<compile_context>
chip_gen: v5e
topology: v5e:2x2
jax: 0.10.0
libtpu: 0.0.40
codegen_flags: <defaults>
</compile_context>

<pallas_src>
import functools

import jax
import jax.numpy as jnp
from jax.experimental import pallas as pl
from jax.experimental.pallas import tpu as pltpu

EPS = 1e-5  # PyTorch BatchNorm2d default


def _round_up(x, m):
    return ((x + m - 1) // m) * m


# ---------------------------------------------------------------------------
# Generic fused kernel: Y = act(X @ W + shift)
#   X, W in bf16 (native MXU rate, half the HBM traffic), f32 accumulation,
#   BN scale pre-folded into W so the epilogue is a single f32 add.
# ---------------------------------------------------------------------------
def _mm_shift_act_kernel(x_ref, w_ref, shift_ref, o_ref, *, act):
    y = jnp.dot(x_ref[...], w_ref[...], preferred_element_type=jnp.float32)
    y = y + shift_ref[...]                      # folded bias / BN shift
    if act == "relu":
        y = jnp.maximum(y, 0.0)
    elif act == "sigmoid":
        # exp on the EUP + approximate reciprocal -> no VALU divide.
        y = pl.reciprocal(1.0 + jnp.exp(-y), approx=True)
    o_ref[...] = y.astype(o_ref.dtype)


def _pick_row_tile(r, rb_max=1024):
    """Multiple-of-16 row tile minimizing padding (16 keeps bf16 blocks legal)."""
    best = None
    for t in range(1, 1024):
        rb = _round_up(-(-r // t), 16)
        if rb > rb_max:
            continue
        padded = _round_up(r, rb)
        if best is None or padded < best[0]:
            best = (padded, rb)
    return best[1] if best is not None else max(16, (rb_max // 16) * 16)


def _pick_col_tile(co, cb_max=2048):
    """Largest multiple-of-128 tile (<= cb_max) that divides the padded width."""
    cp = _round_up(co, 128)
    best, d = 128, 128
    while d <= min(cp, cb_max):
        if cp % d == 0:
            best = d
        d += 128
    return best


def fused_matmul(x, w, shift, act, out_dtype=jnp.bfloat16,
                 rb_max=1024, cb_max=2048):
    """act(x @ w + shift).  x:(R,K) bf16, w:(K,Co) bf16, shift:(1,Co) f32."""
    r, kc = x.shape
    co = w.shape[1]

    rb = _pick_row_tile(r, rb_max)          # exact-fit / minimal-padding rows
    rp = _round_up(r, rb)
    cb = _pick_col_tile(co, cb_max)         # lane-dense, exact divisor columns
    cp = _round_up(co, cb)

    if rp != r:
        x = jnp.pad(x, ((0, rp - r), (0, 0)))
    if cp != co:
        w = jnp.pad(w, ((0, 0), (0, cp - co)))
        shift = jnp.pad(shift, ((0, 0), (0, cp - co)))

    grid = (rp // rb, cp // cb)             # K untiled -> no reduction axis
    out = pl.pallas_call(
        functools.partial(_mm_shift_act_kernel, act=act),
        out_shape=jax.ShapeDtypeStruct((rp, cp), out_dtype),
        grid=grid,
        in_specs=[
            pl.BlockSpec((rb, kc), lambda i, j: (i, 0)),   # patches / activations
            pl.BlockSpec((kc, cb), lambda i, j: (0, j)),   # weights (BN folded)
            pl.BlockSpec((1, cb), lambda i, j: (0, j)),    # bias / BN shift
        ],
        out_specs=pl.BlockSpec((rb, cb), lambda i, j: (i, j)),
        compiler_params=pltpu.CompilerParams(
            dimension_semantics=("parallel", "parallel"),
            vmem_limit_bytes=32 * 1024 * 1024),            # safe on v7x 64 MiB
    )(x, w, shift)
    if rp != r or cp != co:
        # padded rows/cols hold act(shift) garbage -> slice off, never consumed
        out = out[:r, :co]
    return out


# ---------------------------------------------------------------------------
# One-time parameter preparation (outside the jitted forward): fold inference
# BN + bias into the matmul weights / one shift vector, build the phase-
# decomposed stride-2 weights, cast MXU operands to bf16.
# ---------------------------------------------------------------------------
def _fold_bn(bias, bn):
    if bn is None:
        return jnp.ones_like(bias), bias
    gamma, beta, mean, var = bn
    s = gamma / jnp.sqrt(var + EPS)
    return s, beta + (bias - mean) * s


def _prep_linear(w, b):
    return w.astype(jnp.bfloat16), b.reshape(1, -1).astype(jnp.float32)


def _prep_convt_s1(wt, bias, bn):
    """ConvT(k=3, s=1, p=0) == conv(flipped kernel, full padding).
    Returns the (K*K*Cin, Cout) im2col weight (BN scale folded) + shift."""
    cin, cout, k, _ = wt.shape
    s, shift = _fold_bn(bias, bn)
    wt = wt * s.reshape(1, cout, 1, 1)
    wf = jnp.transpose(wt[:, :, ::-1, ::-1], (2, 3, 0, 1)).reshape(k * k * cin, cout)
    return wf.astype(jnp.bfloat16), shift.reshape(1, cout).astype(jnp.float32)


def _prep_convt_s2(wt, bias, bn):
    """Sub-pixel phase decomposition of ConvT(k=4, s=2, p=0):
         out[2a+da, 2b+db, co] = sum_{r,s,ci} xpad1[a+r, b+s, ci]
                                              * W[ci, co, 2*(1-r)+da, 2*(1-s)+db]
    -> ONE 2x2-window im2col shared by all 4 phases and a (4*Cin, 4*Cout)
    matmul whose columns are ordered (da, db, co)."""
    cin, cout, k, _ = wt.shape
    assert k == 4
    s, shift = _fold_bn(bias, bn)
    wt = wt * s.reshape(1, cout, 1, 1)
    w6 = wt.reshape(cin, cout, 2, 2, 2, 2)      # (ci, co, kh_hi, da, kw_hi, db)
    w6 = w6[:, :, ::-1, :, ::-1, :]             # kh_hi -> r, kw_hi -> s
    wm = jnp.transpose(w6, (2, 4, 0, 3, 5, 1)).reshape(4 * cin, 4 * cout)
    shift4 = jnp.tile(shift, 4).reshape(1, 4 * cout)
    return wm.astype(jnp.bfloat16), shift4.astype(jnp.float32)


def prepare_params(p):
    q = {}
    q["fc1_w"], q["fc1_s"] = _prep_linear(p["fc1_w"], p["fc1_b"])
    q["fc2_w"], q["fc2_s"] = _prep_linear(p["fc2_w"], p["fc2_b"])
    q["ct1_w"], q["ct1_s"] = _prep_convt_s1(p["ct1_w"], p["ct1_b"], p["bn1"])
    q["ct2_w"], q["ct2_s"] = _prep_convt_s2(p["ct2_w"], p["ct2_b"], p["bn2"])
    q["ct3_w"], q["ct3_s"] = _prep_convt_s2(p["ct3_w"], p["ct3_b"], p["bn3"])
    q["ct4_w"], q["ct4_s"] = _prep_convt_s2(p["ct4_w"], p["ct4_b"], None)
    return q


# ---------------------------------------------------------------------------
# Layer wrappers (bf16 patch construction = cheap XLA glue on tiny tensors)
# ---------------------------------------------------------------------------
def convt_s1_block(x_nhwc, wm, shift, act):
    """Stride-1 ConvT via flipped-kernel 'full' conv (bf16 im2col, ~0.75 MB)."""
    n, h, w, cin = x_nhwc.shape
    cout = wm.shape[1]
    k = 3
    ho, wo = h + k - 1, w + k - 1
    xp = jnp.pad(x_nhwc, ((0, 0), (k - 1, k - 1), (k - 1, k - 1), (0, 0)))
    cols = [xp[:, kh:kh + ho, kw:kw + wo, :] for kh in range(k) for kw in range(k)]
    patches = jnp.concatenate(cols, axis=-1).reshape(n * ho * wo, k * k * cin)
    y = fused_matmul(patches, wm, shift, act)
    return y.reshape(n, ho, wo, cout)


def convt_s2_block(x_nhwc, wm, shift, act, crop=0, out_dtype=jnp.bfloat16):
    """Stride-2 ConvT via sub-pixel phase matmul + depth-to-space + crop."""
    n, h, w, cin = x_nhwc.shape
    cout = wm.shape[1] // 4
    a, b = h + 1, w + 1                      # super-pixel grid of the pad-0 output
    xp = jnp.pad(x_nhwc, ((0, 0), (1, 1), (1, 1), (0, 0)))
    cols = [xp[:, r:r + a, s:s + b, :] for r in range(2) for s in range(2)]
    patches = jnp.concatenate(cols, axis=-1).reshape(n * a * b, 4 * cin)
    y = fused_matmul(patches, wm, shift, act, out_dtype=out_dtype)
    # depth-to-space: (n, a, b, da, db, co) -> (n, 2a, 2b, co)
    y = y.reshape(n, a, b, 2, 2, cout).transpose(0, 1, 3, 2, 4, 5)
    y = y.reshape(n, 2 * a, 2 * b, cout)
    if crop:
        y = y[:, crop:-crop, crop:-crop, :]  # ConvTranspose2d `padding` crop
    return y


def conv_decoder_anai_forward(z, q):
    """Pallas implementation of ConvDecoderAnAI.forward (returns NCHW f32)."""
    n = z.shape[0]
    x = fused_matmul(z.astype(jnp.bfloat16), q["fc1_w"], q["fc1_s"], "relu")   # (N,512)
    x = fused_matmul(x, q["fc2_w"], q["fc2_s"], "relu")                        # (N,12544)
    h = x.reshape(n, 256, 7, 7).transpose(0, 2, 3, 1)                          # NHWC (N,7,7,256)
    h = convt_s1_block(h, q["ct1_w"], q["ct1_s"], "relu")                      # (N,9,9,128)
    h = convt_s2_block(h, q["ct2_w"], q["ct2_s"], "relu")                      # (N,20,20,64)
    h = convt_s2_block(h, q["ct3_w"], q["ct3_s"], "relu")                      # (N,42,42,32)
    h = convt_s2_block(h, q["ct4_w"], q["ct4_s"], "sigmoid", crop=1,
                       out_dtype=jnp.float32)                                  # (N,84,84,3)
    return h.transpose(0, 3, 1, 2)                                             # (N,3,84,84)


# ---------------------------------------------------------------------------
# Pure-JAX f32 reference (mirrors PyTorch semantics, NCHW, inference-mode BN)
# ---------------------------------------------------------------------------
def _ref_conv_transpose(x, wt, bias, stride, padding):
    n, cin, h, w = x.shape
    cout, k = wt.shape[1], wt.shape[2]
    hf = (h - 1) * stride + k
    wf = (w - 1) * stride + k
    out = jnp.zeros((n, cout, hf, wf), jnp.float32)
    for kh in range(k):
        for kw in range(k):
            contrib = jnp.einsum("nchw,cd->ndhw", x, wt[:, :, kh, kw])
            out = out.at[:, :, kh:kh + stride * (h - 1) + 1:stride,
                         kw:kw + stride * (w - 1) + 1:stride].add(contrib)
    out = out[:, :, padding:hf - padding, padding:wf - padding]
    return out + bias.reshape(1, cout, 1, 1)


def _ref_batchnorm(x, bn):
    gamma, beta, mean, var = bn
    c = x.shape[1]
    xn = (x - mean.reshape(1, c, 1, 1)) / jnp.sqrt(var.reshape(1, c, 1, 1) + EPS)
    return xn * gamma.reshape(1, c, 1, 1) + beta.reshape(1, c, 1, 1)


def _ref_forward(z, p):
    n = z.shape[0]
    x = jax.nn.relu(z @ p["fc1_w"] + p["fc1_b"])
    x = jax.nn.relu(x @ p["fc2_w"] + p["fc2_b"])
    h = x.reshape(n, 256, 7, 7)
    h = jax.nn.relu(_ref_batchnorm(_ref_conv_transpose(h, p["ct1_w"], p["ct1_b"], 1, 0), p["bn1"]))
    h = jax.nn.relu(_ref_batchnorm(_ref_conv_transpose(h, p["ct2_w"], p["ct2_b"], 2, 0), p["bn2"]))
    h = jax.nn.relu(_ref_batchnorm(_ref_conv_transpose(h, p["ct3_w"], p["ct3_b"], 2, 0), p["bn3"]))
    h = jax.nn.sigmoid(_ref_conv_transpose(h, p["ct4_w"], p["ct4_b"], 2, 1))
    return h


# ---------------------------------------------------------------------------
# Deterministic parameter construction
# ---------------------------------------------------------------------------
def make_params(key, z_dim):
    ks = jax.random.split(key, 16)

    def nrm(k, shape, s):
        return s * jax.random.normal(k, shape, jnp.float32)

    def bn(k, c):
        k1, k2, k3, k4 = jax.random.split(k, 4)
        gamma = 1.0 + 0.1 * jax.random.normal(k1, (c,), jnp.float32)
        beta = 0.1 * jax.random.normal(k2, (c,), jnp.float32)
        mean = 0.1 * jax.random.normal(k3, (c,), jnp.float32)
        var = 0.5 + jax.random.uniform(k4, (c,), jnp.float32)
        return (gamma, beta, mean, var)

    p = {
        "fc1_w": nrm(ks[0], (z_dim, 512), 0.05),
        "fc1_b": nrm(ks[1], (512,), 0.05),
        "fc2_w": nrm(ks[2], (512, 256 * 7 * 7), 0.02),
        "fc2_b": nrm(ks[3], (256 * 7 * 7,), 0.02),
        # ConvTranspose2d weights in PyTorch layout (Cin, Cout, K, K)
        "ct1_w": nrm(ks[4], (256, 128, 3, 3), 0.03),
        "ct1_b": nrm(ks[5], (128,), 0.03),
        "ct2_w": nrm(ks[6], (128, 64, 4, 4), 0.03),
        "ct2_b": nrm(ks[7], (64,), 0.03),
        "ct3_w": nrm(ks[8], (64, 32, 4, 4), 0.05),
        "ct3_b": nrm(ks[9], (32,), 0.05),
        "ct4_w": nrm(ks[10], (32, 3, 4, 4), 0.05),
        "ct4_b": nrm(ks[11], (3,), 0.05),
        "bn1": bn(ks[12], 128),
        "bn2": bn(ks[13], 64),
        "bn3": bn(ks[14], 32),
    }
    return p


if __name__ == "__main__":
    key = jax.random.PRNGKey(0)
    k_z, k_p = jax.random.split(key)

    N, Z_DIM = 2, 32
    z = jax.random.normal(k_z, (N, Z_DIM), jnp.float32)
    params = make_params(k_p, Z_DIM)
    prepped = prepare_params(params)          # one-time weight folding / bf16 cast

    fwd = jax.jit(conv_decoder_anai_forward)
    out = fwd(z, prepped)
    jax.block_until_ready(out)

    ref = _ref_forward(z, params)
    assert out.shape == (N, 3, 84, 84), out.shape
    err = float(jnp.max(jnp.abs(out - ref)))
    # bf16 MXU operands + bf16 hidden activations (f32 accumulate / epilogue):
    # tolerance loosened vs. the all-f32 variant accordingly.
    assert err < 8e-2, f"max abs error {err}"

    print("KERNEL_OK")
</pallas_src>

<mosaic_0001>
module attributes {stable_mosaic.version = 11 : i64} {
  func.func @_mm_shift_act_kernel(%arg0: i32, %arg1: i32, %arg2: memref<16x32xbf16, #tpu.memory_space<vmem>>, %arg3: memref<32x512xbf16, #tpu.memory_space<vmem>>, %arg4: memref<1x512xf32, #tpu.memory_space<vmem>>, %arg5: memref<16x512xbf16, #tpu.memory_space<vmem>>) attributes {dimension_semantics = [#tpu.dimension_semantics<parallel>, #tpu.dimension_semantics<parallel>], iteration_bounds = array<i64: 1, 1>, scalar_prefetch = 0 : i64, scratch_operands = 0 : i64, tpu.core_type = #tpu.core_type<tc>, window_params = [{transform_indices = @transform_0, window_bounds = array<i64: 16, 32>}, {transform_indices = @transform_1, window_bounds = array<i64: 32, 512>}, {transform_indices = @transform_2, window_bounds = array<i64: 1, 512>}, {transform_indices = @transform_3, window_bounds = array<i64: 16, 512>}]} {
    %c0 = arith.constant 0 : index
    %c0_0 = arith.constant 0 : index
    %0 = vector.load %arg2[%c0, %c0_0] : memref<16x32xbf16, #tpu.memory_space<vmem>>, vector<16x32xbf16>
    %c0_1 = arith.constant 0 : index
    %c0_2 = arith.constant 0 : index
    %1 = vector.load %arg3[%c0_1, %c0_2] : memref<32x512xbf16, #tpu.memory_space<vmem>>, vector<32x512xbf16>
    %cst = arith.constant dense<0.000000e+00> : vector<16x512xf32>
    %2 = tpu.matmul %0, %1, %cst {dimension_numbers = #tpu.dot_dimension_numbers<[1], [0], [0], [1], [0, 0, 1, 1], [], []>} : vector<16x32xbf16>, vector<32x512xbf16>, vector<16x512xf32> -> vector<16x512xf32>
    %c0_3 = arith.constant 0 : index
    %c0_4 = arith.constant 0 : index
    %3 = vector.load %arg4[%c0_3, %c0_4] : memref<1x512xf32, #tpu.memory_space<vmem>>, vector<1x512xf32>
    %4 = vector.broadcast %3 : vector<1x512xf32> to vector<16x512xf32>
    %5 = arith.addf %2, %4 : vector<16x512xf32>
    %cst_5 = arith.constant 0.000000e+00 : f32
    %6 = vector.broadcast %cst_5 : f32 to vector<16x512xf32>
    %7 = arith.maximumf %5, %6 : vector<16x512xf32>
    %8 = arith.truncf %7 : vector<16x512xf32> to vector<16x512xbf16>
    %c0_6 = arith.constant 0 : index
    %c0_7 = arith.constant 0 : index
    %9 = vector.load %arg5[%c0_6, %c0_7] : memref<16x512xbf16, #tpu.memory_space<vmem>>, vector<16x512xbf16>
    tpu.vector_store %arg5[%c0_6, %c0_7], %8 {strides = array<i32>} : memref<16x512xbf16, #tpu.memory_space<vmem>>, vector<16x512xbf16>,
    return
  }
  func.func @transform_0(%arg0: i32, %arg1: i32) -> (i32, i32) {
    %c0_i32 = arith.constant 0 : i32
    %c0_i32_0 = arith.constant 0 : i32
    return %arg0, %c0_i32 : i32, i32
  }
  func.func @transform_1(%arg0: i32, %arg1: i32) -> (i32, i32) {
    %c0_i32 = arith.constant 0 : i32
    %c0_i32_0 = arith.constant 0 : i32
    return %c0_i32, %arg1 : i32, i32
  }
  func.func @transform_2(%arg0: i32, %arg1: i32) -> (i32, i32) {
    %c0_i32 = arith.constant 0 : i32
    %c0_i32_0 = arith.constant 0 : i32
    return %c0_i32, %arg1 : i32, i32
  }
  func.func @transform_3(%arg0: i32, %arg1: i32) -> (i32, i32) {
    %c0_i32 = arith.constant 0 : i32
    return %arg0, %arg1 : i32, i32
  }
}

module attributes {stable_mosaic.version = 11 : i64} {
  func.func @_mm_shift_act_kernel(%arg0: i32, %arg1: i32, %arg2: memref<16x512xbf16, #tpu.memory_space<vmem>>, %arg3: memref<512x1792xbf16, #tpu.memory_space<vmem>>, %arg4: memref<1x1792xf32, #tpu.memory_space<vmem>>, %arg5: memref<16x1792xbf16, #tpu.memory_space<vmem>>) attributes {dimension_semantics = [#tpu.dimension_semantics<parallel>, #tpu.dimension_semantics<parallel>], iteration_bounds = array<i64: 1, 7>, scalar_prefetch = 0 : i64, scratch_operands = 0 : i64, tpu.core_type = #tpu.core_type<tc>, window_params = [{transform_indices = @transform_0, window_bounds = array<i64: 16, 512>}, {transform_indices = @transform_1, window_bounds = array<i64: 512, 1792>}, {transform_indices = @transform_2, window_bounds = array<i64: 1, 1792>}, {transform_indices = @transform_3, window_bounds = array<i64: 16, 1792>}]} {
    %c0 = arith.constant 0 : index
    %c0_0 = arith.constant 0 : index
    %0 = vector.load %arg2[%c0, %c0_0] : memref<16x512xbf16, #tpu.memory_space<vmem>>, vector<16x512xbf16>
    %c0_1 = arith.constant 0 : index
    %c0_2 = arith.constant 0 : index
    %1 = vector.load %arg3[%c0_1, %c0_2] : memref<512x1792xbf16, #tpu.memory_space<vmem>>, vector<512x1792xbf16>
    %cst = arith.constant dense<0.000000e+00> : vector<16x1792xf32>
    %2 = tpu.matmul %0, %1, %cst {dimension_numbers = #tpu.dot_dimension_numbers<[1], [0], [0], [1], [0, 0, 1, 1], [], []>} : vector<16x512xbf16>, vector<512x1792xbf16>, vector<16x1792xf32> -> vector<16x1792xf32>
    %c0_3 = arith.constant 0 : index
    %c0_4 = arith.constant 0 : index
    %3 = vector.load %arg4[%c0_3, %c0_4] : memref<1x1792xf32, #tpu.memory_space<vmem>>, vector<1x1792xf32>
    %4 = vector.broadcast %3 : vector<1x1792xf32> to vector<16x1792xf32>
    %5 = arith.addf %2, %4 : vector<16x1792xf32>
    %cst_5 = arith.constant 0.000000e+00 : f32
    %6 = vector.broadcast %cst_5 : f32 to vector<16x1792xf32>
    %7 = arith.maximumf %5, %6 : vector<16x1792xf32>
    %8 = arith.truncf %7 : vector<16x1792xf32> to vector<16x1792xbf16>
    %c0_6 = arith.constant 0 : index
    %c0_7 = arith.constant 0 : index
    %9 = vector.load %arg5[%c0_6, %c0_7] : memref<16x1792xbf16, #tpu.memory_space<vmem>>, vector<16x1792xbf16>
    tpu.vector_store %arg5[%c0_6, %c0_7], %8 {strides = array<i32>} : memref<16x1792xbf16, #tpu.memory_space<vmem>>, vector<16x1792xbf16>,
    return
  }
  func.func @transform_0(%arg0: i32, %arg1: i32) -> (i32, i32) {
    %c0_i32 = arith.constant 0 : i32
    %c0_i32_0 = arith.constant 0 : i32
    return %arg0, %c0_i32 : i32, i32
  }
  func.func @transform_1(%arg0: i32, %arg1: i32) -> (i32, i32) {
    %c0_i32 = arith.constant 0 : i32
    %c0_i32_0 = arith.constant 0 : i32
    return %c0_i32, %arg1 : i32, i32
  }
  func.func @transform_2(%arg0: i32, %arg1: i32) -> (i32, i32) {
    %c0_i32 = arith.constant 0 : i32
    %c0_i32_0 = arith.constant 0 : i32
    return %c0_i32, %arg1 : i32, i32
  }
  func.func @transform_3(%arg0: i32, %arg1: i32) -> (i32, i32) {
    %c0_i32 = arith.constant 0 : i32
    return %arg0, %arg1 : i32, i32
  }
}

module attributes {stable_mosaic.version = 11 : i64} {
  func.func @_mm_shift_act_kernel(%arg0: i32, %arg1: i32, %arg2: memref<176x2304xbf16, #tpu.memory_space<vmem>>, %arg3: memref<2304x128xbf16, #tpu.memory_space<vmem>>, %arg4: memref<1x128xf32, #tpu.memory_space<vmem>>, %arg5: memref<176x128xbf16, #tpu.memory_space<vmem>>) attributes {dimension_semantics = [#tpu.dimension_semantics<parallel>, #tpu.dimension_semantics<parallel>], iteration_bounds = array<i64: 1, 1>, scalar_prefetch = 0 : i64, scratch_operands = 0 : i64, tpu.core_type = #tpu.core_type<tc>, window_params = [{transform_indices = @transform_0, window_bounds = array<i64: 176, 2304>}, {transform_indices = @transform_1, window_bounds = array<i64: 2304, 128>}, {transform_indices = @transform_2, window_bounds = array<i64: 1, 128>}, {transform_indices = @transform_3, window_bounds = array<i64: 176, 128>}]} {
    %c0 = arith.constant 0 : index
    %c0_0 = arith.constant 0 : index
    %0 = vector.load %arg2[%c0, %c0_0] : memref<176x2304xbf16, #tpu.memory_space<vmem>>, vector<176x2304xbf16>
    %c0_1 = arith.constant 0 : index
    %c0_2 = arith.constant 0 : index
    %1 = vector.load %arg3[%c0_1, %c0_2] : memref<2304x128xbf16, #tpu.memory_space<vmem>>, vector<2304x128xbf16>
    %cst = arith.constant dense<0.000000e+00> : vector<176x128xf32>
    %2 = tpu.matmul %0, %1, %cst {dimension_numbers = #tpu.dot_dimension_numbers<[1], [0], [0], [1], [0, 0, 1, 1], [], []>} : vector<176x2304xbf16>, vector<2304x128xbf16>, vector<176x128xf32> -> vector<176x128xf32>
    %c0_3 = arith.constant 0 : index
    %c0_4 = arith.constant 0 : index
    %3 = vector.load %arg4[%c0_3, %c0_4] : memref<1x128xf32, #tpu.memory_space<vmem>>, vector<1x128xf32>
    %4 = vector.broadcast %3 : vector<1x128xf32> to vector<176x128xf32>
    %5 = arith.addf %2, %4 : vector<176x128xf32>
    %cst_5 = arith.constant 0.000000e+00 : f32
    %6 = vector.broadcast %cst_5 : f32 to vector<176x128xf32>
    %7 = arith.maximumf %5, %6 : vector<176x128xf32>
    %8 = arith.truncf %7 : vector<176x128xf32> to vector<176x128xbf16>
    %c0_6 = arith.constant 0 : index
    %c0_7 = arith.constant 0 : index
    %9 = vector.load %arg5[%c0_6, %c0_7] : memref<176x128xbf16, #tpu.memory_space<vmem>>, vector<176x128xbf16>
    tpu.vector_store %arg5[%c0_6, %c0_7], %8 {strides = array<i32>} : memref<176x128xbf16, #tpu.memory_space<vmem>>, vector<176x128xbf16>,
    return
  }
  func.func @transform_0(%arg0: i32, %arg1: i32) -> (i32, i32) {
    %c0_i32 = arith.constant 0 : i32
    %c0_i32_0 = arith.constant 0 : i32
    return %arg0, %c0_i32 : i32, i32
  }
  func.func @transform_1(%arg0: i32, %arg1: i32) -> (i32, i32) {
    %c0_i32 = arith.constant 0 : i32
    %c0_i32_0 = arith.constant 0 : i32
    return %c0_i32, %arg1 : i32, i32
  }
  func.func @transform_2(%arg0: i32, %arg1: i32) -> (i32, i32) {
    %c0_i32 = arith.constant 0 : i32
    %c0_i32_0 = arith.constant 0 : i32
    return %c0_i32, %arg1 : i32, i32
  }
  func.func @transform_3(%arg0: i32, %arg1: i32) -> (i32, i32) {
    %c0_i32 = arith.constant 0 : i32
    return %arg0, %arg1 : i32, i32
  }
}

module attributes {stable_mosaic.version = 11 : i64} {
  func.func @_mm_shift_act_kernel(%arg0: i32, %arg1: i32, %arg2: memref<208x512xbf16, #tpu.memory_space<vmem>>, %arg3: memref<512x256xbf16, #tpu.memory_space<vmem>>, %arg4: memref<1x256xf32, #tpu.memory_space<vmem>>, %arg5: memref<208x256xbf16, #tpu.memory_space<vmem>>) attributes {dimension_semantics = [#tpu.dimension_semantics<parallel>, #tpu.dimension_semantics<parallel>], iteration_bounds = array<i64: 1, 1>, scalar_prefetch = 0 : i64, scratch_operands = 0 : i64, tpu.core_type = #tpu.core_type<tc>, window_params = [{transform_indices = @transform_0, window_bounds = array<i64: 208, 512>}, {transform_indices = @transform_1, window_bounds = array<i64: 512, 256>}, {transform_indices = @transform_2, window_bounds = array<i64: 1, 256>}, {transform_indices = @transform_3, window_bounds = array<i64: 208, 256>}]} {
    %c0 = arith.constant 0 : index
    %c0_0 = arith.constant 0 : index
    %0 = vector.load %arg2[%c0, %c0_0] : memref<208x512xbf16, #tpu.memory_space<vmem>>, vector<208x512xbf16>
    %c0_1 = arith.constant 0 : index
    %c0_2 = arith.constant 0 : index
    %1 = vector.load %arg3[%c0_1, %c0_2] : memref<512x256xbf16, #tpu.memory_space<vmem>>, vector<512x256xbf16>
    %cst = arith.constant dense<0.000000e+00> : vector<208x256xf32>
    %2 = tpu.matmul %0, %1, %cst {dimension_numbers = #tpu.dot_dimension_numbers<[1], [0], [0], [1], [0, 0, 1, 1], [], []>} : vector<208x512xbf16>, vector<512x256xbf16>, vector<208x256xf32> -> vector<208x256xf32>
    %c0_3 = arith.constant 0 : index
    %c0_4 = arith.constant 0 : index
    %3 = vector.load %arg4[%c0_3, %c0_4] : memref<1x256xf32, #tpu.memory_space<vmem>>, vector<1x256xf32>
    %4 = vector.broadcast %3 : vector<1x256xf32> to vector<208x256xf32>
    %5 = arith.addf %2, %4 : vector<208x256xf32>
    %cst_5 = arith.constant 0.000000e+00 : f32
    %6 = vector.broadcast %cst_5 : f32 to vector<208x256xf32>
    %7 = arith.maximumf %5, %6 : vector<208x256xf32>
    %8 = arith.truncf %7 : vector<208x256xf32> to vector<208x256xbf16>
    %c0_6 = arith.constant 0 : index
    %c0_7 = arith.constant 0 : index
    %9 = vector.load %arg5[%c0_6, %c0_7] : memref<208x256xbf16, #tpu.memory_space<vmem>>, vector<208x256xbf16>
    tpu.vector_store %arg5[%c0_6, %c0_7], %8 {strides = array<i32>} : memref<208x256xbf16, #tpu.memory_space<vmem>>, vector<208x256xbf16>,
    return
  }
  func.func @transform_0(%arg0: i32, %arg1: i32) -> (i32, i32) {
    %c0_i32 = arith.constant 0 : i32
    %c0_i32_0 = arith.constant 0 : i32
    return %arg0, %c0_i32 : i32, i32
  }
  func.func @transform_1(%arg0: i32, %arg1: i32) -> (i32, i32) {
    %c0_i32 = arith.constant 0 : i32
    %c0_i32_0 = arith.constant 0 : i32
    return %c0_i32, %arg1 : i32, i32
  }
  func.func @transform_2(%arg0: i32, %arg1: i32) -> (i32, i32) {
    %c0_i32 = arith.constant 0 : i32
    %c0_i32_0 = arith.constant 0 : i32
    return %c0_i32, %arg1 : i32, i32
  }
  func.func @transform_3(%arg0: i32, %arg1: i32) -> (i32, i32) {
    %c0_i32 = arith.constant 0 : i32
    return %arg0, %arg1 : i32, i32
  }
}

module attributes {stable_mosaic.version = 11 : i64} {
  func.func @_mm_shift_act_kernel(%arg0: i32, %arg1: i32, %arg2: memref<896x256xbf16, #tpu.memory_space<vmem>>, %arg3: memref<256x128xbf16, #tpu.memory_space<vmem>>, %arg4: memref<1x128xf32, #tpu.memory_space<vmem>>, %arg5: memref<896x128xbf16, #tpu.memory_space<vmem>>) attributes {dimension_semantics = [#tpu.dimension_semantics<parallel>, #tpu.dimension_semantics<parallel>], iteration_bounds = array<i64: 1, 1>, scalar_prefetch = 0 : i64, scratch_operands = 0 : i64, tpu.core_type = #tpu.core_type<tc>, window_params = [{transform_indices = @transform_0, window_bounds = array<i64: 896, 256>}, {transform_indices = @transform_1, window_bounds = array<i64: 256, 128>}, {transform_indices = @transform_2, window_bounds = array<i64: 1, 128>}, {transform_indices = @transform_3, window_bounds = array<i64: 896, 128>}]} {
    %c0 = arith.constant 0 : index
    %c0_0 = arith.constant 0 : index
    %0 = vector.load %arg2[%c0, %c0_0] : memref<896x256xbf16, #tpu.memory_space<vmem>>, vector<896x256xbf16>
    %c0_1 = arith.constant 0 : index
    %c0_2 = arith.constant 0 : index
    %1 = vector.load %arg3[%c0_1, %c0_2] : memref<256x128xbf16, #tpu.memory_space<vmem>>, vector<256x128xbf16>
    %cst = arith.constant dense<0.000000e+00> : vector<896x128xf32>
    %2 = tpu.matmul %0, %1, %cst {dimension_numbers = #tpu.dot_dimension_numbers<[1], [0], [0], [1], [0, 0, 1, 1], [], []>} : vector<896x256xbf16>, vector<256x128xbf16>, vector<896x128xf32> -> vector<896x128xf32>
    %c0_3 = arith.constant 0 : index
    %c0_4 = arith.constant 0 : index
    %3 = vector.load %arg4[%c0_3, %c0_4] : memref<1x128xf32, #tpu.memory_space<vmem>>, vector<1x128xf32>
    %4 = vector.broadcast %3 : vector<1x128xf32> to vector<896x128xf32>
    %5 = arith.addf %2, %4 : vector<896x128xf32>
    %cst_5 = arith.constant 0.000000e+00 : f32
    %6 = vector.broadcast %cst_5 : f32 to vector<896x128xf32>
    %7 = arith.maximumf %5, %6 : vector<896x128xf32>
    %8 = arith.truncf %7 : vector<896x128xf32> to vector<896x128xbf16>
    %c0_6 = arith.constant 0 : index
    %c0_7 = arith.constant 0 : index
    %9 = vector.load %arg5[%c0_6, %c0_7] : memref<896x128xbf16, #tpu.memory_space<vmem>>, vector<896x128xbf16>
    tpu.vector_store %arg5[%c0_6, %c0_7], %8 {strides = array<i32>} : memref<896x128xbf16, #tpu.memory_space<vmem>>, vector<896x128xbf16>,
    return
  }
  func.func @transform_0(%arg0: i32, %arg1: i32) -> (i32, i32) {
    %c0_i32 = arith.constant 0 : i32
    %c0_i32_0 = arith.constant 0 : i32
    return %arg0, %c0_i32 : i32, i32
  }
  func.func @transform_1(%arg0: i32, %arg1: i32) -> (i32, i32) {
    %c0_i32 = arith.constant 0 : i32
    %c0_i32_0 = arith.constant 0 : i32
    return %c0_i32, %arg1 : i32, i32
  }
  func.func @transform_2(%arg0: i32, %arg1: i32) -> (i32, i32) {
    %c0_i32 = arith.constant 0 : i32
    %c0_i32_0 = arith.constant 0 : i32
    return %c0_i32, %arg1 : i32, i32
  }
  func.func @transform_3(%arg0: i32, %arg1: i32) -> (i32, i32) {
    %c0_i32 = arith.constant 0 : i32
    return %arg0, %arg1 : i32, i32
  }
}

module attributes {stable_mosaic.version = 11 : i64} {
  func.func @_mm_shift_act_kernel(%arg0: i32, %arg1: i32, %arg2: memref<928x128xbf16, #tpu.memory_space<vmem>>, %arg3: memref<128x128xbf16, #tpu.memory_space<vmem>>, %arg4: memref<1x128xf32, #tpu.memory_space<vmem>>, %arg5: memref<928x128xf32, #tpu.memory_space<vmem>>) attributes {dimension_semantics = [#tpu.dimension_semantics<parallel>, #tpu.dimension_semantics<parallel>], iteration_bounds = array<i64: 4, 1>, scalar_prefetch = 0 : i64, scratch_operands = 0 : i64, tpu.core_type = #tpu.core_type<tc>, window_params = [{transform_indices = @transform_0, window_bounds = array<i64: 928, 128>}, {transform_indices = @transform_1, window_bounds = array<i64: 128, 128>}, {transform_indices = @transform_2, window_bounds = array<i64: 1, 128>}, {transform_indices = @transform_3, window_bounds = array<i64: 928, 128>}]} {
    %c0 = arith.constant 0 : index
    %c0_0 = arith.constant 0 : index
    %0 = vector.load %arg2[%c0, %c0_0] : memref<928x128xbf16, #tpu.memory_space<vmem>>, vector<928x128xbf16>
    %c0_1 = arith.constant 0 : index
    %c0_2 = arith.constant 0 : index
    %1 = vector.load %arg3[%c0_1, %c0_2] : memref<128x128xbf16, #tpu.memory_space<vmem>>, vector<128x128xbf16>
    %cst = arith.constant dense<0.000000e+00> : vector<928x128xf32>
    %2 = tpu.matmul %0, %1, %cst {dimension_numbers = #tpu.dot_dimension_numbers<[1], [0], [0], [1], [0, 0, 1, 1], [], []>} : vector<928x128xbf16>, vector<128x128xbf16>, vector<928x128xf32> -> vector<928x128xf32>
    %c0_3 = arith.constant 0 : index
    %c0_4 = arith.constant 0 : index
    %3 = vector.load %arg4[%c0_3, %c0_4] : memref<1x128xf32, #tpu.memory_space<vmem>>, vector<1x128xf32>
    %4 = vector.broadcast %3 : vector<1x128xf32> to vector<928x128xf32>
    %5 = arith.addf %2, %4 : vector<928x128xf32>
    %cst_5 = arith.constant 0.000000e+00 : f32
    %6 = vector.broadcast %cst_5 : f32 to vector<928x128xf32>
    %7 = arith.subf %6, %5 : vector<928x128xf32>
    %8 = math.exp %7 : vector<928x128xf32>
    %cst_6 = arith.constant 1.000000e+00 : f32
    %9 = vector.broadcast %cst_6 : f32 to vector<928x128xf32>
    %10 = arith.addf %9, %8 : vector<928x128xf32>
    %11 = tpu.reciprocal %10 {approx = true} : vector<928x128xf32> -> vector<928x128xf32>
    %c0_7 = arith.constant 0 : index
    %c0_8 = arith.constant 0 : index
    %12 = vector.load %arg5[%c0_7, %c0_8] : memref<928x128xf32, #tpu.memory_space<vmem>>, vector<928x128xf32>
    tpu.vector_store %arg5[%c0_7, %c0_8], %11 {strides = array<i32>} : memref<928x128xf32, #tpu.memory_space<vmem>>, vector<928x128xf32>,
    return
  }
  func.func @transform_0(%arg0: i32, %arg1: i32) -> (i32, i32) {
    %c0_i32 = arith.constant 0 : i32
    %c0_i32_0 = arith.constant 0 : i32
    return %arg0, %c0_i32 : i32, i32
  }
  func.func @transform_1(%arg0: i32, %arg1: i32) -> (i32, i32) {
    %c0_i32 = arith.constant 0 : i32
    %c0_i32_0 = arith.constant 0 : i32
    return %c0_i32, %arg1 : i32, i32
  }
  func.func @transform_2(%arg0: i32, %arg1: i32) -> (i32, i32) {
    %c0_i32 = arith.constant 0 : i32
    %c0_i32_0 = arith.constant 0 : i32
    return %c0_i32, %arg1 : i32, i32
  }
  func.func @transform_3(%arg0: i32, %arg1: i32) -> (i32, i32) {
    %c0_i32 = arith.constant 0 : i32
    return %arg0, %arg1 : i32, i32
  }
}

</mosaic_0001>

<bundles_post_ra>
// kernel: conv_decoder_anai_forward.6
= control target key start
LH: loop header
LB: loop body
LE: loop exit
PB: predicated region body
PF: predicated region fallthrough
CT: control target
= control target key end

     0   :  { %8 = vsyncpa [#allocation3], 0  ;;  %s342_s0 = inlined_call_operand.vmem [shape: bf16[16,32], index: 0, kind: input, shape index: {}]   ;;  %s343_s1 = inlined_call_operand.hbm [shape: bf16[32,512], index: 1, kind: input, shape index: {}]   ;;  %s344_s2 = inlined_call_operand.hbm [shape: f32[1,512], index: 2, kind: input, shape index: {}]   ;;  %s345_s3 = inlined_call_operand.vmem [shape: bf16[16,512], index: 3, kind: output, shape index: {}]  }
   0x1   :  { %s16_s14 = sshll.u32 %s343_s1, 4  ;;  %s17_s14 = int_to_ptr.hbm [resolvable:$true] %s16_s14 }
   0x2   :  { %9 = vsyncpa [#allocation5], 0  ;;  %s297_s15 = smov [#allocation2]   ;;  %s30_s19 = sshll.u32 %s344_s2, 4  ;;  %s31_s19 = int_to_ptr.hbm [resolvable:$true] %s30_s19 }
   0x3   :  { %s18_s16 = sshll.u32 %s297_s15, 4  ;;  %s298_s20 = smov 256   ;;  %s19_s16 = int_to_ptr.vmem [resolvable:$true] %s18_s16 }
   0x4   :  { %s299_s21 = smov 16   ;;  %s300_s22 = smov [#allocation4]  }
   0x5   :  { %24 = dma.hbm_to_vmem [thread:$0]  %s17_s14, 1024, %s19_s16, [#allocation3], %s298_s20, %s298_s20, %s299_s21  }
   0x6   :  { %s32_s23 = sshll.u32 %s300_s22, 4  ;;  %s33_s23 = int_to_ptr.vmem [resolvable:$true] %s32_s23 }
   0x7   :  { %35 = dma.hbm_to_vmem [thread:$0]  %s31_s19, 64, %s33_s23, [#allocation5]  }
   0x8   :  { %293 = dma.done.wait [#allocation3], 1024  }
   0x9   :  { %294 = vsyncadd [#allocation3], 4294966272 }
   0xa   :  { %295 = dma.done.wait [#allocation5], 64  }
   0xb   :  { %296 = vsyncadd [#allocation5], 4294967232  ;;  %v214_v0 = vld [vmem:[#allocation2 + $0x20] sm:$0xf]  ;;  %v239_v1 = vld [vmem:[#allocation2 + $0x2c] sm:$0xf0] }
   0xc   :  { %v237_v2 = vld [vmem:[#allocation2 + $0x24] sm:$0xf]  ;;  %v215_v3 = vor.u32 %v239_v1, %v214_v0  ;;  %v216_v4 = vld [vmem:[#allocation2 + $0x30] sm:$0xf0]  ;;  %v222_v5 = vld [vmem:[#allocation2 + $0x28] sm:$0xf] }
   0xd   :  { %v240_v6 = vld [vmem:[#allocation2 + $0x34] sm:$0xf0]  ;;  %v219_v7 = vor.u32 %v237_v2, %v216_v4  ;;  %v238_v9 = vld [vmem:[#allocation2 + $0x2c] sm:$0xf]  ;;  %v224_v10 = vld [vmem:[#allocation2 + $0x38] sm:$0xf0] }
   0xe   :  { %v223_v8 = vor.u32 %v240_v6, %v222_v5  ;;  %v198_v11 = vld [vmem:[#allocation2] sm:$0xf]  ;;  %120 = vmatpush.bf16.msra.mxu0 %v215_v3  ;;  %v227_v12 = vor.u32 %v238_v9, %v224_v10  ;;  %v235_v13 = vld [vmem:[#allocation2 + $0xc] sm:$0xf0]  ;;  %v233_v14 = vld [vmem:[#allocation2 + $0x4] sm:$0xf] }
   0xf   :  { %v200_v15 = vld [vmem:[#allocation2 + $0x10] sm:$0xf0]  ;;  %134 = vmatpush.bf16.msra.mxu1 %v219_v7  ;;  %v199_v16 = vor.u32 %v235_v13, %v198_v11  ;;  %v206_v18 = vld [vmem:[#allocation2 + $0x8] sm:$0xf]  ;;  %v236_v19 = vld [vmem:[#allocation2 + $0x14] sm:$0xf0] }
  0x10   :  { %148 = vmatpush.bf16.msra.mxu2 %v223_v8  ;;  %v203_v17 = vor.u32 %v233_v14, %v200_v15  ;;  %v234_v20 = vld [vmem:[#allocation2 + $0xc] sm:$0xf]  ;;  %162 = vmatpush.bf16.msra.mxu3 %v227_v12  ;;  %v207_v21 = vor.u32 %v236_v19, %v206_v18  ;;  %v208_v22 = vld [vmem:[#allocation2 + $0x18] sm:$0xf0]  ;;  %v232_v24 = vld [vmem:[%s342_s0] sm:$0xff]  ;;  %vm110_vm0 = vcmask 261120  }
  0x11   :  { %v211_v23 = vor.u32 %v234_v20, %v208_v22  ;;  %v55_v25 = vld [vmem:[#allocation4] sm:$0xf] }
  0x12   :  { %121 = vmatpush.bf16.msra.mxu0 %v199_v16  ;;  %v57_v26 = vperm.slane %v55_v25, 0  ;;  %v58_v27 = vperm.slane %v55_v25, 1  ;;  %v59_v34 = vperm.slane %v55_v25, 2  ;;  %v60_v35 = vperm.slane %v55_v25, 3 }
  0x13   :  { %135 = vmatpush.bf16.msra.mxu1 %v203_v17 }
  0x14   :  { %149 = vmatpush.bf16.msra.mxu2 %v207_v21  ;;  %163 = vmatpush.bf16.msra.mxu3 %v211_v23 }
  0x15   :  { %228 = vmatmul.msk.bf16.vlgmr.msra.gmra.mxu0 %vm110_vm0, %v232_v24 }
  0x16   :  { %229 = vmatmul.msk.bf16.vlgmr.msra.gmra.mxu1 %vm110_vm0, %v232_v24 }
  0x17   :  { %230 = vmatmul.msk.bf16.vlgmr.msra.gmra.mxu2 %vm110_vm0, %v232_v24  ;;  %231 = vmatmul.msk.bf16.vlgmr.msra.gmra.mxu3 %vm110_vm0, %v232_v24 }
  0x92   :  { %v123_v28 = vpop.f32.mrf.mxu0 }
  0x93   :  { %v124_v29 = vadd.f32 %v123_v28, %v57_v26  ;;  %v137_v30 = vpop.f32.mrf.mxu1 }
  0x94   :  { %v138_v31 = vadd.f32 %v137_v30, %v58_v27 }
  0x95   :  { %v170_v32 = vmax.f32 %v124_v29, 0.0 }
  0x96   :  { %v171_v33 = vmax.f32 %v138_v31, 0.0 }
  0x98   :  { %v178_v36 = vpack.c.bf16 %v171_v33, %v170_v32 }
  0x9a   :  { %v151_v37 = vpop.f32.mrf.mxu2  ;;  %182 = vst [vmem:[%s345_s3] sm:$0xff] %v178_v36  ;;  %v165_v39 = vpop.f32.mrf.mxu3 }
  0x9b   :  { %v152_v38 = vadd.f32 %v151_v37, %v59_v34  ;;  %v125_v40 = vpop.f32.mrf.mxu0  ;;  %v166_v41 = vadd.f32 %v165_v39, %v60_v35  ;;  %v139_v43 = vpop.f32.mrf.mxu1 }
  0x9c   :  { %v126_v42 = vadd.f32 %v125_v40, %v57_v26  ;;  %v140_v45 = vadd.f32 %v139_v43, %v58_v27 }
  0x9d   :  { %v172_v44 = vmax.f32 %v152_v38, 0.0  ;;  %v173_v46 = vmax.f32 %v166_v41, 0.0 }
  0x9e   :  { %v174_v47 = vmax.f32 %v126_v42, 0.0  ;;  %v175_v48 = vmax.f32 %v140_v45, 0.0 }
  0x9f   :  { %v179_v49 = vpack.c.bf16 %v173_v46, %v172_v44 }
  0xa0   :  { %v180_v50 = vpack.c.bf16 %v175_v48, %v174_v47 }
  0xa1   :  { %183 = vst [vmem:[%s345_s3 + $0x8] sm:$0xff] %v179_v49 }
  0xa2   :  { %v153_v51 = vpop.f32.mrf.mxu2  ;;  %184 = vst [vmem:[%s345_s3 + $0x10] sm:$0xff] %v180_v50  ;;  %v167_v53 = vpop.f32.mrf.mxu3 }
  0xa3   :  { %v154_v52 = vadd.f32 %v153_v51, %v59_v34  ;;  %v168_v54 = vadd.f32 %v167_v53, %v60_v35 }
  0xa5   :  { %v176_v55 = vmax.f32 %v154_v52, 0.0  ;;  %v177_v56 = vmax.f32 %v168_v54, 0.0 }
  0xa7   :  { %v181_v57 = vpack.c.bf16 %v177_v56, %v176_v55 }
  0xa9   :  { %185 = vst [vmem:[%s345_s3 + $0x18] sm:$0xff] %v181_v57 }
  0xaa   :  { %190 = vsyncpa [#allocation3], 1 }
  0xab   :  { %191 = vsyncpa [#allocation5], 1 }

// kernel: conv_decoder_anai_forward.7
= control target key start
LH: loop header
LB: loop body
LE: loop exit
PB: predicated region body
PF: predicated region fallthrough
CT: control target
= control target key end

     0   :  { %8 = vsyncpa [#allocation3], 0  ;;  %s7765_s0 = inlined_call_operand.vmem [shape: bf16[16,512], index: 0, kind: input, shape index: {}]   ;;  %s7766_s1 = inlined_call_operand.hbm [shape: bf16[512,12544], index: 1, kind: input, shape index: {}]   ;;  %s7767_s2 = inlined_call_operand.hbm [shape: f32[1,12544], index: 2, kind: input, shape index: {}]   ;;  %s7768_s3 = inlined_call_operand.vmem [shape: bf16[16,12544], index: 3, kind: output, shape index: {}]  }
   0x1   :  { %10 = vsyncpa [#allocation3 + $0x1], 0 }
   0x2   :  { %11 = vsyncpa [#allocation5], 0 }
   0x3   :  { %13 = vsyncpa [#allocation5 + $0x1], 0  ;;  %s6500_s12 = smov 0   ;;  %s6502_s13 = smov 0  }
   0x4   :  { %s6504_s14 = smov 0   ;;  %s6506_s15 = smov 0  }
   0x5   :  { %s6508_s16 = smov 0   ;;  %s6510_s17 = smov 0  }
   0x6 LB: > { %s4020_s18 = sadd.s32 4294967295, %s6475_s17   ;;  %s28_s19 = sadd.s32 1, %s6471_s16  ;;  %s6475_s17 = sphi %s6510_s17, %s19_s17   ;;  %s6471_s16 = sphi %s6508_s16, %s7777_s16   ;;  %s6467_s15 = sphi %s6506_s15, %s7776_s15   ;;  %s6463_s14 = sphi %s6504_s14, %s7775_s14   ;;  %s6459_s13 = sphi %s6502_s13, %s7774_s13   ;;  %s6455_s12 = sphi %s6500_s12, %s7773_s12  }
   0x7   : > { %p29_p0 = scmp.ge.s32.totalorder %s28_s19, 7  ;;  %s64_s20 = sadd.s32 1, %s6463_s14 }
   0x8   : > { %p71_p1 = scmp.ne.s32.totalorder %s6463_s14, %s6459_s13  ;;  %p72_p2 = scmp.eq.s32.totalorder %s6475_s17, 0 }
   0x9   : > { %s7779_s19 = smov (%p29_p0, %s28_s19), 0  ;;  %p77_p4 = scmp.ne.s32.totalorder %s6459_s13, %s6455_s12 }
   0xa   : > { %p6536_p3 = por %p72_p2, %p71_p1  ;;  %s61_s22 = ssub.s32 %s6471_s16, %s7779_s19 }
   0xb   : > { %p78_p5 = scmp.eq.s32.totalorder %s4020_s18, 0  ;;  %p62_p6 = scmp.eq.s32.totalorder %s61_s22, 0 }
   0xc   : > { %p129_p7 = scmp.eq.s32.totalorder %s4020_s18, 6  ;;  %p6308_p10 = scmp.lt.s32.totalorder %s6475_s17, 7 }
   0xd   : > { %p6543_p8 = por %p78_p5, %p77_p4  ;;  %s6556_s26 = sand.u32 1, %s6463_s14  }
   0xe   : > { %s6548_s24 = scalar_select %p62_p6, %s6463_s14, %s64_s20  }
   0xf   : > { %p6550_p9 = por %p129_p7, %p71_p1  ;;  %s5838_s27 = smul.u32 56, %s6471_s16 }
  0x10   : > { %s6292_s28 = smul.u32 3584, %s6556_s26  ;;  %p6565_p11 = pnand %p6308_p10, %p6536_p3 }
  0x11   : > { %s174_s4 = scalar_lea.hbm %s7766_s1, %s5838_s27  ;;  %p4026_p12 = scmp.ge.s32.totalorder %s6475_s17, 1 }
  0x12   : > { %s175_s6 = sshll.u32 %s174_s4, 4  ;;  %s169_s7 = scalar_lea.vmem [#allocation2], %s6292_s28  ;;  %s176_s6 = int_to_ptr.hbm [resolvable:$true] %s175_s6 }
  0x13   : > { %s177_s8 = sshll.u32 %s169_s7, 4  ;;  %s166_s9 = scalar_lea.sflag [#allocation3], %s6556_s26  ;;  %s178_s8 = int_to_ptr.vmem [resolvable:$true] %s177_s8 }
  0x14   : > { %s6477_s10 = smov 6272   ;;  %s6478_s11 = smov 896  }
  0x15   : > { %s6479_s12 = smov 56   ;;  %p204_p13 = scmp.lt.s32.totalorder %s6475_s17, 8 }
  0x16   : > { %6304 = dma.hbm_to_vmem [thread:$0]  (!%p6565_p11), %s176_s6, 57344, %s178_s8, %s166_s9, %s6477_s10, %s6478_s11, %s6479_s12  }
  0x17   : > { %s6293_s18 = smul.u32 14, %s6556_s26  ;;  %p205_p0 = pnand %p4026_p12, %p204_p13 }
  0x18   : > { %s192_s20 = smul.u32 14, %s6471_s16  ;;  %s188_s4 = scalar_lea.sflag [#allocation5], %s6556_s26 }
  0x19   : > { %s191_s28 = scalar_lea.vmem [#allocation4], %s6293_s18  ;;  %208 = sbr.rel (%p205_p0) target bundleno = 646 (0x286), region = 32 }
  0x1a   : > { %s195_s27 = scalar_lea.hbm %s7767_s2, %s192_s20  ;;  %s199_s29 = sshll.u32 %s191_s28, 4  ;;  %s200_s29 = int_to_ptr.vmem [resolvable:$true] %s199_s29 }
  0x1b   : > { %s197_s30 = sshll.u32 %s195_s27, 4  ;;  %s6583_s6 = sand.u32 (!%p205_p0), 1, %s6459_s13   ;;  %s198_s30 = int_to_ptr.hbm [resolvable:$true] %s197_s30 }
  0x1c   : > { %6307 = dma.hbm_to_vmem [thread:$0]  (!%p6565_p11), %s198_s30, 224, %s200_s29, %s188_s4  }
  0x1d   : > { %s6294_s7 = smul.u32 (!%p205_p0), 3584, %s6583_s6  ;;  %s211_s8 = scalar_lea.sflag (!%p205_p0), [#allocation3], %s6583_s6 }
  0x1f   : > { %s6587_s9 = scalar_lea.vmem [#allocation2], %s6294_s7 }
  0x20   : > { %6446 = dma.done.wait (%p6543_p8), %s211_s8, 57344  }
  0x21   : > { %6448 = vsyncadd (%p6543_p8), %s211_s8, 4294909952  ;;  %s6295_s26 = smul.u32 14, %s6583_s6  ;;  %s221_s5 = scalar_lea.sflag [#allocation5], %s6583_s6 }
  0x23   : > { %s6595_s10 = scalar_lea.vmem [#allocation4], %s6295_s26 }
  0x24   : > { %6450 = dma.done.wait (%p6543_p8), %s221_s5, 224  }
  0x25   : > { %6452 = vsyncadd (%p6543_p8), %s221_s5, 4294967072  ;;  %v4437_v0 = vld [vmem:[%s6587_s9 + $0x310] sm:$0xf]  ;;  %v5948_v1 = vld [vmem:[%s6587_s9 + $0x344] sm:$0xf0]  ;;  %s6296_s23 = smul.u32 112, %s6583_s6 }
  0x26   : > { %v4885_v2 = vld [vmem:[%s6587_s9 + $0x690] sm:$0xf]  ;;  %v4438_v3 = vor.u32 %v5948_v1, %v4437_v0  ;;  %v6060_v4 = vld [vmem:[%s6587_s9 + $0x6c4] sm:$0xf0]  ;;  %v4381_v11 = vld [vmem:[%s6587_s9 + $0x2a0] sm:$0xf] }
  0x27   : > { %v5333_v5 = vld [vmem:[%s6587_s9 + $0xa10] sm:$0xf]  ;;  %v6172_v6 = vld [vmem:[%s6587_s9 + $0xa44] sm:$0xf0]  ;;  %v4886_v7 = vor.u32 %v6060_v4, %v4885_v2  ;;  %v5934_v13 = vld [vmem:[%s6587_s9 + $0x2d4] sm:$0xf0] }
  0x28   : > { %v5334_v8 = vor.u32 %v6172_v6, %v5333_v5  ;;  %v5781_v9 = vld [vmem:[%s6587_s9 + $0xd90] sm:$0xf]  ;;  %v6284_v10 = vld [vmem:[%s6587_s9 + $0xdc4] sm:$0xf0]  ;;  %3013 = vmatpush.bf16.msra.mxu0 %v4438_v3  ;;  %v4829_v14 = vld [vmem:[%s6587_s9 + $0x620] sm:$0xf]  ;;  %v4382_v16 = vor.u32 %v5934_v13, %v4381_v11 }
  0x29   : > { %v5782_v12 = vor.u32 %v6284_v10, %v5781_v9  ;;  %v6046_v15 = vld [vmem:[%s6587_s9 + $0x654] sm:$0xf0]  ;;  %3027 = vmatpush.bf16.msra.mxu1 %v4886_v7  ;;  %v5277_v18 = vld [vmem:[%s6587_s9 + $0x9a0] sm:$0xf]  ;;  %v4325_v23 = vld [vmem:[%s6587_s9 + $0x230] sm:$0xf] }
  0x2a   : > { %3041 = vmatpush.bf16.msra.mxu2 %v5334_v8  ;;  %v4830_v17 = vor.u32 %v6046_v15, %v4829_v14  ;;  %v6158_v19 = vld [vmem:[%s6587_s9 + $0x9d4] sm:$0xf0]  ;;  %v5725_v20 = vld [vmem:[%s6587_s9 + $0xd20] sm:$0xf]  ;;  %v5920_v24 = vld [vmem:[%s6587_s9 + $0x264] sm:$0xf0] }
  0x2b   : > { %3055 = vmatpush.bf16.msra.mxu3 %v5782_v12  ;;  %v5278_v21 = vor.u32 %v6158_v19, %v5277_v18  ;;  %v6270_v22 = vld [vmem:[%s6587_s9 + $0xd54] sm:$0xf0]  ;;  %v4773_v26 = vld [vmem:[%s6587_s9 + $0x5b0] sm:$0xf]  ;;  %v6032_v27 = vld [vmem:[%s6587_s9 + $0x5e4] sm:$0xf0]  ;;  %v4326_v29 = vor.u32 %v5920_v24, %v4325_v23 }
  0x2c   : > { %v5726_v25 = vor.u32 %v6270_v22, %v5725_v20  ;;  %v5221_v28 = vld [vmem:[%s6587_s9 + $0x930] sm:$0xf]  ;;  %3014 = vmatpush.bf16.msra.mxu0 %v4382_v16  ;;  %v6144_v30 = vld [vmem:[%s6587_s9 + $0x964] sm:$0xf0]  ;;  %v4774_v33 = vor.u32 %v6032_v27, %v4773_v26  ;;  %v4269_v35 = vld [vmem:[%s6587_s9 + $0x1c0] sm:$0xf] }
  0x2d   : > { %v5669_v31 = vld [vmem:[%s6587_s9 + $0xcb0] sm:$0xf]  ;;  %v6256_v32 = vld [vmem:[%s6587_s9 + $0xce4] sm:$0xf0]  ;;  %3028 = vmatpush.bf16.msra.mxu1 %v4830_v17  ;;  %v5222_v34 = vor.u32 %v6144_v30, %v5221_v28  ;;  %v5906_v36 = vld [vmem:[%s6587_s9 + $0x1f4] sm:$0xf0] }
  0x2e   : > { %3042 = vmatpush.bf16.msra.mxu2 %v5278_v21  ;;  %v4717_v37 = vld [vmem:[%s6587_s9 + $0x540] sm:$0xf]  ;;  %v5670_v38 = vor.u32 %v6256_v32, %v5669_v31  ;;  %v6018_v39 = vld [vmem:[%s6587_s9 + $0x574] sm:$0xf0]  ;;  %v4270_v44 = vor.u32 %v5906_v36, %v4269_v35  ;;  %v4213_v47 = vld [vmem:[%s6587_s9 + $0x150] sm:$0xf] }
  0x2f   : > { %3056 = vmatpush.bf16.msra.mxu3 %v5726_v25  ;;  %v5165_v40 = vld [vmem:[%s6587_s9 + $0x8c0] sm:$0xf]  ;;  %v6130_v41 = vld [vmem:[%s6587_s9 + $0x8f4] sm:$0xf0]  ;;  %v4718_v45 = vor.u32 %v6018_v39, %v4717_v37  ;;  %v5892_v48 = vld [vmem:[%s6587_s9 + $0x184] sm:$0xf0] }
  0x30   : > { %v5613_v42 = vld [vmem:[%s6587_s9 + $0xc40] sm:$0xf]  ;;  %v6242_v43 = vld [vmem:[%s6587_s9 + $0xc74] sm:$0xf0]  ;;  %3015 = vmatpush.bf16.msra.mxu0 %v4326_v29  ;;  %v5166_v46 = vor.u32 %v6130_v41, %v5165_v40  ;;  %v4661_v49 = vld [vmem:[%s6587_s9 + $0x4d0] sm:$0xf]  ;;  %v4214_v56 = vor.u32 %v5892_v48, %v4213_v47 }
  0x31   : > { %3029 = vmatpush.bf16.msra.mxu1 %v4774_v33  ;;  %v5614_v50 = vor.u32 %v6242_v43, %v5613_v42  ;;  %v6004_v51 = vld [vmem:[%s6587_s9 + $0x504] sm:$0xf0]  ;;  %v5109_v52 = vld [vmem:[%s6587_s9 + $0x850] sm:$0xf]  ;;  %v4157_v59 = vld [vmem:[%s6587_s9 + $0xe0] sm:$0xf] }
  0x32   : > { %3043 = vmatpush.bf16.msra.mxu2 %v5222_v34  ;;  %v6116_v53 = vld [vmem:[%s6587_s9 + $0x884] sm:$0xf0]  ;;  %v5557_v54 = vld [vmem:[%s6587_s9 + $0xbd0] sm:$0xf]  ;;  %v4662_v57 = vor.u32 %v6004_v51, %v4661_v49  ;;  %v5878_v60 = vld [vmem:[%s6587_s9 + $0x114] sm:$0xf0] }
  0x33   : > { %3057 = vmatpush.bf16.msra.mxu3 %v5670_v38  ;;  %v6228_v55 = vld [vmem:[%s6587_s9 + $0xc04] sm:$0xf0]  ;;  %v5110_v58 = vor.u32 %v6116_v53, %v5109_v52  ;;  %v4605_v61 = vld [vmem:[%s6587_s9 + $0x460] sm:$0xf]  ;;  %v5990_v63 = vld [vmem:[%s6587_s9 + $0x494] sm:$0xf0]  ;;  %v4158_v4 = vor.u32 %v5878_v60, %v4157_v59 }
  0x34   : > { %3016 = vmatpush.bf16.msra.mxu0 %v4270_v44  ;;  %v5558_v62 = vor.u32 %v6228_v55, %v5557_v54  ;;  %v5053_v0 = vld [vmem:[%s6587_s9 + $0x7e0] sm:$0xf]  ;;  %v6102_v1 = vld [vmem:[%s6587_s9 + $0x814] sm:$0xf0]  ;;  %v4606_v5 = vor.u32 %v5990_v63, %v4605_v61  ;;  %v4101_v7 = vld [vmem:[%s6587_s9 + $0x70] sm:$0xf] }
  0x35   : > { %3030 = vmatpush.bf16.msra.mxu1 %v4718_v45  ;;  %v5501_v2 = vld [vmem:[%s6587_s9 + $0xb60] sm:$0xf]  ;;  %v6214_v3 = vld [vmem:[%s6587_s9 + $0xb94] sm:$0xf0]  ;;  %v5054_v6 = vor.u32 %v6102_v1, %v5053_v0  ;;  %v5864_v8 = vld [vmem:[%s6587_s9 + $0xa4] sm:$0xf0] }
  0x36   : > { %3044 = vmatpush.bf16.msra.mxu2 %v5166_v46  ;;  %v4549_v9 = vld [vmem:[%s6587_s9 + $0x3f0] sm:$0xf]  ;;  %v5502_v10 = vor.u32 %v6214_v3, %v5501_v2  ;;  %v5976_v11 = vld [vmem:[%s6587_s9 + $0x424] sm:$0xf0]  ;;  %v4102_v16 = vor.u32 %v5864_v8, %v4101_v7  ;;  %v4045_v17 = vld [vmem:[%s6587_s9] sm:$0xf] }
  0x37   : > { %3058 = vmatpush.bf16.msra.mxu3 %v5614_v50  ;;  %v4997_v12 = vld [vmem:[%s6587_s9 + $0x770] sm:$0xf]  ;;  %v6088_v13 = vld [vmem:[%s6587_s9 + $0x7a4] sm:$0xf0]  ;;  %v5850_v18 = vld [vmem:[%s6587_s9 + $0x34] sm:$0xf0]  ;;  %v4550_v19 = vor.u32 %v5976_v11, %v4549_v9 }
  0x38   : > { %3017 = vmatpush.bf16.msra.mxu0 %v4214_v56  ;;  %v5445_v14 = vld [vmem:[%s6587_s9 + $0xaf0] sm:$0xf]  ;;  %v6200_v15 = vld [vmem:[%s6587_s9 + $0xb24] sm:$0xf0]  ;;  %v4998_v20 = vor.u32 %v6088_v13, %v4997_v12  ;;  %v4493_v21 = vld [vmem:[%s6587_s9 + $0x380] sm:$0xf]  ;;  %v4046_v31 = vor.u32 %v5850_v18, %v4045_v17 }
  0x39   : > { %3031 = vmatpush.bf16.msra.mxu1 %v4662_v57  ;;  %v5962_v22 = vld [vmem:[%s6587_s9 + $0x3b4] sm:$0xf0]  ;;  %v4941_v23 = vld [vmem:[%s6587_s9 + $0x700] sm:$0xf]  ;;  %v5446_v24 = vor.u32 %v6200_v15, %v5445_v14  ;;  %v5941_v28 = vld [vmem:[%s6587_s9 + $0x314] sm:$0xf] }
  0x3a   : > { %3045 = vmatpush.bf16.msra.mxu2 %v5110_v58  ;;  %v6074_v25 = vld [vmem:[%s6587_s9 + $0x734] sm:$0xf0]  ;;  %v5389_v26 = vld [vmem:[%s6587_s9 + $0xa80] sm:$0xf]  ;;  %v4439_v29 = vld [vmem:[%s6587_s9 + $0x348] sm:$0xf0]  ;;  %v4494_v35 = vor.u32 %v5962_v22, %v4493_v21 }
  0x3b   : > { %3059 = vmatpush.bf16.msra.mxu3 %v5558_v62  ;;  %v6186_v27 = vld [vmem:[%s6587_s9 + $0xab4] sm:$0xf0]  ;;  %v6053_v30 = vld [vmem:[%s6587_s9 + $0x694] sm:$0xf]  ;;  %v4887_v32 = vld [vmem:[%s6587_s9 + $0x6c8] sm:$0xf0]  ;;  %v4942_v36 = vor.u32 %v6074_v25, %v4941_v23  ;;  %v4442_v40 = vor.u32 %v5941_v28, %v4439_v29 }
  0x3c   : > { %3018 = vmatpush.bf16.msra.mxu0 %v4158_v4  ;;  %v6165_v33 = vld [vmem:[%s6587_s9 + $0xa14] sm:$0xf]  ;;  %v5335_v34 = vld [vmem:[%s6587_s9 + $0xa48] sm:$0xf0]  ;;  %v5390_v39 = vor.u32 %v6186_v27, %v5389_v26  ;;  %v5927_v41 = vld [vmem:[%s6587_s9 + $0x2a4] sm:$0xf]  ;;  %v4890_v43 = vor.u32 %v6053_v30, %v4887_v32 }
  0x3d   : > { %3032 = vmatpush.bf16.msra.mxu1 %v4606_v5  ;;  %v6277_v37 = vld [vmem:[%s6587_s9 + $0xd94] sm:$0xf]  ;;  %v5783_v38 = vld [vmem:[%s6587_s9 + $0xdc8] sm:$0xf0]  ;;  %v4383_v42 = vld [vmem:[%s6587_s9 + $0x2d8] sm:$0xf0]  ;;  %v5338_v44 = vor.u32 %v6165_v33, %v5335_v34 }
  0x3e   : > { %3046 = vmatpush.bf16.msra.mxu2 %v5054_v6  ;;  %v6039_v45 = vld [vmem:[%s6587_s9 + $0x624] sm:$0xf]  ;;  %v4831_v46 = vld [vmem:[%s6587_s9 + $0x658] sm:$0xf0]  ;;  %v5786_v48 = vor.u32 %v6277_v37, %v5783_v38  ;;  %v5913_v52 = vld [vmem:[%s6587_s9 + $0x234] sm:$0xf]  ;;  %v4386_v55 = vor.u32 %v5927_v41, %v4383_v42 }
  0x3f   : > { %3060 = vmatpush.bf16.msra.mxu3 %v5502_v10  ;;  %v6151_v47 = vld [vmem:[%s6587_s9 + $0x9a4] sm:$0xf]  ;;  %v5279_v49 = vld [vmem:[%s6587_s9 + $0x9d8] sm:$0xf0]  ;;  %v4037_v53 = vld [vmem:[%s7765_s0 + $0x8] sm:$0xf]  ;;  %v4834_v60 = vor.u32 %v6039_v45, %v4831_v46 }
  0x40   : > { %3019 = vmatpush.bf16.msra.mxu0 %v4102_v16  ;;  %v6263_v50 = vld [vmem:[%s6587_s9 + $0xd24] sm:$0xf]  ;;  %v5727_v51 = vld [vmem:[%s6587_s9 + $0xd58] sm:$0xf0]  ;;  %v5842_v54 = vld [vmem:[%s7765_s0 + $0x14] sm:$0xf0]  ;;  %v5282_v61 = vor.u32 %v6151_v47, %v5279_v49 }
  0x41   : > { %3033 = vmatpush.bf16.msra.mxu1 %v4550_v19  ;;  %v4327_v56 = vld [vmem:[%s6587_s9 + $0x268] sm:$0xf0]  ;;  %v6025_v57 = vld [vmem:[%s6587_s9 + $0x5b4] sm:$0xf]  ;;  %v6691_v59 = vor.u32 %v5842_v54, %v4037_v53  ;;  %v5730_v1 = vor.u32 %v6263_v50, %v5727_v51  ;;  %v4029_v3 = vld [vmem:[%s7765_s0] sm:$0xf] }
  0x42   : > { %3047 = vmatpush.bf16.msra.mxu2 %v4998_v20  ;;  %v4775_v58 = vld [vmem:[%s6587_s9 + $0x5e8] sm:$0xf0]  ;;  %v6137_v62 = vld [vmem:[%s6587_s9 + $0x934] sm:$0xf]  ;;  %v5841_v4 = vld [vmem:[%s7765_s0 + $0xc] sm:$0xf0]  ;;  %v4330_v9 = vor.u32 %v5913_v52, %v4327_v56 }
  0x43   : > { %3061 = vmatpush.bf16.msra.mxu3 %v5446_v24  ;;  %v5223_v63 = vld [vmem:[%s6587_s9 + $0x968] sm:$0xf0]  ;;  %v6249_v0 = vld [vmem:[%s6587_s9 + $0xcb4] sm:$0xf]  ;;  %v6704_v5 = vor.u32 %v5841_v4, %v4029_v3  ;;  %v4039_v7 = vld [vmem:[%s7765_s0 + $0x18] sm:$0xf0]  ;;  %v4778_v12 = vor.u32 %v6025_v57, %v4775_v58 }
  0x44   : > { %3020 = vmatpush.bf16.msra.mxu0 %v4046_v31  ;;  %v5671_v2 = vld [vmem:[%s6587_s9 + $0xce8] sm:$0xf0]  ;;  %v5839_v8 = vld [vmem:[%s7765_s0 + $0x4] sm:$0xf]  ;;  %v4031_v11 = vld [vmem:[%s7765_s0 + $0x10] sm:$0xf0]  ;;  %v5226_v13 = vor.u32 %v6137_v62, %v5223_v63 }
  0x45   : > { %3034 = vmatpush.bf16.msra.mxu1 %v4494_v35  ;;  %v5840_v6 = vld [vmem:[%s7765_s0 + $0xc] sm:$0xf]  ;;  %v5899_v14 = vld [vmem:[%s6587_s9 + $0x1c4] sm:$0xf]  ;;  %v4271_v15 = vld [vmem:[%s6587_s9 + $0x1f8] sm:$0xf0]  ;;  %v6723_v17 = vor.u32 %v5839_v8, %v4031_v11  ;;  %v5674_v18 = vor.u32 %v6249_v0, %v5671_v2 }
  0x46   : > { %3048 = vmatpush.bf16.msra.mxu2 %v4942_v36  ;;  %v6715_v10 = vor.u32 %v5840_v6, %v4039_v7  ;;  %v6011_v16 = vld [vmem:[%s6587_s9 + $0x544] sm:$0xf]  ;;  %v4719_v19 = vld [vmem:[%s6587_s9 + $0x578] sm:$0xf0]  ;;  %v4274_v24 = vor.u32 %v5899_v14, %v4271_v15  ;;  %v5885_v27 = vld [vmem:[%s6587_s9 + $0x154] sm:$0xf] }
  0x47   : > { %3062 = vmatpush.bf16.msra.mxu3 %v5390_v39  ;;  %v6123_v20 = vld [vmem:[%s6587_s9 + $0x8c4] sm:$0xf]  ;;  %v5167_v21 = vld [vmem:[%s6587_s9 + $0x8f8] sm:$0xf0]  ;;  %3021 = vmatmul.bf16.vlgmr.msra.gmra.mxu0 %v6704_v5  ;;  %v4722_v25 = vor.u32 %v6011_v16, %v4719_v19  ;;  %v4215_v28 = vld [vmem:[%s6587_s9 + $0x188] sm:$0xf0] }
  0x48   : > { %3069 = vmatpush.bf16.msrb.mxu0 %v4442_v40  ;;  %v6235_v22 = vld [vmem:[%s6587_s9 + $0xc44] sm:$0xf]  ;;  %v5615_v23 = vld [vmem:[%s6587_s9 + $0xc78] sm:$0xf0]  ;;  %3035 = vmatmul.bf16.vlgmr.msra.gmra.mxu1 %v6723_v17  ;;  %v5170_v26 = vor.u32 %v6123_v20, %v5167_v21  ;;  %v5997_v29 = vld [vmem:[%s6587_s9 + $0x4d4] sm:$0xf]  ;;  %v4218_v36 = vor.u32 %v5885_v27, %v4215_v28 }
  0x49   : > { %3083 = vmatpush.bf16.msrb.mxu1 %v4890_v43  ;;  %3049 = vmatmul.bf16.vlgmr.msra.gmra.mxu2 %v6691_v59  ;;  %v5618_v30 = vor.u32 %v6235_v22, %v5615_v23  ;;  %v4663_v31 = vld [vmem:[%s6587_s9 + $0x508] sm:$0xf0]  ;;  %v6109_v32 = vld [vmem:[%s6587_s9 + $0x854] sm:$0xf]  ;;  %v5871_v39 = vld [vmem:[%s6587_s9 + $0xe4] sm:$0xf] }
  0x4a   : > { %3097 = vmatpush.bf16.msrb.mxu2 %v5338_v44  ;;  %3063 = vmatmul.bf16.vlgmr.msra.gmra.mxu3 %v6715_v10  ;;  %v5111_v33 = vld [vmem:[%s6587_s9 + $0x888] sm:$0xf0]  ;;  %v6221_v34 = vld [vmem:[%s6587_s9 + $0xbd4] sm:$0xf]  ;;  %v4666_v37 = vor.u32 %v5997_v29, %v4663_v31  ;;  %v4159_v40 = vld [vmem:[%s6587_s9 + $0x118] sm:$0xf0] }
  0x4b   : > { %3111 = vmatpush.bf16.msrb.mxu3 %v5786_v48  ;;  %v5559_v35 = vld [vmem:[%s6587_s9 + $0xc08] sm:$0xf0]  ;;  %v5114_v38 = vor.u32 %v6109_v32, %v5111_v33  ;;  %v5983_v41 = vld [vmem:[%s6587_s9 + $0x464] sm:$0xf]  ;;  %v4607_v43 = vld [vmem:[%s6587_s9 + $0x498] sm:$0xf0]  ;;  %v4162_v48 = vor.u32 %v5871_v39, %v4159_v40 }
  0x4c   : > { %3070 = vmatpush.bf16.msrb.mxu0 %v4386_v55  ;;  %v5562_v42 = vor.u32 %v6221_v34, %v5559_v35  ;;  %v6095_v44 = vld [vmem:[%s6587_s9 + $0x7e4] sm:$0xf]  ;;  %v5055_v45 = vld [vmem:[%s6587_s9 + $0x818] sm:$0xf0]  ;;  %v4610_v49 = vor.u32 %v5983_v41, %v4607_v43  ;;  %v5857_v51 = vld [vmem:[%s6587_s9 + $0x74] sm:$0xf] }
  0x4d   : > { %3084 = vmatpush.bf16.msrb.mxu1 %v4834_v60  ;;  %v6207_v46 = vld [vmem:[%s6587_s9 + $0xb64] sm:$0xf]  ;;  %v5503_v47 = vld [vmem:[%s6587_s9 + $0xb98] sm:$0xf0]  ;;  %v5058_v50 = vor.u32 %v6095_v44, %v5055_v45  ;;  %v4103_v52 = vld [vmem:[%s6587_s9 + $0xa8] sm:$0xf0] }
  0x4e   : > { %3098 = vmatpush.bf16.msrb.mxu2 %v5282_v61  ;;  %v5969_v53 = vld [vmem:[%s6587_s9 + $0x3f4] sm:$0xf]  ;;  %v5506_v54 = vor.u32 %v6207_v46, %v5503_v47  ;;  %v4551_v55 = vld [vmem:[%s6587_s9 + $0x428] sm:$0xf0]  ;;  %v4106_v61 = vor.u32 %v5857_v51, %v4103_v52  ;;  %v5843_v62 = vld [vmem:[%s6587_s9 + $0x4] sm:$0xf] }
  0x4f   : > { %3112 = vmatpush.bf16.msrb.mxu3 %v5730_v1  ;;  %v6081_v56 = vld [vmem:[%s6587_s9 + $0x774] sm:$0xf]  ;;  %v4999_v57 = vld [vmem:[%s6587_s9 + $0x7a8] sm:$0xf0]  ;;  %v4047_v63 = vld [vmem:[%s6587_s9 + $0x38] sm:$0xf0]  ;;  %v4554_v0 = vor.u32 %v5969_v53, %v4551_v55 }
  0x50   : > { %3071 = vmatpush.bf16.msrb.mxu0 %v4330_v9  ;;  %v6193_v58 = vld [vmem:[%s6587_s9 + $0xaf4] sm:$0xf]  ;;  %v5447_v60 = vld [vmem:[%s6587_s9 + $0xb28] sm:$0xf0]  ;;  %v5002_v1 = vor.u32 %v6081_v56, %v4999_v57  ;;  %v5955_v2 = vld [vmem:[%s6587_s9 + $0x384] sm:$0xf]  ;;  %v4050_v14 = vor.u32 %v5843_v62, %v4047_v63 }
  0x51   : > { %3085 = vmatpush.bf16.msrb.mxu1 %v4778_v12  ;;  %v4495_v3 = vld [vmem:[%s6587_s9 + $0x3b8] sm:$0xf0]  ;;  %v6067_v4 = vld [vmem:[%s6587_s9 + $0x704] sm:$0xf]  ;;  %v5450_v6 = vor.u32 %v6193_v58, %v5447_v60  ;;  %v4445_v11 = vld [vmem:[%s6587_s9 + $0x318] sm:$0xf] }
  0x52   : > { %3099 = vmatpush.bf16.msrb.mxu2 %v5226_v13  ;;  %v4943_v7 = vld [vmem:[%s6587_s9 + $0x738] sm:$0xf0]  ;;  %v6179_v8 = vld [vmem:[%s6587_s9 + $0xa84] sm:$0xf]  ;;  %v5949_v12 = vld [vmem:[%s6587_s9 + $0x34c] sm:$0xf0]  ;;  %v4498_v19 = vor.u32 %v5955_v2, %v4495_v3 }
  0x53   : > { %3113 = vmatpush.bf16.msrb.mxu3 %v5674_v18  ;;  %v5391_v9 = vld [vmem:[%s6587_s9 + $0xab8] sm:$0xf0]  ;;  %v4893_v13 = vld [vmem:[%s6587_s9 + $0x698] sm:$0xf]  ;;  %v6061_v15 = vld [vmem:[%s6587_s9 + $0x6cc] sm:$0xf0]  ;;  %v4946_v20 = vor.u32 %v6067_v4, %v4943_v7 }
  0x54   : > { %3072 = vmatpush.bf16.msrb.mxu0 %v4274_v24  ;;  %v5341_v16 = vld [vmem:[%s6587_s9 + $0xa18] sm:$0xf]  ;;  %v6173_v18 = vld [vmem:[%s6587_s9 + $0xa4c] sm:$0xf0]  ;;  %v5394_v23 = vor.u32 %v6179_v8, %v5391_v9  ;;  %v4446_v24 = vor.u32 %v5949_v12, %v4445_v11  ;;  %v4389_v27 = vld [vmem:[%s6587_s9 + $0x2a8] sm:$0xf] }
  0x55   : > { %3086 = vmatpush.bf16.msrb.mxu1 %v4722_v25  ;;  %v5789_v21 = vld [vmem:[%s6587_s9 + $0xd98] sm:$0xf]  ;;  %v6285_v22 = vld [vmem:[%s6587_s9 + $0xdcc] sm:$0xf0]  ;;  %v4894_v25 = vor.u32 %v6061_v15, %v4893_v13  ;;  %v5935_v28 = vld [vmem:[%s6587_s9 + $0x2dc] sm:$0xf0] }
  0x56   : > { %3100 = vmatpush.bf16.msrb.mxu2 %v5170_v26  ;;  %v5342_v26 = vor.u32 %v6173_v18, %v5341_v16  ;;  %v4837_v29 = vld [vmem:[%s6587_s9 + $0x628] sm:$0xf]  ;;  %v6047_v31 = vld [vmem:[%s6587_s9 + $0x65c] sm:$0xf0]  ;;  %v4333_v39 = vld [vmem:[%s6587_s9 + $0x238] sm:$0xf] }
  0x57   : > { %3114 = vmatpush.bf16.msrb.mxu3 %v5618_v30  ;;  %v5790_v30 = vor.u32 %v6285_v22, %v5789_v21  ;;  %v5285_v32 = vld [vmem:[%s6587_s9 + $0x9a8] sm:$0xf]  ;;  %v6159_v33 = vld [vmem:[%s6587_s9 + $0x9dc] sm:$0xf0]  ;;  %v5921_v40 = vld [vmem:[%s6587_s9 + $0x26c] sm:$0xf0] }
  0x58   : > { %3073 = vmatpush.bf16.msrb.mxu0 %v4218_v36  ;;  %v5733_v34 = vld [vmem:[%s6587_s9 + $0xd28] sm:$0xf]  ;;  %v6271_v35 = vld [vmem:[%s6587_s9 + $0xd5c] sm:$0xf0]  ;;  %v4390_v36 = vor.u32 %v5935_v28, %v4389_v27  ;;  %v4781_v41 = vld [vmem:[%s6587_s9 + $0x5b8] sm:$0xf] }
  0x59   : > { %3087 = vmatpush.bf16.msrb.mxu1 %v4666_v37  ;;  %v4838_v37 = vor.u32 %v6047_v31, %v4837_v29  ;;  %v6033_v43 = vld [vmem:[%s6587_s9 + $0x5ec] sm:$0xf0]  ;;  %v5229_v44 = vld [vmem:[%s6587_s9 + $0x938] sm:$0xf]  ;;  %v4277_v51 = vld [vmem:[%s6587_s9 + $0x1c8] sm:$0xf] }
  0x5a   : > { %3101 = vmatpush.bf16.msrb.mxu2 %v5114_v38  ;;  %v5286_v38 = vor.u32 %v6159_v33, %v5285_v32  ;;  %v6145_v45 = vld [vmem:[%s6587_s9 + $0x96c] sm:$0xf0]  ;;  %v5677_v46 = vld [vmem:[%s6587_s9 + $0xcb8] sm:$0xf]  ;;  %v5907_v52 = vld [vmem:[%s6587_s9 + $0x1fc] sm:$0xf0] }
  0x5b   : > { %3115 = vmatpush.bf16.msrb.mxu3 %v5562_v42  ;;  %v5734_v42 = vor.u32 %v6271_v35, %v5733_v34  ;;  %v6257_v47 = vld [vmem:[%s6587_s9 + $0xcec] sm:$0xf0]  ;;  %v4725_v53 = vld [vmem:[%s6587_s9 + $0x548] sm:$0xf]  ;;  %v6019_v55 = vld [vmem:[%s6587_s9 + $0x57c] sm:$0xf0] }
  0x5c   : > { %3074 = vmatpush.bf16.msrb.mxu0 %v4162_v48  ;;  %v4334_v48 = vor.u32 %v5921_v40, %v4333_v39  ;;  %v5173_v56 = vld [vmem:[%s6587_s9 + $0x8c8] sm:$0xf]  ;;  %v6131_v57 = vld [vmem:[%s6587_s9 + $0x8fc] sm:$0xf0]  ;;  %v4726_v62 = vor.u32 %v6019_v55, %v4725_v53  ;;  %v4669_v2 = vld [vmem:[%s6587_s9 + $0x4d8] sm:$0xf] }
  0x5d   : > { %3088 = vmatpush.bf16.msrb.mxu1 %v4610_v49  ;;  %v4782_v49 = vor.u32 %v6033_v43, %v4781_v41  ;;  %v5621_v58 = vld [vmem:[%s6587_s9 + $0xc48] sm:$0xf]  ;;  %v6243_v60 = vld [vmem:[%s6587_s9 + $0xc7c] sm:$0xf0]  ;;  %v5174_v63 = vor.u32 %v6131_v57, %v5173_v56  ;;  %v6005_v4 = vld [vmem:[%s6587_s9 + $0x50c] sm:$0xf0] }
  0x5e   : > { %3102 = vmatpush.bf16.msrb.mxu2 %v5058_v50  ;;  %v5230_v50 = vor.u32 %v6145_v45, %v5229_v44  ;;  %v5622_v3 = vor.u32 %v6243_v60, %v5621_v58  ;;  %v6117_v7 = vld [vmem:[%s6587_s9 + $0x88c] sm:$0xf0]  ;;  %v5565_v8 = vld [vmem:[%s6587_s9 + $0xbd8] sm:$0xf]  ;;  %v4670_v12 = vor.u32 %v6005_v4, %v4669_v2  ;;  %v5879_v15 = vld [vmem:[%s6587_s9 + $0x11c] sm:$0xf0] }
  0x5f   : > { %3116 = vmatpush.bf16.msrb.mxu3 %v5506_v54  ;;  %v5678_v54 = vor.u32 %v6257_v47, %v5677_v46  ;;  %v6229_v9 = vld [vmem:[%s6587_s9 + $0xc0c] sm:$0xf0]  ;;  %v4613_v16 = vld [vmem:[%s6587_s9 + $0x468] sm:$0xf]  ;;  %v6103_v21 = vld [vmem:[%s6587_s9 + $0x81c] sm:$0xf0] }
  0x60   : > { %3075 = vmatpush.bf16.msrb.mxu0 %v4106_v61  ;;  %v4278_v61 = vor.u32 %v5907_v52, %v4277_v51  ;;  %v5566_v18 = vor.u32 %v6229_v9, %v5565_v8  ;;  %v5509_v22 = vld [vmem:[%s6587_s9 + $0xb68] sm:$0xf]  ;;  %v4109_v27 = vld [vmem:[%s6587_s9 + $0x78] sm:$0xf]  ;;  %v5865_v28 = vld [vmem:[%s6587_s9 + $0xac] sm:$0xf0] }
  0x61   : > { %3089 = vmatpush.bf16.msrb.mxu1 %v4554_v0  ;;  %v4221_v0 = vld [vmem:[%s6587_s9 + $0x158] sm:$0xf]  ;;  %v5977_v31 = vld [vmem:[%s6587_s9 + $0x42c] sm:$0xf0]  ;;  %v4501_v41 = vld [vmem:[%s6587_s9 + $0x388] sm:$0xf] }
  0x62   : > { %3103 = vmatpush.bf16.msrb.mxu2 %v5002_v1  ;;  %v5893_v1 = vld [vmem:[%s6587_s9 + $0x18c] sm:$0xf0]  ;;  %v4557_v29 = vld [vmem:[%s6587_s9 + $0x3f8] sm:$0xf]  ;;  %v4949_v43 = vld [vmem:[%s6587_s9 + $0x708] sm:$0xf] }
  0x63   : > { %3117 = vmatpush.bf16.msrb.mxu3 %v5450_v6  ;;  %v5117_v6 = vld [vmem:[%s6587_s9 + $0x858] sm:$0xf]  ;;  %v4222_v11 = vor.u32 %v5893_v1, %v4221_v0  ;;  %v6089_v33 = vld [vmem:[%s6587_s9 + $0x7ac] sm:$0xf0]  ;;  %v4558_v39 = vor.u32 %v5977_v31, %v4557_v29  ;;  %v6075_v45 = vld [vmem:[%s6587_s9 + $0x73c] sm:$0xf0] }
  0x64   : > { %3076 = vmatpush.bf16.msrb.mxu0 %v4050_v14  ;;  %v5118_v13 = vor.u32 %v6117_v7, %v5117_v6  ;;  %v4165_v14 = vld [vmem:[%s6587_s9 + $0xe8] sm:$0xf]  ;;  %v5005_v32 = vld [vmem:[%s6587_s9 + $0x778] sm:$0xf]  ;;  %v6201_v35 = vld [vmem:[%s6587_s9 + $0xb2c] sm:$0xf0]  ;;  %v4950_v56 = vor.u32 %v6075_v45, %v4949_v43 }
  0x65   : > { %3090 = vmatpush.bf16.msrb.mxu1 %v4498_v19  ;;  %v5991_v19 = vld [vmem:[%s6587_s9 + $0x49c] sm:$0xf0]  ;;  %v5453_v34 = vld [vmem:[%s6587_s9 + $0xaf8] sm:$0xf]  ;;  %v5006_v40 = vor.u32 %v6089_v33, %v5005_v32  ;;  %v5397_v46 = vld [vmem:[%s6587_s9 + $0xa88] sm:$0xf] }
  0x66   : > { %3104 = vmatpush.bf16.msrb.mxu2 %v4946_v20  ;;  %v5061_v20 = vld [vmem:[%s6587_s9 + $0x7e8] sm:$0xf]  ;;  %v5454_v44 = vor.u32 %v6201_v35, %v5453_v34  ;;  %v6187_v47 = vld [vmem:[%s6587_s9 + $0xabc] sm:$0xf0]  ;;  %v4895_v52 = vld [vmem:[%s6587_s9 + $0x6d0] sm:$0xf0] }
  0x67   : > { %3118 = vmatpush.bf16.msrb.mxu3 %v5394_v23  ;;  %3077 = vmatmul.bf16.vlgmr.msrb.gmra.mxu0 %v6704_v5  ;;  %v6215_v23 = vld [vmem:[%s6587_s9 + $0xb9c] sm:$0xf0]  ;;  %v6166_v53 = vld [vmem:[%s6587_s9 + $0xa1c] sm:$0xf]  ;;  %v5791_v58 = vld [vmem:[%s6587_s9 + $0xdd0] sm:$0xf0]  ;;  %v5398_v60 = vor.u32 %v6187_v47, %v5397_v46 }
  0x68   : > { %3125 = vmatpush.bf16.msra.mxu0 %v4446_v24  ;;  %3091 = vmatmul.bf16.vlgmr.msrb.gmra.mxu1 %v6723_v17  ;;  %v4166_v24 = vor.u32 %v5879_v15, %v4165_v14  ;;  %v6278_v57 = vld [vmem:[%s6587_s9 + $0xd9c] sm:$0xf]  ;;  %v5928_v0 = vld [vmem:[%s6587_s9 + $0x2ac] sm:$0xf]  ;;  %v4391_v1 = vld [vmem:[%s6587_s9 + $0x2e0] sm:$0xf0] }
  0x69   : > { %3139 = vmatpush.bf16.msra.mxu1 %v4894_v25  ;;  %3105 = vmatmul.bf16.vlgmr.msrb.gmra.mxu2 %v6691_v59  ;;  %v4614_v25 = vor.u32 %v5991_v19, %v4613_v16  ;;  %v6040_v2 = vld [vmem:[%s6587_s9 + $0x62c] sm:$0xf]  ;;  %v4839_v4 = vld [vmem:[%s6587_s9 + $0x660] sm:$0xf0]  ;;  %v5914_v14 = vld [vmem:[%s6587_s9 + $0x23c] sm:$0xf] }
  0x6a   : > { %3153 = vmatpush.bf16.msra.mxu2 %v5342_v26  ;;  %3119 = vmatmul.bf16.vlgmr.msrb.gmra.mxu3 %v6715_v10  ;;  %v5062_v26 = vor.u32 %v6103_v21, %v5061_v20  ;;  %v6152_v6 = vld [vmem:[%s6587_s9 + $0x9ac] sm:$0xf]  ;;  %v5287_v7 = vld [vmem:[%s6587_s9 + $0x9e0] sm:$0xf0]  ;;  %v4335_v15 = vld [vmem:[%s6587_s9 + $0x270] sm:$0xf0] }
  0x6b   : > { %3167 = vmatpush.bf16.msra.mxu3 %v5790_v30  ;;  %v5510_v30 = vor.u32 %v6215_v23, %v5509_v22  ;;  %v6264_v8 = vld [vmem:[%s6587_s9 + $0xd2c] sm:$0xf]  ;;  %v5735_v9 = vld [vmem:[%s6587_s9 + $0xd60] sm:$0xf0]  ;;  %v6026_v16 = vld [vmem:[%s6587_s9 + $0x5bc] sm:$0xf] }
  0x6c   : > { %3126 = vmatpush.bf16.msra.mxu0 %v4390_v36  ;;  %v4110_v36 = vor.u32 %v5865_v28, %v4109_v27  ;;  %v4783_v19 = vld [vmem:[%s6587_s9 + $0x5f0] sm:$0xf0]  ;;  %v6138_v20 = vld [vmem:[%s6587_s9 + $0x93c] sm:$0xf]  ;;  %v5900_v27 = vld [vmem:[%s6587_s9 + $0x1cc] sm:$0xf] }
  0x6d   : > { %3140 = vmatpush.bf16.msra.mxu1 %v4838_v37  ;;  %v4053_v37 = vld [vmem:[%s6587_s9 + $0x8] sm:$0xf]  ;;  %v5231_v21 = vld [vmem:[%s6587_s9 + $0x970] sm:$0xf0]  ;;  %v6250_v22 = vld [vmem:[%s6587_s9 + $0xcbc] sm:$0xf] }
  0x6e   : > { %3154 = vmatpush.bf16.msra.mxu2 %v5286_v38  ;;  %v5851_v38 = vld [vmem:[%s6587_s9 + $0x3c] sm:$0xf0]  ;;  %v5679_v23 = vld [vmem:[%s6587_s9 + $0xcf0] sm:$0xf0]  ;;  %v4279_v28 = vld [vmem:[%s6587_s9 + $0x200] sm:$0xf0] }
  0x6f   : > { %3168 = vmatpush.bf16.msra.mxu3 %v5734_v42  ;;  %v5963_v42 = vld [vmem:[%s6587_s9 + $0x3bc] sm:$0xf0]  ;;  %v4054_v51 = vor.u32 %v5851_v38, %v4053_v37  ;;  %v6012_v29 = vld [vmem:[%s6587_s9 + $0x54c] sm:$0xf]  ;;  %v4727_v31 = vld [vmem:[%s6587_s9 + $0x580] sm:$0xf0] }
  0x70   : > { %3127 = vmatpush.bf16.msra.mxu0 %v4334_v48  ;;  %v5942_v48 = vld [vmem:[%s6587_s9 + $0x31c] sm:$0xf]  ;;  %v4502_v55 = vor.u32 %v5963_v42, %v4501_v41  ;;  %v6124_v32 = vld [vmem:[%s6587_s9 + $0x8cc] sm:$0xf]  ;;  %v5175_v33 = vld [vmem:[%s6587_s9 + $0x900] sm:$0xf0]  ;;  %v4730_v37 = vor.u32 %v6012_v29, %v4727_v31 }
  0x71   : > { %3141 = vmatpush.bf16.msra.mxu1 %v4782_v49  ;;  %v4447_v49 = vld [vmem:[%s6587_s9 + $0x350] sm:$0xf0]  ;;  %v6236_v34 = vld [vmem:[%s6587_s9 + $0xc4c] sm:$0xf]  ;;  %v5623_v35 = vld [vmem:[%s6587_s9 + $0xc80] sm:$0xf0]  ;;  %v5178_v38 = vor.u32 %v6124_v32, %v5175_v33 }
  0x72   : > { %3155 = vmatpush.bf16.msra.mxu2 %v5230_v50  ;;  %v6054_v50 = vld [vmem:[%s6587_s9 + $0x69c] sm:$0xf]  ;;  %v5626_v42 = vor.u32 %v6236_v34, %v5623_v35  ;;  %v4671_v43 = vld [vmem:[%s6587_s9 + $0x510] sm:$0xf0]  ;;  %v5349_v29 = vld [vmem:[%s6587_s9 + $0xa20] sm:$0xf] }
  0x73   : > { %3169 = vmatpush.bf16.msra.mxu3 %v5678_v54  ;;  %v5343_v54 = vld [vmem:[%s6587_s9 + $0xa50] sm:$0xf0]  ;;  %v5998_v41 = vld [vmem:[%s6587_s9 + $0x4dc] sm:$0xf]  ;;  %v5797_v33 = vld [vmem:[%s6587_s9 + $0xda0] sm:$0xf] }
  0x74   : > { %3128 = vmatpush.bf16.msra.mxu0 %v4278_v61  ;;  %v4450_v61 = vor.u32 %v5942_v48, %v4447_v49  ;;  %v5119_v45 = vld [vmem:[%s6587_s9 + $0x890] sm:$0xf0]  ;;  %v6222_v46 = vld [vmem:[%s6587_s9 + $0xbdc] sm:$0xf]  ;;  %v4674_v49 = vor.u32 %v5998_v41, %v4671_v43  ;;  %v6286_v34 = vld [vmem:[%s6587_s9 + $0xdd4] sm:$0xf0] }
  0x75   : > { %3142 = vmatpush.bf16.msra.mxu1 %v4726_v62  ;;  %v4898_v62 = vor.u32 %v6054_v50, %v4895_v52  ;;  %v5567_v47 = vld [vmem:[%s6587_s9 + $0xc10] sm:$0xf0]  ;;  %v4167_v52 = vld [vmem:[%s6587_s9 + $0x120] sm:$0xf0]  ;;  %v4845_v41 = vld [vmem:[%s6587_s9 + $0x630] sm:$0xf] }
  0x76   : > { %3156 = vmatpush.bf16.msra.mxu2 %v5174_v63  ;;  %v5346_v63 = vor.u32 %v6166_v53, %v5343_v54  ;;  %v5984_v53 = vld [vmem:[%s6587_s9 + $0x46c] sm:$0xf]  ;;  %v5570_v54 = vor.u32 %v6222_v46, %v5567_v47  ;;  %v6048_v43 = vld [vmem:[%s6587_s9 + $0x664] sm:$0xf0]  ;;  %v5741_v46 = vld [vmem:[%s6587_s9 + $0xd30] sm:$0xf] }
  0x77   : > { %3170 = vmatpush.bf16.msra.mxu3 %v5622_v3  ;;  %v5794_v3 = vor.u32 %v6278_v57, %v5791_v58  ;;  %v5063_v57 = vld [vmem:[%s6587_s9 + $0x820] sm:$0xf0]  ;;  %v6208_v58 = vld [vmem:[%s6587_s9 + $0xb6c] sm:$0xf]  ;;  %v6272_v47 = vld [vmem:[%s6587_s9 + $0xd64] sm:$0xf0] }
  0x78   : > { %3129 = vmatpush.bf16.msra.mxu0 %v4222_v11  ;;  %v4394_v11 = vor.u32 %v5928_v0, %v4391_v1  ;;  %v5858_v0 = vld [vmem:[%s6587_s9 + $0x7c] sm:$0xf]  ;;  %v4111_v1 = vld [vmem:[%s6587_s9 + $0xb0] sm:$0xf0]  ;;  %s7135_s11 = scalar_lea.vmem [#allocation6], %s6296_s23  ;;  %s6291_s6 = smul.u32 (%p6550_p9), 56, %s6467_s15 }
  0x79   : > { %3143 = vmatpush.bf16.msra.mxu1 %v4670_v12  ;;  %v4842_v12 = vor.u32 %v6040_v2, %v4839_v4  ;;  %v5970_v2 = vld [vmem:[%s6587_s9 + $0x3fc] sm:$0xf]  ;;  %v4559_v4 = vld [vmem:[%s6587_s9 + $0x430] sm:$0xf0] }
  0x7a   : > { %3157 = vmatpush.bf16.msra.mxu2 %v5118_v13  ;;  %v5290_v13 = vor.u32 %v6152_v6, %v5287_v7  ;;  %v6082_v6 = vld [vmem:[%s6587_s9 + $0x77c] sm:$0xf]  ;;  %v5007_v7 = vld [vmem:[%s6587_s9 + $0x7b0] sm:$0xf0]  ;;  %s3865_s12 = scalar_lea.vmem (%p6550_p9), %s7768_s3, %s6291_s6 }
  0x7b   : > { %3171 = vmatpush.bf16.msra.mxu3 %v5566_v18  ;;  %v5738_v18 = vor.u32 %v6264_v8, %v5735_v9  ;;  %v6194_v8 = vld [vmem:[%s6587_s9 + $0xafc] sm:$0xf]  ;;  %v5455_v9 = vld [vmem:[%s6587_s9 + $0xb30] sm:$0xf0] }
  0x7c   : > { %3130 = vmatpush.bf16.msra.mxu0 %v4166_v24  ;;  %v4338_v24 = vor.u32 %v5914_v14, %v4335_v15  ;;  %v4562_v14 = vor.u32 %v5970_v2, %v4559_v4  ;;  %v5010_v15 = vor.u32 %v6082_v6, %v5007_v7  ;;  %v4733_v2 = vld [vmem:[%s6587_s9 + $0x550] sm:$0xf]  ;;  %v6020_v4 = vld [vmem:[%s6587_s9 + $0x584] sm:$0xf0] }
  0x7d   : > { %3144 = vmatpush.bf16.msra.mxu1 %v4614_v25  ;;  %v4786_v25 = vor.u32 %v6026_v16, %v4783_v19  ;;  %v5956_v16 = vld [vmem:[%s6587_s9 + $0x38c] sm:$0xf]  ;;  %v5181_v6 = vld [vmem:[%s6587_s9 + $0x8d0] sm:$0xf]  ;;  %v6132_v7 = vld [vmem:[%s6587_s9 + $0x904] sm:$0xf0] }
  0x7e   : > { %3158 = vmatpush.bf16.msra.mxu2 %v5062_v26  ;;  %v5234_v26 = vor.u32 %v6138_v20, %v5231_v21  ;;  %v6068_v19 = vld [vmem:[%s6587_s9 + $0x70c] sm:$0xf]  ;;  %v5458_v20 = vor.u32 %v6194_v8, %v5455_v9  ;;  %v4951_v21 = vld [vmem:[%s6587_s9 + $0x740] sm:$0xf0]  ;;  %v5629_v8 = vld [vmem:[%s6587_s9 + $0xc50] sm:$0xf] }
  0x7f   : > { %3172 = vmatpush.bf16.msra.mxu3 %v5510_v30  ;;  %v5682_v30 = vor.u32 %v6250_v22, %v5679_v23  ;;  %v6180_v22 = vld [vmem:[%s6587_s9 + $0xa8c] sm:$0xf]  ;;  %v5399_v23 = vld [vmem:[%s6587_s9 + $0xac0] sm:$0xf0]  ;;  %v4954_v32 = vor.u32 %v6068_v19, %v4951_v21  ;;  %v6244_v9 = vld [vmem:[%s6587_s9 + $0xc84] sm:$0xf0] }
  0x80   : > { %3131 = vmatpush.bf16.msra.mxu0 %v4110_v36  ;;  %v4282_v36 = vor.u32 %v5900_v27, %v4279_v28  ;;  %v6062_v28 = vld [vmem:[%s6587_s9 + $0x6d4] sm:$0xf0]  ;;  %v5402_v35 = vor.u32 %v6180_v22, %v5399_v23  ;;  %v5573_v22 = vld [vmem:[%s6587_s9 + $0xbe0] sm:$0xf] }
  0x81   : > { %3145 = vmatpush.bf16.msra.mxu1 %v4558_v39  ;;  %v5886_v39 = vld [vmem:[%s6587_s9 + $0x15c] sm:$0xf]  ;;  %v6006_v19 = vld [vmem:[%s6587_s9 + $0x514] sm:$0xf0] }
  0x82   : > { %3159 = vmatpush.bf16.msra.mxu2 %v5006_v40  ;;  %v4223_v40 = vld [vmem:[%s6587_s9 + $0x190] sm:$0xf0]  ;;  %v6118_v21 = vld [vmem:[%s6587_s9 + $0x894] sm:$0xf0] }
  0x83   : > { %3173 = vmatpush.bf16.msra.mxu3 %v5454_v44  ;;  %v6110_v44 = vld [vmem:[%s6587_s9 + $0x85c] sm:$0xf]  ;;  %v4226_v48 = vor.u32 %v5886_v39, %v4223_v40  ;;  %v4397_v39 = vld [vmem:[%s6587_s9 + $0x2b0] sm:$0xf]  ;;  %v5936_v40 = vld [vmem:[%s6587_s9 + $0x2e4] sm:$0xf0] }
  0x84   : > { %3132 = vmatpush.bf16.msra.mxu0 %v4054_v51  ;;  %v5122_v50 = vor.u32 %v6110_v44, %v5119_v45  ;;  %v5872_v51 = vld [vmem:[%s6587_s9 + $0xec] sm:$0xf]  ;;  %v5293_v44 = vld [vmem:[%s6587_s9 + $0x9b0] sm:$0xf]  ;;  %v6160_v45 = vld [vmem:[%s6587_s9 + $0x9e4] sm:$0xf0] }
  0x85   : > { %3146 = vmatpush.bf16.msra.mxu1 %v4502_v55  ;;  %v4615_v55 = vld [vmem:[%s6587_s9 + $0x4a0] sm:$0xf0]  ;;  %v6230_v23 = vld [vmem:[%s6587_s9 + $0xc14] sm:$0xf0] }
  0x86   : > { %3160 = vmatpush.bf16.msra.mxu2 %v4950_v56  ;;  %v6096_v56 = vld [vmem:[%s6587_s9 + $0x7ec] sm:$0xf] }
  0x87   : > { %3174 = vmatpush.bf16.msra.mxu3 %v5398_v60  ;;  %3133 = vmatmul.bf16.vlgmr.msra.gmra.mxu0 %v6704_v5  ;;  %v5511_v60 = vld [vmem:[%s6587_s9 + $0xba0] sm:$0xf0] }
  0x88   : > { %3181 = vmatpush.bf16.msrb.mxu0 %v4450_v61  ;;  %3147 = vmatmul.bf16.vlgmr.msra.gmra.mxu1 %v6723_v17  ;;  %v4170_v61 = vor.u32 %v5872_v51, %v4167_v52  ;;  %v4341_v51 = vld [vmem:[%s6587_s9 + $0x240] sm:$0xf]  ;;  %v5922_v52 = vld [vmem:[%s6587_s9 + $0x274] sm:$0xf0] }
  0x89   : > { %3195 = vmatpush.bf16.msrb.mxu1 %v4898_v62  ;;  %3161 = vmatmul.bf16.vlgmr.msra.gmra.mxu2 %v6691_v59  ;;  %v4618_v62 = vor.u32 %v5984_v53, %v4615_v55  ;;  %v4789_v53 = vld [vmem:[%s6587_s9 + $0x5c0] sm:$0xf]  ;;  %v6034_v55 = vld [vmem:[%s6587_s9 + $0x5f4] sm:$0xf0] }
  0x8a   : > { %3209 = vmatpush.bf16.msrb.mxu2 %v5346_v63  ;;  %3175 = vmatmul.bf16.vlgmr.msra.gmra.mxu3 %v6715_v10  ;;  %v5066_v63 = vor.u32 %v6096_v56, %v5063_v57  ;;  %v5237_v56 = vld [vmem:[%s6587_s9 + $0x940] sm:$0xf]  ;;  %v6146_v57 = vld [vmem:[%s6587_s9 + $0x974] sm:$0xf0] }
  0x8b   : > { %3223 = vmatpush.bf16.msrb.mxu3 %v5794_v3  ;;  %v5514_v3 = vor.u32 %v6208_v58, %v5511_v60  ;;  %v5685_v58 = vld [vmem:[%s6587_s9 + $0xcc0] sm:$0xf]  ;;  %v6258_v60 = vld [vmem:[%s6587_s9 + $0xcf4] sm:$0xf0] }
  0x8c   : > { %3182 = vmatpush.bf16.msrb.mxu0 %v4394_v11  ;;  %v4114_v11 = vor.u32 %v5858_v0, %v4111_v1  ;;  %v4285_v0 = vld [vmem:[%s6587_s9 + $0x1d0] sm:$0xf]  ;;  %v5908_v1 = vld [vmem:[%s6587_s9 + $0x204] sm:$0xf0] }
  0x8d   : > { %3196 = vmatpush.bf16.msrb.mxu1 %v4842_v12  ;;  %v5844_v12 = vld [vmem:[%s6587_s9 + $0xc] sm:$0xf] }
  0x8e   : > { %3210 = vmatpush.bf16.msrb.mxu2 %v5290_v13  ;;  %v4055_v13 = vld [vmem:[%s6587_s9 + $0x40] sm:$0xf0] }
  0x8f   : > { %3224 = vmatpush.bf16.msrb.mxu3 %v5738_v18  ;;  %v4503_v18 = vld [vmem:[%s6587_s9 + $0x3c0] sm:$0xf0]  ;;  %v4058_v27 = vor.u32 %v5844_v12, %v4055_v13  ;;  %v4734_v12 = vor.u32 %v6020_v4, %v4733_v2  ;;  %v5182_v13 = vor.u32 %v6132_v7, %v5181_v6 }
  0x90   : > { %3183 = vmatpush.bf16.msrb.mxu0 %v4338_v24  ;;  %v4453_v24 = vld [vmem:[%s6587_s9 + $0x320] sm:$0xf]  ;;  %v4506_v31 = vor.u32 %v5956_v16, %v4503_v18  ;;  %v5630_v18 = vor.u32 %v6244_v9, %v5629_v8  ;;  %v6167_v2 = vld [vmem:[%s6587_s9 + $0xa24] sm:$0xf]  ;;  %v5799_v8 = vld [vmem:[%s6587_s9 + $0xdd8] sm:$0xf0] }
  0x91   : > { %3197 = vmatpush.bf16.msrb.mxu1 %v4786_v25  ;;  %v5950_v25 = vld [vmem:[%s6587_s9 + $0x354] sm:$0xf0]  ;;  %v4677_v16 = vld [vmem:[%s6587_s9 + $0x4e0] sm:$0xf]  ;;  %v6279_v7 = vld [vmem:[%s6587_s9 + $0xda4] sm:$0xf] }
  0x92   : > { %3211 = vmatpush.bf16.msrb.mxu2 %v5234_v26  ;;  %v4901_v26 = vld [vmem:[%s6587_s9 + $0x6a0] sm:$0xf] }
  0x93   : > { %3225 = vmatpush.bf16.msrb.mxu3 %v5682_v30  ;;  %v6174_v30 = vld [vmem:[%s6587_s9 + $0xa54] sm:$0xf0] }
  0x94   : > { %3184 = vmatpush.bf16.msrb.mxu0 %v4282_v36  ;;  %v4454_v36 = vor.u32 %v5950_v25, %v4453_v24  ;;  %v4678_v25 = vor.u32 %v6006_v19, %v4677_v16  ;;  %v6041_v16 = vld [vmem:[%s6587_s9 + $0x634] sm:$0xf]  ;;  %v4847_v19 = vld [vmem:[%s6587_s9 + $0x668] sm:$0xf0] }
  0x95   : > { %3198 = vmatpush.bf16.msrb.mxu1 %v4730_v37  ;;  %v4902_v37 = vor.u32 %v6062_v28, %v4901_v26  ;;  %v5880_v28 = vld [vmem:[%s6587_s9 + $0x124] sm:$0xf0] }
  0x96   : > { %3212 = vmatpush.bf16.msrb.mxu2 %v5178_v38  ;;  %v5350_v38 = vor.u32 %v6174_v30, %v5349_v29  ;;  %v4621_v29 = vld [vmem:[%s6587_s9 + $0x470] sm:$0xf]  ;;  %v5574_v30 = vor.u32 %v6230_v23, %v5573_v22  ;;  %v6265_v22 = vld [vmem:[%s6587_s9 + $0xd34] sm:$0xf]  ;;  %v5743_v23 = vld [vmem:[%s6587_s9 + $0xd68] sm:$0xf0] }
  0x97   : > { %3226 = vmatpush.bf16.msrb.mxu3 %v5626_v42  ;;  %v5798_v42 = vor.u32 %v6286_v34, %v5797_v33  ;;  %v6104_v33 = vld [vmem:[%s6587_s9 + $0x824] sm:$0xf0]  ;;  %v5517_v34 = vld [vmem:[%s6587_s9 + $0xb70] sm:$0xf] }
  0x98   : > { %3185 = vmatpush.bf16.msrb.mxu0 %v4226_v48  ;;  %v4398_v48 = vor.u32 %v5936_v40, %v4397_v39  ;;  %v4117_v39 = vld [vmem:[%s6587_s9 + $0x80] sm:$0xf]  ;;  %v5866_v40 = vld [vmem:[%s6587_s9 + $0xb4] sm:$0xf0] }
  0x99   : > { %3199 = vmatpush.bf16.msrb.mxu1 %v4674_v49  ;;  %v4846_v49 = vor.u32 %v6048_v43, %v4845_v41  ;;  %v4565_v41 = vld [vmem:[%s6587_s9 + $0x400] sm:$0xf]  ;;  %v5978_v43 = vld [vmem:[%s6587_s9 + $0x434] sm:$0xf0] }
  0x9a   : > { %3213 = vmatpush.bf16.msrb.mxu2 %v5122_v50  ;;  %v5294_v50 = vor.u32 %v6160_v45, %v5293_v44  ;;  %v5013_v44 = vld [vmem:[%s6587_s9 + $0x780] sm:$0xf]  ;;  %v6090_v45 = vld [vmem:[%s6587_s9 + $0x7b4] sm:$0xf0] }
  0x9b   : > { %3227 = vmatpush.bf16.msrb.mxu3 %v5570_v54  ;;  %v5742_v54 = vor.u32 %v6272_v47, %v5741_v46  ;;  %v5461_v46 = vld [vmem:[%s6587_s9 + $0xb00] sm:$0xf]  ;;  %v6202_v47 = vld [vmem:[%s6587_s9 + $0xb34] sm:$0xf0] }
  0x9c   : > { %3186 = vmatpush.bf16.msrb.mxu0 %v4170_v61  ;;  %v4342_v61 = vor.u32 %v5922_v52, %v4341_v51  ;;  %v4566_v51 = vor.u32 %v5978_v43, %v4565_v41  ;;  %v5014_v52 = vor.u32 %v6090_v45, %v5013_v44  ;;  %v6013_v41 = vld [vmem:[%s6587_s9 + $0x554] sm:$0xf]  ;;  %v4735_v43 = vld [vmem:[%s6587_s9 + $0x588] sm:$0xf0] }
  0x9d   : > { %3200 = vmatpush.bf16.msrb.mxu1 %v4618_v62  ;;  %v4790_v62 = vor.u32 %v6034_v55, %v4789_v53  ;;  %v4509_v53 = vld [vmem:[%s6587_s9 + $0x390] sm:$0xf]  ;;  %v6125_v44 = vld [vmem:[%s6587_s9 + $0x8d4] sm:$0xf]  ;;  %v5183_v45 = vld [vmem:[%s6587_s9 + $0x908] sm:$0xf0] }
  0x9e   : > { %3214 = vmatpush.bf16.msrb.mxu2 %v5066_v63  ;;  %v5238_v63 = vor.u32 %v6146_v57, %v5237_v56  ;;  %v4957_v55 = vld [vmem:[%s6587_s9 + $0x710] sm:$0xf]  ;;  %v5462_v56 = vor.u32 %v6202_v47, %v5461_v46  ;;  %v6076_v57 = vld [vmem:[%s6587_s9 + $0x744] sm:$0xf0]  ;;  %v6237_v46 = vld [vmem:[%s6587_s9 + $0xc54] sm:$0xf] }
  0x9f   : > { %3228 = vmatpush.bf16.msrb.mxu3 %v5514_v3  ;;  %v5686_v3 = vor.u32 %v6258_v60, %v5685_v58  ;;  %v5405_v58 = vld [vmem:[%s6587_s9 + $0xa90] sm:$0xf]  ;;  %v6188_v60 = vld [vmem:[%s6587_s9 + $0xac4] sm:$0xf0]  ;;  %v4958_v6 = vor.u32 %v6076_v57, %v4957_v55  ;;  %v5631_v47 = vld [vmem:[%s6587_s9 + $0xc88] sm:$0xf0] }
  0xa0   : > { %3187 = vmatpush.bf16.msrb.mxu0 %v4114_v11  ;;  %v4286_v11 = vor.u32 %v5908_v1, %v4285_v0  ;;  %v4903_v1 = vld [vmem:[%s6587_s9 + $0x6d8] sm:$0xf0]  ;;  %v5406_v9 = vor.u32 %v6188_v60, %v5405_v58  ;;  %v6223_v58 = vld [vmem:[%s6587_s9 + $0xbe4] sm:$0xf] }
  0xa1   : > { %3201 = vmatpush.bf16.msrb.mxu1 %v4562_v14  ;;  %v4229_v14 = vld [vmem:[%s6587_s9 + $0x160] sm:$0xf]  ;;  %v4679_v55 = vld [vmem:[%s6587_s9 + $0x518] sm:$0xf0] }
  0xa2   : > { %3215 = vmatpush.bf16.msrb.mxu2 %v5010_v15  ;;  %v5894_v15 = vld [vmem:[%s6587_s9 + $0x194] sm:$0xf0]  ;;  %v5127_v57 = vld [vmem:[%s6587_s9 + $0x898] sm:$0xf0] }
  0xa3   : > { %3229 = vmatpush.bf16.msrb.mxu3 %v5458_v20  ;;  %v5125_v20 = vld [vmem:[%s6587_s9 + $0x860] sm:$0xf]  ;;  %v4230_v24 = vor.u32 %v5894_v15, %v4229_v14  ;;  %v5929_v14 = vld [vmem:[%s6587_s9 + $0x2b4] sm:$0xf]  ;;  %v4399_v15 = vld [vmem:[%s6587_s9 + $0x2e8] sm:$0xf0] }
  0xa4   : > { %3188 = vmatpush.bf16.msrb.mxu0 %v4058_v27  ;;  %v5126_v26 = vor.u32 %v6118_v21, %v5125_v20  ;;  %v4173_v27 = vld [vmem:[%s6587_s9 + $0xf0] sm:$0xf]  ;;  %v6153_v20 = vld [vmem:[%s6587_s9 + $0x9b4] sm:$0xf]  ;;  %v5295_v21 = vld [vmem:[%s6587_s9 + $0x9e8] sm:$0xf0] }
  0xa5   : > { %3202 = vmatpush.bf16.msrb.mxu1 %v4506_v31  ;;  %v5992_v31 = vld [vmem:[%s6587_s9 + $0x4a4] sm:$0xf0]  ;;  %v5575_v60 = vld [vmem:[%s6587_s9 + $0xc18] sm:$0xf0] }
  0xa6   : > { %3216 = vmatpush.bf16.msrb.mxu2 %v4954_v32  ;;  %v5069_v32 = vld [vmem:[%s6587_s9 + $0x7f0] sm:$0xf] }
  0xa7   : > { %3230 = vmatpush.bf16.msrb.mxu3 %v5402_v35  ;;  %3189 = vmatmul.bf16.vlgmr.msrb.gmra.mxu0 %v6704_v5  ;;  %v6216_v35 = vld [vmem:[%s6587_s9 + $0xba4] sm:$0xf0] }
  0xa8   : > { %3237 = vmatpush.bf16.msra.mxu0 %v4454_v36  ;;  %3203 = vmatmul.bf16.vlgmr.msrb.gmra.mxu1 %v6723_v17  ;;  %v4174_v36 = vor.u32 %v5880_v28, %v4173_v27  ;;  %v5915_v27 = vld [vmem:[%s6587_s9 + $0x244] sm:$0xf]  ;;  %v4343_v28 = vld [vmem:[%s6587_s9 + $0x278] sm:$0xf0] }
  0xa9   : > { %3251 = vmatpush.bf16.msra.mxu1 %v4902_v37  ;;  %3217 = vmatmul.bf16.vlgmr.msrb.gmra.mxu2 %v6691_v59  ;;  %v4622_v37 = vor.u32 %v5992_v31, %v4621_v29  ;;  %v6027_v29 = vld [vmem:[%s6587_s9 + $0x5c4] sm:$0xf]  ;;  %v4791_v31 = vld [vmem:[%s6587_s9 + $0x5f8] sm:$0xf0] }
  0xaa   : > { %3265 = vmatpush.bf16.msra.mxu2 %v5350_v38  ;;  %3231 = vmatmul.bf16.vlgmr.msrb.gmra.mxu3 %v6715_v10  ;;  %v5070_v38 = vor.u32 %v6104_v33, %v5069_v32  ;;  %v6139_v32 = vld [vmem:[%s6587_s9 + $0x944] sm:$0xf]  ;;  %v5239_v33 = vld [vmem:[%s6587_s9 + $0x978] sm:$0xf0] }
  0xab   : > { %3279 = vmatpush.bf16.msra.mxu3 %v5798_v42  ;;  %v5518_v42 = vor.u32 %v6216_v35, %v5517_v34  ;;  %v6251_v34 = vld [vmem:[%s6587_s9 + $0xcc4] sm:$0xf]  ;;  %v5687_v35 = vld [vmem:[%s6587_s9 + $0xcf8] sm:$0xf0] }
  0xac   : > { %3238 = vmatpush.bf16.msra.mxu0 %v4398_v48  ;;  %v4118_v48 = vor.u32 %v5866_v40, %v4117_v39  ;;  %v5901_v39 = vld [vmem:[%s6587_s9 + $0x1d4] sm:$0xf]  ;;  %v4287_v40 = vld [vmem:[%s6587_s9 + $0x208] sm:$0xf0] }
  0xad   : > { %3252 = vmatpush.bf16.msra.mxu1 %v4846_v49  ;;  %v4061_v49 = vld [vmem:[%s6587_s9 + $0x10] sm:$0xf] }
  0xae   : > { %3266 = vmatpush.bf16.msra.mxu2 %v5294_v50  ;;  %v5852_v50 = vld [vmem:[%s6587_s9 + $0x44] sm:$0xf0] }
  0xaf   : > { %3280 = vmatpush.bf16.msra.mxu3 %v5742_v54  ;;  %v5964_v54 = vld [vmem:[%s6587_s9 + $0x3c4] sm:$0xf0]  ;;  %v4062_v0 = vor.u32 %v5852_v50, %v4061_v49  ;;  %v4738_v49 = vor.u32 %v6013_v41, %v4735_v43  ;;  %v5186_v50 = vor.u32 %v6125_v44, %v5183_v45  ;;  %v6063_v44 = vld [vmem:[%s6587_s9 + $0x6dc] sm:$0xf0] }
  0xb0   : > { %3239 = vmatpush.bf16.msra.mxu0 %v4342_v61  ;;  %v5943_v61 = vld [vmem:[%s6587_s9 + $0x324] sm:$0xf]  ;;  %v4510_v4 = vor.u32 %v5964_v54, %v4509_v53  ;;  %v5634_v54 = vor.u32 %v6237_v46, %v5631_v47  ;;  %v4909_v41 = vld [vmem:[%s6587_s9 + $0x6a8] sm:$0xf]  ;;  %v6175_v46 = vld [vmem:[%s6587_s9 + $0xa5c] sm:$0xf0] }
  0xb1   : > { %3253 = vmatpush.bf16.msra.mxu1 %v4790_v62  ;;  %v4455_v62 = vld [vmem:[%s6587_s9 + $0x358] sm:$0xf0]  ;;  %v5999_v53 = vld [vmem:[%s6587_s9 + $0x4e4] sm:$0xf]  ;;  %v5357_v45 = vld [vmem:[%s6587_s9 + $0xa28] sm:$0xf] }
  0xb2   : > { %3267 = vmatpush.bf16.msra.mxu2 %v5238_v63  ;;  %v6055_v63 = vld [vmem:[%s6587_s9 + $0x6a4] sm:$0xf] }
  0xb3   : > { %3281 = vmatpush.bf16.msra.mxu3 %v5686_v3  ;;  %v5351_v3 = vld [vmem:[%s6587_s9 + $0xa58] sm:$0xf0] }
  0xb4   : > { %3240 = vmatpush.bf16.msra.mxu0 %v4286_v11  ;;  %v4458_v11 = vor.u32 %v5943_v61, %v4455_v62  ;;  %v4682_v62 = vor.u32 %v5999_v53, %v4679_v55  ;;  %v4910_v55 = vor.u32 %v6063_v44, %v4909_v41 }
  0xb5   : > { %3254 = vmatpush.bf16.msra.mxu1 %v4734_v12  ;;  %v4906_v12 = vor.u32 %v6055_v63, %v4903_v1  ;;  %v4175_v1 = vld [vmem:[%s6587_s9 + $0x128] sm:$0xf0] }
  0xb6   : > { %3268 = vmatpush.bf16.msra.mxu2 %v5182_v13  ;;  %v5354_v13 = vor.u32 %v6167_v2, %v5351_v3  ;;  %v5985_v2 = vld [vmem:[%s6587_s9 + $0x474] sm:$0xf]  ;;  %v5578_v3 = vor.u32 %v6223_v58, %v5575_v60  ;;  %v5937_v58 = vld [vmem:[%s6587_s9 + $0x2ec] sm:$0xf0]  ;;  %v4853_v60 = vld [vmem:[%s6587_s9 + $0x638] sm:$0xf] }
  0xb7   : > { %3282 = vmatpush.bf16.msra.mxu3 %v5630_v18  ;;  %v5802_v18 = vor.u32 %v6279_v7, %v5799_v8  ;;  %v5071_v7 = vld [vmem:[%s6587_s9 + $0x828] sm:$0xf0]  ;;  %v6209_v8 = vld [vmem:[%s6587_s9 + $0xb74] sm:$0xf] }
  0xb8   : > { %3241 = vmatpush.bf16.msra.mxu0 %v4230_v24  ;;  %v4402_v24 = vor.u32 %v5929_v14, %v4399_v15  ;;  %v5859_v14 = vld [vmem:[%s6587_s9 + $0x84] sm:$0xf]  ;;  %v4119_v15 = vld [vmem:[%s6587_s9 + $0xb8] sm:$0xf0] }
  0xb9   : > { %3255 = vmatpush.bf16.msra.mxu1 %v4678_v25  ;;  %v4850_v25 = vor.u32 %v6041_v16, %v4847_v19  ;;  %v5971_v16 = vld [vmem:[%s6587_s9 + $0x404] sm:$0xf]  ;;  %v4567_v19 = vld [vmem:[%s6587_s9 + $0x438] sm:$0xf0] }
  0xba   : > { %3269 = vmatpush.bf16.msra.mxu2 %v5126_v26  ;;  %v5298_v26 = vor.u32 %v6153_v20, %v5295_v21  ;;  %v6083_v20 = vld [vmem:[%s6587_s9 + $0x784] sm:$0xf]  ;;  %v5015_v21 = vld [vmem:[%s6587_s9 + $0x7b8] sm:$0xf0] }
  0xbb   : > { %3283 = vmatpush.bf16.msra.mxu3 %v5574_v30  ;;  %v5746_v30 = vor.u32 %v6265_v22, %v5743_v23  ;;  %v6195_v23 = vld [vmem:[%s6587_s9 + $0xb04] sm:$0xf] }
  0xbc   : > { %3242 = vmatpush.bf16.msra.mxu0 %v4174_v36  ;;  %v4346_v36 = vor.u32 %v5915_v27, %v4343_v28  ;;  %v5845_v27 = vld [vmem:[%s6587_s9 + $0x14] sm:$0xf]  ;;  %v4063_v28 = vld [vmem:[%s6587_s9 + $0x48] sm:$0xf0] }
  0xbd   : > { %3256 = vmatpush.bf16.msra.mxu1 %v4622_v37  ;;  %v4794_v37 = vor.u32 %v6027_v29, %v4791_v31  ;;  %v4570_v29 = vor.u32 %v5971_v16, %v4567_v19  ;;  %v7036_v31 = vld [vmem:[%s6595_s10] sm:$0xff]  ;;  %v4066_v43 = vor.u32 %v5845_v27, %v4063_v28  ;;  %v5245_v16 = vld [vmem:[%s6587_s9 + $0x948] sm:$0xf] }
  0xbe   : > { %3270 = vmatpush.bf16.msra.mxu2 %v5070_v38  ;;  %v5242_v38 = vor.u32 %v6139_v32, %v5239_v33  ;;  %v5957_v32 = vld [vmem:[%s6587_s9 + $0x394] sm:$0xf]  ;;  %v4511_v33 = vld [vmem:[%s6587_s9 + $0x3c8] sm:$0xf0]  ;;  %v5693_v19 = vld [vmem:[%s6587_s9 + $0xcc8] sm:$0xf] }
  0xbf   : > { %3284 = vmatpush.bf16.msra.mxu3 %v5518_v42  ;;  %v5690_v42 = vor.u32 %v6251_v34, %v5687_v35  ;;  %v6069_v34 = vld [vmem:[%s6587_s9 + $0x714] sm:$0xf]  ;;  %v5909_v28 = vld [vmem:[%s6587_s9 + $0x20c] sm:$0xf0] }
  0xc0   : > { %3243 = vmatpush.bf16.msra.mxu0 %v4118_v48  ;;  %v4290_v48 = vor.u32 %v5901_v39, %v4287_v40  ;;  %v4461_v39 = vld [vmem:[%s6587_s9 + $0x328] sm:$0xf]  ;;  %v5951_v40 = vld [vmem:[%s6587_s9 + $0x35c] sm:$0xf0] }
  0xc1   : > { %3257 = vmatpush.bf16.msra.mxu1 %v4566_v51  ;;  %v5887_v51 = vld [vmem:[%s6587_s9 + $0x164] sm:$0xf] }
  0xc2   : > { %3271 = vmatpush.bf16.msra.mxu2 %v5014_v52  ;;  %v4231_v52 = vld [vmem:[%s6587_s9 + $0x198] sm:$0xf0] }
  0xc3   : > { %3285 = vmatpush.bf16.msra.mxu3 %v5462_v56  ;;  %v6111_v56 = vld [vmem:[%s6587_s9 + $0x864] sm:$0xf]  ;;  %v4234_v61 = vor.u32 %v5887_v51, %v4231_v52  ;;  %v6287_v51 = vld [vmem:[%s6587_s9 + $0xddc] sm:$0xf0]  ;;  %v725_v52 = vperm.slane %v7036_v31, 0 }
  0xc4   : > { %3244 = vmatpush.bf16.msra.mxu0 %v4062_v0  ;;  %v5130_v63 = vor.u32 %v6111_v56, %v5127_v57  ;;  %v5873_v0 = vld [vmem:[%s6587_s9 + $0xf4] sm:$0xf]  ;;  %v7027_v22 = vpop.f32.mrf.mxu0  ;;  %v5358_v56 = vor.u32 %v6175_v46, %v5357_v45  ;;  %v4405_v57 = vld [vmem:[%s6587_s9 + $0x2b8] sm:$0xf]  ;;  %v4237_v45 = vld [vmem:[%s6587_s9 + $0x168] sm:$0xf] }
  0xc5   : > { %3258 = vmatpush.bf16.msra.mxu1 %v4510_v4  ;;  %v4623_v4 = vld [vmem:[%s6587_s9 + $0x4a8] sm:$0xf0]  ;;  %v5895_v46 = vld [vmem:[%s6587_s9 + $0x19c] sm:$0xf0] }
  0xc6   : > { %3272 = vmatpush.bf16.msra.mxu2 %v4958_v6  ;;  %v6097_v6 = vld [vmem:[%s6587_s9 + $0x7f4] sm:$0xf] }
  0xc7   : > { %3286 = vmatpush.bf16.msra.mxu3 %v5406_v9  ;;  %3245 = vmatmul.bf16.vlgmr.msra.gmra.mxu0 %v6704_v5  ;;  %v5519_v9 = vld [vmem:[%s6587_s9 + $0xba8] sm:$0xf0] }
  0xc8   : > { %3293 = vmatpush.bf16.msrb.mxu0 %v4458_v11  ;;  %3259 = vmatmul.bf16.vlgmr.msra.gmra.mxu1 %v6723_v17  ;;  %v4178_v11 = vor.u32 %v5873_v0, %v4175_v1  ;;  %v6161_v0 = vld [vmem:[%s6587_s9 + $0x9ec] sm:$0xf0] }
  0xc9   : > { %3307 = vmatpush.bf16.msrb.mxu1 %v4906_v12  ;;  %3273 = vmatmul.bf16.vlgmr.msra.gmra.mxu2 %v6691_v59  ;;  %v4626_v12 = vor.u32 %v5985_v2, %v4623_v4  ;;  %v5749_v2 = vld [vmem:[%s6587_s9 + $0xd38] sm:$0xf] }
  0xca   : > { %3321 = vmatpush.bf16.msrb.mxu2 %v5354_v13  ;;  %3287 = vmatmul.bf16.vlgmr.msra.gmra.mxu3 %v6715_v10  ;;  %v5074_v13 = vor.u32 %v6097_v6, %v5071_v7  ;;  %v4406_v6 = vor.u32 %v5937_v58, %v4405_v57  ;;  %v5581_v57 = vld [vmem:[%s6587_s9 + $0xbe8] sm:$0xf]  ;;  %v6231_v58 = vld [vmem:[%s6587_s9 + $0xc1c] sm:$0xf0] }
  0xcb   : > { %3335 = vmatpush.bf16.msrb.mxu3 %v5802_v18  ;;  %v5522_v18 = vor.u32 %v6209_v8, %v5519_v9  ;;  %v4349_v9 = vld [vmem:[%s6587_s9 + $0x248] sm:$0xf] }
  0xcc   : > { %3294 = vmatpush.bf16.msrb.mxu0 %v4402_v24  ;;  %v5463_v24 = vld [vmem:[%s6587_s9 + $0xb38] sm:$0xf0]  ;;  %v3024_v1 = vpop.f32.mrf.mxu0 }
  0xcd   : > { %3308 = vmatpush.bf16.msrb.mxu1 %v4850_v25  ;;  %v7031_v25 = vpop.f32.mrf.mxu1  ;;  %v5466_v35 = vor.u32 %v6195_v23, %v5463_v24  ;;  %v7052_v47 = vpop.f32.mrf.mxu3  ;;  %v4293_v24 = vld [vmem:[%s6587_s9 + $0x1d8] sm:$0xf] }
  0xce   : > { %3322 = vmatpush.bf16.msrb.mxu2 %v5298_v26  ;;  %v4122_v26 = vor.u32 %v5859_v14, %v4119_v15  ;;  %v6035_v15 = vld [vmem:[%s6587_s9 + $0x5fc] sm:$0xf0] }
  0xcf   : > { %3336 = vmatpush.bf16.msrb.mxu3 %v5746_v30  ;;  %v5018_v30 = vor.u32 %v6083_v20, %v5015_v21  ;;  %v6259_v20 = vld [vmem:[%s6587_s9 + $0xcfc] sm:$0xf0] }
  0xd0   : > { %3295 = vmatpush.bf16.msrb.mxu0 %v4346_v36  ;;  %v4959_v36 = vld [vmem:[%s6587_s9 + $0x748] sm:$0xf0] }
  0xd1   : > { %3309 = vmatpush.bf16.msrb.mxu1 %v4794_v37  ;;  %v6181_v37 = vld [vmem:[%s6587_s9 + $0xa94] sm:$0xf] }
  0xd2   : > { %3323 = vmatpush.bf16.msrb.mxu2 %v5242_v38  ;;  %v5407_v38 = vld [vmem:[%s6587_s9 + $0xac8] sm:$0xf0] }
  0xd3   : > { %3337 = vmatpush.bf16.msrb.mxu3 %v5690_v42  ;;  %v7047_v42 = vpop.f32.mrf.mxu2  ;;  %v5410_v53 = vor.u32 %v6181_v37, %v5407_v38  ;;  %v5637_v37 = vld [vmem:[%s6587_s9 + $0xc58] sm:$0xf]  ;;  %v6245_v38 = vld [vmem:[%s6587_s9 + $0xc8c] sm:$0xf0] }
  0xd4   : > { %3296 = vmatpush.bf16.msrb.mxu0 %v4290_v48  ;;  %v4514_v48 = vor.u32 %v5957_v32, %v4511_v33  ;;  %v5694_v33 = vor.u32 %v6259_v20, %v5693_v19 }
  0xd5   : > { %3310 = vmatpush.bf16.msrb.mxu1 %v4738_v49  ;;  %v4962_v49 = vor.u32 %v6069_v34, %v4959_v36  ;;  %v7065_v4 = vpop.f32.mrf.mxu1  ;;  %v7084_v23 = vpop.f32.mrf.mxu3  ;;  %v6021_v34 = vld [vmem:[%s6587_s9 + $0x58c] sm:$0xf0] }
  0xd6   : > { %3324 = vmatpush.bf16.msrb.mxu2 %v5186_v50  ;;  %v5805_v50 = vld [vmem:[%s6587_s9 + $0xda8] sm:$0xf]  ;;  %v6133_v36 = vld [vmem:[%s6587_s9 + $0x90c] sm:$0xf0] }
  0xd7   : > { %3338 = vmatpush.bf16.msrb.mxu3 %v5634_v54  ;;  %v4462_v54 = vor.u32 %v5951_v40, %v4461_v39  ;;  %v4294_v39 = vor.u32 %v5909_v28, %v4293_v24  ;;  %v4573_v24 = vld [vmem:[%s6587_s9 + $0x408] sm:$0xf] }
  0xd8   : > { %3297 = vmatpush.bf16.msrb.mxu0 %v4234_v61  ;;  %v5806_v61 = vor.u32 %v6287_v51, %v5805_v50  ;;  %v3025_v50 = vadd.f32 %v3024_v1, %v725_v52  ;;  %v5638_v51 = vor.u32 %v6245_v38, %v5637_v37 }
  0xd9   : > { %3311 = vmatpush.bf16.msrb.mxu1 %v4682_v62  ;;  %v6049_v62 = vld [vmem:[%s6587_s9 + $0x66c] sm:$0xf0] }
  0xda   : > { %3325 = vmatpush.bf16.msrb.mxu2 %v5130_v63  ;;  %v5301_v63 = vld [vmem:[%s6587_s9 + $0x9b8] sm:$0xf]  ;;  %v4854_v7 = vor.u32 %v6049_v62, %v4853_v60  ;;  %v4238_v60 = vor.u32 %v5895_v46, %v4237_v45 }
  0xdb   : > { %3339 = vmatpush.bf16.msrb.mxu3 %v5578_v3  ;;  %v6273_v3 = vld [vmem:[%s6587_s9 + $0xd6c] sm:$0xf0]  ;;  %v5302_v8 = vor.u32 %v6161_v0, %v5301_v63  ;;  %v7081_v21 = vpop.f32.mrf.mxu2  ;;  %v4181_v62 = vld [vmem:[%s6587_s9 + $0xf8] sm:$0xf] }
  0xdc   : > { %3298 = vmatpush.bf16.msrb.mxu0 %v4178_v11  ;;  %v5923_v11 = vld [vmem:[%s6587_s9 + $0x27c] sm:$0xf0]  ;;  %v5750_v14 = vor.u32 %v6273_v3, %v5749_v2  ;;  %v5881_v63 = vld [vmem:[%s6587_s9 + $0x12c] sm:$0xf0]  ;;  %v4629_v0 = vld [vmem:[%s6587_s9 + $0x478] sm:$0xf]  ;;  %v3039_v2 = vadd.f32 %v7065_v4, %v3025_v50  ;;  %v5582_v3 = vor.u32 %v6231_v58, %v5581_v57 }
  0xdd   : > { %3312 = vmatpush.bf16.msrb.mxu1 %v4626_v12  ;;  %v4797_v12 = vld [vmem:[%s6587_s9 + $0x5c8] sm:$0xf]  ;;  %v4965_v45 = vld [vmem:[%s6587_s9 + $0x718] sm:$0xf] }
  0xde   : > { %3326 = vmatpush.bf16.msrb.mxu2 %v5074_v13  ;;  %v3023_v13 = vadd.f32 %v7027_v22, %v725_v52  ;;  %v4350_v22 = vor.u32 %v5923_v11, %v4349_v9  ;;  %v5077_v9 = vld [vmem:[%s6587_s9 + $0x7f8] sm:$0xf]  ;;  %v6105_v11 = vld [vmem:[%s6587_s9 + $0x82c] sm:$0xf0]  ;;  %v3053_v28 = vadd.f32 %v7081_v21, %v3039_v2 }
  0xdf   : > { %3340 = vmatpush.bf16.msrb.mxu3 %v5522_v18  ;;  %v6147_v18 = vld [vmem:[%s6587_s9 + $0x97c] sm:$0xf0] }
  0xe0   : > { %3299 = vmatpush.bf16.msrb.mxu0 %v4122_v26  ;;  %v4798_v26 = vor.u32 %v6035_v15, %v4797_v12  ;;  %v5246_v27 = vor.u32 %v6147_v18, %v5245_v16  ;;  %v3037_v32 = vadd.f32 %v7031_v25, %v3023_v13  ;;  %v5525_v12 = vld [vmem:[%s6587_s9 + $0xb78] sm:$0xf]  ;;  %v6217_v13 = vld [vmem:[%s6587_s9 + $0xbac] sm:$0xf0]  ;;  %v4182_v15 = vor.u32 %v5881_v63, %v4181_v62  ;;  %v4125_v16 = vld [vmem:[%s6587_s9 + $0x88] sm:$0xf] }
  0xe1   : > { %3313 = vmatpush.bf16.msrb.mxu1 %v4570_v29  ;;  %v4741_v29 = vld [vmem:[%s6587_s9 + $0x558] sm:$0xf]  ;;  %v5078_v18 = vor.u32 %v6105_v11, %v5077_v9  ;;  %v3067_v46 = vadd.f32 %v7084_v23, %v3053_v28  ;;  %v6056_v23 = vld [vmem:[%s6587_s9 + $0x6ac] sm:$0xf]  ;;  %v5930_v9 = vld [vmem:[%s6587_s9 + $0x2bc] sm:$0xf] }
  0xe2   : > { %3327 = vmatpush.bf16.msrb.mxu2 %v5018_v30  ;;  %v726_v30 = vperm.slane %v7036_v31, 1  ;;  %v4742_v25 = vor.u32 %v6021_v34, %v4741_v29  ;;  %v6091_v34 = vld [vmem:[%s6587_s9 + $0x7bc] sm:$0xf0]  ;;  %v6280_v63 = vld [vmem:[%s6587_s9 + $0xdac] sm:$0xf] }
  0xe3   : > { %3341 = vmatpush.bf16.msrb.mxu3 %v5466_v35  ;;  %v5189_v35 = vld [vmem:[%s6587_s9 + $0x8d8] sm:$0xf]  ;;  %v4407_v11 = vld [vmem:[%s6587_s9 + $0x2f0] sm:$0xf0] }
  0xe4   : > { %3300 = vmatpush.bf16.msrb.mxu0 %v4066_v43  ;;  %v3078_v40 = vpop.f32.mrf.mxu0  ;;  %v5190_v41 = vor.u32 %v6133_v36, %v5189_v35  ;;  %v5469_v36 = vld [vmem:[%s6587_s9 + $0xb08] sm:$0xf] }
  0xe5   : > { %3314 = vmatpush.bf16.msrb.mxu1 %v4514_v48  ;;  %v3079_v43 = vadd.f32 %v3078_v40, %v726_v30  ;;  %v3092_v44 = vpop.f32.mrf.mxu1  ;;  %v4685_v48 = vld [vmem:[%s6587_s9 + $0x4e8] sm:$0xf]  ;;  %v5853_v40 = vld [vmem:[%s6587_s9 + $0x4c] sm:$0xf0] }
  0xe6   : > { %3328 = vmatpush.bf16.msrb.mxu2 %v4962_v49  ;;  %v3051_v49 = vadd.f32 %v7047_v42, %v3037_v32  ;;  %v5526_v32 = vor.u32 %v6217_v13, %v5525_v12  ;;  %v6042_v12 = vld [vmem:[%s6587_s9 + $0x63c] sm:$0xf] }
  0xe7   : > { %3342 = vmatpush.bf16.msrb.mxu3 %v5410_v53  ;;  %3301 = vmatmul.bf16.vlgmr.msrb.gmra.mxu0 %v6704_v5  ;;  %v6007_v53 = vld [vmem:[%s6587_s9 + $0x51c] sm:$0xf0] }
  0xe8   : > { %3349 = vmatpush.bf16.msra.mxu0 %v4462_v54  ;;  %3315 = vmatmul.bf16.vlgmr.msrb.gmra.mxu1 %v6723_v17  ;;  %v5133_v54 = vld [vmem:[%s6587_s9 + $0x868] sm:$0xf]  ;;  %v4686_v42 = vor.u32 %v6007_v53, %v4685_v48  ;;  %v3065_v1 = vadd.f32 %v7052_v47, %v3051_v49  ;;  %v5413_v53 = vld [vmem:[%s6587_s9 + $0xa98] sm:$0xf] }
  0xe9   : > { %3363 = vmatpush.bf16.msra.mxu1 %v4910_v55  ;;  %3329 = vmatmul.bf16.vlgmr.msrb.gmra.mxu2 %v6691_v59  ;;  %v6119_v55 = vld [vmem:[%s6587_s9 + $0x89c] sm:$0xf0] }
  0xea   : > { %3377 = vmatpush.bf16.msra.mxu2 %v5358_v56  ;;  %3343 = vmatmul.bf16.vlgmr.msrb.gmra.mxu3 %v6715_v10  ;;  %v3093_v56 = vadd.f32 %v3092_v44, %v3079_v43  ;;  %v5134_v52 = vor.u32 %v6119_v55, %v5133_v54  ;;  %v4517_v43 = vld [vmem:[%s6587_s9 + $0x398] sm:$0xf]  ;;  %v5965_v44 = vld [vmem:[%s6587_s9 + $0x3cc] sm:$0xf0]  ;;  %v5944_v55 = vld [vmem:[%s6587_s9 + $0x32c] sm:$0xf] }
  0xeb   : > { %3391 = vmatpush.bf16.msra.mxu3 %v5806_v61  ;;  %v6189_v54 = vld [vmem:[%s6587_s9 + $0xacc] sm:$0xf0] }
  0xec   : > { %3350 = vmatpush.bf16.msra.mxu0 %v4406_v6  ;;  %v3106_v61 = vpop.f32.mrf.mxu2  ;;  %v3080_v47 = vpop.f32.mrf.mxu0 }
  0xed   : > { %3364 = vmatpush.bf16.msra.mxu1 %v4854_v7  ;;  %v3107_v6 = vadd.f32 %v3106_v61, %v3093_v56  ;;  %v3120_v7 = vpop.f32.mrf.mxu3  ;;  %v3081_v19 = vadd.f32 %v3080_v47, %v726_v30  ;;  %v3094_v20 = vpop.f32.mrf.mxu1  ;;  %v6203_v30 = vld [vmem:[%s6587_s9 + $0xb3c] sm:$0xf0]  ;;  %v4463_v56 = vld [vmem:[%s6587_s9 + $0x360] sm:$0xf0]  ;;  %v4518_v61 = vor.u32 %v5965_v44, %v4517_v43  ;;  %v6154_v47 = vld [vmem:[%s6587_s9 + $0x9bc] sm:$0xf] }
  0xee   : > { %3378 = vmatpush.bf16.msra.mxu2 %v5302_v8  ;;  %v5993_v8 = vld [vmem:[%s6587_s9 + $0x4ac] sm:$0xf0]  ;;  %v5470_v48 = vor.u32 %v6203_v30, %v5469_v36  ;;  %v5191_v43 = vld [vmem:[%s6587_s9 + $0x910] sm:$0xf0]  ;;  %v6238_v44 = vld [vmem:[%s6587_s9 + $0xc5c] sm:$0xf] }
  0xef   : > { %3392 = vmatpush.bf16.msra.mxu3 %v5750_v14  ;;  %v3121_v14 = vadd.f32 %v3120_v7, %v3107_v6  ;;  %v4630_v4 = vor.u32 %v5993_v8, %v4629_v0  ;;  %v3095_v35 = vadd.f32 %v3094_v20, %v3081_v19  ;;  %v5807_v0 = vld [vmem:[%s6587_s9 + $0xde0] sm:$0xf0]  ;;  %v4466_v6 = vor.u32 %v5944_v55, %v4463_v56  ;;  %v6112_v56 = vld [vmem:[%s6587_s9 + $0x86c] sm:$0xf] }
  0xf0   : > { %3351 = vmatpush.bf16.msra.mxu0 %v4350_v22  ;;  %v5867_v22 = vld [vmem:[%s6587_s9 + $0xbc] sm:$0xf0]  ;;  %v4410_v19 = vor.u32 %v5930_v9, %v4407_v11  ;;  %v4687_v55 = vld [vmem:[%s6587_s9 + $0x520] sm:$0xf0] }
  0xf1   : > { %3365 = vmatpush.bf16.msra.mxu1 %v4798_v26  ;;  %v5979_v26 = vld [vmem:[%s6587_s9 + $0x43c] sm:$0xf0]  ;;  %v3798_v29 = vmax.f32 %v3121_v14, 0.0  ;;  %v4126_v38 = vor.u32 %v5867_v22, %v4125_v16  ;;  %v5810_v14 = vor.u32 %v6280_v63, %v5807_v0  ;;  %v5303_v16 = vld [vmem:[%s6587_s9 + $0x9f0] sm:$0xf0] }
  0xf2   : > { %3379 = vmatpush.bf16.msra.mxu2 %v5246_v27  ;;  %v3797_v27 = vmax.f32 %v3065_v1, 0.0  ;;  %v4574_v21 = vor.u32 %v5979_v26, %v4573_v24  ;;  %v3811_v1 = vmax.f32 %v3067_v46, 0.0  ;;  %v5306_v22 = vor.u32 %v6154_v47, %v5303_v16  ;;  %v5916_v24 = vld [vmem:[%s6587_s9 + $0x24c] sm:$0xf]  ;;  %v4351_v26 = vld [vmem:[%s6587_s9 + $0x280] sm:$0xf0] }
  0xf3   : > { %3393 = vmatpush.bf16.msra.mxu3 %v5694_v33  ;;  %v5021_v33 = vld [vmem:[%s6587_s9 + $0x788] sm:$0xf]  ;;  %v4354_v36 = vor.u32 %v5916_v24, %v4351_v26  ;;  %v5986_v63 = vld [vmem:[%s6587_s9 + $0x47c] sm:$0xf]  ;;  %v4575_v47 = vld [vmem:[%s6587_s9 + $0x440] sm:$0xf0] }
  0xf4   : > { %3352 = vmatpush.bf16.msra.mxu0 %v4294_v39  ;;  %v3825_v37 = vpack.c.bf16 %v3798_v29, %v3797_v27  ;;  %v4069_v39 = vld [vmem:[%s6587_s9 + $0x18] sm:$0xf]  ;;  %v6028_v27 = vld [vmem:[%s6587_s9 + $0x5cc] sm:$0xf]  ;;  %v4799_v29 = vld [vmem:[%s6587_s9 + $0x600] sm:$0xf0] }
  0xf5   : > { %3366 = vmatpush.bf16.msra.mxu1 %v4742_v25  ;;  %v5022_v25 = vor.u32 %v6091_v34, %v5021_v33  ;;  %v3122_v50 = vpop.f32.mrf.mxu3  ;;  %v4070_v58 = vor.u32 %v5853_v40, %v4069_v39  ;;  %v5247_v33 = vld [vmem:[%s6587_s9 + $0x980] sm:$0xf0]  ;;  %v6252_v34 = vld [vmem:[%s6587_s9 + $0xccc] sm:$0xf]  ;;  %v4802_v30 = vor.u32 %v6028_v27, %v4799_v29  ;;  %v4295_v39 = vld [vmem:[%s6587_s9 + $0x210] sm:$0xf0] }
  0xf6   : > { %3380 = vmatpush.bf16.msra.mxu2 %v5190_v41  ;;  %v3108_v41 = vpop.f32.mrf.mxu2  ;;  %3839 = vst [vmem:[%s7135_s11] sm:$0xff] %v3825_v37  ;;  %v6014_v40 = vld [vmem:[%s6587_s9 + $0x55c] sm:$0xf]  ;;  %v6084_v16 = vld [vmem:[%s6587_s9 + $0x78c] sm:$0xf]  ;;  %v4071_v27 = vld [vmem:[%s6587_s9 + $0x50] sm:$0xf0] }
  0xf7   : > { %3394 = vmatpush.bf16.msra.mxu3 %v5638_v51  ;;  %v3109_v49 = vadd.f32 %v3108_v41, %v3095_v35  ;;  %v6077_v51 = vld [vmem:[%s6587_s9 + $0x74c] sm:$0xf0]  ;;  %v5695_v35 = vld [vmem:[%s6587_s9 + $0xd00] sm:$0xf0]  ;;  %v6126_v41 = vld [vmem:[%s6587_s9 + $0x8dc] sm:$0xf] }
  0xf8   : > { %3353 = vmatpush.bf16.msra.mxu0 %v4238_v60  ;;  %v4911_v60 = vld [vmem:[%s6587_s9 + $0x6e0] sm:$0xf0]  ;;  %v4966_v62 = vor.u32 %v6077_v51, %v4965_v45  ;;  %v5639_v45 = vld [vmem:[%s6587_s9 + $0xc90] sm:$0xf0]  ;;  %v5846_v26 = vld [vmem:[%s6587_s9 + $0x1c] sm:$0xf] }
  0xf9   : > { %3367 = vmatpush.bf16.msra.mxu1 %v4686_v42  ;;  %v3123_v57 = vadd.f32 %v3122_v50, %v3109_v49  ;;  %v6168_v42 = vld [vmem:[%s6587_s9 + $0xa2c] sm:$0xf]  ;;  %v4914_v7 = vor.u32 %v6056_v23, %v4911_v60  ;;  %v5194_v49 = vor.u32 %v6126_v41, %v5191_v43  ;;  %v4239_v51 = vld [vmem:[%s6587_s9 + $0x1a0] sm:$0xf0]  ;;  %v6064_v41 = vld [vmem:[%s6587_s9 + $0x6e4] sm:$0xf0] }
  0xfa   : > { %3381 = vmatpush.bf16.msra.mxu2 %v5134_v52  ;;  %v5359_v52 = vld [vmem:[%s6587_s9 + $0xa60] sm:$0xf0]  ;;  %v5888_v50 = vld [vmem:[%s6587_s9 + $0x16c] sm:$0xf]  ;;  %v5365_v43 = vld [vmem:[%s6587_s9 + $0xa30] sm:$0xf] }
  0xfb   : > { %3395 = vmatpush.bf16.msra.mxu3 %v5582_v3  ;;  %v3812_v2 = vmax.f32 %v3123_v57, 0.0  ;;  %v5414_v3 = vor.u32 %v6189_v54, %v5413_v53  ;;  %v5362_v8 = vor.u32 %v6168_v42, %v5359_v52  ;;  %v6000_v53 = vld [vmem:[%s6587_s9 + $0x4ec] sm:$0xf]  ;;  %v5642_v54 = vor.u32 %v6238_v44, %v5639_v45  ;;  %v5135_v23 = vld [vmem:[%s6587_s9 + $0x8a0] sm:$0xf0] }
  0xfc   : > { %3354 = vmatpush.bf16.msra.mxu0 %v4182_v15  ;;  %v4855_v15 = vld [vmem:[%s6587_s9 + $0x670] sm:$0xf0]  ;;  %v6224_v57 = vld [vmem:[%s6587_s9 + $0xbec] sm:$0xf]  ;;  %v4242_v60 = vor.u32 %v5888_v50, %v4239_v51  ;;  %v4690_v42 = vor.u32 %v6000_v53, %v4687_v55  ;;  %v5138_v52 = vor.u32 %v6112_v56, %v5135_v23  ;;  %v6176_v44 = vld [vmem:[%s6587_s9 + $0xa64] sm:$0xf0] }
  0xfd   : > { %3368 = vmatpush.bf16.msra.mxu1 %v4630_v4  ;;  %v3832_v13 = vpack.c.bf16 %v3812_v2, %v3811_v1  ;;  %v6266_v4 = vld [vmem:[%s6587_s9 + $0xd3c] sm:$0xf]  ;;  %v4858_v20 = vor.u32 %v6042_v12, %v4855_v15  ;;  %v4631_v1 = vld [vmem:[%s6587_s9 + $0x4b0] sm:$0xf0]  ;;  %v5860_v12 = vld [vmem:[%s6587_s9 + $0x8c] sm:$0xf]  ;;  %v5366_v56 = vor.u32 %v6176_v44, %v5365_v43 }
  0xfe   : > { %3382 = vmatpush.bf16.msra.mxu2 %v5078_v18  ;;  %v5751_v18 = vld [vmem:[%s6587_s9 + $0xd70] sm:$0xf0]  ;;  %v6098_v2 = vld [vmem:[%s6587_s9 + $0x7fc] sm:$0xf]  ;;  %v4634_v9 = vor.u32 %v5986_v63, %v4631_v1  ;;  %v6288_v50 = vld [vmem:[%s6587_s9 + $0xde4] sm:$0xf0] }
  0xff   : > { %3396 = vmatpush.bf16.msra.mxu3 %v5526_v32  ;;  %3846 = vst [vmem:[%s7135_s11 + $0x38] sm:$0xff] %v3832_v13  ;;  %v5754_v28 = vor.u32 %v6266_v4, %v5751_v18  ;;  %v6140_v32 = vld [vmem:[%s6587_s9 + $0x94c] sm:$0xf]  ;;  %v4127_v13 = vld [vmem:[%s6587_s9 + $0xc0] sm:$0xf0]  ;;  %v727_v51 = vperm.slane %v7036_v31, 2 }
 0x100   : > { %3355 = vmatpush.bf16.msra.mxu0 %v4126_v38  ;;  %v5250_v37 = vor.u32 %v6140_v32, %v5247_v33  ;;  %v5902_v38 = vld [vmem:[%s6587_s9 + $0x1dc] sm:$0xf]  ;;  %v5023_v4 = vld [vmem:[%s6587_s9 + $0x7c0] sm:$0xf0]  ;;  %v4130_v24 = vor.u32 %v5860_v12, %v4127_v13  ;;  %v4519_v33 = vld [vmem:[%s6587_s9 + $0x3d0] sm:$0xf0] }
 0x101   : > { %3369 = vmatpush.bf16.msra.mxu1 %v4574_v21  ;;  %v5698_v21 = vor.u32 %v6252_v34, %v5695_v35  ;;  %v4298_v46 = vor.u32 %v5902_v38, %v4295_v39  ;;  %v5026_v29 = vor.u32 %v6084_v16, %v5023_v4  ;;  %v5958_v32 = vld [vmem:[%s6587_s9 + $0x39c] sm:$0xf]  ;;  %v4469_v38 = vld [vmem:[%s6587_s9 + $0x330] sm:$0xf]  ;;  %v5952_v39 = vld [vmem:[%s6587_s9 + $0x364] sm:$0xf0] }
 0x102   : > { %3383 = vmatpush.bf16.msra.mxu2 %v5022_v25  ;;  %v4743_v25 = vld [vmem:[%s6587_s9 + $0x590] sm:$0xf0]  ;;  %v6070_v34 = vld [vmem:[%s6587_s9 + $0x71c] sm:$0xf]  ;;  %v4413_v23 = vld [vmem:[%s6587_s9 + $0x2c0] sm:$0xf] }
 0x103   : > { %3397 = vmatpush.bf16.msra.mxu3 %v5470_v48  ;;  %v4746_v48 = vor.u32 %v6014_v40, %v4743_v25  ;;  %v4917_v40 = vld [vmem:[%s6587_s9 + $0x6b0] sm:$0xf]  ;;  %v4074_v25 = vor.u32 %v5846_v26, %v4071_v27  ;;  %v5757_v63 = vld [vmem:[%s6587_s9 + $0xd40] sm:$0xf]  ;;  %v6036_v13 = vld [vmem:[%s6587_s9 + $0x604] sm:$0xf0] }
 0x104   : > { %3356 = vmatpush.bf16.msra.mxu0 %v4070_v58  ;;  %v5583_v58 = vld [vmem:[%s6587_s9 + $0xc20] sm:$0xf0]  ;;  %v7200_v18 = vpop.f32.mrf.mxu0  ;;  %v4918_v55 = vor.u32 %v6064_v41, %v4917_v40  ;;  %v6260_v16 = vld [vmem:[%s6587_s9 + $0xd04] sm:$0xf0]  ;;  %v5910_v27 = vld [vmem:[%s6587_s9 + $0x214] sm:$0xf0] }
 0x105   : > { %3370 = vmatpush.bf16.msra.mxu1 %v4518_v61  ;;  %v5874_v61 = vld [vmem:[%s6587_s9 + $0xfc] sm:$0xf]  ;;  %v5586_v0 = vor.u32 %v6224_v57, %v5583_v58  ;;  %v5938_v57 = vld [vmem:[%s6587_s9 + $0x2f4] sm:$0xf0]  ;;  %v4861_v58 = vld [vmem:[%s6587_s9 + $0x640] sm:$0xf] }
 0x106   : > { %3384 = vmatpush.bf16.msra.mxu2 %v4966_v62  ;;  %v4183_v62 = vld [vmem:[%s6587_s9 + $0x130] sm:$0xf0]  ;;  %v4245_v43 = vld [vmem:[%s6587_s9 + $0x170] sm:$0xf]  ;;  %v5896_v44 = vld [vmem:[%s6587_s9 + $0x1a4] sm:$0xf0] }
 0x107   : > { %3398 = vmatpush.bf16.msra.mxu3 %v5414_v3  ;;  %3357 = vmatmul.bf16.vlgmr.msra.gmra.mxu0 %v6704_v5  ;;  %v5079_v3 = vld [vmem:[%s6587_s9 + $0x830] sm:$0xf0] }
 0x108   : > { %3405 = vmatpush.bf16.msrb.mxu0 %v4466_v6  ;;  %3371 = vmatmul.bf16.vlgmr.msra.gmra.mxu1 %v6723_v17  ;;  %v6210_v6 = vld [vmem:[%s6587_s9 + $0xb7c] sm:$0xf]  ;;  %v5082_v11 = vor.u32 %v6098_v2, %v5079_v3  ;;  %v4414_v2 = vor.u32 %v5938_v57, %v4413_v23  ;;  %v5589_v23 = vld [vmem:[%s6587_s9 + $0xbf0] sm:$0xf]  ;;  %v6232_v57 = vld [vmem:[%s6587_s9 + $0xc24] sm:$0xf0] }
 0x109   : > { %3419 = vmatpush.bf16.msrb.mxu1 %v4914_v7  ;;  %3385 = vmatmul.bf16.vlgmr.msra.gmra.mxu2 %v6691_v59  ;;  %v5527_v7 = vld [vmem:[%s6587_s9 + $0xbb0] sm:$0xf0] }
 0x10a   : > { %3433 = vmatpush.bf16.msrb.mxu2 %v5362_v8  ;;  %3399 = vmatmul.bf16.vlgmr.msra.gmra.mxu3 %v6715_v10  ;;  %v4186_v8 = vor.u32 %v5874_v61, %v4183_v62  ;;  %v5530_v15 = vor.u32 %v6210_v6, %v5527_v7  ;;  %v6162_v61 = vld [vmem:[%s6587_s9 + $0x9f4] sm:$0xf0]  ;;  %v4357_v7 = vld [vmem:[%s6587_s9 + $0x250] sm:$0xf] }
 0x10b   : > { %3447 = vmatpush.bf16.msrb.mxu3 %v5810_v14  ;;  %v5972_v14 = vld [vmem:[%s6587_s9 + $0x40c] sm:$0xf] }
 0x10c   : > { %3406 = vmatpush.bf16.msrb.mxu0 %v4410_v19  ;;  %v6196_v19 = vld [vmem:[%s6587_s9 + $0xb0c] sm:$0xf]  ;;  %v3136_v62 = vpop.f32.mrf.mxu0 }
 0x10d   : > { %3420 = vmatpush.bf16.msrb.mxu1 %v4858_v20  ;;  %v5471_v20 = vld [vmem:[%s6587_s9 + $0xb40] sm:$0xf0]  ;;  %v7222_v45 = vpop.f32.mrf.mxu3 }
 0x10e   : > { %3434 = vmatpush.bf16.msrb.mxu2 %v5306_v22  ;;  %v7204_v22 = vpop.f32.mrf.mxu1  ;;  %v5474_v35 = vor.u32 %v6196_v19, %v5471_v20  ;;  %v4301_v20 = vld [vmem:[%s6587_s9 + $0x1e0] sm:$0xf] }
 0x10f   : > { %3448 = vmatpush.bf16.msrb.mxu3 %v5754_v28  ;;  %v4578_v28 = vor.u32 %v5972_v14, %v4575_v47  ;;  %v5253_v14 = vld [vmem:[%s6587_s9 + $0x950] sm:$0xf] }
 0x110   : > { %3407 = vmatpush.bf16.msrb.mxu0 %v4354_v36  ;;  %v4967_v36 = vld [vmem:[%s6587_s9 + $0x750] sm:$0xf0]  ;;  %v5701_v47 = vld [vmem:[%s6587_s9 + $0xcd0] sm:$0xf] }
 0x111   : > { %3421 = vmatpush.bf16.msrb.mxu1 %v4802_v30  ;;  %v6182_v30 = vld [vmem:[%s6587_s9 + $0xa9c] sm:$0xf] }
 0x112   : > { %3435 = vmatpush.bf16.msrb.mxu2 %v5250_v37  ;;  %v5415_v37 = vld [vmem:[%s6587_s9 + $0xad0] sm:$0xf0] }
 0x113   : > { %3449 = vmatpush.bf16.msrb.mxu3 %v5698_v21  ;;  %v7217_v21 = vpop.f32.mrf.mxu2  ;;  %v5418_v53 = vor.u32 %v6182_v30, %v5415_v37  ;;  %v5645_v30 = vld [vmem:[%s6587_s9 + $0xc60] sm:$0xf]  ;;  %v6246_v37 = vld [vmem:[%s6587_s9 + $0xc94] sm:$0xf0] }
 0x114   : > { %3408 = vmatpush.bf16.msrb.mxu0 %v4298_v46  ;;  %v4522_v46 = vor.u32 %v5958_v32, %v4519_v33  ;;  %v5702_v33 = vor.u32 %v6260_v16, %v5701_v47  ;;  %v5868_v16 = vld [vmem:[%s6587_s9 + $0xc4] sm:$0xf0] }
 0x115   : > { %3422 = vmatpush.bf16.msrb.mxu1 %v4746_v48  ;;  %v4970_v48 = vor.u32 %v6070_v34, %v4967_v36  ;;  %v7254_v19 = vpop.f32.mrf.mxu3  ;;  %v6022_v34 = vld [vmem:[%s6587_s9 + $0x594] sm:$0xf0] }
 0x116   : > { %3436 = vmatpush.bf16.msrb.mxu2 %v5194_v49  ;;  %v5813_v49 = vld [vmem:[%s6587_s9 + $0xdb0] sm:$0xf]  ;;  %v7235_v1 = vpop.f32.mrf.mxu1  ;;  %v6134_v36 = vld [vmem:[%s6587_s9 + $0x914] sm:$0xf0] }
 0x117   : > { %3450 = vmatpush.bf16.msrb.mxu3 %v5642_v54  ;;  %v4470_v54 = vor.u32 %v5952_v39, %v4469_v38  ;;  %v4302_v38 = vor.u32 %v5910_v27, %v4301_v20  ;;  %v5980_v20 = vld [vmem:[%s6587_s9 + $0x444] sm:$0xf0] }
 0x118   : > { %3409 = vmatpush.bf16.msrb.mxu0 %v4242_v60  ;;  %v5814_v60 = vor.u32 %v6288_v50, %v5813_v49  ;;  %v3137_v49 = vadd.f32 %v3136_v62, %v727_v51  ;;  %v5646_v50 = vor.u32 %v6246_v37, %v5645_v30  ;;  %v4077_v37 = vld [vmem:[%s6587_s9 + $0x20] sm:$0xf] }
 0x119   : > { %3423 = vmatpush.bf16.msrb.mxu1 %v4690_v42  ;;  %v6050_v42 = vld [vmem:[%s6587_s9 + $0x674] sm:$0xf0] }
 0x11a   : > { %3437 = vmatpush.bf16.msrb.mxu2 %v5138_v52  ;;  %v5309_v52 = vld [vmem:[%s6587_s9 + $0x9c0] sm:$0xf]  ;;  %v4862_v3 = vor.u32 %v6050_v42, %v4861_v58  ;;  %v4246_v58 = vor.u32 %v5896_v44, %v4245_v43  ;;  %v5882_v42 = vld [vmem:[%s6587_s9 + $0x134] sm:$0xf0]  ;;  %v3151_v62 = vadd.f32 %v7235_v1, %v3137_v49 }
 0x11b   : > { %3451 = vmatpush.bf16.msrb.mxu3 %v5586_v0  ;;  %v6274_v0 = vld [vmem:[%s6587_s9 + $0xd74] sm:$0xf0]  ;;  %v5310_v6 = vor.u32 %v6162_v61, %v5309_v52  ;;  %v7251_v4 = vpop.f32.mrf.mxu2  ;;  %v4637_v52 = vld [vmem:[%s6587_s9 + $0x480] sm:$0xf] }
 0x11c   : > { %3410 = vmatpush.bf16.msrb.mxu0 %v4186_v8  ;;  %v5924_v8 = vld [vmem:[%s6587_s9 + $0x284] sm:$0xf0]  ;;  %v5758_v12 = vor.u32 %v6274_v0, %v5757_v63  ;;  %v5590_v63 = vor.u32 %v6232_v57, %v5589_v23  ;;  %v6078_v43 = vld [vmem:[%s6587_s9 + $0x754] sm:$0xf0] }
 0x11d   : > { %3424 = vmatpush.bf16.msrb.mxu1 %v4634_v9  ;;  %v4805_v9 = vld [vmem:[%s6587_s9 + $0x5d0] sm:$0xf] }
 0x11e   : > { %3438 = vmatpush.bf16.msrb.mxu2 %v5082_v11  ;;  %v3135_v11 = vadd.f32 %v7200_v18, %v727_v51  ;;  %v4358_v18 = vor.u32 %v5924_v8, %v4357_v7  ;;  %v6106_v7 = vld [vmem:[%s6587_s9 + $0x834] sm:$0xf0]  ;;  %v5533_v8 = vld [vmem:[%s6587_s9 + $0xb80] sm:$0xf] }
 0x11f   : > { %3452 = vmatpush.bf16.msrb.mxu3 %v5530_v15  ;;  %v6148_v15 = vld [vmem:[%s6587_s9 + $0x984] sm:$0xf0] }
 0x120   : > { %3411 = vmatpush.bf16.msrb.mxu0 %v4130_v24  ;;  %v4806_v24 = vor.u32 %v6036_v13, %v4805_v9  ;;  %v5254_v26 = vor.u32 %v6148_v15, %v5253_v14  ;;  %v3149_v32 = vadd.f32 %v7204_v22, %v3135_v11  ;;  %v6218_v9 = vld [vmem:[%s6587_s9 + $0xbb4] sm:$0xf0] }
 0x121   : > { %3425 = vmatpush.bf16.msrb.mxu1 %v4578_v28  ;;  %v4749_v28 = vld [vmem:[%s6587_s9 + $0x560] sm:$0xf] }
 0x122   : > { %3439 = vmatpush.bf16.msrb.mxu2 %v5026_v29  ;;  %v728_v29 = vperm.slane %v7036_v31, 3  ;;  %v4750_v22 = vor.u32 %v6022_v34, %v4749_v28  ;;  %v5534_v28 = vor.u32 %v6218_v9, %v5533_v8 }
 0x123   : > { %3453 = vmatpush.bf16.msrb.mxu3 %v5474_v35  ;;  %v5197_v35 = vld [vmem:[%s6587_s9 + $0x8e0] sm:$0xf] }
 0x124   : > { %3412 = vmatpush.bf16.msrb.mxu0 %v4074_v25  ;;  %v3190_v39 = vpop.f32.mrf.mxu0  ;;  %v5198_v40 = vor.u32 %v6134_v36, %v5197_v35  ;;  %v6204_v35 = vld [vmem:[%s6587_s9 + $0xb44] sm:$0xf0] }
 0x125   : > { %3426 = vmatpush.bf16.msrb.mxu1 %v4522_v46  ;;  %v3191_v25 = vadd.f32 %v3190_v39, %v728_v29  ;;  %v3204_v41 = vpop.f32.mrf.mxu1  ;;  %v4693_v46 = vld [vmem:[%s6587_s9 + $0x4f0] sm:$0xf]  ;;  %v4525_v39 = vld [vmem:[%s6587_s9 + $0x3a0] sm:$0xf] }
 0x126   : > { %3440 = vmatpush.bf16.msrb.mxu2 %v4970_v48  ;;  %v3163_v48 = vadd.f32 %v7217_v21, %v3149_v32  ;;  %v5029_v32 = vld [vmem:[%s6587_s9 + $0x790] sm:$0xf] }
 0x127   : > { %3454 = vmatpush.bf16.msrb.mxu3 %v5418_v53  ;;  %3413 = vmatmul.bf16.vlgmr.msrb.gmra.mxu0 %v6704_v5  ;;  %v6008_v53 = vld [vmem:[%s6587_s9 + $0x524] sm:$0xf0] }
 0x128   : > { %3461 = vmatpush.bf16.msra.mxu0 %v4470_v54  ;;  %3427 = vmatmul.bf16.vlgmr.msrb.gmra.mxu1 %v6723_v17  ;;  %v5141_v54 = vld [vmem:[%s6587_s9 + $0x870] sm:$0xf]  ;;  %v4694_v31 = vor.u32 %v6008_v53, %v4693_v46  ;;  %v3177_v61 = vadd.f32 %v7222_v45, %v3163_v48  ;;  %v6190_v53 = vld [vmem:[%s6587_s9 + $0xad4] sm:$0xf0] }
 0x129   : > { %3475 = vmatpush.bf16.msra.mxu1 %v4918_v55  ;;  %3441 = vmatmul.bf16.vlgmr.msrb.gmra.mxu2 %v6691_v59  ;;  %v6120_v55 = vld [vmem:[%s6587_s9 + $0x8a4] sm:$0xf0]  ;;  %v4133_v45 = vld [vmem:[%s6587_s9 + $0x90] sm:$0xf] }
 0x12a   : > { %3489 = vmatpush.bf16.msra.mxu2 %v5366_v56  ;;  %3455 = vmatmul.bf16.vlgmr.msrb.gmra.mxu3 %v6715_v10  ;;  %v3205_v56 = vadd.f32 %v3204_v41, %v3191_v25  ;;  %v5142_v21 = vor.u32 %v6120_v55, %v5141_v54  ;;  %v4134_v30 = vor.u32 %v5868_v16, %v4133_v45  ;;  %v5966_v25 = vld [vmem:[%s6587_s9 + $0x3d4] sm:$0xf0]  ;;  %v4973_v41 = vld [vmem:[%s6587_s9 + $0x720] sm:$0xf]  ;;  %v5945_v54 = vld [vmem:[%s6587_s9 + $0x334] sm:$0xf] }
 0x12b   : > { %3503 = vmatpush.bf16.msra.mxu3 %v5814_v60  ;;  %v4189_v60 = vld [vmem:[%s6587_s9 + $0x100] sm:$0xf]  ;;  %v4471_v55 = vld [vmem:[%s6587_s9 + $0x368] sm:$0xf0]  ;;  %v6267_v45 = vld [vmem:[%s6587_s9 + $0xd44] sm:$0xf] }
 0x12c   : > { %3462 = vmatpush.bf16.msra.mxu0 %v4414_v2  ;;  %v3218_v51 = vpop.f32.mrf.mxu2  ;;  %v3192_v13 = vpop.f32.mrf.mxu0  ;;  %v5917_v16 = vld [vmem:[%s6587_s9 + $0x254] sm:$0xf] }
 0x12d   : > { %3476 = vmatpush.bf16.msra.mxu1 %v4862_v3  ;;  %v3219_v0 = vadd.f32 %v3218_v51, %v3205_v56  ;;  %v3232_v2 = vpop.f32.mrf.mxu3  ;;  %v5994_v3 = vld [vmem:[%s6587_s9 + $0x4b4] sm:$0xf0]  ;;  %v3193_v15 = vadd.f32 %v3192_v13, %v728_v29  ;;  %v3206_v47 = vpop.f32.mrf.mxu1  ;;  %v5477_v29 = vld [vmem:[%s6587_s9 + $0xb10] sm:$0xf]  ;;  %v6057_v56 = vld [vmem:[%s6587_s9 + $0x6b4] sm:$0xf]  ;;  %v4974_v51 = vor.u32 %v6078_v43, %v4973_v41 }
 0x12e   : > { %3490 = vmatpush.bf16.msra.mxu2 %v5310_v6  ;;  %v5085_v6 = vld [vmem:[%s6587_s9 + $0x800] sm:$0xf]  ;;  %v4638_v1 = vor.u32 %v5994_v3, %v4637_v52  ;;  %v5478_v46 = vor.u32 %v6204_v35, %v5477_v29  ;;  %v5931_v3 = vld [vmem:[%s6587_s9 + $0x2c4] sm:$0xf]  ;;  %v5311_v13 = vld [vmem:[%s6587_s9 + $0x9f8] sm:$0xf0] }
 0x12f   : > { %3504 = vmatpush.bf16.msra.mxu3 %v5758_v12  ;;  %v3233_v11 = vadd.f32 %v3232_v2, %v3219_v0  ;;  %v4190_v12 = vor.u32 %v5882_v42, %v4189_v60  ;;  %v5086_v14 = vor.u32 %v6106_v7, %v5085_v6  ;;  %v3207_v34 = vadd.f32 %v3206_v47, %v3193_v15  ;;  %v6281_v60 = vld [vmem:[%s6587_s9 + $0xdb4] sm:$0xf]  ;;  %v5815_v42 = vld [vmem:[%s6587_s9 + $0xde8] sm:$0xf0]  ;;  %v4415_v6 = vld [vmem:[%s6587_s9 + $0x2f8] sm:$0xf0] }
 0x130   : > { %3463 = vmatpush.bf16.msra.mxu0 %v4358_v18  ;;  %v4581_v18 = vld [vmem:[%s6587_s9 + $0x410] sm:$0xf]  ;;  %v6043_v7 = vld [vmem:[%s6587_s9 + $0x644] sm:$0xf]  ;;  %v5818_v9 = vor.u32 %v6281_v60, %v5815_v42  ;;  %v4639_v42 = vld [vmem:[%s6587_s9 + $0x4b8] sm:$0xf0] }
 0x131   : > { %3477 = vmatpush.bf16.msra.mxu1 %v4806_v24  ;;  %v3799_v24 = vmax.f32 %v3177_v61, 0.0  ;;  %v3800_v27 = vmax.f32 %v3233_v11, 0.0  ;;  %v4863_v11 = vld [vmem:[%s6587_s9 + $0x678] sm:$0xf0] }
 0x132   : > { %3491 = vmatpush.bf16.msra.mxu2 %v5254_v26  ;;  %v3165_v26 = vadd.f32 %v7251_v4, %v3151_v62  ;;  %v4582_v4 = vor.u32 %v5980_v20, %v4581_v18  ;;  %v4866_v15 = vor.u32 %v6043_v7, %v4863_v11  ;;  %v4359_v18 = vld [vmem:[%s6587_s9 + $0x288] sm:$0xf0]  ;;  %v6029_v20 = vld [vmem:[%s6587_s9 + $0x5d4] sm:$0xf] }
 0x133   : > { %3505 = vmatpush.bf16.msra.mxu3 %v5702_v33  ;;  %v6092_v33 = vld [vmem:[%s6587_s9 + $0x7c4] sm:$0xf0]  ;;  %v3826_v36 = vpack.c.bf16 %v3800_v27, %v3799_v24  ;;  %v6141_v27 = vld [vmem:[%s6587_s9 + $0x954] sm:$0xf]  ;;  %v4135_v7 = vld [vmem:[%s6587_s9 + $0xc8] sm:$0xf0] }
 0x134   : > { %3464 = vmatpush.bf16.msra.mxu0 %v4302_v38  ;;  %v5854_v38 = vld [vmem:[%s6587_s9 + $0x54] sm:$0xf0]  ;;  %v3179_v44 = vadd.f32 %v7254_v19, %v3165_v26  ;;  %v5367_v19 = vld [vmem:[%s6587_s9 + $0xa68] sm:$0xf0] }
 0x135   : > { %3478 = vmatpush.bf16.msra.mxu1 %v4750_v22  ;;  %v5030_v22 = vor.u32 %v6092_v33, %v5029_v32  ;;  %3840 = vst [vmem:[%s7135_s11 + $0x8] sm:$0xff] %v3826_v36  ;;  %v3234_v49 = vpop.f32.mrf.mxu3  ;;  %v4078_v57 = vor.u32 %v5854_v38, %v4077_v37  ;;  %v4807_v26 = vld [vmem:[%s6587_s9 + $0x608] sm:$0xf0]  ;;  %v6253_v32 = vld [vmem:[%s6587_s9 + $0xcd4] sm:$0xf] }
 0x136   : > { %3492 = vmatpush.bf16.msra.mxu2 %v5198_v40  ;;  %v3220_v40 = vpop.f32.mrf.mxu2  ;;  %v3813_v52 = vmax.f32 %v3179_v44, 0.0  ;;  %v5703_v33 = vld [vmem:[%s6587_s9 + $0xd08] sm:$0xf0]  ;;  %v4810_v29 = vor.u32 %v6029_v20, %v4807_v26  ;;  %v5903_v36 = vld [vmem:[%s6587_s9 + $0x1e4] sm:$0xf] }
 0x137   : > { %3506 = vmatpush.bf16.msra.mxu3 %v5646_v50  ;;  %v3221_v48 = vadd.f32 %v3220_v40, %v3207_v34  ;;  %v5421_v50 = vld [vmem:[%s6587_s9 + $0xaa0] sm:$0xf]  ;;  %v4362_v34 = vor.u32 %v5917_v16, %v4359_v18  ;;  %v6015_v37 = vld [vmem:[%s6587_s9 + $0x564] sm:$0xf]  ;;  %v5706_v38 = vor.u32 %v6253_v32, %v5703_v33  ;;  %v4583_v11 = vld [vmem:[%s6587_s9 + $0x448] sm:$0xf0] }
 0x138   : > { %3465 = vmatpush.bf16.msra.mxu0 %v4246_v58  ;;  %v4919_v58 = vld [vmem:[%s6587_s9 + $0x6e8] sm:$0xf0]  ;;  %v5422_v62 = vor.u32 %v6190_v53, %v5421_v50  ;;  %v6239_v40 = vld [vmem:[%s6587_s9 + $0xc64] sm:$0xf]  ;;  %v4079_v18 = vld [vmem:[%s6587_s9 + $0x58] sm:$0xf0] }
 0x139   : > { %3479 = vmatpush.bf16.msra.mxu1 %v4694_v31  ;;  %v3235_v23 = vadd.f32 %v3234_v49, %v3221_v48  ;;  %v6169_v31 = vld [vmem:[%s6587_s9 + $0xa34] sm:$0xf]  ;;  %v4922_v0 = vor.u32 %v6057_v56, %v4919_v58  ;;  %v4247_v48 = vld [vmem:[%s6587_s9 + $0x1a8] sm:$0xf0]  ;;  %v5847_v16 = vld [vmem:[%s6587_s9 + $0x24] sm:$0xf] }
 0x13a   : > { %3493 = vmatpush.bf16.msra.mxu2 %v5142_v21  ;;  %v4526_v21 = vor.u32 %v5966_v25, %v4525_v39  ;;  %v5370_v2 = vor.u32 %v6169_v31, %v5367_v19  ;;  %v4751_v39 = vld [vmem:[%s6587_s9 + $0x598] sm:$0xf0]  ;;  %v6001_v49 = vld [vmem:[%s6587_s9 + $0x4f4] sm:$0xf]  ;;  %v4695_v53 = vld [vmem:[%s6587_s9 + $0x528] sm:$0xf0] }
 0x13b   : > { %3507 = vmatpush.bf16.msra.mxu3 %v5590_v63  ;;  %v3814_v61 = vmax.f32 %v3235_v23, 0.0  ;;  %v4474_v63 = vor.u32 %v5945_v54, %v4471_v55  ;;  %v5647_v25 = vld [vmem:[%s6587_s9 + $0xc98] sm:$0xf0]  ;;  %v4754_v43 = vor.u32 %v6015_v37, %v4751_v39  ;;  %v6113_v54 = vld [vmem:[%s6587_s9 + $0x874] sm:$0xf]  ;;  %v4698_v58 = vor.u32 %v6001_v49, %v4695_v53 }
 0x13c   : > { %3466 = vmatpush.bf16.msra.mxu0 %v4190_v12  ;;  %v6155_v12 = vld [vmem:[%s6587_s9 + $0x9c4] sm:$0xf]  ;;  %v5650_v50 = vor.u32 %v6239_v40, %v5647_v25  ;;  %v5143_v55 = vld [vmem:[%s6587_s9 + $0x8a8] sm:$0xf0]  ;;  %v6225_v56 = vld [vmem:[%s6587_s9 + $0xbf4] sm:$0xf] }
 0x13d   : > { %3480 = vmatpush.bf16.msra.mxu1 %v4638_v1  ;;  %v3833_v8 = vpack.c.bf16 %v3814_v61, %v3813_v52  ;;  %v5759_v1 = vld [vmem:[%s6587_s9 + $0xd78] sm:$0xf0]  ;;  %v5314_v47 = vor.u32 %v6155_v12, %v5311_v13  ;;  %v5591_v23 = vld [vmem:[%s6587_s9 + $0xc28] sm:$0xf0]  ;;  %v5146_v31 = vor.u32 %v6113_v54, %v5143_v55  ;;  %v5875_v19 = vld [vmem:[%s6587_s9 + $0x104] sm:$0xf] }
 0x13e   : > { %3494 = vmatpush.bf16.msra.mxu2 %v5086_v14  ;;  %v4418_v14 = vor.u32 %v5931_v3, %v4415_v6  ;;  %v5762_v24 = vor.u32 %v6267_v45, %v5759_v1  ;;  %v5594_v60 = vor.u32 %v6225_v56, %v5591_v23  ;;  %v6099_v52 = vld [vmem:[%s6587_s9 + $0x804] sm:$0xf]  ;;  %v5087_v61 = vld [vmem:[%s6587_s9 + $0x838] sm:$0xf0]  ;;  %v5861_v6 = vld [vmem:[%s6587_s9 + $0x94] sm:$0xf] }
 0x13f   : > { %3508 = vmatpush.bf16.msra.mxu3 %v5534_v28  ;;  %3847 = vst [vmem:[%s7135_s11 + $0x40] sm:$0xff] %v3833_v8  ;;  %v5255_v28 = vld [vmem:[%s6587_s9 + $0x988] sm:$0xf0]  ;;  %v5090_v3 = vor.u32 %v6099_v52, %v5087_v61  ;;  %v5973_v8 = vld [vmem:[%s6587_s9 + $0x414] sm:$0xf] }
 0x140   : > { %3467 = vmatpush.bf16.msra.mxu0 %v4134_v30  ;;  %v5258_v35 = vor.u32 %v6141_v27, %v5255_v28  ;;  %v4303_v30 = vld [vmem:[%s6587_s9 + $0x218] sm:$0xf0]  ;;  %v6085_v12 = vld [vmem:[%s6587_s9 + $0x794] sm:$0xf]  ;;  %v5031_v13 = vld [vmem:[%s6587_s9 + $0x7c8] sm:$0xf0]  ;;  %v4586_v20 = vor.u32 %v5973_v8, %v4583_v11 }
 0x141   : > { %3481 = vmatpush.bf16.msra.mxu1 %v4582_v4  ;;  %v6127_v4 = vld [vmem:[%s6587_s9 + $0x8e4] sm:$0xf]  ;;  %v4306_v41 = vor.u32 %v5903_v36, %v4303_v30  ;;  %v6197_v1 = vld [vmem:[%s6587_s9 + $0xb14] sm:$0xf]  ;;  %v4527_v27 = vld [vmem:[%s6587_s9 + $0x3d8] sm:$0xf0] }
 0x142   : > { %3495 = vmatpush.bf16.msra.mxu2 %v5030_v22  ;;  %v5199_v22 = vld [vmem:[%s6587_s9 + $0x918] sm:$0xf0]  ;;  %v5959_v26 = vld [vmem:[%s6587_s9 + $0x3a4] sm:$0xf]  ;;  %v5953_v36 = vld [vmem:[%s6587_s9 + $0x36c] sm:$0xf0] }
 0x143   : > { %3509 = vmatpush.bf16.msra.mxu3 %v5478_v46  ;;  %v5202_v44 = vor.u32 %v6127_v4, %v5199_v22  ;;  %v5889_v46 = vld [vmem:[%s6587_s9 + $0x174] sm:$0xf]  ;;  %v6071_v28 = vld [vmem:[%s6587_s9 + $0x724] sm:$0xf]  ;;  %v4975_v33 = vld [vmem:[%s6587_s9 + $0x758] sm:$0xf0]  ;;  %v4530_v25 = vor.u32 %v5959_v26, %v4527_v27 }
 0x144   : > { %3468 = vmatpush.bf16.msra.mxu0 %v4078_v57  ;;  %v4250_v57 = vor.u32 %v5889_v46, %v4247_v48  ;;  %v7365_v45 = vpop.f32.mrf.mxu0  ;;  %v4925_v30 = vld [vmem:[%s6587_s9 + $0x6b8] sm:$0xf]  ;;  %v6065_v39 = vld [vmem:[%s6587_s9 + $0x6ec] sm:$0xf0]  ;;  %v4421_v55 = vld [vmem:[%s6587_s9 + $0x2c8] sm:$0xf] }
 0x145   : > { %3482 = vmatpush.bf16.msra.mxu1 %v4526_v21  ;;  %v4191_v21 = vld [vmem:[%s6587_s9 + $0x138] sm:$0xf0]  ;;  %v5373_v4 = vld [vmem:[%s6587_s9 + $0xa38] sm:$0xf]  ;;  %v6177_v22 = vld [vmem:[%s6587_s9 + $0xa6c] sm:$0xf0]  ;;  %v4926_v53 = vor.u32 %v6065_v39, %v4925_v30 }
 0x146   : > { %3496 = vmatpush.bf16.msra.mxu2 %v4974_v51  ;;  %v5987_v51 = vld [vmem:[%s6587_s9 + $0x484] sm:$0xf]  ;;  %v5374_v54 = vor.u32 %v6177_v22, %v5373_v4  ;;  %v5939_v56 = vld [vmem:[%s6587_s9 + $0x2fc] sm:$0xf0]  ;;  %v4869_v23 = vld [vmem:[%s6587_s9 + $0x648] sm:$0xf] }
 0x147   : > { %3510 = vmatpush.bf16.msra.mxu3 %v5422_v62  ;;  %3469 = vmatmul.bf16.vlgmr.msra.gmra.mxu0 %v6704_v5  ;;  %v6211_v62 = vld [vmem:[%s6587_s9 + $0xb84] sm:$0xf]  ;;  %v4422_v52 = vor.u32 %v5939_v56, %v4421_v55  ;;  %v5261_v8 = vld [vmem:[%s6587_s9 + $0x958] sm:$0xf]  ;;  %v5897_v22 = vld [vmem:[%s6587_s9 + $0x1ac] sm:$0xf0] }
 0x148   : > { %3517 = vmatpush.bf16.msrb.mxu0 %v4474_v63  ;;  %3483 = vmatmul.bf16.vlgmr.msra.gmra.mxu1 %v6723_v17  ;;  %v5535_v63 = vld [vmem:[%s6587_s9 + $0xbb8] sm:$0xf0]  ;;  %v7392_v46 = vld [vmem:[%s6595_s10] sm:$0xff]  ;;  %v5709_v11 = vld [vmem:[%s6587_s9 + $0xcd8] sm:$0xf] }
 0x149   : > { %3531 = vmatpush.bf16.msrb.mxu1 %v4922_v0  ;;  %3497 = vmatmul.bf16.vlgmr.msra.gmra.mxu2 %v6691_v59  ;;  %v4194_v0 = vor.u32 %v5875_v19, %v4191_v21  ;;  %v729_v48 = vperm.slane %v7392_v46, 4  ;;  %v6163_v19 = vld [vmem:[%s6587_s9 + $0x9fc] sm:$0xf0]  ;;  %v4253_v4 = vld [vmem:[%s6587_s9 + $0x178] sm:$0xf] }
 0x14a   : > { %3545 = vmatpush.bf16.msrb.mxu2 %v5370_v2  ;;  %3511 = vmatmul.bf16.vlgmr.msra.gmra.mxu3 %v6715_v10  ;;  %v4642_v2 = vor.u32 %v5987_v51, %v4639_v42  ;;  %v5765_v51 = vld [vmem:[%s6587_s9 + $0xd48] sm:$0xf]  ;;  %v5597_v55 = vld [vmem:[%s6587_s9 + $0xbf8] sm:$0xf]  ;;  %v6233_v56 = vld [vmem:[%s6587_s9 + $0xc2c] sm:$0xf0] }
 0x14b   : > { %3559 = vmatpush.bf16.msrb.mxu3 %v5818_v9  ;;  %v5538_v9 = vor.u32 %v6211_v62, %v5535_v63  ;;  %v4365_v63 = vld [vmem:[%s6587_s9 + $0x258] sm:$0xf] }
 0x14c   : > { %3518 = vmatpush.bf16.msrb.mxu0 %v4418_v14  ;;  %v5479_v14 = vld [vmem:[%s6587_s9 + $0xb48] sm:$0xf0]  ;;  %v7382_v37 = vpop.f32.mrf.mxu2  ;;  %v3248_v21 = vpop.f32.mrf.mxu0 }
 0x14d   : > { %3532 = vmatpush.bf16.msrb.mxu1 %v4866_v15  ;;  %v7369_v15 = vpop.f32.mrf.mxu1  ;;  %v5482_v32 = vor.u32 %v6197_v1, %v5479_v14  ;;  %v7387_v40 = vpop.f32.mrf.mxu3  ;;  %v4309_v14 = vld [vmem:[%s6587_s9 + $0x1e8] sm:$0xf] }
 0x14e   : > { %3546 = vmatpush.bf16.msrb.mxu2 %v5314_v47  ;;  %v4138_v47 = vor.u32 %v5861_v6, %v4135_v7  ;;  %v6037_v7 = vld [vmem:[%s6587_s9 + $0x60c] sm:$0xf0] }
 0x14f   : > { %3560 = vmatpush.bf16.msrb.mxu3 %v5762_v24  ;;  %v5034_v24 = vor.u32 %v6085_v12, %v5031_v13  ;;  %v6261_v12 = vld [vmem:[%s6587_s9 + $0xd0c] sm:$0xf0] }
 0x150   : > { %3519 = vmatpush.bf16.msrb.mxu0 %v4362_v34  ;;  %v6183_v34 = vld [vmem:[%s6587_s9 + $0xaa4] sm:$0xf]  ;;  %v5710_v27 = vor.u32 %v6261_v12, %v5709_v11 }
 0x151   : > { %3533 = vmatpush.bf16.msrb.mxu1 %v4810_v29  ;;  %v5423_v29 = vld [vmem:[%s6587_s9 + $0xad8] sm:$0xf0] }
 0x152   : > { %3547 = vmatpush.bf16.msrb.mxu2 %v5258_v35  ;;  %v4477_v35 = vld [vmem:[%s6587_s9 + $0x338] sm:$0xf]  ;;  %v5426_v49 = vor.u32 %v6183_v34, %v5423_v29  ;;  %v5653_v34 = vld [vmem:[%s6587_s9 + $0xc68] sm:$0xf]  ;;  %v6247_v29 = vld [vmem:[%s6587_s9 + $0xc9c] sm:$0xf0] }
 0x153   : > { %3561 = vmatpush.bf16.msrb.mxu3 %v5706_v38  ;;  %v4082_v38 = vor.u32 %v5847_v16, %v4079_v18  ;;  %v5911_v18 = vld [vmem:[%s6587_s9 + $0x21c] sm:$0xf0] }
 0x154   : > { %3520 = vmatpush.bf16.msrb.mxu0 %v4306_v41  ;;  %v4978_v41 = vor.u32 %v6071_v28, %v4975_v33  ;;  %v7419_v13 = vpop.f32.mrf.mxu2  ;;  %v6023_v28 = vld [vmem:[%s6587_s9 + $0x59c] sm:$0xf0] }
 0x155   : > { %3534 = vmatpush.bf16.msrb.mxu1 %v4754_v43  ;;  %v5821_v43 = vld [vmem:[%s6587_s9 + $0xdb8] sm:$0xf]  ;;  %v7403_v42 = vpop.f32.mrf.mxu1  ;;  %v7422_v1 = vpop.f32.mrf.mxu3  ;;  %v6135_v33 = vld [vmem:[%s6587_s9 + $0x91c] sm:$0xf0] }
 0x156   : > { %3548 = vmatpush.bf16.msrb.mxu2 %v5202_v44  ;;  %v6289_v44 = vld [vmem:[%s6587_s9 + $0xdec] sm:$0xf0] }
 0x157   : > { %3562 = vmatpush.bf16.msrb.mxu3 %v5650_v50  ;;  %v4478_v50 = vor.u32 %v5953_v36, %v4477_v35  ;;  %v4310_v35 = vor.u32 %v5911_v18, %v4309_v14  ;;  %v4589_v14 = vld [vmem:[%s6587_s9 + $0x418] sm:$0xf] }
 0x158   : > { %3521 = vmatpush.bf16.msrb.mxu0 %v4250_v57  ;;  %v5822_v57 = vor.u32 %v6289_v44, %v5821_v43  ;;  %v3249_v43 = vadd.f32 %v3248_v21, %v729_v48  ;;  %v5654_v44 = vor.u32 %v6247_v29, %v5653_v34 }
 0x159   : > { %3535 = vmatpush.bf16.msrb.mxu1 %v4698_v58  ;;  %v6051_v58 = vld [vmem:[%s6587_s9 + $0x67c] sm:$0xf0] }
 0x15a   : > { %3549 = vmatpush.bf16.msrb.mxu2 %v5146_v31  ;;  %v5317_v31 = vld [vmem:[%s6587_s9 + $0x9c8] sm:$0xf]  ;;  %v4870_v61 = vor.u32 %v6051_v58, %v4869_v23  ;;  %v4254_v23 = vor.u32 %v5897_v22, %v4253_v4  ;;  %v6079_v22 = vld [vmem:[%s6587_s9 + $0x75c] sm:$0xf0] }
 0x15b   : > { %3563 = vmatpush.bf16.msrb.mxu3 %v5594_v60  ;;  %v6275_v60 = vld [vmem:[%s6587_s9 + $0xd7c] sm:$0xf0]  ;;  %v5318_v62 = vor.u32 %v6163_v19, %v5317_v31  ;;  %v4197_v58 = vld [vmem:[%s6587_s9 + $0x108] sm:$0xf] }
 0x15c   : > { %3522 = vmatpush.bf16.msrb.mxu0 %v4194_v0  ;;  %v5925_v0 = vld [vmem:[%s6587_s9 + $0x28c] sm:$0xf0]  ;;  %v5766_v6 = vor.u32 %v6275_v60, %v5765_v51  ;;  %v5883_v31 = vld [vmem:[%s6587_s9 + $0x13c] sm:$0xf0]  ;;  %v4645_v19 = vld [vmem:[%s6587_s9 + $0x488] sm:$0xf]  ;;  %v3263_v51 = vadd.f32 %v7403_v42, %v3249_v43  ;;  %v5598_v60 = vor.u32 %v6233_v56, %v5597_v55 }
 0x15d   : > { %3536 = vmatpush.bf16.msrb.mxu1 %v4642_v2  ;;  %v4813_v2 = vld [vmem:[%s6587_s9 + $0x5d8] sm:$0xf]  ;;  %v4981_v4 = vld [vmem:[%s6587_s9 + $0x728] sm:$0xf]  ;;  %v6058_v55 = vld [vmem:[%s6587_s9 + $0x6bc] sm:$0xf] }
 0x15e   : > { %3550 = vmatpush.bf16.msrb.mxu2 %v5090_v3  ;;  %v3247_v3 = vadd.f32 %v7365_v45, %v729_v48  ;;  %v4366_v45 = vor.u32 %v5925_v0, %v4365_v63  ;;  %v5093_v63 = vld [vmem:[%s6587_s9 + $0x808] sm:$0xf]  ;;  %v6107_v0 = vld [vmem:[%s6587_s9 + $0x83c] sm:$0xf0]  ;;  %v3277_v18 = vadd.f32 %v7419_v13, %v3263_v51 }
 0x15f   : > { %3564 = vmatpush.bf16.msrb.mxu3 %v5538_v9  ;;  %v6149_v9 = vld [vmem:[%s6587_s9 + $0x98c] sm:$0xf0] }
 0x160   : > { %3523 = vmatpush.bf16.msrb.mxu0 %v4138_v47  ;;  %v4814_v47 = vor.u32 %v6037_v7, %v4813_v2  ;;  %v5262_v16 = vor.u32 %v6149_v9, %v5261_v8  ;;  %v3261_v26 = vadd.f32 %v7369_v15, %v3247_v3  ;;  %v5541_v2 = vld [vmem:[%s6587_s9 + $0xb88] sm:$0xf]  ;;  %v6219_v3 = vld [vmem:[%s6587_s9 + $0xbbc] sm:$0xf0]  ;;  %v4198_v7 = vor.u32 %v5883_v31, %v4197_v58  ;;  %v6282_v31 = vld [vmem:[%s6587_s9 + $0xdbc] sm:$0xf] }
 0x161   : > { %3537 = vmatpush.bf16.msrb.mxu1 %v4586_v20  ;;  %v4757_v20 = vld [vmem:[%s6587_s9 + $0x568] sm:$0xf]  ;;  %v5094_v9 = vor.u32 %v6107_v0, %v5093_v63  ;;  %v4982_v58 = vor.u32 %v6079_v22, %v4981_v4  ;;  %v5932_v63 = vld [vmem:[%s6587_s9 + $0x2cc] sm:$0xf]  ;;  %v4423_v0 = vld [vmem:[%s6587_s9 + $0x300] sm:$0xf0] }
 0x162   : > { %3551 = vmatpush.bf16.msrb.mxu2 %v5034_v24  ;;  %v730_v24 = vperm.slane %v7392_v46, 5  ;;  %v4758_v15 = vor.u32 %v6023_v28, %v4757_v20  ;;  %v6093_v28 = vld [vmem:[%s6587_s9 + $0x7cc] sm:$0xf0]  ;;  %v5655_v4 = vld [vmem:[%s6587_s9 + $0xca0] sm:$0xf0] }
 0x163   : > { %3565 = vmatpush.bf16.msrb.mxu3 %v5482_v32  ;;  %v5205_v32 = vld [vmem:[%s6587_s9 + $0x8e8] sm:$0xf] }
 0x164   : > { %3524 = vmatpush.bf16.msrb.mxu0 %v4082_v38  ;;  %v3302_v36 = vpop.f32.mrf.mxu0  ;;  %v5206_v30 = vor.u32 %v6135_v33, %v5205_v32  ;;  %v6205_v33 = vld [vmem:[%s6587_s9 + $0xb4c] sm:$0xf0] }
 0x165   : > { %3538 = vmatpush.bf16.msrb.mxu1 %v4530_v25  ;;  %v3303_v38 = vadd.f32 %v3302_v36, %v730_v24  ;;  %v3316_v39 = vpop.f32.mrf.mxu1  ;;  %v4701_v25 = vld [vmem:[%s6587_s9 + $0x4f8] sm:$0xf]  ;;  %v5855_v36 = vld [vmem:[%s6587_s9 + $0x5c] sm:$0xf0] }
 0x166   : > { %3552 = vmatpush.bf16.msrb.mxu2 %v4978_v41  ;;  %v3275_v41 = vadd.f32 %v7382_v37, %v3261_v26  ;;  %v5542_v26 = vor.u32 %v6219_v3, %v5541_v2  ;;  %v6044_v2 = vld [vmem:[%s6587_s9 + $0x64c] sm:$0xf] }
 0x167   : > { %3566 = vmatpush.bf16.msrb.mxu3 %v5426_v49  ;;  %3525 = vmatmul.bf16.vlgmr.msrb.gmra.mxu0 %v6704_v5  ;;  %v6009_v49 = vld [vmem:[%s6587_s9 + $0x52c] sm:$0xf0] }
 0x168   : > { %3573 = vmatpush.bf16.msra.mxu0 %v4478_v50  ;;  %3539 = vmatmul.bf16.vlgmr.msrb.gmra.mxu1 %v6723_v17  ;;  %v5149_v50 = vld [vmem:[%s6587_s9 + $0x878] sm:$0xf]  ;;  %v4702_v37 = vor.u32 %v6009_v49, %v4701_v25  ;;  %v3289_v21 = vadd.f32 %v7387_v40, %v3275_v41  ;;  %v3291_v25 = vadd.f32 %v7422_v1, %v3277_v18  ;;  %v5429_v49 = vld [vmem:[%s6587_s9 + $0xaa8] sm:$0xf]  ;;  %v5375_v1 = vld [vmem:[%s6587_s9 + $0xa70] sm:$0xf0] }
 0x169   : > { %3587 = vmatpush.bf16.msra.mxu1 %v4926_v53  ;;  %3553 = vmatmul.bf16.vlgmr.msrb.gmra.mxu2 %v6691_v59  ;;  %v6121_v53 = vld [vmem:[%s6587_s9 + $0x8ac] sm:$0xf0]  ;;  %v4141_v40 = vld [vmem:[%s6587_s9 + $0x98] sm:$0xf] }
 0x16a   : > { %3601 = vmatpush.bf16.msra.mxu2 %v5374_v54  ;;  %3567 = vmatmul.bf16.vlgmr.msrb.gmra.mxu3 %v6715_v10  ;;  %v3317_v54 = vadd.f32 %v3316_v39, %v3303_v38  ;;  %v5150_v48 = vor.u32 %v6121_v53, %v5149_v50  ;;  %v5967_v39 = vld [vmem:[%s6587_s9 + $0x3dc] sm:$0xf0]  ;;  %v5946_v53 = vld [vmem:[%s6587_s9 + $0x33c] sm:$0xf] }
 0x16b   : > { %3615 = vmatpush.bf16.msra.mxu3 %v5822_v57  ;;  %v6191_v50 = vld [vmem:[%s6587_s9 + $0xadc] sm:$0xf0] }
 0x16c   : > { %3574 = vmatpush.bf16.msra.mxu0 %v4422_v52  ;;  %v3330_v57 = vpop.f32.mrf.mxu2  ;;  %v3304_v8 = vpop.f32.mrf.mxu0 }
 0x16d   : > { %3588 = vmatpush.bf16.msra.mxu1 %v4870_v61  ;;  %v3331_v52 = vadd.f32 %v3330_v57, %v3317_v54  ;;  %v3344_v61 = vpop.f32.mrf.mxu3  ;;  %v3305_v11 = vadd.f32 %v3304_v8, %v730_v24  ;;  %v3318_v12 = vpop.f32.mrf.mxu1  ;;  %v5485_v24 = vld [vmem:[%s6587_s9 + $0xb18] sm:$0xf]  ;;  %v4479_v54 = vld [vmem:[%s6587_s9 + $0x370] sm:$0xf0]  ;;  %v6156_v8 = vld [vmem:[%s6587_s9 + $0x9cc] sm:$0xf] }
 0x16e   : > { %3602 = vmatpush.bf16.msra.mxu2 %v5318_v62  ;;  %v5995_v62 = vld [vmem:[%s6587_s9 + $0x4bc] sm:$0xf0]  ;;  %v5486_v41 = vor.u32 %v6205_v33, %v5485_v24 }
 0x16f   : > { %3616 = vmatpush.bf16.msra.mxu3 %v5766_v6  ;;  %v3345_v6 = vadd.f32 %v3344_v61, %v3331_v52  ;;  %v4646_v42 = vor.u32 %v5995_v62, %v4645_v19  ;;  %v3319_v32 = vadd.f32 %v3318_v12, %v3305_v11  ;;  %v5823_v19 = vld [vmem:[%s6587_s9 + $0xdf0] sm:$0xf0]  ;;  %v4482_v52 = vor.u32 %v5946_v53, %v4479_v54  ;;  %v6114_v54 = vld [vmem:[%s6587_s9 + $0x87c] sm:$0xf] }
 0x170   : > { %3575 = vmatpush.bf16.msra.mxu0 %v4366_v45  ;;  %v5869_v45 = vld [vmem:[%s6587_s9 + $0xcc] sm:$0xf0]  ;;  %v4426_v11 = vor.u32 %v5932_v63, %v4423_v0  ;;  %v4703_v53 = vld [vmem:[%s6587_s9 + $0x530] sm:$0xf0] }
 0x171   : > { %3589 = vmatpush.bf16.msra.mxu1 %v4814_v47  ;;  %v5981_v47 = vld [vmem:[%s6587_s9 + $0x44c] sm:$0xf0]  ;;  %v3802_v20 = vmax.f32 %v3345_v6, 0.0  ;;  %v4142_v29 = vor.u32 %v5869_v45, %v4141_v40  ;;  %v5826_v6 = vor.u32 %v6282_v31, %v5823_v19  ;;  %v5319_v40 = vld [vmem:[%s6587_s9 + $0xa00] sm:$0xf0] }
 0x172   : > { %3603 = vmatpush.bf16.msra.mxu2 %v5262_v16  ;;  %v3801_v16 = vmax.f32 %v3289_v21, 0.0  ;;  %v4590_v13 = vor.u32 %v5981_v47, %v4589_v14  ;;  %v3815_v21 = vmax.f32 %v3291_v25, 0.0  ;;  %v5322_v45 = vor.u32 %v6156_v8, %v5319_v40  ;;  %v5918_v14 = vld [vmem:[%s6587_s9 + $0x25c] sm:$0xf]  ;;  %v4367_v47 = vld [vmem:[%s6587_s9 + $0x290] sm:$0xf0] }
 0x173   : > { %3617 = vmatpush.bf16.msra.mxu3 %v5710_v27  ;;  %v5037_v27 = vld [vmem:[%s6587_s9 + $0x798] sm:$0xf]  ;;  %v4370_v24 = vor.u32 %v5918_v14, %v4367_v47  ;;  %v5988_v31 = vld [vmem:[%s6587_s9 + $0x48c] sm:$0xf]  ;;  %v4591_v8 = vld [vmem:[%s6587_s9 + $0x450] sm:$0xf0] }
 0x174   : > { %3576 = vmatpush.bf16.msra.mxu0 %v4310_v35  ;;  %v3827_v34 = vpack.c.bf16 %v3802_v20, %v3801_v16  ;;  %v4085_v35 = vld [vmem:[%s6587_s9 + $0x28] sm:$0xf]  ;;  %v3332_v38 = vpop.f32.mrf.mxu2  ;;  %v6030_v16 = vld [vmem:[%s6587_s9 + $0x5dc] sm:$0xf]  ;;  %v4815_v20 = vld [vmem:[%s6587_s9 + $0x610] sm:$0xf0] }
 0x175   : > { %3590 = vmatpush.bf16.msra.mxu1 %v4758_v15  ;;  %v4533_v15 = vld [vmem:[%s6587_s9 + $0x3a8] sm:$0xf]  ;;  %v3333_v43 = vadd.f32 %v3332_v38, %v3319_v32  ;;  %v5711_v32 = vld [vmem:[%s6587_s9 + $0xd10] sm:$0xf0]  ;;  %v4818_v33 = vor.u32 %v6030_v16, %v4815_v20  ;;  %v5207_v38 = vld [vmem:[%s6587_s9 + $0x920] sm:$0xf0] }
 0x176   : > { %3604 = vmatpush.bf16.msra.mxu2 %v5206_v30  ;;  %v5038_v30 = vor.u32 %v6093_v28, %v5037_v27  ;;  %3841 = vst [vmem:[%s7135_s11 + $0x10] sm:$0xff] %v3827_v34  ;;  %v4534_v57 = vor.u32 %v5967_v39, %v4533_v15  ;;  %v5263_v27 = vld [vmem:[%s6587_s9 + $0x990] sm:$0xf0]  ;;  %v6254_v28 = vld [vmem:[%s6587_s9 + $0xcdc] sm:$0xf] }
 0x177   : > { %3618 = vmatpush.bf16.msra.mxu3 %v5654_v44  ;;  %v3346_v44 = vpop.f32.mrf.mxu3  ;;  %v5714_v15 = vor.u32 %v6254_v28, %v5711_v32  ;;  %v6240_v39 = vld [vmem:[%s6587_s9 + $0xc6c] sm:$0xf]  ;;  %v6086_v40 = vld [vmem:[%s6587_s9 + $0x79c] sm:$0xf]  ;;  %v4087_v16 = vld [vmem:[%s6587_s9 + $0x60] sm:$0xf0] }
 0x178   : > { %3577 = vmatpush.bf16.msra.mxu0 %v4254_v23  ;;  %v3347_v56 = vadd.f32 %v3346_v44, %v3333_v43  ;;  %v4086_v23 = vor.u32 %v5855_v36, %v4085_v35  ;;  %v4311_v35 = vld [vmem:[%s6587_s9 + $0x220] sm:$0xf0]  ;;  %v6016_v36 = vld [vmem:[%s6587_s9 + $0x56c] sm:$0xf]  ;;  %v5890_v43 = vld [vmem:[%s6587_s9 + $0x17c] sm:$0xf] }
 0x179   : > { %3591 = vmatpush.bf16.msra.mxu1 %v4702_v37  ;;  %v4927_v37 = vld [vmem:[%s6587_s9 + $0x6f0] sm:$0xf0]  ;;  %v5848_v47 = vld [vmem:[%s6587_s9 + $0x2c] sm:$0xf] }
 0x17a   : > { %3605 = vmatpush.bf16.msra.mxu2 %v5150_v48  ;;  %v6170_v48 = vld [vmem:[%s6587_s9 + $0xa3c] sm:$0xf]  ;;  %v3816_v51 = vmax.f32 %v3347_v56, 0.0  ;;  %v4930_v61 = vor.u32 %v6058_v55, %v4927_v37  ;;  %v4255_v44 = vld [vmem:[%s6587_s9 + $0x1b0] sm:$0xf0] }
 0x17b   : > { %3619 = vmatpush.bf16.msra.mxu3 %v5598_v60  ;;  %v5430_v60 = vor.u32 %v6191_v50, %v5429_v49  ;;  %v5378_v62 = vor.u32 %v6170_v48, %v5375_v1  ;;  %v6002_v49 = vld [vmem:[%s6587_s9 + $0x4fc] sm:$0xf]  ;;  %v5658_v50 = vor.u32 %v6240_v39, %v5655_v4  ;;  %v5151_v55 = vld [vmem:[%s6587_s9 + $0x8b0] sm:$0xf0]  ;;  %v4258_v37 = vor.u32 %v5890_v43, %v4255_v44  ;;  %v6072_v28 = vld [vmem:[%s6587_s9 + $0x72c] sm:$0xf] }
 0x17c   : > { %3578 = vmatpush.bf16.msra.mxu0 %v4198_v7  ;;  %v3834_v3 = vpack.c.bf16 %v3816_v51, %v3815_v21  ;;  %v4871_v7 = vld [vmem:[%s6587_s9 + $0x680] sm:$0xf0]  ;;  %v6226_v56 = vld [vmem:[%s6587_s9 + $0xbfc] sm:$0xf]  ;;  %v4706_v48 = vor.u32 %v6002_v49, %v4703_v53  ;;  %v5154_v1 = vor.u32 %v6114_v54, %v5151_v55  ;;  %v6100_v51 = vld [vmem:[%s6587_s9 + $0x80c] sm:$0xf] }
 0x17d   : > { %3592 = vmatpush.bf16.msra.mxu1 %v4646_v42  ;;  %v6268_v42 = vld [vmem:[%s6587_s9 + $0xd4c] sm:$0xf]  ;;  %v4874_v12 = vor.u32 %v6044_v2, %v4871_v7  ;;  %v4647_v21 = vld [vmem:[%s6587_s9 + $0x4c0] sm:$0xf0]  ;;  %v5862_v2 = vld [vmem:[%s6587_s9 + $0x9c] sm:$0xf] }
 0x17e   : > { %3606 = vmatpush.bf16.msra.mxu2 %v5094_v9  ;;  %v5767_v9 = vld [vmem:[%s6587_s9 + $0xd80] sm:$0xf0]  ;;  %3848 = vst [vmem:[%s7135_s11 + $0x48] sm:$0xff] %v3834_v3  ;;  %v4650_v63 = vor.u32 %v5988_v31, %v4647_v21  ;;  %v4143_v3 = vld [vmem:[%s6587_s9 + $0xd0] sm:$0xf0]  ;;  %v731_v44 = vperm.slane %v7392_v46, 6 }
 0x17f   : > { %3620 = vmatpush.bf16.msra.mxu3 %v5542_v26  ;;  %v5770_v18 = vor.u32 %v6268_v42, %v5767_v9  ;;  %v6142_v26 = vld [vmem:[%s6587_s9 + $0x95c] sm:$0xf]  ;;  %v5039_v42 = vld [vmem:[%s6587_s9 + $0x7d0] sm:$0xf0]  ;;  %v4146_v14 = vor.u32 %v5862_v2, %v4143_v3  ;;  %v6178_v39 = vld [vmem:[%s6587_s9 + $0xa74] sm:$0xf0] }
 0x180   : > { %3579 = vmatpush.bf16.msra.mxu0 %v4142_v29  ;;  %v5266_v34 = vor.u32 %v6142_v26, %v5263_v27  ;;  %v5904_v29 = vld [vmem:[%s6587_s9 + $0x1ec] sm:$0xf]  ;;  %v5042_v20 = vor.u32 %v6086_v40, %v5039_v42  ;;  %v4535_v27 = vld [vmem:[%s6587_s9 + $0x3e0] sm:$0xf0]  ;;  %v6290_v43 = vld [vmem:[%s6587_s9 + $0xdf4] sm:$0xf0] }
 0x181   : > { %3593 = vmatpush.bf16.msra.mxu1 %v4590_v13  ;;  %v4759_v13 = vld [vmem:[%s6587_s9 + $0x5a0] sm:$0xf0]  ;;  %v4314_v22 = vor.u32 %v5904_v29, %v4311_v35  ;;  %v5960_v26 = vld [vmem:[%s6587_s9 + $0x3ac] sm:$0xf]  ;;  %v4485_v29 = vld [vmem:[%s6587_s9 + $0x340] sm:$0xf] }
 0x182   : > { %3607 = vmatpush.bf16.msra.mxu2 %v5038_v30  ;;  %v6128_v30 = vld [vmem:[%s6587_s9 + $0x8ec] sm:$0xf]  ;;  %v4762_v25 = vor.u32 %v6016_v36, %v4759_v13  ;;  %v5954_v35 = vld [vmem:[%s6587_s9 + $0x374] sm:$0xf0]  ;;  %v4933_v36 = vld [vmem:[%s6587_s9 + $0x6c0] sm:$0xf]  ;;  %v4090_v13 = vor.u32 %v5848_v47, %v4087_v16 }
 0x183   : > { %3621 = vmatpush.bf16.msra.mxu3 %v5486_v41  ;;  %v5210_v41 = vor.u32 %v6128_v30, %v5207_v38  ;;  %v6066_v30 = vld [vmem:[%s6587_s9 + $0x6f4] sm:$0xf0]  ;;  %v5381_v38 = vld [vmem:[%s6587_s9 + $0xa40] sm:$0xf]  ;;  %v4429_v55 = vld [vmem:[%s6587_s9 + $0x2d0] sm:$0xf] }
 0x184   : > { %3580 = vmatpush.bf16.msra.mxu0 %v4086_v23  ;;  %v5599_v23 = vld [vmem:[%s6587_s9 + $0xc30] sm:$0xf0]  ;;  %v7533_v9 = vpop.f32.mrf.mxu0  ;;  %v4934_v53 = vor.u32 %v6066_v30, %v4933_v36  ;;  %v5382_v54 = vor.u32 %v6178_v39, %v5381_v38  ;;  %v5773_v31 = vld [vmem:[%s6587_s9 + $0xd50] sm:$0xf]  ;;  %v6038_v3 = vld [vmem:[%s6587_s9 + $0x614] sm:$0xf0] }
 0x185   : > { %3594 = vmatpush.bf16.msra.mxu1 %v4534_v57  ;;  %v5876_v57 = vld [vmem:[%s6587_s9 + $0x10c] sm:$0xf]  ;;  %v5602_v19 = vor.u32 %v6226_v56, %v5599_v23  ;;  %v5940_v56 = vld [vmem:[%s6587_s9 + $0x304] sm:$0xf0]  ;;  %v4877_v23 = vld [vmem:[%s6587_s9 + $0x650] sm:$0xf] }
 0x186   : > { %3608 = vmatpush.bf16.msra.mxu2 %v4982_v58  ;;  %v4199_v58 = vld [vmem:[%s6587_s9 + $0x140] sm:$0xf0]  ;;  %v6262_v40 = vld [vmem:[%s6587_s9 + $0xd14] sm:$0xf0]  ;;  %v5912_v16 = vld [vmem:[%s6587_s9 + $0x224] sm:$0xf0] }
 0x187   : > { %3622 = vmatpush.bf16.msra.mxu3 %v5430_v60  ;;  %3581 = vmatmul.bf16.vlgmr.msra.gmra.mxu0 %v6704_v5  ;;  %v5095_v60 = vld [vmem:[%s6587_s9 + $0x840] sm:$0xf0]  ;;  %v4261_v38 = vld [vmem:[%s6587_s9 + $0x180] sm:$0xf]  ;;  %v5898_v39 = vld [vmem:[%s6587_s9 + $0x1b4] sm:$0xf0] }
 0x188   : > { %3629 = vmatpush.bf16.msrb.mxu0 %v4482_v52  ;;  %3595 = vmatmul.bf16.vlgmr.msra.gmra.mxu1 %v6723_v17  ;;  %v6212_v52 = vld [vmem:[%s6587_s9 + $0xb8c] sm:$0xf]  ;;  %v5098_v0 = vor.u32 %v6100_v51, %v5095_v60  ;;  %v4430_v51 = vor.u32 %v5940_v56, %v4429_v55  ;;  %v5605_v55 = vld [vmem:[%s6587_s9 + $0xc00] sm:$0xf]  ;;  %v6234_v56 = vld [vmem:[%s6587_s9 + $0xc34] sm:$0xf0] }
 0x189   : > { %3643 = vmatpush.bf16.msrb.mxu1 %v4930_v61  ;;  %3609 = vmatmul.bf16.vlgmr.msra.gmra.mxu2 %v6691_v59  ;;  %v5543_v61 = vld [vmem:[%s6587_s9 + $0xbc0] sm:$0xf0] }
 0x18a   : > { %3657 = vmatpush.bf16.msrb.mxu2 %v5378_v62  ;;  %3623 = vmatmul.bf16.vlgmr.msra.gmra.mxu3 %v6715_v10  ;;  %v4202_v62 = vor.u32 %v5876_v57, %v4199_v58  ;;  %v5546_v7 = vor.u32 %v6212_v52, %v5543_v61  ;;  %v6164_v57 = vld [vmem:[%s6587_s9 + $0xa04] sm:$0xf0]  ;;  %v4373_v61 = vld [vmem:[%s6587_s9 + $0x260] sm:$0xf] }
 0x18b   : > { %3671 = vmatpush.bf16.msrb.mxu3 %v5826_v6  ;;  %v5974_v6 = vld [vmem:[%s6587_s9 + $0x41c] sm:$0xf] }
 0x18c   : > { %3630 = vmatpush.bf16.msrb.mxu0 %v4426_v11  ;;  %v6198_v11 = vld [vmem:[%s6587_s9 + $0xb1c] sm:$0xf]  ;;  %v3360_v58 = vpop.f32.mrf.mxu0 }
 0x18d   : > { %3644 = vmatpush.bf16.msrb.mxu1 %v4874_v12  ;;  %v5487_v12 = vld [vmem:[%s6587_s9 + $0xb50] sm:$0xf0]  ;;  %v7555_v4 = vpop.f32.mrf.mxu3 }
 0x18e   : > { %3658 = vmatpush.bf16.msrb.mxu2 %v5322_v45  ;;  %v7537_v45 = vpop.f32.mrf.mxu1  ;;  %v5490_v32 = vor.u32 %v6198_v11, %v5487_v12  ;;  %v4317_v12 = vld [vmem:[%s6587_s9 + $0x1f0] sm:$0xf] }
 0x18f   : > { %3672 = vmatpush.bf16.msrb.mxu3 %v5770_v18  ;;  %v4594_v18 = vor.u32 %v5974_v6, %v4591_v8  ;;  %v5269_v6 = vld [vmem:[%s6587_s9 + $0x960] sm:$0xf] }
 0x190   : > { %3631 = vmatpush.bf16.msrb.mxu0 %v4370_v24  ;;  %v4983_v24 = vld [vmem:[%s6587_s9 + $0x760] sm:$0xf0]  ;;  %v5717_v8 = vld [vmem:[%s6587_s9 + $0xce0] sm:$0xf] }
 0x191   : > { %3645 = vmatpush.bf16.msrb.mxu1 %v4818_v33  ;;  %v6184_v33 = vld [vmem:[%s6587_s9 + $0xaac] sm:$0xf] }
 0x192   : > { %3659 = vmatpush.bf16.msrb.mxu2 %v5266_v34  ;;  %v5431_v34 = vld [vmem:[%s6587_s9 + $0xae0] sm:$0xf0] }
 0x193   : > { %3673 = vmatpush.bf16.msrb.mxu3 %v5714_v15  ;;  %v7550_v15 = vpop.f32.mrf.mxu2  ;;  %v5434_v49 = vor.u32 %v6184_v33, %v5431_v34  ;;  %v5661_v33 = vld [vmem:[%s6587_s9 + $0xc70] sm:$0xf]  ;;  %v6248_v34 = vld [vmem:[%s6587_s9 + $0xca4] sm:$0xf0] }
 0x194   : > { %3632 = vmatpush.bf16.msrb.mxu0 %v4314_v22  ;;  %v4538_v22 = vor.u32 %v5960_v26, %v4535_v27  ;;  %v5718_v27 = vor.u32 %v6262_v40, %v5717_v8  ;;  %v5870_v40 = vld [vmem:[%s6587_s9 + $0xd4] sm:$0xf0] }
 0x195   : > { %3646 = vmatpush.bf16.msrb.mxu1 %v4762_v25  ;;  %v4986_v25 = vor.u32 %v6072_v28, %v4983_v24  ;;  %v7587_v11 = vpop.f32.mrf.mxu3  ;;  %v6024_v28 = vld [vmem:[%s6587_s9 + $0x5a4] sm:$0xf0] }
 0x196   : > { %3660 = vmatpush.bf16.msrb.mxu2 %v5210_v41  ;;  %v5829_v41 = vld [vmem:[%s6587_s9 + $0xdc0] sm:$0xf]  ;;  %v7568_v21 = vpop.f32.mrf.mxu1  ;;  %v6136_v24 = vld [vmem:[%s6587_s9 + $0x924] sm:$0xf0] }
 0x197   : > { %3674 = vmatpush.bf16.msrb.mxu3 %v5658_v50  ;;  %v4486_v50 = vor.u32 %v5954_v35, %v4485_v29  ;;  %v4318_v29 = vor.u32 %v5912_v16, %v4317_v12  ;;  %v5982_v12 = vld [vmem:[%s6587_s9 + $0x454] sm:$0xf0] }
 0x198   : > { %3633 = vmatpush.bf16.msrb.mxu0 %v4258_v37  ;;  %v5830_v37 = vor.u32 %v6290_v43, %v5829_v41  ;;  %v3361_v41 = vadd.f32 %v3360_v58, %v731_v44  ;;  %v5662_v43 = vor.u32 %v6248_v34, %v5661_v33  ;;  %v4093_v34 = vld [vmem:[%s6587_s9 + $0x30] sm:$0xf] }
 0x199   : > { %3647 = vmatpush.bf16.msrb.mxu1 %v4706_v48  ;;  %v6052_v48 = vld [vmem:[%s6587_s9 + $0x684] sm:$0xf0] }
 0x19a   : > { %3661 = vmatpush.bf16.msrb.mxu2 %v5154_v1  ;;  %v5325_v1 = vld [vmem:[%s6587_s9 + $0x9d0] sm:$0xf]  ;;  %v4878_v60 = vor.u32 %v6052_v48, %v4877_v23  ;;  %v4262_v23 = vor.u32 %v5898_v39, %v4261_v38  ;;  %v5884_v48 = vld [vmem:[%s6587_s9 + $0x144] sm:$0xf0]  ;;  %v3375_v58 = vadd.f32 %v7568_v21, %v3361_v41 }
 0x19b   : > { %3675 = vmatpush.bf16.msrb.mxu3 %v5602_v19  ;;  %v6276_v19 = vld [vmem:[%s6587_s9 + $0xd84] sm:$0xf0]  ;;  %v5326_v52 = vor.u32 %v6164_v57, %v5325_v1  ;;  %v7584_v42 = vpop.f32.mrf.mxu2  ;;  %v4653_v1 = vld [vmem:[%s6587_s9 + $0x490] sm:$0xf] }
 0x19c   : > { %3634 = vmatpush.bf16.msrb.mxu0 %v4202_v62  ;;  %v5926_v62 = vld [vmem:[%s6587_s9 + $0x294] sm:$0xf0]  ;;  %v5774_v2 = vor.u32 %v6276_v19, %v5773_v31  ;;  %v5606_v31 = vor.u32 %v6234_v56, %v5605_v55  ;;  %v6080_v38 = vld [vmem:[%s6587_s9 + $0x764] sm:$0xf0] }
 0x19d   : > { %3648 = vmatpush.bf16.msrb.mxu1 %v4650_v63  ;;  %v4821_v63 = vld [vmem:[%s6587_s9 + $0x5e0] sm:$0xf] }
 0x19e   : > { %3662 = vmatpush.bf16.msrb.mxu2 %v5098_v0  ;;  %v3359_v0 = vadd.f32 %v7533_v9, %v731_v44  ;;  %v4374_v9 = vor.u32 %v5926_v62, %v4373_v61  ;;  %v6108_v61 = vld [vmem:[%s6587_s9 + $0x844] sm:$0xf0]  ;;  %v5549_v62 = vld [vmem:[%s6587_s9 + $0xb90] sm:$0xf] }
 0x19f   : > { %3676 = vmatpush.bf16.msrb.mxu3 %v5546_v7  ;;  %v6150_v7 = vld [vmem:[%s6587_s9 + $0x994] sm:$0xf0] }
 0x1a0   : > { %3635 = vmatpush.bf16.msrb.mxu0 %v4146_v14  ;;  %v4822_v14 = vor.u32 %v6038_v3, %v4821_v63  ;;  %v5270_v47 = vor.u32 %v6150_v7, %v5269_v6  ;;  %v3373_v26 = vadd.f32 %v7537_v45, %v3359_v0  ;;  %v6220_v63 = vld [vmem:[%s6587_s9 + $0xbc4] sm:$0xf0] }
 0x1a1   : > { %3649 = vmatpush.bf16.msrb.mxu1 %v4594_v18  ;;  %v4765_v18 = vld [vmem:[%s6587_s9 + $0x570] sm:$0xf] }
 0x1a2   : > { %3663 = vmatpush.bf16.msrb.mxu2 %v5042_v20  ;;  %v732_v20 = vperm.slane %v7392_v46, 7  ;;  %v4766_v45 = vor.u32 %v6024_v28, %v4765_v18  ;;  %v5550_v18 = vor.u32 %v6220_v63, %v5549_v62 }
 0x1a3   : > { %3677 = vmatpush.bf16.msrb.mxu3 %v5490_v32  ;;  %v5213_v32 = vld [vmem:[%s6587_s9 + $0x8f0] sm:$0xf] }
 0x1a4   : > { %3636 = vmatpush.bf16.msrb.mxu0 %v4090_v13  ;;  %v3414_v35 = vpop.f32.mrf.mxu0  ;;  %v5214_v36 = vor.u32 %v6136_v24, %v5213_v32  ;;  %v6206_v32 = vld [vmem:[%s6587_s9 + $0xb54] sm:$0xf0] }
 0x1a5   : > { %3650 = vmatpush.bf16.msrb.mxu1 %v4538_v22  ;;  %v3415_v13 = vadd.f32 %v3414_v35, %v732_v20  ;;  %v3428_v30 = vpop.f32.mrf.mxu1  ;;  %v4709_v22 = vld [vmem:[%s6587_s9 + $0x500] sm:$0xf]  ;;  %v4541_v35 = vld [vmem:[%s6587_s9 + $0x3b0] sm:$0xf] }
 0x1a6   : > { %3664 = vmatpush.bf16.msrb.mxu2 %v4986_v25  ;;  %v3387_v25 = vadd.f32 %v7550_v15, %v3373_v26  ;;  %v5045_v26 = vld [vmem:[%s6587_s9 + $0x7a0] sm:$0xf] }
 0x1a7   : > { %3678 = vmatpush.bf16.msrb.mxu3 %v5434_v49  ;;  %3637 = vmatmul.bf16.vlgmr.msrb.gmra.mxu0 %v6704_v5  ;;  %v6010_v49 = vld [vmem:[%s6587_s9 + $0x534] sm:$0xf0] }
 0x1a8   : > { %3685 = vmatpush.bf16.msra.mxu0 %v4486_v50  ;;  %3651 = vmatmul.bf16.vlgmr.msrb.gmra.mxu1 %v6723_v17  ;;  %v5157_v50 = vld [vmem:[%s6587_s9 + $0x880] sm:$0xf]  ;;  %v4710_v46 = vor.u32 %v6010_v49, %v4709_v22  ;;  %v3401_v57 = vadd.f32 %v7555_v4, %v3387_v25  ;;  %v6192_v49 = vld [vmem:[%s6587_s9 + $0xae4] sm:$0xf0] }
 0x1a9   : > { %3699 = vmatpush.bf16.msra.mxu1 %v4934_v53  ;;  %3665 = vmatmul.bf16.vlgmr.msrb.gmra.mxu2 %v6691_v59  ;;  %v6122_v53 = vld [vmem:[%s6587_s9 + $0x8b4] sm:$0xf0]  ;;  %v4149_v4 = vld [vmem:[%s6587_s9 + $0xa0] sm:$0xf] }
 0x1aa   : > { %3713 = vmatpush.bf16.msra.mxu2 %v5382_v54  ;;  %3679 = vmatmul.bf16.vlgmr.msrb.gmra.mxu3 %v6715_v10  ;;  %v3429_v54 = vadd.f32 %v3428_v30, %v3415_v13  ;;  %v5158_v15 = vor.u32 %v6122_v53, %v5157_v50  ;;  %v4150_v33 = vor.u32 %v5870_v40, %v4149_v4  ;;  %v5968_v13 = vld [vmem:[%s6587_s9 + $0x3e4] sm:$0xf0]  ;;  %v4989_v30 = vld [vmem:[%s6587_s9 + $0x730] sm:$0xf]  ;;  %v5947_v50 = vld [vmem:[%s6587_s9 + $0x344] sm:$0xf] }
 0x1ab   : > { %3727 = vmatpush.bf16.msra.mxu3 %v5830_v37  ;;  %v4205_v37 = vld [vmem:[%s6587_s9 + $0x110] sm:$0xf]  ;;  %v4487_v53 = vld [vmem:[%s6587_s9 + $0x378] sm:$0xf0]  ;;  %v6269_v4 = vld [vmem:[%s6587_s9 + $0xd54] sm:$0xf] }
 0x1ac   : > { %3686 = vmatpush.bf16.msra.mxu0 %v4430_v51  ;;  %v3442_v44 = vpop.f32.mrf.mxu2  ;;  %v3416_v3 = vpop.f32.mrf.mxu0  ;;  %v5919_v40 = vld [vmem:[%s6587_s9 + $0x264] sm:$0xf] }
 0x1ad   : > { %3700 = vmatpush.bf16.msra.mxu1 %v4878_v60  ;;  %v3443_v19 = vadd.f32 %v3442_v44, %v3429_v54  ;;  %v3456_v51 = vpop.f32.mrf.mxu3  ;;  %v5996_v60 = vld [vmem:[%s6587_s9 + $0x4c4] sm:$0xf0]  ;;  %v3417_v7 = vadd.f32 %v3416_v3, %v732_v20  ;;  %v3430_v8 = vpop.f32.mrf.mxu1  ;;  %v5493_v20 = vld [vmem:[%s6587_s9 + $0xb20] sm:$0xf]  ;;  %v6059_v54 = vld [vmem:[%s6587_s9 + $0x6c4] sm:$0xf]  ;;  %v4990_v44 = vor.u32 %v6080_v38, %v4989_v30 }
 0x1ae   : > { %3714 = vmatpush.bf16.msra.mxu2 %v5326_v52  ;;  %v5101_v52 = vld [vmem:[%s6587_s9 + $0x810] sm:$0xf]  ;;  %v4654_v21 = vor.u32 %v5996_v60, %v4653_v1  ;;  %v5494_v22 = vor.u32 %v6206_v32, %v5493_v20  ;;  %v5933_v60 = vld [vmem:[%s6587_s9 + $0x2d4] sm:$0xf]  ;;  %v5327_v3 = vld [vmem:[%s6587_s9 + $0xa08] sm:$0xf0] }
 0x1af   : > { %3728 = vmatpush.bf16.msra.mxu3 %v5774_v2  ;;  %v3457_v0 = vadd.f32 %v3456_v51, %v3443_v19  ;;  %v4206_v2 = vor.u32 %v5884_v48, %v4205_v37  ;;  %v5102_v6 = vor.u32 %v6108_v61, %v5101_v52  ;;  %v3431_v28 = vadd.f32 %v3430_v8, %v3417_v7  ;;  %v6283_v37 = vld [vmem:[%s6587_s9 + $0xdc4] sm:$0xf]  ;;  %v5831_v48 = vld [vmem:[%s6587_s9 + $0xdf8] sm:$0xf0]  ;;  %v4431_v52 = vld [vmem:[%s6587_s9 + $0x308] sm:$0xf0] }
 0x1b0   : > { %3687 = vmatpush.bf16.msra.mxu0 %v4374_v9  ;;  %v4597_v9 = vld [vmem:[%s6587_s9 + $0x420] sm:$0xf]  ;;  %v6045_v61 = vld [vmem:[%s6587_s9 + $0x654] sm:$0xf]  ;;  %v5834_v63 = vor.u32 %v6283_v37, %v5831_v48  ;;  %v4655_v48 = vld [vmem:[%s6587_s9 + $0x4c8] sm:$0xf0] }
 0x1b1   : > { %3701 = vmatpush.bf16.msra.mxu1 %v4822_v14  ;;  %v3803_v14 = vmax.f32 %v3401_v57, 0.0  ;;  %v3804_v16 = vmax.f32 %v3457_v0, 0.0  ;;  %v4879_v0 = vld [vmem:[%s6587_s9 + $0x688] sm:$0xf0] }
 0x1b2   : > { %3715 = vmatpush.bf16.msra.mxu2 %v5270_v47  ;;  %v3389_v47 = vadd.f32 %v7584_v42, %v3375_v58  ;;  %v4598_v42 = vor.u32 %v5982_v12, %v4597_v9  ;;  %v4882_v7 = vor.u32 %v6045_v61, %v4879_v0  ;;  %v4375_v9 = vld [vmem:[%s6587_s9 + $0x298] sm:$0xf0]  ;;  %v6031_v12 = vld [vmem:[%s6587_s9 + $0x5e4] sm:$0xf] }
 0x1b3   : > { %3729 = vmatpush.bf16.msra.mxu3 %v5718_v27  ;;  %v6094_v27 = vld [vmem:[%s6587_s9 + $0x7d4] sm:$0xf0]  ;;  %v3828_v24 = vpack.c.bf16 %v3804_v16, %v3803_v14  ;;  %v6143_v16 = vld [vmem:[%s6587_s9 + $0x964] sm:$0xf]  ;;  %v4151_v61 = vld [vmem:[%s6587_s9 + $0xd8] sm:$0xf0] }
 0x1b4   : > { %3688 = vmatpush.bf16.msra.mxu0 %v4318_v29  ;;  %v5856_v29 = vld [vmem:[%s6587_s9 + $0x64] sm:$0xf0]  ;;  %v3403_v39 = vadd.f32 %v7587_v11, %v3389_v47  ;;  %v5383_v11 = vld [vmem:[%s6587_s9 + $0xa78] sm:$0xf0] }
 0x1b5   : > { %3702 = vmatpush.bf16.msra.mxu1 %v4766_v45  ;;  %v5046_v45 = vor.u32 %v6094_v27, %v5045_v26  ;;  %3842 = vst [vmem:[%s7135_s11 + $0x18] sm:$0xff] %v3828_v24  ;;  %v3458_v41 = vpop.f32.mrf.mxu3  ;;  %v4094_v56 = vor.u32 %v5856_v29, %v4093_v34  ;;  %v4823_v47 = vld [vmem:[%s6587_s9 + $0x618] sm:$0xf0]  ;;  %v6255_v26 = vld [vmem:[%s6587_s9 + $0xce4] sm:$0xf] }
 0x1b6   : > { %3716 = vmatpush.bf16.msra.mxu2 %v5214_v36  ;;  %v3444_v36 = vpop.f32.mrf.mxu2  ;;  %v3817_v1 = vmax.f32 %v3403_v39, 0.0  ;;  %v5719_v27 = vld [vmem:[%s6587_s9 + $0xd18] sm:$0xf0]  ;;  %v4826_v20 = vor.u32 %v6031_v12, %v4823_v47  ;;  %v5905_v24 = vld [vmem:[%s6587_s9 + $0x1f4] sm:$0xf] }
 0x1b7   : > { %3730 = vmatpush.bf16.msra.mxu3 %v5662_v43  ;;  %v3445_v25 = vadd.f32 %v3444_v36, %v3431_v28  ;;  %v5437_v43 = vld [vmem:[%s6587_s9 + $0xab0] sm:$0xf]  ;;  %v4378_v28 = vor.u32 %v5919_v40, %v4375_v9  ;;  %v6017_v34 = vld [vmem:[%s6587_s9 + $0x574] sm:$0xf]  ;;  %v5722_v29 = vor.u32 %v6255_v26, %v5719_v27  ;;  %v4599_v0 = vld [vmem:[%s6587_s9 + $0x458] sm:$0xf0] }
 0x1b8   : > { %3689 = vmatpush.bf16.msra.mxu0 %v4262_v23  ;;  %v4935_v23 = vld [vmem:[%s6587_s9 + $0x6f8] sm:$0xf0]  ;;  %v5438_v58 = vor.u32 %v6192_v49, %v5437_v43  ;;  %v6241_v36 = vld [vmem:[%s6587_s9 + $0xc74] sm:$0xf]  ;;  %v4991_v27 = vld [vmem:[%s6587_s9 + $0x768] sm:$0xf0] }
 0x1b9   : > { %3703 = vmatpush.bf16.msra.mxu1 %v4710_v46  ;;  %v3459_v55 = vadd.f32 %v3458_v41, %v3445_v25  ;;  %v6171_v46 = vld [vmem:[%s6587_s9 + $0xa44] sm:$0xf]  ;;  %v4938_v19 = vor.u32 %v6059_v54, %v4935_v23  ;;  %v4263_v25 = vld [vmem:[%s6587_s9 + $0x1b8] sm:$0xf0]  ;;  %v5849_v12 = vld [vmem:[%s6587_s9 + $0x34] sm:$0xf] }
 0x1ba   : > { %3717 = vmatpush.bf16.msra.mxu2 %v5158_v15  ;;  %v4542_v15 = vor.u32 %v5968_v13, %v4541_v35  ;;  %v5386_v51 = vor.u32 %v6171_v46, %v5383_v11  ;;  %v4767_v35 = vld [vmem:[%s6587_s9 + $0x5a8] sm:$0xf0]  ;;  %v6003_v41 = vld [vmem:[%s6587_s9 + $0x504] sm:$0xf]  ;;  %v4711_v49 = vld [vmem:[%s6587_s9 + $0x538] sm:$0xf0] }
 0x1bb   : > { %3731 = vmatpush.bf16.msra.mxu3 %v5606_v31  ;;  %v3818_v57 = vmax.f32 %v3459_v55, 0.0  ;;  %v4490_v31 = vor.u32 %v5947_v50, %v4487_v53  ;;  %v5663_v13 = vld [vmem:[%s6587_s9 + $0xca8] sm:$0xf0]  ;;  %v4770_v38 = vor.u32 %v6017_v34, %v4767_v35  ;;  %v6115_v50 = vld [vmem:[%s6587_s9 + $0x884] sm:$0xf]  ;;  %v4714_v23 = vor.u32 %v6003_v41, %v4711_v49 }
 0x1bc   : > { %3690 = vmatpush.bf16.msra.mxu0 %v4206_v2  ;;  %v6157_v2 = vld [vmem:[%s6587_s9 + $0x9d4] sm:$0xf]  ;;  %v5666_v43 = vor.u32 %v6241_v36, %v5663_v13  ;;  %v5159_v53 = vld [vmem:[%s6587_s9 + $0x8b8] sm:$0xf0]  ;;  %v6227_v54 = vld [vmem:[%s6587_s9 + $0xc04] sm:$0xf] }
 0x1bd   : > { %3704 = vmatpush.bf16.msra.mxu1 %v4654_v21  ;;  %v3835_v62 = vpack.c.bf16 %v3818_v57, %v3817_v1  ;;  %v5775_v21 = vld [vmem:[%s6587_s9 + $0xd88] sm:$0xf0]  ;;  %v5330_v8 = vor.u32 %v6157_v2, %v5327_v3  ;;  %v5607_v55 = vld [vmem:[%s6587_s9 + $0xc38] sm:$0xf0]  ;;  %v5162_v46 = vor.u32 %v6115_v50, %v5159_v53  ;;  %v5877_v11 = vld [vmem:[%s6587_s9 + $0x114] sm:$0xf] }
 0x1be   : > { %3718 = vmatpush.bf16.msra.mxu2 %v5102_v6  ;;  %v4434_v6 = vor.u32 %v5933_v60, %v4431_v52  ;;  %v5778_v14 = vor.u32 %v6269_v4, %v5775_v21  ;;  %v5610_v37 = vor.u32 %v6227_v54, %v5607_v55  ;;  %v6101_v1 = vld [vmem:[%s6587_s9 + $0x814] sm:$0xf]  ;;  %v5103_v57 = vld [vmem:[%s6587_s9 + $0x848] sm:$0xf0]  ;;  %v5863_v52 = vld [vmem:[%s6587_s9 + $0xa4] sm:$0xf] }
 0x1bf   : > { %3732 = vmatpush.bf16.msra.mxu3 %v5550_v18  ;;  %3849 = vst [vmem:[%s7135_s11 + $0x50] sm:$0xff] %v3835_v62  ;;  %v5271_v18 = vld [vmem:[%s6587_s9 + $0x998] sm:$0xf0]  ;;  %v5106_v60 = vor.u32 %v6101_v1, %v5103_v57  ;;  %v5975_v62 = vld [vmem:[%s6587_s9 + $0x424] sm:$0xf] }
 0x1c0   : > { %3691 = vmatpush.bf16.msra.mxu0 %v4150_v33  ;;  %v5274_v32 = vor.u32 %v6143_v16, %v5271_v18  ;;  %v4319_v33 = vld [vmem:[%s6587_s9 + $0x228] sm:$0xf0]  ;;  %v6087_v2 = vld [vmem:[%s6587_s9 + $0x7a4] sm:$0xf]  ;;  %v5047_v3 = vld [vmem:[%s6587_s9 + $0x7d8] sm:$0xf0]  ;;  %v4602_v40 = vor.u32 %v5975_v62, %v4599_v0 }
 0x1c1   : > { %3705 = vmatpush.bf16.msra.mxu1 %v4598_v42  ;;  %v6129_v42 = vld [vmem:[%s6587_s9 + $0x8f4] sm:$0xf]  ;;  %v4322_v30 = vor.u32 %v5905_v24, %v4319_v33  ;;  %v6199_v21 = vld [vmem:[%s6587_s9 + $0xb24] sm:$0xf]  ;;  %v5050_v9 = vor.u32 %v6087_v2, %v5047_v3  ;;  %v4543_v18 = vld [vmem:[%s6587_s9 + $0x3e8] sm:$0xf0] }
 0x1c2   : > { %3719 = vmatpush.bf16.msra.mxu2 %v5046_v45  ;;  %v5215_v45 = vld [vmem:[%s6587_s9 + $0x928] sm:$0xf0]  ;;  %v5961_v47 = vld [vmem:[%s6587_s9 + $0x3b4] sm:$0xf] }
 0x1c3   : > { %3733 = vmatpush.bf16.msra.mxu3 %v5494_v22  ;;  %v5218_v39 = vor.u32 %v6129_v42, %v5215_v45  ;;  %v5891_v22 = vld [vmem:[%s6587_s9 + $0x184] sm:$0xf]  ;;  %v6073_v26 = vld [vmem:[%s6587_s9 + $0x734] sm:$0xf] }
 0x1c4   : > { %3692 = vmatpush.bf16.msra.mxu0 %v4094_v56  ;;  %v4266_v56 = vor.u32 %v5891_v22, %v4263_v25  ;;  %v3470_v4 = vpop.f32.mrf.mxu0  ;;  %v7709_v34 = vld [vmem:[%s6595_s10 + $0x8] sm:$0x3f]  ;;  %v4994_v35 = vor.u32 %v6073_v26, %v4991_v27 }
 0x1c5   : > { %3706 = vmatpush.bf16.msra.mxu1 %v4542_v15  ;;  %v4207_v15 = vld [vmem:[%s6587_s9 + $0x148] sm:$0xf0]  ;;  %v733_v45 = vperm.slane %v7709_v34, 0  ;;  %v734_v22 = vperm.slane %v7709_v34, 1  ;;  %v735_v3 = vperm.slane %v7709_v34, 2 }
 0x1c6   : > { %3720 = vmatpush.bf16.msra.mxu2 %v4990_v44  ;;  %v5989_v44 = vld [vmem:[%s6587_s9 + $0x494] sm:$0xf] }
 0x1c7   : > { %3734 = vmatpush.bf16.msra.mxu3 %v5438_v58  ;;  %3693 = vmatmul.bf16.vlgmr.msra.gmra.mxu0 %v6704_v5  ;;  %v6213_v58 = vld [vmem:[%s6587_s9 + $0xb94] sm:$0xf] }
 0x1c8   : > { %3741 = vmatpush.bf16.msrb.mxu0 %v4490_v31  ;;  %3707 = vmatmul.bf16.vlgmr.msra.gmra.mxu1 %v6723_v17  ;;  %v5551_v31 = vld [vmem:[%s6587_s9 + $0xbc8] sm:$0xf0] }
 0x1c9   : > { %3755 = vmatpush.bf16.msrb.mxu1 %v4938_v19  ;;  %3721 = vmatmul.bf16.vlgmr.msra.gmra.mxu2 %v6691_v59  ;;  %v4210_v19 = vor.u32 %v5877_v11, %v4207_v15 }
 0x1ca   : > { %3769 = vmatpush.bf16.msrb.mxu2 %v5386_v51  ;;  %3735 = vmatmul.bf16.vlgmr.msra.gmra.mxu3 %v6715_v10  ;;  %v4658_v51 = vor.u32 %v5989_v44, %v4655_v48 }
 0x1cb   : > { %3783 = vmatpush.bf16.msrb.mxu3 %v5834_v63  ;;  %v5554_v63 = vor.u32 %v6213_v58, %v5551_v31 }
 0x1cc   : > { %3742 = vmatpush.bf16.msrb.mxu0 %v4434_v6  ;;  %v5495_v6 = vld [vmem:[%s6587_s9 + $0xb58] sm:$0xf0]  ;;  %v3472_v36 = vpop.f32.mrf.mxu0 }
 0x1cd   : > { %3756 = vmatpush.bf16.msrb.mxu1 %v4882_v7  ;;  %v3484_v7 = vpop.f32.mrf.mxu1  ;;  %v5498_v16 = vor.u32 %v6199_v21, %v5495_v6  ;;  %v3512_v33 = vpop.f32.mrf.mxu3  ;;  %v3473_v53 = vadd.f32 %v3472_v36, %v733_v45 }
 0x1ce   : > { %3770 = vmatpush.bf16.msrb.mxu2 %v5330_v8  ;;  %v4154_v8 = vor.u32 %v5863_v52, %v4151_v61 }
 0x1cf   : > { %3784 = vmatpush.bf16.msrb.mxu3 %v5778_v14  ;;  %v4095_v14 = vld [vmem:[%s6587_s9 + $0x68] sm:$0xf0] }
 0x1d0   : > { %3743 = vmatpush.bf16.msrb.mxu0 %v4378_v28  ;;  %v6185_v28 = vld [vmem:[%s6587_s9 + $0xab4] sm:$0xf]  ;;  %v4098_v24 = vor.u32 %v5849_v12, %v4095_v14 }
 0x1d1   : > { %3757 = vmatpush.bf16.msrb.mxu1 %v4826_v20  ;;  %v5439_v20 = vld [vmem:[%s6587_s9 + $0xae8] sm:$0xf0] }
 0x1d2   : > { %3771 = vmatpush.bf16.msrb.mxu2 %v5274_v32  ;;  %v3498_v32 = vpop.f32.mrf.mxu2  ;;  %v5442_v42 = vor.u32 %v6185_v28, %v5439_v20 }
 0x1d3   : > { %3785 = vmatpush.bf16.msrb.mxu3 %v5722_v29  ;;  %v4546_v29 = vor.u32 %v5961_v47, %v4543_v18 }
 0x1d4   : > { %3744 = vmatpush.bf16.msrb.mxu0 %v4322_v30  ;;  %v3471_v30 = vadd.f32 %v3470_v4, %v733_v45 }
 0x1d5   : > { %3758 = vmatpush.bf16.msrb.mxu1 %v4770_v38  ;;  %v3486_v13 = vpop.f32.mrf.mxu1 }
 0x1d6   : > { %3772 = vmatpush.bf16.msrb.mxu2 %v5218_v39  ;;  %v3514_v39 = vpop.f32.mrf.mxu3  ;;  %v3485_v25 = vadd.f32 %v3484_v7, %v3471_v30 }
 0x1d7   : > { %3786 = vmatpush.bf16.msrb.mxu3 %v5666_v43 }
 0x1d8   : > { %3745 = vmatpush.bf16.msrb.mxu0 %v4266_v56  ;;  %v3499_v50 = vadd.f32 %v3498_v32, %v3485_v25  ;;  %v3487_v56 = vadd.f32 %v3486_v13, %v3473_v53 }
 0x1d9   : > { %3759 = vmatpush.bf16.msrb.mxu1 %v4714_v23 }
 0x1da   : > { %3773 = vmatpush.bf16.msrb.mxu2 %v5162_v46  ;;  %v3500_v38 = vpop.f32.mrf.mxu2 }
 0x1db   : > { %3787 = vmatpush.bf16.msrb.mxu3 %v5610_v37  ;;  %v3501_v44 = vadd.f32 %v3500_v38, %v3487_v56 }
 0x1dc   : > { %3746 = vmatpush.bf16.msrb.mxu0 %v4210_v19 }
 0x1dd   : > { %3760 = vmatpush.bf16.msrb.mxu1 %v4658_v51  ;;  %v3515_v58 = vadd.f32 %v3514_v39, %v3501_v44 }
 0x1de   : > { %3774 = vmatpush.bf16.msrb.mxu2 %v5106_v60 }
 0x1df   : > { %3788 = vmatpush.bf16.msrb.mxu3 %v5554_v63  ;;  %v3819_v60 = vmax.f32 %v3515_v58, 0.0 }
 0x1e0   : > { %3747 = vmatpush.bf16.msrb.mxu0 %v4154_v8 }
 0x1e1   : > { %3761 = vmatpush.bf16.msrb.mxu1 %v4602_v40  ;;  %v736_v40 = vperm.slane %v7709_v34, 3 }
 0x1e2   : > { %3775 = vmatpush.bf16.msrb.mxu2 %v5050_v9 }
 0x1e3   : > { %3789 = vmatpush.bf16.msrb.mxu3 %v5498_v16 }
 0x1e4   : > { %3748 = vmatpush.bf16.msrb.mxu0 %v4098_v24  ;;  %v3526_v41 = vpop.f32.mrf.mxu0 }
 0x1e5   : > { %3762 = vmatpush.bf16.msrb.mxu1 %v4546_v29  ;;  %v3527_v43 = vadd.f32 %v3526_v41, %v734_v22  ;;  %v3540_v49 = vpop.f32.mrf.mxu1 }
 0x1e6   : > { %3776 = vmatpush.bf16.msrb.mxu2 %v4994_v35 }
 0x1e7   : > { %3790 = vmatpush.bf16.msrb.mxu3 %v5442_v42  ;;  %3749 = vmatmul.bf16.vlgmr.msrb.gmra.mxu0 %v6704_v5  ;;  %v3541_v54 = vadd.f32 %v3540_v49, %v3527_v43  ;;  %v3513_v5 = vadd.f32 %v3512_v33, %v3499_v50 }
 0x1e8   : > { %3763 = vmatmul.bf16.vlgmr.msrb.gmra.mxu1 %v6723_v17 }
 0x1e9   : > { %3777 = vmatmul.bf16.vlgmr.msrb.gmra.mxu2 %v6691_v59  ;;  %v3805_v15 = vmax.f32 %v3513_v5, 0.0 }
 0x1ea   : > { %3791 = vmatmul.bf16.vlgmr.msrb.gmra.mxu3 %v6715_v10 }
 0x1ec   : > { %v3554_v55 = vpop.f32.mrf.mxu2  ;;  %v3528_v46 = vpop.f32.mrf.mxu0 }
 0x1ed   : > { %v3555_v17 = vadd.f32 %v3554_v55, %v3541_v54  ;;  %v3568_v23 = vpop.f32.mrf.mxu3  ;;  %v3529_v10 = vadd.f32 %v3528_v46, %v734_v22  ;;  %v3542_v11 = vpop.f32.mrf.mxu1 }
 0x1ef   : > { %v3569_v59 = vadd.f32 %v3568_v23, %v3555_v17  ;;  %v3543_v48 = vadd.f32 %v3542_v11, %v3529_v10  ;;  %v737_v17 = vperm.slane %v7709_v34, 4  ;;  %v738_v10 = vperm.slane %v7709_v34, 5 }
 0x1f1   : > { %v3806_v37 = vmax.f32 %v3569_v59, 0.0 }
 0x1f3   : > { %v3829_v1 = vpack.c.bf16 %v3806_v37, %v3805_v15 }
 0x1f4   : > { %v3556_v57 = vpop.f32.mrf.mxu2 }
 0x1f5   : > { %3843 = vst [vmem:[%s7135_s11 + $0x20] sm:$0xff] %v3829_v1  ;;  %v3557_v31 = vadd.f32 %v3556_v57, %v3543_v48  ;;  %v3570_v19 = vpop.f32.mrf.mxu3 }
 0x1f7   : > { %v3571_v51 = vadd.f32 %v3570_v19, %v3557_v31 }
 0x1f9   : > { %v3820_v52 = vmax.f32 %v3571_v51, 0.0 }
 0x1fb   : > { %v3836_v61 = vpack.c.bf16 %v3820_v52, %v3819_v60 }
 0x1fd   : > { %3850 = vst [vmem:[%s7135_s11 + $0x58] sm:$0xff] %v3836_v61 }
 0x204   : > { %v3582_v62 = vpop.f32.mrf.mxu0 }
 0x205   : > { %v3596_v63 = vpop.f32.mrf.mxu1  ;;  %v3583_v6 = vadd.f32 %v3582_v62, %v735_v3 }
 0x207   : > { %v3597_v9 = vadd.f32 %v3596_v63, %v3583_v6 }
 0x20c   : > { %v3610_v0 = vpop.f32.mrf.mxu2  ;;  %v3584_v4 = vpop.f32.mrf.mxu0 }
 0x20d   : > { %v3624_v2 = vpop.f32.mrf.mxu3  ;;  %v3598_v21 = vpop.f32.mrf.mxu1  ;;  %v3611_v16 = vadd.f32 %v3610_v0, %v3597_v9  ;;  %v3585_v18 = vadd.f32 %v3584_v4, %v735_v3 }
 0x20f   : > { %v3625_v28 = vadd.f32 %v3624_v2, %v3611_v16  ;;  %v3599_v20 = vadd.f32 %v3598_v21, %v3585_v18  ;;  %v3878_v18 = vld [vmem:[%s7135_s11] sm:$0xff] (%p6550_p9) }
 0x210   : > { %3879 = vst [vmem:[%s3865_s12] sm:$0xff] (%p6550_p9), %v3878_v18 }
 0x211   : > { %v3807_v45 = vmax.f32 %v3625_v28, 0.0  ;;  %v3884_v28 = vld [vmem:[%s7135_s11 + $0x18] sm:$0xff] (%p6550_p9) }
 0x212   : > { %3885 = vst [vmem:[%s3865_s12 + $0x18] sm:$0xff] (%p6550_p9), %v3884_v28 }
 0x214   : > { %v3612_v7 = vpop.f32.mrf.mxu2 }
 0x215   : > { %v3626_v8 = vpop.f32.mrf.mxu3  ;;  %v3613_v36 = vadd.f32 %v3612_v7, %v3599_v20  ;;  %v3886_v20 = vld [vmem:[%s7135_s11 + $0x20] sm:$0xff] (%p6550_p9) }
 0x216   : > { %3887 = vst [vmem:[%s3865_s12 + $0x20] sm:$0xff] (%p6550_p9), %v3886_v20 }
 0x217   : > { %v3627_v22 = vadd.f32 %v3626_v8, %v3613_v36 }
 0x219   : > { %v3821_v49 = vmax.f32 %v3627_v22, 0.0 }
 0x224   : > { %v3638_v12 = vpop.f32.mrf.mxu0 }
 0x225   : > { %v3639_v14 = vadd.f32 %v3638_v12, %v736_v40  ;;  %v3652_v47 = vpop.f32.mrf.mxu1 }
 0x227   : > { %v3653_v26 = vadd.f32 %v3652_v47, %v3639_v14 }
 0x22c   : > { %v3666_v27 = vpop.f32.mrf.mxu2  ;;  %v3640_v29 = vpop.f32.mrf.mxu0 }
 0x22d   : > { %v3667_v32 = vadd.f32 %v3666_v27, %v3653_v26  ;;  %v3680_v24 = vpop.f32.mrf.mxu3  ;;  %v3641_v35 = vadd.f32 %v3640_v29, %v736_v40  ;;  %v3654_v42 = vpop.f32.mrf.mxu1  ;;  %v3880_v26 = vld [vmem:[%s7135_s11 + $0x8] sm:$0xff] (%p6550_p9)  ;;  %v3882_v27 = vld [vmem:[%s7135_s11 + $0x10] sm:$0xff] (%p6550_p9)  ;;  %v3894_v29 = vld [vmem:[%s7135_s11 + $0x40] sm:$0xff] (%p6550_p9) }
 0x22e   : > { %3881 = vst [vmem:[%s3865_s12 + $0x8] sm:$0xff] (%p6550_p9), %v3880_v26 }
 0x22f   : > { %v3681_v33 = vadd.f32 %v3680_v24, %v3667_v32  ;;  %v3655_v30 = vadd.f32 %v3654_v42, %v3641_v35  ;;  %3883 = vst [vmem:[%s3865_s12 + $0x10] sm:$0xff] (%p6550_p9), %v3882_v27  ;;  %v3896_v35 = vld [vmem:[%s7135_s11 + $0x48] sm:$0xff] (%p6550_p9)  ;;  %v3898_v42 = vld [vmem:[%s7135_s11 + $0x50] sm:$0xff] (%p6550_p9) }
 0x230   : > { %3895 = vst [vmem:[%s3865_s12 + $0x190] sm:$0xff] (%p6550_p9), %v3894_v29 }
 0x231   : > { %v3808_v13 = vmax.f32 %v3681_v33, 0.0  ;;  %v3892_v33 = vld [vmem:[%s7135_s11 + $0x38] sm:$0xff] (%p6550_p9)  ;;  %3897 = vst [vmem:[%s3865_s12 + $0x198] sm:$0xff] (%p6550_p9), %v3896_v35 }
 0x232   : > { %3893 = vst [vmem:[%s3865_s12 + $0x188] sm:$0xff] (%p6550_p9), %v3892_v33 }
 0x233   : > { %v3830_v38 = vpack.c.bf16 %v3808_v13, %v3807_v45  ;;  %v3900_v45 = vld [vmem:[%s7135_s11 + $0x58] sm:$0xff] (%p6550_p9)  ;;  %3899 = vst [vmem:[%s3865_s12 + $0x1a0] sm:$0xff] (%p6550_p9), %v3898_v42 }
 0x234   : > { %v3668_v39 = vpop.f32.mrf.mxu2  ;;  %3901 = vst [vmem:[%s3865_s12 + $0x1a8] sm:$0xff] (%p6550_p9), %v3900_v45 }
 0x235   : > { %3844 = vst [vmem:[%s7135_s11 + $0x28] sm:$0xff] %v3830_v38  ;;  %v3669_v25 = vadd.f32 %v3668_v39, %v3655_v30  ;;  %v3682_v41 = vpop.f32.mrf.mxu3 }
 0x237   : > { %v3683_v43 = vadd.f32 %v3682_v41, %v3669_v25 }
 0x239   : > { %v3822_v50 = vmax.f32 %v3683_v43, 0.0 }
 0x23b   : > { %v3837_v53 = vpack.c.bf16 %v3822_v50, %v3821_v49 }
 0x23c   : > { %v3888_v32 = vld [vmem:[%s7135_s11 + $0x28] sm:$0xff] (%p6550_p9) }
 0x23d   : > { %3851 = vst [vmem:[%s7135_s11 + $0x60] sm:$0xff] %v3837_v53 }
 0x23e   : > { %3889 = vst [vmem:[%s3865_s12 + $0x28] sm:$0xff] (%p6550_p9), %v3888_v32 }
 0x244   : > { %v3694_v54 = vpop.f32.mrf.mxu0  ;;  %v3902_v36 = vld [vmem:[%s7135_s11 + $0x60] sm:$0xff] (%p6550_p9) }
 0x245   : > { %v3708_v55 = vpop.f32.mrf.mxu1  ;;  %v3695_v46 = vadd.f32 %v3694_v54, %v737_v17  ;;  %3903 = vst [vmem:[%s3865_s12 + $0x1b0] sm:$0xff] (%p6550_p9), %v3902_v36 }
 0x247   : > { %v3709_v15 = vadd.f32 %v3708_v55, %v3695_v46 }
 0x24c   : > { %v3722_v5 = vpop.f32.mrf.mxu2  ;;  %v3696_v23 = vpop.f32.mrf.mxu0 }
 0x24d   : > { %v3736_v56 = vpop.f32.mrf.mxu3  ;;  %v3710_v59 = vpop.f32.mrf.mxu1  ;;  %v3723_v57 = vadd.f32 %v3722_v5, %v3709_v15  ;;  %v3697_v58 = vadd.f32 %v3696_v23, %v737_v17 }
 0x24f   : > { %v3737_v51 = vadd.f32 %v3736_v56, %v3723_v57  ;;  %v3711_v60 = vadd.f32 %v3710_v59, %v3697_v58 }
 0x251   : > { %v3809_v34 = vmax.f32 %v3737_v51, 0.0 }
 0x254   : > { %v3724_v11 = vpop.f32.mrf.mxu2 }
 0x255   : > { %v3738_v44 = vpop.f32.mrf.mxu3  ;;  %v3725_v2 = vadd.f32 %v3724_v11, %v3711_v60 }
 0x257   : > { %v3739_v8 = vadd.f32 %v3738_v44, %v3725_v2 }
 0x259   : > { %v3823_v14 = vmax.f32 %v3739_v8, 0.0 }
 0x264   : > { %v3750_v37 = vpop.f32.mrf.mxu0 }
 0x265   : > { %v3751_v48 = vadd.f32 %v3750_v37, %v738_v10  ;;  %v3764_v1 = vpop.f32.mrf.mxu1 }
 0x267   : > { %v3765_v31 = vadd.f32 %v3764_v1, %v3751_v48 }
 0x26c   : > { %v3778_v19 = vpop.f32.mrf.mxu2  ;;  %v3752_v62 = vpop.f32.mrf.mxu0 }
 0x26d   : > { %v3779_v52 = vadd.f32 %v3778_v19, %v3765_v31  ;;  %v3792_v61 = vpop.f32.mrf.mxu3  ;;  %v3753_v0 = vadd.f32 %v3752_v62, %v738_v10  ;;  %v3766_v4 = vpop.f32.mrf.mxu1 }
 0x26f   : > { %v3793_v63 = vadd.f32 %v3792_v61, %v3779_v52  ;;  %v3767_v6 = vadd.f32 %v3766_v4, %v3753_v0 }
 0x271   : > { %v3810_v3 = vmax.f32 %v3793_v63, 0.0 }
 0x273   : > { %v3831_v21 = vpack.c.bf16 %v3810_v3, %v3809_v34 }
 0x274   : > { %v3780_v7 = vpop.f32.mrf.mxu2 }
 0x275   : > { %3845 = vst [vmem:[%s7135_s11 + $0x30] sm:$0xff] %v3831_v21  ;;  %v3781_v40 = vadd.f32 %v3780_v7, %v3767_v6  ;;  %v3794_v9 = vpop.f32.mrf.mxu3 }
 0x277   : > { %v3795_v12 = vadd.f32 %v3794_v9, %v3781_v40 }
 0x279   : > { %v3824_v47 = vmax.f32 %v3795_v12, 0.0  ;;  %3859 = sbr.rel (!%p6550_p9) target bundleno = 646 (0x286), region = 44 }
 0x27b   : > { %v3838_v16 = vpack.c.bf16 %v3824_v47, %v3823_v14 }
 0x27c   : > { %v3890_v24 = vld [vmem:[%s7135_s11 + $0x30] sm:$0xff] (%p6550_p9) }
 0x27d   : > { %3852 = vst [vmem:[%s7135_s11 + $0x68] sm:$0xff] %v3838_v16 }
 0x27e   : > { %3891 = vst [vmem:[%s3865_s12 + $0x30] sm:$0xff] %v3890_v24 }
 0x284   : > { %v3904_v13 = vld [vmem:[%s7135_s11 + $0x68] sm:$0xff] }
 0x285   : > { %3905 = vst [vmem:[%s3865_s12 + $0x1b8] sm:$0xff] %v3904_v13 }
 0x286 PF: > { %s19_s17 = sadd.s32 1, %s6475_s17   ;;  %s7773_s12 = smov %s6459_s13 }
 0x287   : > { %p16_p1 = scmp.ge.s32.totalorder %s19_s17, 9   ;;  %s7774_s13 = smov %s6463_s14 }
 0x288   : > { %s7775_s14 = smov %s6548_s24  ;;  %s7776_s15 = smov %s6471_s16 }
 0x289   : > { %s7777_s16 = smov %s7779_s19  ;;  %18 = sbr.rel (!%p16_p1) target bundleno = 6 (0x6), region = 111 }
 0x28e   :  { %3921 = vsyncpa [#allocation3], 1 }
 0x28f   :  { %3923 = vsyncpa [#allocation3 + $0x1], 1 }
 0x290   :  { %3924 = vsyncpa [#allocation5], 1 }
 0x291   :  { %3926 = vsyncpa [#allocation5 + $0x1], 1 }

// kernel: conv_decoder_anai_forward.9
= control target key start
LH: loop header
LB: loop body
LE: loop exit
PB: predicated region body
PF: predicated region fallthrough
CT: control target
= control target key end

     0   :  { %s3139_s1 = inlined_call_operand.vmem [shape: bf16[512,256], index: 1, kind: input, shape index: {}]   ;;  %s3140_s0 = inlined_call_operand.vmem [shape: bf16[208,512], index: 0, kind: input, shape index: {}]   ;;  %s3141_s2 = inlined_call_operand.vmem [shape: f32[1,256], index: 2, kind: input, shape index: {}]   ;;  %s3142_s3 = inlined_call_operand.vmem [shape: bf16[208,256], index: 3, kind: output, shape index: {}]  }
   0x1   :  { %v1682_v0 = vld [vmem:[%s3139_s1 + $0x70] sm:$0xf]  ;;  %v1947_v1 = vld [vmem:[%s3139_s1 + $0x74] sm:$0xf0]  ;;  %v1674_v11 = vld [vmem:[%s3139_s1 + $0x60] sm:$0xf] }
   0x2   :  { %v1746_v2 = vld [vmem:[%s3139_s1 + $0xf0] sm:$0xf]  ;;  %v1683_v3 = vor.u32 %v1947_v1, %v1682_v0  ;;  %v1963_v4 = vld [vmem:[%s3139_s1 + $0xf4] sm:$0xf0]  ;;  %v1945_v13 = vld [vmem:[%s3139_s1 + $0x64] sm:$0xf0] }
   0x3   :  { %v1810_v5 = vld [vmem:[%s3139_s1 + $0x170] sm:$0xf]  ;;  %v1979_v6 = vld [vmem:[%s3139_s1 + $0x174] sm:$0xf0]  ;;  %v1747_v7 = vor.u32 %v1963_v4, %v1746_v2  ;;  %v1738_v14 = vld [vmem:[%s3139_s1 + $0xe0] sm:$0xf]  ;;  %v1675_v16 = vor.u32 %v1945_v13, %v1674_v11 }
   0x4   :  { %v1811_v8 = vor.u32 %v1979_v6, %v1810_v5  ;;  %v1874_v9 = vld [vmem:[%s3139_s1 + $0x1f0] sm:$0xf]  ;;  %v1995_v10 = vld [vmem:[%s3139_s1 + $0x1f4] sm:$0xf0]  ;;  %716 = vmatpush.bf16.msra.mxu0 %v1683_v3  ;;  %v1961_v15 = vld [vmem:[%s3139_s1 + $0xe4] sm:$0xf0] }
   0x5   :  { %v1875_v12 = vor.u32 %v1995_v10, %v1874_v9  ;;  %790 = vmatpush.bf16.msra.mxu1 %v1747_v7  ;;  %v1739_v17 = vor.u32 %v1961_v15, %v1738_v14  ;;  %v1802_v18 = vld [vmem:[%s3139_s1 + $0x160] sm:$0xf]  ;;  %v1977_v19 = vld [vmem:[%s3139_s1 + $0x164] sm:$0xf0]  ;;  %v1666_v23 = vld [vmem:[%s3139_s1 + $0x50] sm:$0xf] }
   0x6   :  { %864 = vmatpush.bf16.msra.mxu2 %v1811_v8  ;;  %v1866_v20 = vld [vmem:[%s3139_s1 + $0x1e0] sm:$0xf]  ;;  %v1803_v21 = vor.u32 %v1977_v19, %v1802_v18  ;;  %v1993_v22 = vld [vmem:[%s3139_s1 + $0x1e4] sm:$0xf0]  ;;  %v1943_v24 = vld [vmem:[%s3139_s1 + $0x54] sm:$0xf0] }
   0x7   :  { %938 = vmatpush.bf16.msra.mxu3 %v1875_v12  ;;  %v1867_v25 = vor.u32 %v1993_v22, %v1866_v20  ;;  %v1730_v26 = vld [vmem:[%s3139_s1 + $0xd0] sm:$0xf]  ;;  %v1959_v27 = vld [vmem:[%s3139_s1 + $0xd4] sm:$0xf0]  ;;  %v1667_v29 = vor.u32 %v1943_v24, %v1666_v23  ;;  %v1658_v35 = vld [vmem:[%s3139_s1 + $0x40] sm:$0xf] }
   0x8   :  { %v1794_v28 = vld [vmem:[%s3139_s1 + $0x150] sm:$0xf]  ;;  %717 = vmatpush.bf16.msra.mxu0 %v1675_v16  ;;  %v1975_v30 = vld [vmem:[%s3139_s1 + $0x154] sm:$0xf0]  ;;  %v1731_v33 = vor.u32 %v1959_v27, %v1730_v26  ;;  %v1941_v36 = vld [vmem:[%s3139_s1 + $0x44] sm:$0xf0] }
   0x9   :  { %v1858_v31 = vld [vmem:[%s3139_s1 + $0x1d0] sm:$0xf]  ;;  %v1991_v32 = vld [vmem:[%s3139_s1 + $0x1d4] sm:$0xf0]  ;;  %791 = vmatpush.bf16.msra.mxu1 %v1739_v17  ;;  %v1795_v34 = vor.u32 %v1975_v30, %v1794_v28  ;;  %v1722_v37 = vld [vmem:[%s3139_s1 + $0xc0] sm:$0xf]  ;;  %v1659_v44 = vor.u32 %v1941_v36, %v1658_v35 }
   0xa   :  { %865 = vmatpush.bf16.msra.mxu2 %v1803_v21  ;;  %v1859_v38 = vor.u32 %v1991_v32, %v1858_v31  ;;  %v1957_v39 = vld [vmem:[%s3139_s1 + $0xc4] sm:$0xf0]  ;;  %v1786_v40 = vld [vmem:[%s3139_s1 + $0x140] sm:$0xf]  ;;  %v1650_v47 = vld [vmem:[%s3139_s1 + $0x30] sm:$0xf] }
   0xb   :  { %939 = vmatpush.bf16.msra.mxu3 %v1867_v25  ;;  %v1973_v41 = vld [vmem:[%s3139_s1 + $0x144] sm:$0xf0]  ;;  %v1850_v42 = vld [vmem:[%s3139_s1 + $0x1c0] sm:$0xf]  ;;  %v1723_v45 = vor.u32 %v1957_v39, %v1722_v37  ;;  %v1939_v48 = vld [vmem:[%s3139_s1 + $0x34] sm:$0xf0] }
   0xc   :  { %v1989_v43 = vld [vmem:[%s3139_s1 + $0x1c4] sm:$0xf0]  ;;  %718 = vmatpush.bf16.msra.mxu0 %v1667_v29  ;;  %v1787_v46 = vor.u32 %v1973_v41, %v1786_v40  ;;  %v1714_v49 = vld [vmem:[%s3139_s1 + $0xb0] sm:$0xf]  ;;  %v1955_v51 = vld [vmem:[%s3139_s1 + $0xb4] sm:$0xf0]  ;;  %v1651_v56 = vor.u32 %v1939_v48, %v1650_v47 }
   0xd   :  { %792 = vmatpush.bf16.msra.mxu1 %v1731_v33  ;;  %v1851_v50 = vor.u32 %v1989_v43, %v1850_v42  ;;  %v1778_v52 = vld [vmem:[%s3139_s1 + $0x130] sm:$0xf]  ;;  %v1971_v53 = vld [vmem:[%s3139_s1 + $0x134] sm:$0xf0]  ;;  %v1715_v57 = vor.u32 %v1955_v51, %v1714_v49  ;;  %v1642_v59 = vld [vmem:[%s3139_s1 + $0x20] sm:$0xf] }
   0xe   :  { %866 = vmatpush.bf16.msra.mxu2 %v1795_v34  ;;  %v1842_v54 = vld [vmem:[%s3139_s1 + $0x1b0] sm:$0xf]  ;;  %v1987_v55 = vld [vmem:[%s3139_s1 + $0x1b4] sm:$0xf0]  ;;  %v1779_v58 = vor.u32 %v1971_v53, %v1778_v52  ;;  %v1937_v60 = vld [vmem:[%s3139_s1 + $0x24] sm:$0xf0] }
   0xf   :  { %940 = vmatpush.bf16.msra.mxu3 %v1859_v38  ;;  %v1706_v61 = vld [vmem:[%s3139_s1 + $0xa0] sm:$0xf]  ;;  %v1843_v62 = vor.u32 %v1987_v55, %v1842_v54  ;;  %v1953_v63 = vld [vmem:[%s3139_s1 + $0xa4] sm:$0xf0]  ;;  %v1643_v4 = vor.u32 %v1937_v60, %v1642_v59  ;;  %v1634_v7 = vld [vmem:[%s3139_s1 + $0x10] sm:$0xf] }
  0x10   :  { %719 = vmatpush.bf16.msra.mxu0 %v1659_v44  ;;  %v1770_v0 = vld [vmem:[%s3139_s1 + $0x120] sm:$0xf]  ;;  %v1969_v1 = vld [vmem:[%s3139_s1 + $0x124] sm:$0xf0]  ;;  %v1707_v5 = vor.u32 %v1953_v63, %v1706_v61  ;;  %v1935_v8 = vld [vmem:[%s3139_s1 + $0x14] sm:$0xf0] }
  0x11   :  { %793 = vmatpush.bf16.msra.mxu1 %v1723_v45  ;;  %v1834_v2 = vld [vmem:[%s3139_s1 + $0x1a0] sm:$0xf]  ;;  %v1985_v3 = vld [vmem:[%s3139_s1 + $0x1a4] sm:$0xf0]  ;;  %v1771_v6 = vor.u32 %v1969_v1, %v1770_v0  ;;  %v1698_v9 = vld [vmem:[%s3139_s1 + $0x90] sm:$0xf]  ;;  %v1635_v17 = vor.u32 %v1935_v8, %v1634_v7 }
  0x12   :  { %867 = vmatpush.bf16.msra.mxu2 %v1787_v46  ;;  %v1835_v10 = vor.u32 %v1985_v3, %v1834_v2  ;;  %v1951_v11 = vld [vmem:[%s3139_s1 + $0x94] sm:$0xf0]  ;;  %v1762_v12 = vld [vmem:[%s3139_s1 + $0x110] sm:$0xf]  ;;  %v1626_v16 = vld [vmem:[%s3139_s1] sm:$0xf] }
  0x13   :  { %941 = vmatpush.bf16.msra.mxu3 %v1851_v50  ;;  %v1967_v13 = vld [vmem:[%s3139_s1 + $0x114] sm:$0xf0]  ;;  %v1826_v14 = vld [vmem:[%s3139_s1 + $0x190] sm:$0xf]  ;;  %v1933_v18 = vld [vmem:[%s3139_s1 + $0x4] sm:$0xf0]  ;;  %v1699_v21 = vor.u32 %v1951_v11, %v1698_v9 }
  0x14   :  { %720 = vmatpush.bf16.msra.mxu0 %v1651_v56  ;;  %v1983_v15 = vld [vmem:[%s3139_s1 + $0x194] sm:$0xf0]  ;;  %v1690_v19 = vld [vmem:[%s3139_s1 + $0x80] sm:$0xf]  ;;  %v1949_v20 = vld [vmem:[%s3139_s1 + $0x84] sm:$0xf0]  ;;  %v1763_v22 = vor.u32 %v1967_v13, %v1762_v12  ;;  %v1627_v34 = vor.u32 %v1933_v18, %v1626_v16 }
  0x15   :  { %794 = vmatpush.bf16.msra.mxu1 %v1715_v57  ;;  %v1754_v23 = vld [vmem:[%s3139_s1 + $0x100] sm:$0xf]  ;;  %v1965_v24 = vld [vmem:[%s3139_s1 + $0x104] sm:$0xf0]  ;;  %v1827_v26 = vor.u32 %v1983_v15, %v1826_v14  ;;  %v1882_v29 = vld [vmem:[%s3140_s0 + $0xc] sm:$0xf0]  ;;  %v1691_v38 = vor.u32 %v1949_v20, %v1690_v19 }
  0x16   :  { %868 = vmatpush.bf16.msra.mxu2 %v1779_v58  ;;  %v1818_v25 = vld [vmem:[%s3139_s1 + $0x180] sm:$0xf]  ;;  %v1981_v27 = vld [vmem:[%s3139_s1 + $0x184] sm:$0xf0]  ;;  %v1880_v30 = vld [vmem:[%s3140_s0 + $0x4] sm:$0xf]  ;;  %v1755_v39 = vor.u32 %v1965_v24, %v1754_v23 }
  0x17   :  { %942 = vmatpush.bf16.msra.mxu3 %v1843_v62  ;;  %v1418_v28 = vld [vmem:[%s3140_s0] sm:$0xf]  ;;  %v1420_v31 = vld [vmem:[%s3140_s0 + $0x10] sm:$0xf0]  ;;  %v1812_v33 = vld [vmem:[%s3139_s1 + $0x178] sm:$0xf0]  ;;  %v1819_v43 = vor.u32 %v1981_v27, %v1818_v25 }
  0x18   :  { %721 = vmatpush.bf16.msra.mxu0 %v1643_v4  ;;  %v1978_v32 = vld [vmem:[%s3139_s1 + $0x174] sm:$0xf]  ;;  %v1426_v35 = vld [vmem:[%s3140_s0 + $0x8] sm:$0xf]  ;;  %v1876_v37 = vld [vmem:[%s3139_s1 + $0x1f8] sm:$0xf0]  ;;  %v2253_v48 = vor.u32 %v1882_v29, %v1418_v28  ;;  %v2264_v53 = vor.u32 %v1880_v30, %v1420_v31 }
  0x19   :  { %795 = vmatpush.bf16.msra.mxu1 %v1707_v5  ;;  %v1994_v36 = vld [vmem:[%s3139_s1 + $0x1f4] sm:$0xf]  ;;  %v1883_v40 = vld [vmem:[%s3140_s0 + $0x14] sm:$0xf0]  ;;  %v1881_v41 = vld [vmem:[%s3140_s0 + $0xc] sm:$0xf]  ;;  %v1815_v44 = vor.u32 %v1978_v32, %v1812_v33 }
  0x1a   :  { %869 = vmatpush.bf16.msra.mxu2 %v1771_v6  ;;  %v1428_v42 = vld [vmem:[%s3140_s0 + $0x18] sm:$0xf0]  ;;  %v1946_v45 = vld [vmem:[%s3139_s1 + $0x74] sm:$0xf]  ;;  %v1879_v49 = vor.u32 %v1994_v36, %v1876_v37  ;;  %v1976_v51 = vld [vmem:[%s3139_s1 + $0x164] sm:$0xf]  ;;  %v2266_v54 = vor.u32 %v1883_v40, %v1426_v35 }
  0x1b   :  { %943 = vmatpush.bf16.msra.mxu3 %v1835_v10  ;;  %v1684_v46 = vld [vmem:[%s3139_s1 + $0x78] sm:$0xf0]  ;;  %v1962_v47 = vld [vmem:[%s3139_s1 + $0xf4] sm:$0xf]  ;;  %v1804_v52 = vld [vmem:[%s3139_s1 + $0x168] sm:$0xf0]  ;;  %v2274_v57 = vor.u32 %v1881_v41, %v1428_v42 }
  0x1c   :  { %722 = vmatpush.bf16.msra.mxu0 %v1635_v17  ;;  %v1748_v50 = vld [vmem:[%s3139_s1 + $0xf8] sm:$0xf0]  ;;  %v1992_v55 = vld [vmem:[%s3139_s1 + $0x1e4] sm:$0xf]  ;;  %v1868_v56 = vld [vmem:[%s3139_s1 + $0x1e8] sm:$0xf0]  ;;  %v1687_v58 = vor.u32 %v1946_v45, %v1684_v46  ;;  %v1807_v60 = vor.u32 %v1976_v51, %v1804_v52 }
  0x1d   :  { %796 = vmatpush.bf16.msra.mxu1 %v1699_v21  ;;  %v1751_v59 = vor.u32 %v1962_v47, %v1748_v50  ;;  %v1944_v61 = vld [vmem:[%s3139_s1 + $0x64] sm:$0xf]  ;;  %v1676_v62 = vld [vmem:[%s3139_s1 + $0x68] sm:$0xf0]  ;;  %v1871_v63 = vor.u32 %v1992_v55, %v1868_v56  ;;  %v1434_v4 = vld [vmem:[%s3140_s0 + $0x20] sm:$0xf] }
  0x1e   :  { %870 = vmatpush.bf16.msra.mxu2 %v1763_v22  ;;  %v1960_v0 = vld [vmem:[%s3139_s1 + $0xe4] sm:$0xf]  ;;  %v1740_v1 = vld [vmem:[%s3139_s1 + $0xe8] sm:$0xf0]  ;;  %v1679_v2 = vor.u32 %v1944_v61, %v1676_v62  ;;  %v1886_v5 = vld [vmem:[%s3140_s0 + $0x2c] sm:$0xf0] }
  0x1f   :  { %944 = vmatpush.bf16.msra.mxu3 %v1827_v26  ;;  %v1743_v3 = vor.u32 %v1960_v0, %v1740_v1  ;;  %v1884_v6 = vld [vmem:[%s3140_s0 + $0x24] sm:$0xf]  ;;  %v1436_v7 = vld [vmem:[%s3140_s0 + $0x30] sm:$0xf0]  ;;  %v1442_v8 = vld [vmem:[%s3140_s0 + $0x28] sm:$0xf]  ;;  %v2316_v12 = vor.u32 %v1886_v5, %v1434_v4 }
  0x20   :  { %723 = vmatpush.bf16.msra.mxu0 %v1627_v34  ;;  %v1887_v9 = vld [vmem:[%s3140_s0 + $0x34] sm:$0xf0]  ;;  %v1885_v10 = vld [vmem:[%s3140_s0 + $0x2c] sm:$0xf]  ;;  %v1444_v11 = vld [vmem:[%s3140_s0 + $0x38] sm:$0xf0]  ;;  %v2318_v13 = vor.u32 %v1884_v6, %v1436_v7 }
  0x21   :  { %797 = vmatpush.bf16.msra.mxu1 %v1691_v38  ;;  %v2320_v14 = vor.u32 %v1887_v9, %v1442_v8  ;;  %v2322_v15 = vor.u32 %v1885_v10, %v1444_v11  ;;  %v1974_v16 = vld [vmem:[%s3139_s1 + $0x154] sm:$0xf]  ;;  %v1796_v17 = vld [vmem:[%s3139_s1 + $0x158] sm:$0xf0]  ;;  %v1450_v28 = vld [vmem:[%s3140_s0 + $0x40] sm:$0xf] }
  0x22   :  { %871 = vmatpush.bf16.msra.mxu2 %v1755_v39  ;;  %v1942_v18 = vld [vmem:[%s3139_s1 + $0x54] sm:$0xf]  ;;  %v1799_v19 = vor.u32 %v1974_v16, %v1796_v17  ;;  %v1668_v20 = vld [vmem:[%s3139_s1 + $0x58] sm:$0xf0]  ;;  %v1890_v29 = vld [vmem:[%s3140_s0 + $0x4c] sm:$0xf0] }
  0x23   :  { %945 = vmatpush.bf16.msra.mxu3 %v1819_v43  ;;  %724 = vmatmul.bf16.vlgmr.msra.gmra.mxu0 %v2253_v48  ;;  %v1990_v21 = vld [vmem:[%s3139_s1 + $0x1d4] sm:$0xf]  ;;  %v1860_v22 = vld [vmem:[%s3139_s1 + $0x1d8] sm:$0xf0]  ;;  %v1671_v23 = vor.u32 %v1942_v18, %v1668_v20  ;;  %v1888_v30 = vld [vmem:[%s3140_s0 + $0x44] sm:$0xf]  ;;  %v2376_v36 = vor.u32 %v1890_v29, %v1450_v28 }
  0x24   :  { %798 = vmatmul.bf16.vlgmr.msra.gmra.mxu1 %v2264_v53  ;;  %1012 = vmatpush.bf16.msrb.mxu0 %v1687_v58  ;;  %v1863_v24 = vor.u32 %v1990_v21, %v1860_v22  ;;  %v1958_v25 = vld [vmem:[%s3139_s1 + $0xd4] sm:$0xf]  ;;  %v1732_v26 = vld [vmem:[%s3139_s1 + $0xd8] sm:$0xf0]  ;;  %v1458_v32 = vld [vmem:[%s3140_s0 + $0x48] sm:$0xf] }
  0x25   :  { %872 = vmatmul.bf16.vlgmr.msra.gmra.mxu2 %v2266_v54  ;;  %1086 = vmatpush.bf16.msrb.mxu1 %v1751_v59  ;;  %v1735_v27 = vor.u32 %v1958_v25, %v1732_v26  ;;  %v1452_v31 = vld [vmem:[%s3140_s0 + $0x50] sm:$0xf0]  ;;  %v1891_v33 = vld [vmem:[%s3140_s0 + $0x54] sm:$0xf0]  ;;  %v1889_v34 = vld [vmem:[%s3140_s0 + $0x4c] sm:$0xf] }
  0x26   :  { %1160 = vmatpush.bf16.msrb.mxu2 %v1815_v44  ;;  %946 = vmatmul.bf16.vlgmr.msra.gmra.mxu3 %v2274_v57  ;;  %v1460_v35 = vld [vmem:[%s3140_s0 + $0x58] sm:$0xf0]  ;;  %v2378_v37 = vor.u32 %v1888_v30, %v1452_v31  ;;  %v2380_v38 = vor.u32 %v1891_v33, %v1458_v32  ;;  %v1972_v40 = vld [vmem:[%s3139_s1 + $0x144] sm:$0xf]  ;;  %v1788_v41 = vld [vmem:[%s3139_s1 + $0x148] sm:$0xf0] }
  0x27   :  { %1234 = vmatpush.bf16.msrb.mxu3 %v1879_v49  ;;  %v2382_v39 = vor.u32 %v1889_v34, %v1460_v35  ;;  %v1791_v42 = vor.u32 %v1972_v40, %v1788_v41  ;;  %v1466_v43 = vld [vmem:[%s3140_s0 + $0x60] sm:$0xf]  ;;  %v1894_v44 = vld [vmem:[%s3140_s0 + $0x6c] sm:$0xf0]  ;;  %v1892_v45 = vld [vmem:[%s3140_s0 + $0x64] sm:$0xf] }
  0x28   :  { %1013 = vmatpush.bf16.msrb.mxu0 %v1679_v2  ;;  %v1468_v46 = vld [vmem:[%s3140_s0 + $0x70] sm:$0xf0]  ;;  %v1474_v47 = vld [vmem:[%s3140_s0 + $0x68] sm:$0xf]  ;;  %v1895_v49 = vld [vmem:[%s3140_s0 + $0x74] sm:$0xf0]  ;;  %v2418_v52 = vor.u32 %v1894_v44, %v1466_v43 }
  0x29   :  { %1087 = vmatpush.bf16.msrb.mxu1 %v1743_v3  ;;  %v1893_v50 = vld [vmem:[%s3140_s0 + $0x6c] sm:$0xf]  ;;  %v1476_v51 = vld [vmem:[%s3140_s0 + $0x78] sm:$0xf0]  ;;  %v2420_v55 = vor.u32 %v1892_v45, %v1468_v46  ;;  %v2422_v56 = vor.u32 %v1895_v49, %v1474_v47  ;;  %v1940_v59 = vld [vmem:[%s3139_s1 + $0x44] sm:$0xf] }
  0x2a   :  { %1161 = vmatpush.bf16.msrb.mxu2 %v1807_v60  ;;  %v2424_v58 = vor.u32 %v1893_v50, %v1476_v51  ;;  %v1660_v60 = vld [vmem:[%s3139_s1 + $0x48] sm:$0xf0]  ;;  %v1988_v61 = vld [vmem:[%s3139_s1 + $0x1c4] sm:$0xf]  ;;  %v1482_v4 = vld [vmem:[%s3140_s0 + $0x80] sm:$0xf] }
  0x2b   :  { %1235 = vmatpush.bf16.msrb.mxu3 %v1871_v63  ;;  %v1663_v62 = vor.u32 %v1940_v59, %v1660_v60  ;;  %v1852_v63 = vld [vmem:[%s3139_s1 + $0x1c8] sm:$0xf0]  ;;  %v1956_v0 = vld [vmem:[%s3139_s1 + $0xc4] sm:$0xf]  ;;  %v1898_v5 = vld [vmem:[%s3140_s0 + $0x8c] sm:$0xf0] }
  0x2c   :  { %1014 = vmatpush.bf16.msrb.mxu0 %v1671_v23  ;;  %v1724_v1 = vld [vmem:[%s3139_s1 + $0xc8] sm:$0xf0]  ;;  %v1855_v2 = vor.u32 %v1988_v61, %v1852_v63  ;;  %v1896_v6 = vld [vmem:[%s3140_s0 + $0x84] sm:$0xf]  ;;  %v1484_v7 = vld [vmem:[%s3140_s0 + $0x90] sm:$0xf0]  ;;  %v2472_v16 = vor.u32 %v1898_v5, %v1482_v4 }
  0x2d   :  { %1088 = vmatpush.bf16.msrb.mxu1 %v1735_v27  ;;  %v1727_v3 = vor.u32 %v1956_v0, %v1724_v1  ;;  %v1490_v8 = vld [vmem:[%s3140_s0 + $0x88] sm:$0xf]  ;;  %v1899_v9 = vld [vmem:[%s3140_s0 + $0x94] sm:$0xf0]  ;;  %v1897_v10 = vld [vmem:[%s3140_s0 + $0x8c] sm:$0xf]  ;;  %v2474_v17 = vor.u32 %v1896_v6, %v1484_v7 }
  0x2e   :  { %1162 = vmatpush.bf16.msrb.mxu2 %v1799_v19  ;;  %v1492_v11 = vld [vmem:[%s3140_s0 + $0x98] sm:$0xf0]  ;;  %v2476_v18 = vor.u32 %v1899_v9, %v1490_v8  ;;  %v1970_v20 = vld [vmem:[%s3139_s1 + $0x134] sm:$0xf]  ;;  %v1498_v32 = vld [vmem:[%s3140_s0 + $0xa0] sm:$0xf] }
  0x2f   :  { %1236 = vmatpush.bf16.msrb.mxu3 %v1863_v24  ;;  %v2478_v19 = vor.u32 %v1897_v10, %v1492_v11  ;;  %v1780_v21 = vld [vmem:[%s3139_s1 + $0x138] sm:$0xf0]  ;;  %v1938_v22 = vld [vmem:[%s3139_s1 + $0x34] sm:$0xf]  ;;  %v1902_v33 = vld [vmem:[%s3140_s0 + $0xac] sm:$0xf0] }
  0x30   :  { %1015 = vmatpush.bf16.msrb.mxu0 %v1663_v62  ;;  %v1783_v23 = vor.u32 %v1970_v20, %v1780_v21  ;;  %v1652_v24 = vld [vmem:[%s3139_s1 + $0x38] sm:$0xf0]  ;;  %v1986_v25 = vld [vmem:[%s3139_s1 + $0x1b4] sm:$0xf]  ;;  %v1900_v34 = vld [vmem:[%s3140_s0 + $0xa4] sm:$0xf]  ;;  %v2532_v44 = vor.u32 %v1902_v33, %v1498_v32 }
  0x31   :  { %1089 = vmatpush.bf16.msrb.mxu1 %v1727_v3  ;;  %v1844_v26 = vld [vmem:[%s3139_s1 + $0x1b8] sm:$0xf0]  ;;  %v1655_v27 = vor.u32 %v1938_v22, %v1652_v24  ;;  %v1954_v29 = vld [vmem:[%s3139_s1 + $0xb4] sm:$0xf]  ;;  %v1506_v40 = vld [vmem:[%s3140_s0 + $0xa8] sm:$0xf] }
  0x32   :  { %1163 = vmatpush.bf16.msrb.mxu2 %v1791_v42  ;;  %v1847_v28 = vor.u32 %v1986_v25, %v1844_v26  ;;  %v1716_v30 = vld [vmem:[%s3139_s1 + $0xb8] sm:$0xf0]  ;;  %v1500_v35 = vld [vmem:[%s3140_s0 + $0xb0] sm:$0xf0]  ;;  %v1903_v41 = vld [vmem:[%s3140_s0 + $0xb4] sm:$0xf0] }
  0x33   :  { %729 = vmatmul.bf16.gmra.mxu0 %v2316_v12  ;;  %1237 = vmatpush.bf16.msrb.mxu3 %v1855_v2  ;;  %v1719_v31 = vor.u32 %v1954_v29, %v1716_v30  ;;  %v1901_v42 = vld [vmem:[%s3140_s0 + $0xac] sm:$0xf]  ;;  %v1508_v43 = vld [vmem:[%s3140_s0 + $0xb8] sm:$0xf0]  ;;  %v2534_v45 = vor.u32 %v1900_v34, %v1500_v35  ;;  %v2536_v46 = vor.u32 %v1903_v41, %v1506_v40  ;;  %v1514_v49 = vld [vmem:[%s3140_s0 + $0xc0] sm:$0xf] }
  0x34   :  { %803 = vmatmul.bf16.gmra.mxu1 %v2318_v13  ;;  %1016 = vmatpush.bf16.msrb.mxu0 %v1655_v27  ;;  %v2538_v47 = vor.u32 %v1901_v42, %v1508_v43  ;;  %v1906_v50 = vld [vmem:[%s3140_s0 + $0xcc] sm:$0xf0]  ;;  %v1904_v51 = vld [vmem:[%s3140_s0 + $0xc4] sm:$0xf]  ;;  %v1516_v59 = vld [vmem:[%s3140_s0 + $0xd0] sm:$0xf0] }
  0x35   :  { %877 = vmatmul.bf16.gmra.mxu2 %v2320_v14  ;;  %1090 = vmatpush.bf16.msrb.mxu1 %v1719_v31  ;;  %v1522_v60 = vld [vmem:[%s3140_s0 + $0xc8] sm:$0xf]  ;;  %v1907_v61 = vld [vmem:[%s3140_s0 + $0xd4] sm:$0xf0]  ;;  %v1905_v62 = vld [vmem:[%s3140_s0 + $0xcc] sm:$0xf]  ;;  %v2568_v0 = vor.u32 %v1906_v50, %v1514_v49  ;;  %v2570_v1 = vor.u32 %v1904_v51, %v1516_v59 }
  0x36   :  { %951 = vmatmul.bf16.gmra.mxu3 %v2322_v15  ;;  %1164 = vmatpush.bf16.msrb.mxu2 %v1783_v23  ;;  %v1524_v63 = vld [vmem:[%s3140_s0 + $0xd8] sm:$0xf0]  ;;  %v2572_v2 = vor.u32 %v1907_v61, %v1522_v60  ;;  %v1968_v4 = vld [vmem:[%s3139_s1 + $0x124] sm:$0xf]  ;;  %v1772_v5 = vld [vmem:[%s3139_s1 + $0x128] sm:$0xf0] }
  0x37   :  { %1238 = vmatpush.bf16.msrb.mxu3 %v1847_v28  ;;  %v2574_v3 = vor.u32 %v1905_v62, %v1524_v63  ;;  %v1775_v6 = vor.u32 %v1968_v4, %v1772_v5  ;;  %v1530_v7 = vld [vmem:[%s3140_s0 + $0xe0] sm:$0xf]  ;;  %v1910_v8 = vld [vmem:[%s3140_s0 + $0xec] sm:$0xf0]  ;;  %v1908_v9 = vld [vmem:[%s3140_s0 + $0xe4] sm:$0xf] }
  0x38   :  { %v1532_v10 = vld [vmem:[%s3140_s0 + $0xf0] sm:$0xf0]  ;;  %v1538_v11 = vld [vmem:[%s3140_s0 + $0xe8] sm:$0xf]  ;;  %v1911_v20 = vld [vmem:[%s3140_s0 + $0xf4] sm:$0xf0]  ;;  %v2628_v32 = vor.u32 %v1910_v8, %v1530_v7 }
  0x39   :  { %v1936_v21 = vld [vmem:[%s3139_s1 + $0x24] sm:$0xf]  ;;  %v1644_v22 = vld [vmem:[%s3139_s1 + $0x28] sm:$0xf0]  ;;  %v1540_v29 = vld [vmem:[%s3140_s0 + $0xf8] sm:$0xf0]  ;;  %v2630_v33 = vor.u32 %v1908_v9, %v1532_v10  ;;  %v2632_v34 = vor.u32 %v1911_v20, %v1538_v11 }
  0x3a   :  { %1165 = vmatpush.bf16.msrb.mxu2 %v1775_v6  ;;  %v1984_v23 = vld [vmem:[%s3139_s1 + $0x1a4] sm:$0xf]  ;;  %v1647_v24 = vor.u32 %v1936_v21, %v1644_v22  ;;  %v1836_v25 = vld [vmem:[%s3139_s1 + $0x1a8] sm:$0xf0]  ;;  %v2643_v40 = vld [vmem:[%s3141_s2] sm:$0x3] }
  0x3b   :  { %v1952_v26 = vld [vmem:[%s3139_s1 + $0xa4] sm:$0xf]  ;;  %v1708_v27 = vld [vmem:[%s3139_s1 + $0xa8] sm:$0xf0]  ;;  %v1839_v30 = vor.u32 %v1984_v23, %v1836_v25  ;;  %v2646_v41 = vperm.slane %v2643_v40, 0 }
  0x3c   :  { %v1909_v28 = vld [vmem:[%s3140_s0 + $0xec] sm:$0xf]  ;;  %v1711_v31 = vor.u32 %v1952_v26, %v1708_v27  ;;  %1017 = vmatpush.bf16.msrb.mxu0 %v1647_v24  ;;  %v1546_v42 = vld [vmem:[%s3140_s0 + $0x100] sm:$0xf]  ;;  %v1914_v43 = vld [vmem:[%s3140_s0 + $0x10c] sm:$0xf0] }
  0x3d   :  { %1239 = vmatpush.bf16.msrb.mxu3 %v1839_v30  ;;  %v2634_v35 = vor.u32 %v1909_v28, %v1540_v29  ;;  %v1912_v49 = vld [vmem:[%s3140_s0 + $0x104] sm:$0xf]  ;;  %v1548_v50 = vld [vmem:[%s3140_s0 + $0x110] sm:$0xf0]  ;;  %v1554_v51 = vld [vmem:[%s3140_s0 + $0x108] sm:$0xf]  ;;  %v2672_v62 = vor.u32 %v1914_v43, %v1546_v42 }
  0x3e   :  { %1091 = vmatpush.bf16.msrb.mxu1 %v1711_v31  ;;  %v1915_v59 = vld [vmem:[%s3140_s0 + $0x114] sm:$0xf0]  ;;  %v1913_v60 = vld [vmem:[%s3140_s0 + $0x10c] sm:$0xf]  ;;  %v1556_v61 = vld [vmem:[%s3140_s0 + $0x118] sm:$0xf0]  ;;  %v2674_v4 = vor.u32 %v1912_v49, %v1548_v50 }
  0x3f   :  { %v2676_v5 = vor.u32 %v1915_v59, %v1554_v51  ;;  %v2679_v8 = vor.u32 %v1913_v60, %v1556_v61  ;;  %v1966_v10 = vld [vmem:[%s3139_s1 + $0x114] sm:$0xf]  ;;  %v1764_v11 = vld [vmem:[%s3139_s1 + $0x118] sm:$0xf0]  ;;  %v1562_v60 = vld [vmem:[%s3140_s0 + $0x120] sm:$0xf] }
  0x40   :  { %v1934_v20 = vld [vmem:[%s3139_s1 + $0x14] sm:$0xf]  ;;  %v1767_v21 = vor.u32 %v1966_v10, %v1764_v11  ;;  %v1636_v22 = vld [vmem:[%s3139_s1 + $0x18] sm:$0xf0]  ;;  %v1918_v61 = vld [vmem:[%s3140_s0 + $0x12c] sm:$0xf0] }
  0x41   :  { %3153 = vst [vmem:[#allocation2_spill] sm:$0xff] %v2679_v8  ;;  %v1982_v23 = vld [vmem:[%s3139_s1 + $0x194] sm:$0xf]  ;;  %v1828_v24 = vld [vmem:[%s3139_s1 + $0x198] sm:$0xf0]  ;;  %v1639_v25 = vor.u32 %v1934_v20, %v1636_v22 }
  0x42   :  { %v1831_v26 = vor.u32 %v1982_v23, %v1828_v24  ;;  %v1950_v27 = vld [vmem:[%s3139_s1 + $0x94] sm:$0xf]  ;;  %1166 = vmatpush.bf16.msrb.mxu2 %v1767_v21  ;;  %v1700_v29 = vld [vmem:[%s3139_s1 + $0x98] sm:$0xf0]  ;;  %v1917_v10 = vld [vmem:[%s3140_s0 + $0x12c] sm:$0xf]  ;;  %v2736_v21 = vor.u32 %v1918_v61, %v1562_v60 }
  0x43   :  { %734 = vmatmul.bf16.gmra.mxu0 %v2376_v36  ;;  %v1703_v43 = vor.u32 %v1950_v27, %v1700_v29  ;;  %v1572_v11 = vld [vmem:[%s3140_s0 + $0x138] sm:$0xf0] }
  0x44   :  { %808 = vmatmul.bf16.gmra.mxu1 %v2378_v37  ;;  %1018 = vmatpush.bf16.msrb.mxu0 %v1639_v25  ;;  %3155 = vst [vmem:[#allocation4_spill] sm:$0xff] %v2736_v21  ;;  %v2743_v29 = vor.u32 %v1917_v10, %v1572_v11  ;;  %v1580_v10 = vld [vmem:[%s3140_s0 + $0x150] sm:$0xf0]  ;;  %v1586_v11 = vld [vmem:[%s3140_s0 + $0x148] sm:$0xf] }
  0x45   :  { %882 = vmatmul.bf16.gmra.mxu2 %v2380_v38  ;;  %1240 = vmatpush.bf16.msrb.mxu3 %v1831_v26 }
  0x46   :  { %956 = vmatmul.bf16.gmra.mxu3 %v2382_v39  ;;  %1092 = vmatpush.bf16.msrb.mxu1 %v1703_v43  ;;  %3158 = vst [vmem:[#allocation7_spill] sm:$0xff] %v2743_v29 }
  0x53   :  { %739 = vmatmul.bf16.gmra.mxu0 %v2418_v52 }
  0x54   :  { %813 = vmatmul.bf16.gmra.mxu1 %v2420_v55 }
  0x55   :  { %887 = vmatmul.bf16.gmra.mxu2 %v2422_v56 }
  0x56   :  { %961 = vmatmul.bf16.gmra.mxu3 %v2424_v58 }
  0x63   :  { %744 = vmatmul.bf16.gmra.mxu0 %v2472_v16 }
  0x64   :  { %818 = vmatmul.bf16.gmra.mxu1 %v2474_v17 }
  0x65   :  { %892 = vmatmul.bf16.gmra.mxu2 %v2476_v18 }
  0x66   :  { %966 = vmatmul.bf16.gmra.mxu3 %v2478_v19 }
  0x73   :  { %749 = vmatmul.bf16.gmra.mxu0 %v2532_v44 }
  0x74   :  { %823 = vmatmul.bf16.gmra.mxu1 %v2534_v45 }
  0x75   :  { %897 = vmatmul.bf16.gmra.mxu2 %v2536_v46 }
  0x76   :  { %971 = vmatmul.bf16.gmra.mxu3 %v2538_v47 }
  0x83   :  { %754 = vmatmul.bf16.gmra.mxu0 %v2568_v0 }
  0x84   :  { %828 = vmatmul.bf16.gmra.mxu1 %v2570_v1 }
  0x85   :  { %902 = vmatmul.bf16.gmra.mxu2 %v2572_v2 }
  0x86   :  { %976 = vmatmul.bf16.gmra.mxu3 %v2574_v3 }
  0x93   :  { %759 = vmatmul.bf16.gmra.mxu0 %v2628_v32 }
  0x94   :  { %833 = vmatmul.bf16.gmra.mxu1 %v2630_v33 }
  0x95   :  { %907 = vmatmul.bf16.gmra.mxu2 %v2632_v34 }
  0x96   :  { %981 = vmatmul.bf16.gmra.mxu3 %v2634_v35 }
  0xa0   :  { %v725_v63 = vpop.f32.mrf.mxu0 }
  0xa1   :  { %v726_v6 = vadd.f32 %v725_v63, %v2646_v41  ;;  %v799_v7 = vpop.f32.mrf.mxu1  ;;  %v1916_v63 = vld [vmem:[%s3140_s0 + $0x124] sm:$0xf] }
  0xa3   :  { %v800_v9 = vadd.f32 %v799_v7, %v726_v6  ;;  %764 = vmatmul.bf16.gmra.mxu0 %v2672_v62  ;;  %v1564_v6 = vld [vmem:[%s3140_s0 + $0x130] sm:$0xf0]  ;;  %v1570_v7 = vld [vmem:[%s3140_s0 + $0x128] sm:$0xf] }
  0xa4   :  { %838 = vmatmul.bf16.gmra.mxu1 %v2674_v4  ;;  %v2738_v25 = vor.u32 %v1916_v63, %v1564_v6  ;;  %v1578_v63 = vld [vmem:[%s3140_s0 + $0x140] sm:$0xf]  ;;  %v1922_v6 = vld [vmem:[%s3140_s0 + $0x14c] sm:$0xf0] }
  0xa5   :  { %912 = vmatmul.bf16.gmra.mxu2 %v2676_v5 }
  0xa6   :  { %986 = vmatmul.bf16.gmra.mxu3 %v2679_v8  ;;  %3156 = vst [vmem:[#allocation5_spill] sm:$0xff] %v2738_v25 }
  0xa8   :  { %v873_v28 = vpop.f32.mrf.mxu2  ;;  %v727_v42 = vpop.f32.mrf.mxu0 }
  0xa9   :  { %v874_v30 = vadd.f32 %v873_v28, %v800_v9  ;;  %v947_v31 = vpop.f32.mrf.mxu3  ;;  %v728_v49 = vadd.f32 %v727_v42, %v2646_v41  ;;  %v801_v50 = vpop.f32.mrf.mxu1  ;;  %v1919_v9 = vld [vmem:[%s3140_s0 + $0x134] sm:$0xf0] }
  0xaa   :  { %v2740_v26 = vor.u32 %v1919_v9, %v1570_v7  ;;  %v1920_v9 = vld [vmem:[%s3140_s0 + $0x144] sm:$0xf] }
  0xab   :  { %v2710_v51 = vadd.f32 %v947_v31, %v874_v30  ;;  %v802_v59 = vadd.f32 %v801_v50, %v728_v49 }
  0xac   :  { %3157 = vst [vmem:[#allocation6_spill] sm:$0xff] %v2740_v26 }
  0xad   :  { %3154 = vst [vmem:[#allocation3_spill] sm:$0xff] %v2710_v51 }
  0xb0   :  { %v875_v20 = vpop.f32.mrf.mxu2  ;;  %v730_v24 = vpop.f32.mrf.mxu0 }
  0xb1   :  { %v876_v22 = vadd.f32 %v875_v20, %v802_v59  ;;  %v949_v23 = vpop.f32.mrf.mxu3  ;;  %v731_v27 = vadd.f32 %v730_v24, %v2646_v41  ;;  %v804_v28 = vpop.f32.mrf.mxu1  ;;  %v1923_v20 = vld [vmem:[%s3140_s0 + $0x154] sm:$0xf0]  ;;  %v1964_v24 = vld [vmem:[%s3139_s1 + $0x104] sm:$0xf] }
  0xb3   :  { %v2745_v30 = vadd.f32 %v949_v23, %v876_v22  ;;  %v805_v31 = vadd.f32 %v804_v28, %v731_v27  ;;  %769 = vmatmul.bf16.gmra.mxu0 %v2736_v21  ;;  %v1921_v22 = vld [vmem:[%s3140_s0 + $0x14c] sm:$0xf]  ;;  %v1588_v23 = vld [vmem:[%s3140_s0 + $0x158] sm:$0xf0] }
  0xb4   :  { %843 = vmatmul.bf16.gmra.mxu1 %v2738_v25  ;;  %v1756_v27 = vld [vmem:[%s3139_s1 + $0x108] sm:$0xf0]  ;;  %v2804_v25 = vor.u32 %v1920_v9, %v1580_v10  ;;  %v2809_v8 = vor.u32 %v1921_v22, %v1588_v23  ;;  %v1596_v23 = vld [vmem:[%s3140_s0 + $0x170] sm:$0xf0] }
  0xb5   :  { %3159 = vst [vmem:[#allocation8_spill] sm:$0xff] %v2745_v30  ;;  %917 = vmatmul.bf16.gmra.mxu2 %v2740_v26  ;;  %v1759_v28 = vor.u32 %v1964_v24, %v1756_v27  ;;  %v2802_v27 = vor.u32 %v1922_v6, %v1578_v63  ;;  %v2806_v30 = vor.u32 %v1923_v20, %v1586_v11 }
  0xb6   :  { %991 = vmatmul.bf16.gmra.mxu3 %v2743_v29 }
  0xb7   :  { %1167 = vmatpush.bf16.msrb.mxu2 %v1759_v28  ;;  %v1602_v28 = vld [vmem:[%s3140_s0 + $0x168] sm:$0xf] }
  0xb8   :  { %v878_v42 = vpop.f32.mrf.mxu2  ;;  %v732_v50 = vpop.f32.mrf.mxu0 }
  0xb9   :  { %v879_v43 = vadd.f32 %v878_v42, %v805_v31  ;;  %v952_v49 = vpop.f32.mrf.mxu3  ;;  %v733_v59 = vadd.f32 %v732_v50, %v2646_v41  ;;  %v806_v60 = vpop.f32.mrf.mxu1  ;;  %v1932_v31 = vld [vmem:[%s3139_s1 + $0x4] sm:$0xf]  ;;  %v1628_v42 = vld [vmem:[%s3139_s1 + $0x8] sm:$0xf0] }
  0xba   :  { %v1820_v50 = vld [vmem:[%s3139_s1 + $0x188] sm:$0xf0] }
  0xbb   :  { %v2752_v61 = vadd.f32 %v952_v49, %v879_v43  ;;  %v807_v7 = vadd.f32 %v806_v60, %v733_v59  ;;  %v1980_v43 = vld [vmem:[%s3139_s1 + $0x184] sm:$0xf]  ;;  %v1631_v49 = vor.u32 %v1932_v31, %v1628_v42  ;;  %v1692_v60 = vld [vmem:[%s3139_s1 + $0x88] sm:$0xf0] }
  0xbc   :  { %v1948_v59 = vld [vmem:[%s3139_s1 + $0x84] sm:$0xf] }
  0xbd   :  { %3160 = vst [vmem:[#allocation9_spill] sm:$0xff] %v2752_v61  ;;  %v1823_v61 = vor.u32 %v1980_v43, %v1820_v50  ;;  %v1695_v29 = vor.u32 %v1948_v59, %v1692_v60  ;;  %1019 = vmatpush.bf16.msrb.mxu0 %v1631_v49  ;;  %v1927_v43 = vld [vmem:[%s3140_s0 + $0x174] sm:$0xf0]  ;;  %v1925_v49 = vld [vmem:[%s3140_s0 + $0x16c] sm:$0xf] }
  0xbe   :  { %v1604_v50 = vld [vmem:[%s3140_s0 + $0x178] sm:$0xf0] }
  0xbf   :  { %1241 = vmatpush.bf16.msrb.mxu3 %v1823_v61  ;;  %1093 = vmatpush.bf16.msrb.mxu1 %v1695_v29  ;;  %v1924_v29 = vld [vmem:[%s3140_s0 + $0x164] sm:$0xf] }
  0xc0   :  { %v880_v24 = vpop.f32.mrf.mxu2  ;;  %v735_v42 = vpop.f32.mrf.mxu0 }
  0xc1   :  { %v881_v26 = vadd.f32 %v880_v24, %v807_v7  ;;  %v954_v31 = vpop.f32.mrf.mxu3  ;;  %v736_v21 = vadd.f32 %v735_v42, %v2646_v41  ;;  %v809_v51 = vpop.f32.mrf.mxu1 }
  0xc3   :  { %v2811_v63 = vadd.f32 %v954_v31, %v881_v26  ;;  %v810_v6 = vadd.f32 %v809_v51, %v736_v21  ;;  %774 = vmatmul.bf16.gmra.mxu0 %v2802_v27  ;;  %v1594_v51 = vld [vmem:[%s3140_s0 + $0x160] sm:$0xf]  ;;  %v1926_v21 = vld [vmem:[%s3140_s0 + $0x16c] sm:$0xf0] }
  0xc4   :  { %848 = vmatmul.bf16.gmra.mxu1 %v2804_v25  ;;  %v2844_v60 = vor.u32 %v1926_v21, %v1594_v51 }
  0xc5   :  { %922 = vmatmul.bf16.gmra.mxu2 %v2806_v30 }
  0xc6   :  { %996 = vmatmul.bf16.gmra.mxu3 %v2809_v8  ;;  %3161 = vst [vmem:[#allocation10_spill] sm:$0xff] %v2844_v60 }
  0xc8   :  { %v883_v7 = vpop.f32.mrf.mxu2  ;;  %v737_v11 = vpop.f32.mrf.mxu0 }
  0xc9   :  { %v884_v9 = vadd.f32 %v883_v7, %v810_v6  ;;  %v957_v10 = vpop.f32.mrf.mxu3  ;;  %v738_v20 = vadd.f32 %v737_v11, %v2646_v41  ;;  %v811_v22 = vpop.f32.mrf.mxu1  ;;  %v2846_v6 = vor.u32 %v1924_v29, %v1596_v23  ;;  %v2848_v7 = vor.u32 %v1927_v43, %v1602_v28 }
  0xca   :  { %v2851_v11 = vor.u32 %v1925_v49, %v1604_v50  ;;  %v1610_v50 = vld [vmem:[%s3140_s0 + $0x180] sm:$0xf] }
  0xcb   :  { %v2818_v61 = vadd.f32 %v957_v10, %v884_v9  ;;  %v812_v26 = vadd.f32 %v811_v22, %v738_v20  ;;  %3162 = vst [vmem:[#allocation11_spill] sm:$0xff] %v2846_v6 }
  0xcc   :  { %3163 = vst [vmem:[#allocation12_spill] sm:$0xff] %v2848_v7 }
  0xcd   :  { %3164 = vst [vmem:[#allocation13_spill] sm:$0xff] %v2851_v11 }
  0xd0   :  { %v885_v59 = vpop.f32.mrf.mxu2  ;;  %v740_v42 = vpop.f32.mrf.mxu0 }
  0xd1   :  { %v886_v24 = vadd.f32 %v885_v59, %v812_v26  ;;  %v959_v31 = vpop.f32.mrf.mxu3  ;;  %v741_v9 = vadd.f32 %v740_v42, %v2646_v41  ;;  %v814_v10 = vpop.f32.mrf.mxu1  ;;  %v1930_v59 = vld [vmem:[%s3140_s0 + $0x18c] sm:$0xf0]  ;;  %v1618_v42 = vld [vmem:[%s3140_s0 + $0x188] sm:$0xf] }
  0xd3   :  { %v2853_v20 = vadd.f32 %v959_v31, %v886_v24  ;;  %v815_v22 = vadd.f32 %v814_v10, %v741_v9  ;;  %779 = vmatmul.bf16.gmra.mxu0 %v2844_v60  ;;  %v1928_v24 = vld [vmem:[%s3140_s0 + $0x184] sm:$0xf]  ;;  %v1612_v31 = vld [vmem:[%s3140_s0 + $0x190] sm:$0xf0]  ;;  %v1931_v9 = vld [vmem:[%s3140_s0 + $0x194] sm:$0xf0] }
  0xd4   :  { %853 = vmatmul.bf16.gmra.mxu1 %v2846_v6  ;;  %v1929_v10 = vld [vmem:[%s3140_s0 + $0x18c] sm:$0xf] }
  0xd5   :  { %3165 = vst [vmem:[#allocation14_spill] sm:$0xff] %v2853_v20  ;;  %927 = vmatmul.bf16.gmra.mxu2 %v2848_v7 }
  0xd6   :  { %1001 = vmatmul.bf16.gmra.mxu3 %v2851_v11 }
  0xd8   :  { %v888_v26 = vpop.f32.mrf.mxu2  ;;  %v742_v29 = vpop.f32.mrf.mxu0 }
  0xd9   :  { %v889_v51 = vadd.f32 %v888_v26, %v815_v22  ;;  %v962_v21 = vpop.f32.mrf.mxu3  ;;  %v743_v23 = vadd.f32 %v742_v29, %v2646_v41  ;;  %v816_v28 = vpop.f32.mrf.mxu1  ;;  %v1620_v22 = vld [vmem:[%s3140_s0 + $0x198] sm:$0xf0] }
  0xda   :  { %v2893_v6 = vor.u32 %v1929_v10, %v1620_v22 }
  0xdb   :  { %v2860_v43 = vadd.f32 %v962_v21, %v889_v51  ;;  %v817_v49 = vadd.f32 %v816_v28, %v743_v23  ;;  %v2886_v51 = vor.u32 %v1930_v59, %v1610_v50  ;;  %v2888_v28 = vor.u32 %v1928_v24, %v1612_v31 }
  0xdc   :  { %3167 = vst [vmem:[#allocation16_spill] sm:$0xff] %v2893_v6 }
  0xdd   :  { %3166 = vst [vmem:[#allocation15_spill] sm:$0xff] %v2860_v43  ;;  %v2890_v43 = vor.u32 %v1931_v9, %v1618_v42 }
  0xe0   :  { %v890_v26 = vpop.f32.mrf.mxu2  ;;  %v745_v23 = vpop.f32.mrf.mxu0 }
  0xe1   :  { %v891_v21 = vadd.f32 %v890_v26, %v817_v49  ;;  %v964_v29 = vpop.f32.mrf.mxu3  ;;  %v746_v11 = vadd.f32 %v745_v23, %v2646_v41  ;;  %v819_v7 = vpop.f32.mrf.mxu1 }
  0xe3   :  { %v2895_v20 = vadd.f32 %v964_v29, %v891_v21  ;;  %v820_v60 = vadd.f32 %v819_v7, %v746_v11  ;;  %784 = vmatmul.bf16.gmra.mxu0 %v2886_v51 }
  0xe4   :  { %858 = vmatmul.bf16.gmra.mxu1 %v2888_v28 }
  0xe5   :  { %932 = vmatmul.bf16.gmra.mxu2 %v2890_v43 }
  0xe6   :  { %1006 = vmatmul.bf16.gmra.mxu3 %v2893_v6 }
  0xe8   :  { %v893_v49 = vpop.f32.mrf.mxu2  ;;  %v747_v24 = vpop.f32.mrf.mxu0 }
  0xe9   :  { %v894_v50 = vadd.f32 %v893_v49, %v820_v60  ;;  %v967_v59 = vpop.f32.mrf.mxu3  ;;  %v748_v31 = vadd.f32 %v747_v24, %v2646_v41  ;;  %v821_v42 = vpop.f32.mrf.mxu1 }
  0xeb   :  { %v2902_v9 = vadd.f32 %v967_v59, %v894_v50  ;;  %v822_v10 = vadd.f32 %v821_v42, %v748_v31 }
  0xf0   :  { %v895_v22 = vpop.f32.mrf.mxu2  ;;  %v750_v26 = vpop.f32.mrf.mxu0 }
  0xf1   :  { %v896_v7 = vadd.f32 %v895_v22, %v822_v10  ;;  %v969_v11 = vpop.f32.mrf.mxu3  ;;  %v751_v21 = vadd.f32 %v750_v26, %v2646_v41  ;;  %v824_v29 = vpop.f32.mrf.mxu1 }
  0xf3   :  { %v2905_v23 = vadd.f32 %v969_v11, %v896_v7  ;;  %v825_v6 = vadd.f32 %v824_v29, %v751_v21  ;;  %1020 = vmatmul.bf16.vlgmr.msrb.gmra.mxu0 %v2253_v48 }
  0xf4   :  { %1094 = vmatmul.bf16.vlgmr.msrb.gmra.mxu1 %v2264_v53 }
  0xf5   :  { %1168 = vmatmul.bf16.vlgmr.msrb.gmra.mxu2 %v2266_v54 }
  0xf6   :  { %1242 = vmatmul.bf16.vlgmr.msrb.gmra.mxu3 %v2274_v57 }
  0xf8   :  { %v898_v60 = vpop.f32.mrf.mxu2  ;;  %v752_v59 = vpop.f32.mrf.mxu0 }
  0xf9   :  { %v899_v49 = vadd.f32 %v898_v60, %v825_v6  ;;  %v972_v50 = vpop.f32.mrf.mxu3  ;;  %v753_v24 = vadd.f32 %v752_v59, %v2646_v41  ;;  %v826_v31 = vpop.f32.mrf.mxu1 }
  0xfb   :  { %v2912_v42 = vadd.f32 %v972_v50, %v899_v49  ;;  %v827_v10 = vadd.f32 %v826_v31, %v753_v24 }
 0x100   :  { %v900_v22 = vpop.f32.mrf.mxu2  ;;  %v755_v48 = vpop.f32.mrf.mxu0 }
 0x101   :  { %v901_v7 = vadd.f32 %v900_v22, %v827_v10  ;;  %v974_v11 = vpop.f32.mrf.mxu3  ;;  %v756_v53 = vadd.f32 %v755_v48, %v2646_v41  ;;  %v829_v26 = vpop.f32.mrf.mxu1 }
 0x103   :  { %v2915_v54 = vadd.f32 %v974_v11, %v901_v7  ;;  %v830_v57 = vadd.f32 %v829_v26, %v756_v53  ;;  %1025 = vmatmul.bf16.gmra.mxu0 %v2316_v12 }
 0x104   :  { %1099 = vmatmul.bf16.gmra.mxu1 %v2318_v13 }
 0x105   :  { %1173 = vmatmul.bf16.gmra.mxu2 %v2320_v14 }
 0x106   :  { %1247 = vmatmul.bf16.gmra.mxu3 %v2322_v15 }
 0x108   :  { %v903_v6 = vpop.f32.mrf.mxu2  ;;  %v757_v60 = vpop.f32.mrf.mxu0 }
 0x109   :  { %v904_v21 = vadd.f32 %v903_v6, %v830_v57  ;;  %v977_v29 = vpop.f32.mrf.mxu3  ;;  %v758_v49 = vadd.f32 %v757_v60, %v2646_v41  ;;  %v831_v50 = vpop.f32.mrf.mxu1 }
 0x10b   :  { %v2922_v59 = vadd.f32 %v977_v29, %v904_v21  ;;  %v832_v24 = vadd.f32 %v831_v50, %v758_v49 }
 0x110   :  { %v905_v31 = vpop.f32.mrf.mxu2  ;;  %v760_v12 = vpop.f32.mrf.mxu0 }
 0x111   :  { %v906_v10 = vadd.f32 %v905_v31, %v832_v24  ;;  %v979_v22 = vpop.f32.mrf.mxu3  ;;  %v761_v13 = vadd.f32 %v760_v12, %v2646_v41  ;;  %v834_v7 = vpop.f32.mrf.mxu1 }
 0x113   :  { %v2925_v14 = vadd.f32 %v979_v22, %v906_v10  ;;  %v835_v15 = vadd.f32 %v834_v7, %v761_v13  ;;  %1030 = vmatmul.bf16.gmra.mxu0 %v2376_v36 }
 0x114   :  { %1104 = vmatmul.bf16.gmra.mxu1 %v2378_v37 }
 0x115   :  { %1178 = vmatmul.bf16.gmra.mxu2 %v2380_v38 }
 0x116   :  { %1252 = vmatmul.bf16.gmra.mxu3 %v2382_v39 }
 0x118   :  { %v908_v11 = vpop.f32.mrf.mxu2  ;;  %v762_v26 = vpop.f32.mrf.mxu0 }
 0x119   :  { %v909_v48 = vadd.f32 %v908_v11, %v835_v15  ;;  %v982_v53 = vpop.f32.mrf.mxu3  ;;  %v763_v57 = vadd.f32 %v762_v26, %v2646_v41  ;;  %v836_v6 = vpop.f32.mrf.mxu1 }
 0x11b   :  { %v2932_v21 = vadd.f32 %v982_v53, %v909_v48  ;;  %v837_v29 = vadd.f32 %v836_v6, %v763_v57 }
 0x120   :  { %v910_v60 = vpop.f32.mrf.mxu2  ;;  %v765_v36 = vpop.f32.mrf.mxu0 }
 0x121   :  { %v911_v49 = vadd.f32 %v910_v60, %v837_v29  ;;  %v984_v50 = vpop.f32.mrf.mxu3  ;;  %v766_v37 = vadd.f32 %v765_v36, %v2646_v41  ;;  %v839_v24 = vpop.f32.mrf.mxu1 }
 0x123   :  { %v2935_v38 = vadd.f32 %v984_v50, %v911_v49  ;;  %v840_v39 = vadd.f32 %v839_v24, %v766_v37  ;;  %1035 = vmatmul.bf16.gmra.mxu0 %v2418_v52 }
 0x124   :  { %1109 = vmatmul.bf16.gmra.mxu1 %v2420_v55 }
 0x125   :  { %1183 = vmatmul.bf16.gmra.mxu2 %v2422_v56 }
 0x126   :  { %1257 = vmatmul.bf16.gmra.mxu3 %v2424_v58 }
 0x128   :  { %v913_v31 = vpop.f32.mrf.mxu2  ;;  %v767_v12 = vpop.f32.mrf.mxu0 }
 0x129   :  { %v914_v10 = vadd.f32 %v913_v31, %v840_v39  ;;  %v987_v22 = vpop.f32.mrf.mxu3  ;;  %v768_v13 = vadd.f32 %v767_v12, %v2646_v41  ;;  %v841_v7 = vpop.f32.mrf.mxu1 }
 0x12b   :  { %v2942_v15 = vadd.f32 %v987_v22, %v914_v10  ;;  %v842_v11 = vadd.f32 %v841_v7, %v768_v13 }
 0x130   :  { %v915_v48 = vpop.f32.mrf.mxu2  ;;  %v770_v52 = vpop.f32.mrf.mxu0 }
 0x131   :  { %v916_v53 = vadd.f32 %v915_v48, %v842_v11  ;;  %v989_v26 = vpop.f32.mrf.mxu3  ;;  %v771_v55 = vadd.f32 %v770_v52, %v2646_v41  ;;  %v844_v57 = vpop.f32.mrf.mxu1 }
 0x133   :  { %v2945_v56 = vadd.f32 %v989_v26, %v916_v53  ;;  %v845_v58 = vadd.f32 %v844_v57, %v771_v55  ;;  %1040 = vmatmul.bf16.gmra.mxu0 %v2472_v16 }
 0x134   :  { %1114 = vmatmul.bf16.gmra.mxu1 %v2474_v17 }
 0x135   :  { %1188 = vmatmul.bf16.gmra.mxu2 %v2476_v18 }
 0x136   :  { %1262 = vmatmul.bf16.gmra.mxu3 %v2478_v19 }
 0x138   :  { %v918_v6 = vpop.f32.mrf.mxu2  ;;  %v772_v49 = vpop.f32.mrf.mxu0 }
 0x139   :  { %v919_v29 = vadd.f32 %v918_v6, %v845_v58  ;;  %v992_v60 = vpop.f32.mrf.mxu3  ;;  %v773_v50 = vadd.f32 %v772_v49, %v2646_v41  ;;  %v846_v36 = vpop.f32.mrf.mxu1 }
 0x13b   :  { %v2952_v37 = vadd.f32 %v992_v60, %v919_v29  ;;  %v847_v24 = vadd.f32 %v846_v36, %v773_v50 }
 0x140   :  { %v920_v39 = vpop.f32.mrf.mxu2  ;;  %v775_v16 = vpop.f32.mrf.mxu0 }
 0x141   :  { %v921_v31 = vadd.f32 %v920_v39, %v847_v24  ;;  %v994_v10 = vpop.f32.mrf.mxu3  ;;  %v776_v17 = vadd.f32 %v775_v16, %v2646_v41  ;;  %v849_v22 = vpop.f32.mrf.mxu1 }
 0x143   :  { %v2955_v18 = vadd.f32 %v994_v10, %v921_v31  ;;  %v850_v19 = vadd.f32 %v849_v22, %v776_v17  ;;  %1045 = vmatmul.bf16.gmra.mxu0 %v2532_v44 }
 0x144   :  { %1119 = vmatmul.bf16.gmra.mxu1 %v2534_v45 }
 0x145   :  { %1193 = vmatmul.bf16.gmra.mxu2 %v2536_v46 }
 0x146   :  { %1267 = vmatmul.bf16.gmra.mxu3 %v2538_v47 }
 0x148   :  { %v923_v12 = vpop.f32.mrf.mxu2  ;;  %v777_v11 = vpop.f32.mrf.mxu0 }
 0x149   :  { %v924_v13 = vadd.f32 %v923_v12, %v850_v19  ;;  %v997_v7 = vpop.f32.mrf.mxu3  ;;  %v778_v48 = vadd.f32 %v777_v11, %v2646_v41  ;;  %v851_v53 = vpop.f32.mrf.mxu1 }
 0x14b   :  { %v2962_v26 = vadd.f32 %v997_v7, %v924_v13  ;;  %v852_v52 = vadd.f32 %v851_v53, %v778_v48 }
 0x150   :  { %v925_v55 = vpop.f32.mrf.mxu2  ;;  %v780_v44 = vpop.f32.mrf.mxu0 }
 0x151   :  { %v926_v57 = vadd.f32 %v925_v55, %v852_v52  ;;  %v999_v58 = vpop.f32.mrf.mxu3  ;;  %v781_v45 = vadd.f32 %v780_v44, %v2646_v41  ;;  %v854_v6 = vpop.f32.mrf.mxu1  ;;  %v2985_v55 = vperm.slane %v2643_v40, 1 }
 0x153   :  { %v2965_v46 = vadd.f32 %v999_v58, %v926_v57  ;;  %v855_v47 = vadd.f32 %v854_v6, %v781_v45  ;;  %1050 = vmatmul.bf16.gmra.mxu0 %v2568_v0 }
 0x154   :  { %1124 = vmatmul.bf16.gmra.mxu1 %v2570_v1 }
 0x155   :  { %1198 = vmatmul.bf16.gmra.mxu2 %v2572_v2 }
 0x156   :  { %1272 = vmatmul.bf16.gmra.mxu3 %v2574_v3 }
 0x158   :  { %v928_v29 = vpop.f32.mrf.mxu2  ;;  %v782_v50 = vpop.f32.mrf.mxu0 }
 0x159   :  { %v929_v60 = vadd.f32 %v928_v29, %v855_v47  ;;  %v1002_v49 = vpop.f32.mrf.mxu3  ;;  %v783_v36 = vadd.f32 %v782_v50, %v2646_v41  ;;  %v856_v24 = vpop.f32.mrf.mxu1 }
 0x15b   :  { %v2972_v39 = vadd.f32 %v1002_v49, %v929_v60  ;;  %v857_v31 = vadd.f32 %v856_v24, %v783_v36  ;;  %v3169_v36 = vld [vmem:[#allocation3_spill] sm:$0xff] }
 0x15c   :  { %v1308_v24 = vmax.f32 %v3169_v36, 0.0 }
 0x160   :  { %v930_v10 = vpop.f32.mrf.mxu2  ;;  %v785_v0 = vpop.f32.mrf.mxu0 }
 0x161   :  { %v931_v16 = vadd.f32 %v930_v10, %v857_v31  ;;  %v1004_v17 = vpop.f32.mrf.mxu3  ;;  %v786_v1 = vadd.f32 %v785_v0, %v2646_v41  ;;  %v859_v22 = vpop.f32.mrf.mxu1 }
 0x163   :  { %v2975_v2 = vadd.f32 %v1004_v17, %v931_v16  ;;  %v860_v3 = vadd.f32 %v859_v22, %v786_v1  ;;  %1055 = vmatmul.bf16.gmra.mxu0 %v2628_v32 }
 0x164   :  { %1129 = vmatmul.bf16.gmra.mxu1 %v2630_v33 }
 0x165   :  { %1203 = vmatmul.bf16.gmra.mxu2 %v2632_v34 }
 0x166   :  { %1277 = vmatmul.bf16.gmra.mxu3 %v2634_v35 }
 0x168   :  { %v933_v19 = vpop.f32.mrf.mxu2  ;;  %v787_v7 = vpop.f32.mrf.mxu0 }
 0x169   :  { %v934_v12 = vadd.f32 %v933_v19, %v860_v3  ;;  %v1007_v13 = vpop.f32.mrf.mxu3  ;;  %v788_v11 = vadd.f32 %v787_v7, %v2646_v41  ;;  %v861_v48 = vpop.f32.mrf.mxu1  ;;  %v3168_v41 = vld [vmem:[#allocation2_spill] sm:$0xff]  ;;  %v3170_v3 = vld [vmem:[#allocation4_spill] sm:$0xff] }
 0x16a   :  { %v3171_v19 = vld [vmem:[#allocation8_spill] sm:$0xff] }
 0x16b   :  { %v2982_v53 = vadd.f32 %v1007_v13, %v934_v12  ;;  %v862_v52 = vadd.f32 %v861_v48, %v788_v11  ;;  %v1310_v12 = vmax.f32 %v3171_v19, 0.0  ;;  %v3172_v11 = vld [vmem:[#allocation5_spill] sm:$0xff]  ;;  %v3173_v48 = vld [vmem:[#allocation6_spill] sm:$0xff] }
 0x170   :  { %v935_v32 = vpop.f32.mrf.mxu2  ;;  %v1021_v58 = vpop.f32.mrf.mxu0 }
 0x171   :  { %v936_v57 = vadd.f32 %v935_v32, %v862_v52  ;;  %v1009_v33 = vpop.f32.mrf.mxu3  ;;  %v1022_v34 = vadd.f32 %v1021_v58, %v2985_v55  ;;  %v1095_v35 = vpop.f32.mrf.mxu1  ;;  %v3174_v52 = vld [vmem:[#allocation7_spill] sm:$0xff] }
 0x173   :  { %v2988_v44 = vadd.f32 %v1009_v33, %v936_v57  ;;  %1060 = vmatmul.bf16.gmra.mxu0 %v2672_v62  ;;  %v1096_v45 = vadd.f32 %v1095_v35, %v1022_v34 }
 0x174   :  { %1134 = vmatmul.bf16.gmra.mxu1 %v2674_v4 }
 0x175   :  { %1208 = vmatmul.bf16.gmra.mxu2 %v2676_v5 }
 0x176   :  { %1282 = vmatmul.bf16.gmra.mxu3 %v3168_v41 }
 0x178   :  { %v1169_v40 = vpop.f32.mrf.mxu2  ;;  %v1023_v29 = vpop.f32.mrf.mxu0 }
 0x179   :  { %v1170_v6 = vadd.f32 %v1169_v40, %v1096_v45  ;;  %v1243_v47 = vpop.f32.mrf.mxu3  ;;  %v1097_v60 = vpop.f32.mrf.mxu1  ;;  %v1024_v50 = vadd.f32 %v1023_v29, %v2985_v55  ;;  %v3175_v40 = vld [vmem:[#allocation9_spill] sm:$0xff] }
 0x17b   :  { %v1244_v49 = vadd.f32 %v1243_v47, %v1170_v6  ;;  %v1098_v62 = vadd.f32 %v1097_v60, %v1024_v50  ;;  %v1312_v6 = vmax.f32 %v3175_v40, 0.0  ;;  %v3180_v40 = vld [vmem:[#allocation13_spill] sm:$0xff] }
 0x17d   :  { %v1309_v31 = vmax.f32 %v1244_v49, 0.0 }
 0x17f   :  { %v1360_v10 = vpack.c.bf16 %v1309_v31, %v1308_v24 }
 0x180   :  { %v1171_v16 = vpop.f32.mrf.mxu2  ;;  %v1026_v17 = vpop.f32.mrf.mxu0 }
 0x181   :  { %1386 = vst [vmem:[%s3142_s3] sm:$0xff] %v1360_v10  ;;  %v1172_v4 = vadd.f32 %v1171_v16, %v1098_v62  ;;  %v1245_v5 = vpop.f32.mrf.mxu3  ;;  %v1027_v0 = vadd.f32 %v1026_v17, %v2985_v55  ;;  %v1100_v1 = vpop.f32.mrf.mxu1  ;;  %v1314_v16 = vmax.f32 %v2811_v63, 0.0 }
 0x183   :  { %v1246_v22 = vadd.f32 %v1245_v5, %v1172_v4  ;;  %1065 = vmatmul.bf16.gmra.mxu0 %v3170_v3  ;;  %v1101_v7 = vadd.f32 %v1100_v1, %v1027_v0 }
 0x184   :  { %1139 = vmatmul.bf16.gmra.mxu1 %v3172_v11 }
 0x185   :  { %v1311_v13 = vmax.f32 %v1246_v22, 0.0  ;;  %1213 = vmatmul.bf16.gmra.mxu2 %v3173_v48 }
 0x186   :  { %1287 = vmatmul.bf16.gmra.mxu3 %v3174_v52 }
 0x187   :  { %v1361_v32 = vpack.c.bf16 %v1311_v13, %v1310_v12  ;;  %v1316_v12 = vmax.f32 %v2818_v61, 0.0 }
 0x188   :  { %v1174_v57 = vpop.f32.mrf.mxu2  ;;  %v1028_v34 = vpop.f32.mrf.mxu0 }
 0x189   :  { %1387 = vst [vmem:[%s3142_s3 + $0x8] sm:$0xff] %v1361_v32  ;;  %v1175_v33 = vadd.f32 %v1174_v57, %v1101_v7  ;;  %v1248_v58 = vpop.f32.mrf.mxu3  ;;  %v1102_v35 = vpop.f32.mrf.mxu1  ;;  %v1029_v41 = vadd.f32 %v1028_v34, %v2985_v55 }
 0x18b   :  { %v1249_v45 = vadd.f32 %v1248_v58, %v1175_v33  ;;  %v1103_v60 = vadd.f32 %v1102_v35, %v1029_v41  ;;  %v3176_v33 = vld [vmem:[#allocation10_spill] sm:$0xff]  ;;  %v3179_v41 = vld [vmem:[#allocation12_spill] sm:$0xff] }
 0x18c   :  { %v3177_v58 = vld [vmem:[#allocation14_spill] sm:$0xff] }
 0x18d   :  { %v1313_v47 = vmax.f32 %v1249_v45, 0.0  ;;  %v1318_v34 = vmax.f32 %v3177_v58, 0.0  ;;  %v3178_v45 = vld [vmem:[#allocation11_spill] sm:$0xff] }
 0x18f   :  { %v1362_v29 = vpack.c.bf16 %v1313_v47, %v1312_v6 }
 0x190   :  { %v1176_v49 = vpop.f32.mrf.mxu2  ;;  %v1031_v24 = vpop.f32.mrf.mxu0 }
 0x191   :  { %1388 = vst [vmem:[%s3142_s3 + $0x10] sm:$0xff] %v1362_v29  ;;  %v1177_v50 = vadd.f32 %v1176_v49, %v1103_v60  ;;  %v1250_v36 = vpop.f32.mrf.mxu3  ;;  %v1032_v31 = vadd.f32 %v1031_v24, %v2985_v55  ;;  %v1105_v10 = vpop.f32.mrf.mxu1 }
 0x193   :  { %v1251_v62 = vadd.f32 %v1250_v36, %v1177_v50  ;;  %1070 = vmatmul.bf16.gmra.mxu0 %v2802_v27  ;;  %v1106_v5 = vadd.f32 %v1105_v10, %v1032_v31  ;;  %v3181_v31 = vld [vmem:[#allocation15_spill] sm:$0xff] }
 0x194   :  { %1144 = vmatmul.bf16.gmra.mxu1 %v2804_v25  ;;  %v1320_v10 = vmax.f32 %v3181_v31, 0.0  ;;  %v1328_v31 = vmax.f32 %v2912_v42, 0.0 }
 0x195   :  { %v1315_v4 = vmax.f32 %v1251_v62, 0.0  ;;  %1218 = vmatmul.bf16.gmra.mxu2 %v2806_v30 }
 0x196   :  { %1292 = vmatmul.bf16.gmra.mxu3 %v2809_v8 }
 0x197   :  { %v1363_v17 = vpack.c.bf16 %v1315_v4, %v1314_v16 }
 0x198   :  { %v1179_v0 = vpop.f32.mrf.mxu2  ;;  %v1033_v3 = vpop.f32.mrf.mxu0 }
 0x199   :  { %1389 = vst [vmem:[%s3142_s3 + $0x18] sm:$0xff] %v1363_v17  ;;  %v1180_v1 = vadd.f32 %v1179_v0, %v1106_v5  ;;  %v1253_v22 = vpop.f32.mrf.mxu3  ;;  %v1107_v27 = vpop.f32.mrf.mxu1  ;;  %v1034_v63 = vadd.f32 %v1033_v3, %v2985_v55 }
 0x19b   :  { %v1254_v19 = vadd.f32 %v1253_v22, %v1180_v1  ;;  %v1108_v30 = vadd.f32 %v1107_v27, %v1034_v63 }
 0x19d   :  { %v1317_v25 = vmax.f32 %v1254_v19, 0.0  ;;  %v1322_v19 = vmax.f32 %v2895_v20, 0.0 }
 0x19f   :  { %v1364_v13 = vpack.c.bf16 %v1317_v25, %v1316_v12  ;;  %v3182_v25 = vld [vmem:[#allocation16_spill] sm:$0xff] }
 0x1a0   :  { %v1181_v7 = vpop.f32.mrf.mxu2  ;;  %v1036_v48 = vpop.f32.mrf.mxu0 }
 0x1a1   :  { %1390 = vst [vmem:[%s3142_s3 + $0x20] sm:$0xff] %v1364_v13  ;;  %v1182_v8 = vadd.f32 %v1181_v7, %v1108_v30  ;;  %v1255_v11 = vpop.f32.mrf.mxu3  ;;  %v1037_v52 = vadd.f32 %v1036_v48, %v2985_v55  ;;  %v1110_v32 = vpop.f32.mrf.mxu1 }
 0x1a3   :  { %v1256_v57 = vadd.f32 %v1255_v11, %v1182_v8  ;;  %1075 = vmatmul.bf16.gmra.mxu0 %v3176_v33  ;;  %v1111_v35 = vadd.f32 %v1110_v32, %v1037_v52  ;;  %v1324_v52 = vmax.f32 %v2902_v9, 0.0 }
 0x1a4   :  { %1149 = vmatmul.bf16.gmra.mxu1 %v3178_v45 }
 0x1a5   :  { %v1319_v61 = vmax.f32 %v1256_v57, 0.0  ;;  %1223 = vmatmul.bf16.gmra.mxu2 %v3179_v41  ;;  %v1326_v41 = vmax.f32 %v2905_v23, 0.0 }
 0x1a6   :  { %1297 = vmatmul.bf16.gmra.mxu3 %v3180_v40 }
 0x1a7   :  { %v1365_v6 = vpack.c.bf16 %v1319_v61, %v1318_v34 }
 0x1a8   :  { %v1184_v47 = vpop.f32.mrf.mxu2  ;;  %v1038_v49 = vpop.f32.mrf.mxu0 }
 0x1a9   :  { %1391 = vst [vmem:[%s3142_s3 + $0x28] sm:$0xff] %v1365_v6  ;;  %v1185_v29 = vadd.f32 %v1184_v47, %v1111_v35  ;;  %v1258_v60 = vpop.f32.mrf.mxu3  ;;  %v1112_v50 = vpop.f32.mrf.mxu1  ;;  %v1039_v24 = vadd.f32 %v1038_v49, %v2985_v55 }
 0x1ab   :  { %v1259_v36 = vadd.f32 %v1258_v60, %v1185_v29  ;;  %v1113_v4 = vadd.f32 %v1112_v50, %v1039_v24 }
 0x1ad   :  { %v1321_v62 = vmax.f32 %v1259_v36, 0.0 }
 0x1af   :  { %v1366_v16 = vpack.c.bf16 %v1321_v62, %v1320_v10 }
 0x1b0   :  { %v1186_v5 = vpop.f32.mrf.mxu2  ;;  %v1041_v1 = vpop.f32.mrf.mxu0 }
 0x1b1   :  { %1392 = vst [vmem:[%s3142_s3 + $0x30] sm:$0xff] %v1366_v16  ;;  %v1187_v17 = vadd.f32 %v1186_v5, %v1113_v4  ;;  %v1260_v0 = vpop.f32.mrf.mxu3  ;;  %v1042_v22 = vadd.f32 %v1041_v1, %v2985_v55  ;;  %v1115_v3 = vpop.f32.mrf.mxu1 }
 0x1b3   :  { %v1261_v27 = vadd.f32 %v1260_v0, %v1187_v17  ;;  %1080 = vmatmul.bf16.gmra.mxu0 %v2886_v51  ;;  %v1116_v12 = vadd.f32 %v1115_v3, %v1042_v22  ;;  %v1330_v3 = vmax.f32 %v2915_v54, 0.0 }
 0x1b4   :  { %1154 = vmatmul.bf16.gmra.mxu1 %v2888_v28 }
 0x1b5   :  { %v1323_v63 = vmax.f32 %v1261_v27, 0.0  ;;  %1228 = vmatmul.bf16.gmra.mxu2 %v2890_v43 }
 0x1b6   :  { %1302 = vmatmul.bf16.gmra.mxu3 %v3182_v25 }
 0x1b7   :  { %v1367_v13 = vpack.c.bf16 %v1323_v63, %v1322_v19 }
 0x1b8   :  { %v1189_v30 = vpop.f32.mrf.mxu2  ;;  %v1043_v11 = vpop.f32.mrf.mxu0 }
 0x1b9   :  { %1393 = vst [vmem:[%s3142_s3 + $0x38] sm:$0xff] %v1367_v13  ;;  %v1190_v7 = vadd.f32 %v1189_v30, %v1116_v12  ;;  %v1263_v8 = vpop.f32.mrf.mxu3  ;;  %v1117_v51 = vpop.f32.mrf.mxu1  ;;  %v1044_v20 = vadd.f32 %v1043_v11, %v2985_v55  ;;  %v1332_v11 = vmax.f32 %v2922_v59, 0.0 }
 0x1bb   :  { %v1264_v48 = vadd.f32 %v1263_v8, %v1190_v7  ;;  %v1118_v43 = vadd.f32 %v1117_v51, %v1044_v20 }
 0x1bd   :  { %v1325_v28 = vmax.f32 %v1264_v48, 0.0 }
 0x1bf   :  { %v1368_v32 = vpack.c.bf16 %v1325_v28, %v1324_v52 }
 0x1c0   :  { %v1191_v57 = vpop.f32.mrf.mxu2  ;;  %v1046_v34 = vpop.f32.mrf.mxu0 }
 0x1c1   :  { %1394 = vst [vmem:[%s3142_s3 + $0x40] sm:$0xff] %v1368_v32  ;;  %v1192_v33 = vadd.f32 %v1191_v57, %v1118_v43  ;;  %v1265_v58 = vpop.f32.mrf.mxu3  ;;  %v1047_v61 = vadd.f32 %v1046_v34, %v2985_v55  ;;  %v1120_v35 = vpop.f32.mrf.mxu1 }
 0x1c3   :  { %v1266_v45 = vadd.f32 %v1265_v58, %v1192_v33  ;;  %v1121_v6 = vadd.f32 %v1120_v35, %v1047_v61  ;;  %v1334_v58 = vmax.f32 %v2925_v14, 0.0 }
 0x1c5   :  { %v1327_v40 = vmax.f32 %v1266_v45, 0.0 }
 0x1c7   :  { %v1369_v9 = vpack.c.bf16 %v1327_v40, %v1326_v41 }
 0x1c8   :  { %v1194_v47 = vpop.f32.mrf.mxu2  ;;  %v1048_v49 = vpop.f32.mrf.mxu0 }
 0x1c9   :  { %1395 = vst [vmem:[%s3142_s3 + $0x48] sm:$0xff] %v1369_v9  ;;  %v1195_v29 = vadd.f32 %v1194_v47, %v1121_v6  ;;  %v1268_v60 = vpop.f32.mrf.mxu3  ;;  %v1122_v50 = vpop.f32.mrf.mxu1  ;;  %v1049_v24 = vadd.f32 %v1048_v49, %v2985_v55 }
 0x1cb   :  { %v1269_v36 = vadd.f32 %v1268_v60, %v1195_v29  ;;  %v1123_v23 = vadd.f32 %v1122_v50, %v1049_v24  ;;  %v1336_v29 = vmax.f32 %v2932_v21, 0.0 }
 0x1cd   :  { %v1329_v10 = vmax.f32 %v1269_v36, 0.0 }
 0x1cf   :  { %v1370_v62 = vpack.c.bf16 %v1329_v10, %v1328_v31 }
 0x1d0   :  { %v1196_v16 = vpop.f32.mrf.mxu2  ;;  %v1051_v17 = vpop.f32.mrf.mxu0 }
 0x1d1   :  { %1396 = vst [vmem:[%s3142_s3 + $0x50] sm:$0xff] %v1370_v62  ;;  %v1197_v4 = vadd.f32 %v1196_v16, %v1123_v23  ;;  %v1270_v5 = vpop.f32.mrf.mxu3  ;;  %v1052_v0 = vadd.f32 %v1051_v17, %v2985_v55  ;;  %v1125_v1 = vpop.f32.mrf.mxu1  ;;  %v1338_v16 = vmax.f32 %v2935_v38, 0.0 }
 0x1d3   :  { %v1271_v22 = vadd.f32 %v1270_v5, %v1197_v4  ;;  %v1126_v19 = vadd.f32 %v1125_v1, %v1052_v0 }
 0x1d5   :  { %v1331_v27 = vmax.f32 %v1271_v22, 0.0 }
 0x1d7   :  { %v1371_v42 = vpack.c.bf16 %v1331_v27, %v1330_v3 }
 0x1d8   :  { %v1199_v63 = vpop.f32.mrf.mxu2  ;;  %v1053_v13 = vpop.f32.mrf.mxu0 }
 0x1d9   :  { %1397 = vst [vmem:[%s3142_s3 + $0x58] sm:$0xff] %v1371_v42  ;;  %v1200_v12 = vadd.f32 %v1199_v63, %v1126_v19  ;;  %v1273_v25 = vpop.f32.mrf.mxu3  ;;  %v1127_v30 = vpop.f32.mrf.mxu1  ;;  %v1054_v8 = vadd.f32 %v1053_v13, %v2985_v55  ;;  %v1340_v42 = vmax.f32 %v2942_v15, 0.0 }
 0x1db   :  { %v1274_v7 = vadd.f32 %v1273_v25, %v1200_v12  ;;  %v1128_v54 = vadd.f32 %v1127_v30, %v1054_v8 }
 0x1dd   :  { %v1333_v51 = vmax.f32 %v1274_v7, 0.0 }
 0x1df   :  { %v1372_v48 = vpack.c.bf16 %v1333_v51, %v1332_v11 }
 0x1e0   :  { %v1201_v20 = vpop.f32.mrf.mxu2  ;;  %v1056_v32 = vpop.f32.mrf.mxu0 }
 0x1e1   :  { %1398 = vst [vmem:[%s3142_s3 + $0x60] sm:$0xff] %v1372_v48  ;;  %v1202_v52 = vadd.f32 %v1201_v20, %v1128_v54  ;;  %v1275_v28 = vpop.f32.mrf.mxu3  ;;  %v1057_v43 = vadd.f32 %v1056_v32, %v2985_v55  ;;  %v1130_v57 = vpop.f32.mrf.mxu1  ;;  %v1342_v48 = vmax.f32 %v2945_v56, 0.0 }
 0x1e3   :  { %v1276_v33 = vadd.f32 %v1275_v28, %v1202_v52  ;;  %v1131_v61 = vadd.f32 %v1130_v57, %v1057_v43 }
 0x1e5   :  { %v1335_v34 = vmax.f32 %v1276_v33, 0.0 }
 0x1e7   :  { %v1373_v59 = vpack.c.bf16 %v1335_v34, %v1334_v58  ;;  %v1344_v34 = vmax.f32 %v2952_v37, 0.0 }
 0x1e8   :  { %v1204_v35 = vpop.f32.mrf.mxu2  ;;  %v1058_v40 = vpop.f32.mrf.mxu0 }
 0x1e9   :  { %1399 = vst [vmem:[%s3142_s3 + $0x68] sm:$0xff] %v1373_v59  ;;  %v1205_v45 = vadd.f32 %v1204_v35, %v1131_v61  ;;  %v1278_v41 = vpop.f32.mrf.mxu3  ;;  %v1132_v6 = vpop.f32.mrf.mxu1  ;;  %v1059_v47 = vadd.f32 %v1058_v40, %v2985_v55 }
 0x1eb   :  { %v1279_v9 = vadd.f32 %v1278_v41, %v1205_v45  ;;  %v1133_v14 = vadd.f32 %v1132_v6, %v1059_v47 }
 0x1ed   :  { %v1337_v60 = vmax.f32 %v1279_v9, 0.0 }
 0x1ef   :  { %v1374_v49 = vpack.c.bf16 %v1337_v60, %v1336_v29  ;;  %v1346_v29 = vmax.f32 %v2955_v18, 0.0 }
 0x1f0   :  { %v1206_v50 = vpop.f32.mrf.mxu2  ;;  %v1061_v31 = vpop.f32.mrf.mxu0 }
 0x1f1   :  { %1400 = vst [vmem:[%s3142_s3 + $0x70] sm:$0xff] %v1374_v49  ;;  %v1207_v36 = vadd.f32 %v1206_v50, %v1133_v14  ;;  %v1280_v24 = vpop.f32.mrf.mxu3  ;;  %v1062_v10 = vadd.f32 %v1061_v31, %v2985_v55  ;;  %v1135_v62 = vpop.f32.mrf.mxu1 }
 0x1f3   :  { %v1281_v23 = vadd.f32 %v1280_v24, %v1207_v36  ;;  %v1136_v5 = vadd.f32 %v1135_v62, %v1062_v10 }
 0x1f5   :  { %v1339_v4 = vmax.f32 %v1281_v23, 0.0  ;;  %v1348_v23 = vmax.f32 %v2962_v26, 0.0 }
 0x1f7   :  { %v1375_v21 = vpack.c.bf16 %v1339_v4, %v1338_v16 }
 0x1f8   :  { %v1209_v17 = vpop.f32.mrf.mxu2  ;;  %v1063_v22 = vpop.f32.mrf.mxu0 }
 0x1f9   :  { %1401 = vst [vmem:[%s3142_s3 + $0x78] sm:$0xff] %v1375_v21  ;;  %v1210_v0 = vadd.f32 %v1209_v17, %v1136_v5  ;;  %v1283_v1 = vpop.f32.mrf.mxu3  ;;  %v1137_v3 = vpop.f32.mrf.mxu1  ;;  %v1064_v19 = vadd.f32 %v1063_v22, %v2985_v55 }
 0x1fb   :  { %v1284_v27 = vadd.f32 %v1283_v1, %v1210_v0  ;;  %v1138_v38 = vadd.f32 %v1137_v3, %v1064_v19 }
 0x1fd   :  { %v1341_v63 = vmax.f32 %v1284_v27, 0.0  ;;  %v1350_v27 = vmax.f32 %v2965_v46, 0.0 }
 0x1ff   :  { %v1376_v12 = vpack.c.bf16 %v1341_v63, %v1340_v42 }
 0x200   :  { %v1211_v25 = vpop.f32.mrf.mxu2  ;;  %v1066_v7 = vpop.f32.mrf.mxu0 }
 0x201   :  { %1402 = vst [vmem:[%s3142_s3 + $0x80] sm:$0xff] %v1376_v12  ;;  %v1212_v13 = vadd.f32 %v1211_v25, %v1138_v38  ;;  %v1285_v30 = vpop.f32.mrf.mxu3  ;;  %v1067_v8 = vadd.f32 %v1066_v7, %v2985_v55  ;;  %v1140_v11 = vpop.f32.mrf.mxu1 }
 0x203   :  { %v1286_v51 = vadd.f32 %v1285_v30, %v1212_v13  ;;  %v1141_v20 = vadd.f32 %v1140_v11, %v1067_v8  ;;  %v1352_v8 = vmax.f32 %v2972_v39, 0.0 }
 0x205   :  { %v1343_v54 = vmax.f32 %v1286_v51, 0.0 }
 0x207   :  { %v1377_v15 = vpack.c.bf16 %v1343_v54, %v1342_v48 }
 0x208   :  { %v1214_v52 = vpop.f32.mrf.mxu2  ;;  %v1068_v43 = vpop.f32.mrf.mxu0 }
 0x209   :  { %1403 = vst [vmem:[%s3142_s3 + $0x88] sm:$0xff] %v1377_v15  ;;  %v1215_v28 = vadd.f32 %v1214_v52, %v1141_v20  ;;  %v1288_v32 = vpop.f32.mrf.mxu3  ;;  %v1142_v57 = vpop.f32.mrf.mxu1  ;;  %v1069_v58 = vadd.f32 %v1068_v43, %v2985_v55  ;;  %v1354_v43 = vmax.f32 %v2975_v2, 0.0 }
 0x20b   :  { %v1289_v33 = vadd.f32 %v1288_v32, %v1215_v28  ;;  %v1143_v56 = vadd.f32 %v1142_v57, %v1069_v58 }
 0x20d   :  { %v1345_v61 = vmax.f32 %v1289_v33, 0.0 }
 0x20f   :  { %v1378_v59 = vpack.c.bf16 %v1345_v61, %v1344_v34 }
 0x210   :  { %v1216_v35 = vpop.f32.mrf.mxu2  ;;  %v1071_v40 = vpop.f32.mrf.mxu0 }
 0x211   :  { %1404 = vst [vmem:[%s3142_s3 + $0x90] sm:$0xff] %v1378_v59  ;;  %v1217_v45 = vadd.f32 %v1216_v35, %v1143_v56  ;;  %v1290_v41 = vpop.f32.mrf.mxu3  ;;  %v1072_v6 = vadd.f32 %v1071_v40, %v2985_v55  ;;  %v1145_v9 = vpop.f32.mrf.mxu1 }
 0x213   :  { %v1291_v47 = vadd.f32 %v1290_v41, %v1217_v45  ;;  %v1146_v49 = vadd.f32 %v1145_v9, %v1072_v6  ;;  %v1356_v45 = vmax.f32 %v2982_v53, 0.0 }
 0x215   :  { %v1347_v60 = vmax.f32 %v1291_v47, 0.0 }
 0x217   :  { %v1379_v37 = vpack.c.bf16 %v1347_v60, %v1346_v29 }
 0x218   :  { %v1219_v14 = vpop.f32.mrf.mxu2  ;;  %v1073_v24 = vpop.f32.mrf.mxu0 }
 0x219   :  { %1405 = vst [vmem:[%s3142_s3 + $0x98] sm:$0xff] %v1379_v37  ;;  %v1220_v50 = vadd.f32 %v1219_v14, %v1146_v49  ;;  %v1293_v36 = vpop.f32.mrf.mxu3  ;;  %v1147_v31 = vpop.f32.mrf.mxu1  ;;  %v1074_v62 = vadd.f32 %v1073_v24, %v2985_v55  ;;  %v1358_v49 = vmax.f32 %v2988_v44, 0.0 }
 0x21b   :  { %v1294_v10 = vadd.f32 %v1293_v36, %v1220_v50  ;;  %v1148_v18 = vadd.f32 %v1147_v31, %v1074_v62 }
 0x21d   :  { %v1349_v16 = vmax.f32 %v1294_v10, 0.0 }
 0x21f   :  { %v1380_v4 = vpack.c.bf16 %v1349_v16, %v1348_v23 }
 0x220   :  { %v1221_v5 = vpop.f32.mrf.mxu2  ;;  %v1076_v0 = vpop.f32.mrf.mxu0 }
 0x221   :  { %1406 = vst [vmem:[%s3142_s3 + $0xa0] sm:$0xff] %v1380_v4  ;;  %v1222_v21 = vadd.f32 %v1221_v5, %v1148_v18  ;;  %v1295_v17 = vpop.f32.mrf.mxu3  ;;  %v1077_v1 = vadd.f32 %v1076_v0, %v2985_v55  ;;  %v1150_v22 = vpop.f32.mrf.mxu1 }
 0x223   :  { %v1296_v3 = vadd.f32 %v1295_v17, %v1222_v21  ;;  %v1151_v42 = vadd.f32 %v1150_v22, %v1077_v1 }
 0x225   :  { %v1351_v19 = vmax.f32 %v1296_v3, 0.0 }
 0x227   :  { %v1381_v26 = vpack.c.bf16 %v1351_v19, %v1350_v27 }
 0x228   :  { %v1224_v63 = vpop.f32.mrf.mxu2  ;;  %v1078_v25 = vpop.f32.mrf.mxu0 }
 0x229   :  { %1407 = vst [vmem:[%s3142_s3 + $0xa8] sm:$0xff] %v1381_v26  ;;  %v1225_v12 = vadd.f32 %v1224_v63, %v1151_v42  ;;  %v1298_v38 = vpop.f32.mrf.mxu3  ;;  %v1152_v13 = vpop.f32.mrf.mxu1  ;;  %v1079_v7 = vadd.f32 %v1078_v25, %v2985_v55 }
 0x22b   :  { %v1299_v30 = vadd.f32 %v1298_v38, %v1225_v12  ;;  %v1153_v46 = vadd.f32 %v1152_v13, %v1079_v7 }
 0x22d   :  { %v1353_v11 = vmax.f32 %v1299_v30, 0.0 }
 0x22f   :  { %v1382_v51 = vpack.c.bf16 %v1353_v11, %v1352_v8 }
 0x230   :  { %v1226_v48 = vpop.f32.mrf.mxu2  ;;  %v1081_v15 = vpop.f32.mrf.mxu0 }
 0x231   :  { %1408 = vst [vmem:[%s3142_s3 + $0xb0] sm:$0xff] %v1382_v51  ;;  %v1227_v54 = vadd.f32 %v1226_v48, %v1153_v46  ;;  %v1300_v20 = vpop.f32.mrf.mxu3  ;;  %v1082_v52 = vadd.f32 %v1081_v15, %v2985_v55  ;;  %v1155_v32 = vpop.f32.mrf.mxu1 }
 0x233   :  { %v1301_v28 = vadd.f32 %v1300_v20, %v1227_v54  ;;  %v1156_v33 = vadd.f32 %v1155_v32, %v1082_v52 }
 0x235   :  { %v1355_v57 = vmax.f32 %v1301_v28, 0.0 }
 0x237   :  { %v1383_v39 = vpack.c.bf16 %v1355_v57, %v1354_v43 }
 0x238   :  { %v1229_v58 = vpop.f32.mrf.mxu2  ;;  %v1083_v59 = vpop.f32.mrf.mxu0 }
 0x239   :  { %1409 = vst [vmem:[%s3142_s3 + $0xb8] sm:$0xff] %v1383_v39  ;;  %v1230_v34 = vadd.f32 %v1229_v58, %v1156_v33  ;;  %v1303_v61 = vpop.f32.mrf.mxu3  ;;  %v1084_v35 = vadd.f32 %v1083_v59, %v2985_v55  ;;  %v1157_v40 = vpop.f32.mrf.mxu1 }
 0x23b   :  { %v1304_v56 = vadd.f32 %v1303_v61, %v1230_v34  ;;  %v1158_v2 = vadd.f32 %v1157_v40, %v1084_v35 }
 0x23d   :  { %v1357_v41 = vmax.f32 %v1304_v56, 0.0 }
 0x23f   :  { %v1384_v6 = vpack.c.bf16 %v1357_v41, %v1356_v45 }
 0x240   :  { %v1231_v9 = vpop.f32.mrf.mxu2 }
 0x241   :  { %1410 = vst [vmem:[%s3142_s3 + $0xc0] sm:$0xff] %v1384_v6  ;;  %v1232_v47 = vadd.f32 %v1231_v9, %v1158_v2  ;;  %v1305_v29 = vpop.f32.mrf.mxu3 }
 0x243   :  { %v1306_v60 = vadd.f32 %v1305_v29, %v1232_v47 }
 0x245   :  { %v1359_v37 = vmax.f32 %v1306_v60, 0.0 }
 0x247   :  { %v1385_v14 = vpack.c.bf16 %v1359_v37, %v1358_v49 }
 0x249   :  { %1411 = vst [vmem:[%s3142_s3 + $0xc8] sm:$0xff] %v1385_v14 }

// kernel: conv_decoder_anai_forward.8
= control target key start
LH: loop header
LB: loop body
LE: loop exit
PB: predicated region body
PF: predicated region fallthrough
CT: control target
= control target key end

     0   :  { %s7336_s1 = inlined_call_operand.vmem [shape: bf16[2304,128], index: 1, kind: input, shape index: {}]   ;;  %s7337_s2 = inlined_call_operand.vmem [shape: f32[1,128], index: 2, kind: input, shape index: {}]   ;;  %s7338_s0 = inlined_call_operand.vmem [shape: bf16[176,2304], index: 0, kind: input, shape index: {}]   ;;  %s7339_s3 = inlined_call_operand.vmem [shape: bf16[176,128], index: 3, kind: output, shape index: {}]  }
   0x1   :  { %v5153_v0 = vld [vmem:[%s7336_s1 + $0x38] sm:$0xff]  ;;  %v5152_v2 = vld [vmem:[%s7336_s1 + $0x30] sm:$0xff]  ;;  %v5151_v4 = vld [vmem:[%s7336_s1 + $0x28] sm:$0xff] }
   0x2   :  { %v5161_v1 = vld [vmem:[%s7336_s1 + $0x78] sm:$0xff]  ;;  %2358 = vmatpush.bf16.msra.mxu0 %v5153_v0  ;;  %5355 = vmatpush.bf16.msra.mxu2 %v5153_v0  ;;  %v5160_v3 = vld [vmem:[%s7336_s1 + $0x70] sm:$0xff]  ;;  %v5159_v5 = vld [vmem:[%s7336_s1 + $0x68] sm:$0xff] }
   0x3   :  { %2422 = vmatpush.bf16.msra.mxu1 %v5161_v1  ;;  %5363 = vmatpush.bf16.msra.mxu3 %v5161_v1  ;;  %v5150_v6 = vld [vmem:[%s7336_s1 + $0x20] sm:$0xff]  ;;  %v5149_v8 = vld [vmem:[%s7336_s1 + $0x18] sm:$0xff]  ;;  %v5148_v10 = vld [vmem:[%s7336_s1 + $0x10] sm:$0xff] }
   0x4   :  { %v5158_v7 = vld [vmem:[%s7336_s1 + $0x60] sm:$0xff]  ;;  %v5157_v9 = vld [vmem:[%s7336_s1 + $0x58] sm:$0xff]  ;;  %v5156_v11 = vld [vmem:[%s7336_s1 + $0x50] sm:$0xff] }
   0x5   :  { %v5147_v12 = vld [vmem:[%s7336_s1 + $0x8] sm:$0xff]  ;;  %v5146_v14 = vld [vmem:[%s7336_s1] sm:$0xff]  ;;  %v5185_v24 = vld [vmem:[%s7336_s1 + $0x138] sm:$0xff] }
   0x6   :  { %2359 = vmatpush.bf16.msra.mxu0 %v5152_v2  ;;  %5356 = vmatpush.bf16.msra.mxu2 %v5152_v2  ;;  %v5155_v13 = vld [vmem:[%s7336_s1 + $0x48] sm:$0xff]  ;;  %v5154_v15 = vld [vmem:[%s7336_s1 + $0x40] sm:$0xff]  ;;  %v5193_v25 = vld [vmem:[%s7336_s1 + $0x178] sm:$0xff] }
   0x7   :  { %2423 = vmatpush.bf16.msra.mxu1 %v5160_v3  ;;  %5364 = vmatpush.bf16.msra.mxu3 %v5160_v3  ;;  %v3582_v16 = vld [vmem:[%s7338_s0] sm:$0xf]  ;;  %v4957_v17 = vld [vmem:[%s7338_s0 + $0x44] sm:$0xf0]  ;;  %v4948_v20 = vld [vmem:[%s7338_s0 + $0x4] sm:$0xf] }
   0x8   :  { %v4014_v18 = vld [vmem:[%s7338_s0 + $0x360] sm:$0xf]  ;;  %v5065_v19 = vld [vmem:[%s7338_s0 + $0x3a4] sm:$0xf0]  ;;  %v3584_v21 = vld [vmem:[%s7338_s0 + $0x48] sm:$0xf0]  ;;  %v3583_v26 = vor.u32 %v4957_v17, %v3582_v16 }
   0x9   :  { %v5056_v22 = vld [vmem:[%s7338_s0 + $0x364] sm:$0xf]  ;;  %v4016_v23 = vld [vmem:[%s7338_s0 + $0x3a8] sm:$0xf0]  ;;  %v4015_v27 = vor.u32 %v5065_v19, %v4014_v18  ;;  %v3587_v28 = vor.u32 %v4948_v20, %v3584_v21  ;;  %v5169_v30 = vld [vmem:[%s7336_s1 + $0xb8] sm:$0xff] }
   0xa   :  { %2360 = vmatpush.bf16.msra.mxu0 %v5151_v4  ;;  %5357 = vmatpush.bf16.msra.mxu2 %v5151_v4  ;;  %v4019_v29 = vor.u32 %v5056_v22, %v4016_v23  ;;  %v5177_v31 = vld [vmem:[%s7336_s1 + $0xf8] sm:$0xff]  ;;  %v5184_v32 = vld [vmem:[%s7336_s1 + $0x130] sm:$0xff]  ;;  %v5183_v36 = vld [vmem:[%s7336_s1 + $0x128] sm:$0xff] }
   0xb   :  { %2424 = vmatpush.bf16.msra.mxu1 %v5159_v5  ;;  %5365 = vmatpush.bf16.msra.mxu3 %v5159_v5  ;;  %v5192_v33 = vld [vmem:[%s7336_s1 + $0x170] sm:$0xff]  ;;  %v5191_v37 = vld [vmem:[%s7336_s1 + $0x168] sm:$0xff]  ;;  %v5182_v41 = vld [vmem:[%s7336_s1 + $0x120] sm:$0xff] }
   0xc   :  { %v5168_v34 = vld [vmem:[%s7336_s1 + $0xb0] sm:$0xff]  ;;  %v5167_v38 = vld [vmem:[%s7336_s1 + $0xa8] sm:$0xff]  ;;  %v5190_v42 = vld [vmem:[%s7336_s1 + $0x160] sm:$0xff] }
   0xd   :  { %v5176_v35 = vld [vmem:[%s7336_s1 + $0xf0] sm:$0xff]  ;;  %v5175_v39 = vld [vmem:[%s7336_s1 + $0xe8] sm:$0xff]  ;;  %v4975_v43 = vld [vmem:[%s7338_s0 + $0xd4] sm:$0xf0] }
   0xe   :  { %2361 = vmatpush.bf16.msra.mxu0 %v5150_v6  ;;  %5358 = vmatpush.bf16.msra.mxu2 %v5150_v6  ;;  %v3654_v40 = vld [vmem:[%s7338_s0 + $0x90] sm:$0xf]  ;;  %v5083_v45 = vld [vmem:[%s7338_s0 + $0x434] sm:$0xf0]  ;;  %v4966_v46 = vld [vmem:[%s7338_s0 + $0x94] sm:$0xf] }
   0xf   :  { %2425 = vmatpush.bf16.msra.mxu1 %v5158_v7  ;;  %5366 = vmatpush.bf16.msra.mxu3 %v5158_v7  ;;  %v4086_v44 = vld [vmem:[%s7338_s0 + $0x3f0] sm:$0xf]  ;;  %v3656_v47 = vld [vmem:[%s7338_s0 + $0xd8] sm:$0xf0]  ;;  %v5074_v48 = vld [vmem:[%s7338_s0 + $0x3f4] sm:$0xf]  ;;  %v3655_v52 = vor.u32 %v4975_v43, %v3654_v40 }
  0x10   :  { %v4088_v49 = vld [vmem:[%s7338_s0 + $0x438] sm:$0xf0]  ;;  %v5166_v50 = vld [vmem:[%s7336_s1 + $0xa0] sm:$0xff]  ;;  %v4087_v53 = vor.u32 %v5083_v45, %v4086_v44  ;;  %v3659_v54 = vor.u32 %v4966_v46, %v3656_v47  ;;  %v5164_v60 = vld [vmem:[%s7336_s1 + $0x90] sm:$0xff] }
  0x11   :  { %v5174_v51 = vld [vmem:[%s7336_s1 + $0xe0] sm:$0xff]  ;;  %v4091_v55 = vor.u32 %v5074_v48, %v4088_v49  ;;  %v5165_v56 = vld [vmem:[%s7336_s1 + $0x98] sm:$0xff]  ;;  %v5172_v61 = vld [vmem:[%s7336_s1 + $0xd0] sm:$0xff] }
  0x12   :  { %2362 = vmatpush.bf16.msra.mxu0 %v5149_v8  ;;  %5359 = vmatpush.bf16.msra.mxu2 %v5149_v8  ;;  %v5173_v57 = vld [vmem:[%s7336_s1 + $0xd8] sm:$0xff]  ;;  %v5180_v62 = vld [vmem:[%s7336_s1 + $0x110] sm:$0xff]  ;;  %v3726_v0 = vld [vmem:[%s7338_s0 + $0x120] sm:$0xf] }
  0x13   :  { %2426 = vmatpush.bf16.msra.mxu1 %v5157_v9  ;;  %5367 = vmatpush.bf16.msra.mxu3 %v5157_v9  ;;  %v5181_v58 = vld [vmem:[%s7336_s1 + $0x118] sm:$0xff]  ;;  %v5188_v63 = vld [vmem:[%s7336_s1 + $0x150] sm:$0xff]  ;;  %v4993_v1 = vld [vmem:[%s7338_s0 + $0x164] sm:$0xf0] }
  0x14   :  { %v5189_v59 = vld [vmem:[%s7336_s1 + $0x158] sm:$0xff]  ;;  %v4158_v2 = vld [vmem:[%s7338_s0 + $0x480] sm:$0xf]  ;;  %v5101_v3 = vld [vmem:[%s7338_s0 + $0x4c4] sm:$0xf0]  ;;  %v3727_v8 = vor.u32 %v4993_v1, %v3726_v0 }
  0x15   :  { %v4984_v4 = vld [vmem:[%s7338_s0 + $0x124] sm:$0xf]  ;;  %v3728_v5 = vld [vmem:[%s7338_s0 + $0x168] sm:$0xf0]  ;;  %v4159_v9 = vor.u32 %v5101_v3, %v4158_v2  ;;  %v3798_v18 = vld [vmem:[%s7338_s0 + $0x1b0] sm:$0xf] }
  0x16   :  { %2363 = vmatpush.bf16.msra.mxu0 %v5148_v10  ;;  %5360 = vmatpush.bf16.msra.mxu2 %v5148_v10  ;;  %v5092_v6 = vld [vmem:[%s7338_s0 + $0x484] sm:$0xf]  ;;  %v4160_v7 = vld [vmem:[%s7338_s0 + $0x4c8] sm:$0xf0]  ;;  %v3731_v10 = vor.u32 %v4984_v4, %v3728_v5  ;;  %v5011_v19 = vld [vmem:[%s7338_s0 + $0x1f4] sm:$0xf0] }
  0x17   :  { %2427 = vmatpush.bf16.msra.mxu1 %v5156_v11  ;;  %5368 = vmatpush.bf16.msra.mxu3 %v5156_v11  ;;  %v4163_v11 = vor.u32 %v5092_v6, %v4160_v7  ;;  %v5162_v16 = vld [vmem:[%s7336_s1 + $0x80] sm:$0xff]  ;;  %v4230_v20 = vld [vmem:[%s7338_s0 + $0x510] sm:$0xf]  ;;  %v5119_v21 = vld [vmem:[%s7338_s0 + $0x554] sm:$0xf0] }
  0x18   :  { %v5170_v17 = vld [vmem:[%s7336_s1 + $0xc0] sm:$0xff]  ;;  %v5002_v22 = vld [vmem:[%s7338_s0 + $0x1b4] sm:$0xf]  ;;  %v3800_v23 = vld [vmem:[%s7338_s0 + $0x1f8] sm:$0xf0] }
  0x19   :  { %v5128_v40 = vld [vmem:[%s7338_s0 + $0x5a4] sm:$0xf]  ;;  %v5217_v46 = vld [vmem:[%s7336_s1 + $0x238] sm:$0xff]  ;;  %v5200_v48 = vld [vmem:[%s7336_s1 + $0x1b0] sm:$0xff] }
  0x1a   :  { %2364 = vmatpush.bf16.msra.mxu0 %v5147_v12  ;;  %5361 = vmatpush.bf16.msra.mxu2 %v5147_v12  ;;  %v5163_v12 = vld [vmem:[%s7336_s1 + $0x88] sm:$0xff]  ;;  %v5225_v47 = vld [vmem:[%s7336_s1 + $0x278] sm:$0xff]  ;;  %v5208_v49 = vld [vmem:[%s7336_s1 + $0x1f0] sm:$0xff] }
  0x1b   :  { %2428 = vmatpush.bf16.msra.mxu1 %v5155_v13  ;;  %5369 = vmatpush.bf16.msra.mxu3 %v5155_v13  ;;  %v5171_v13 = vld [vmem:[%s7336_s1 + $0xc8] sm:$0xff]  ;;  %v3662_v0 = vld [vmem:[%s7338_s0 + $0x98] sm:$0xf]  ;;  %v4976_v1 = vld [vmem:[%s7338_s0 + $0xdc] sm:$0xf0] }
  0x1c   :  { %v4967_v2 = vld [vmem:[%s7338_s0 + $0x9c] sm:$0xf]  ;;  %v3598_v3 = vld [vmem:[%s7338_s0 + $0x10] sm:$0xf]  ;;  %v4959_v4 = vld [vmem:[%s7338_s0 + $0x54] sm:$0xf0] }
  0x1d   :  { %v3664_v5 = vld [vmem:[%s7338_s0 + $0xe0] sm:$0xf0]  ;;  %v4950_v6 = vld [vmem:[%s7338_s0 + $0x14] sm:$0xf]  ;;  %v3600_v7 = vld [vmem:[%s7338_s0 + $0x58] sm:$0xf0] }
  0x1e   :  { %2365 = vmatpush.bf16.msra.mxu0 %v5146_v14  ;;  %5362 = vmatpush.bf16.msra.mxu2 %v5146_v14  ;;  %v5179_v14 = vld [vmem:[%s7336_s1 + $0x108] sm:$0xff] }
  0x1f   :  { %2429 = vmatpush.bf16.msra.mxu1 %v5154_v15  ;;  %5370 = vmatpush.bf16.msra.mxu3 %v5154_v15  ;;  %v5187_v15 = vld [vmem:[%s7336_s1 + $0x148] sm:$0xff] }
  0x21   :  { %2366 = vmatmul.bf16.vlgmr.msra.gmra.mxu0 %v3583_v26  ;;  %2396 = vmatmul.bf16.vlgmr.msra.gmra.mxu2 %v4015_v27  ;;  %v3799_v26 = vor.u32 %v5011_v19, %v3798_v18  ;;  %v4231_v27 = vor.u32 %v5119_v21, %v4230_v20  ;;  %v4977_v18 = vld [vmem:[%s7338_s0 + $0xe4] sm:$0xf0]  ;;  %v3736_v19 = vld [vmem:[%s7338_s0 + $0x170] sm:$0xf0]  ;;  %v4968_v20 = vld [vmem:[%s7338_s0 + $0xa4] sm:$0xf] }
  0x22   :  { %2614 = vmatpush.bf16.msrb.mxu0 %v5185_v24  ;;  %2430 = vmatmul.bf16.vlgmr.msra.gmra.mxu1 %v3587_v28  ;;  %v5110_v24 = vld [vmem:[%s7338_s0 + $0x514] sm:$0xf]  ;;  %v3803_v28 = vor.u32 %v5002_v22, %v3800_v23  ;;  %v3672_v21 = vld [vmem:[%s7338_s0 + $0xe8] sm:$0xf0] }
  0x23   :  { %2678 = vmatpush.bf16.msrb.mxu1 %v5193_v25  ;;  %2460 = vmatmul.bf16.vlgmr.msra.gmra.mxu3 %v4019_v29  ;;  %v4232_v25 = vld [vmem:[%s7338_s0 + $0x558] sm:$0xf0] }
  0x24   :  { %2486 = vmatpush.bf16.msrb.mxu2 %v5169_v30  ;;  %2550 = vmatpush.bf16.msrb.mxu3 %v5177_v31  ;;  %v4235_v29 = vor.u32 %v5110_v24, %v4232_v25  ;;  %v5178_v30 = vld [vmem:[%s7336_s1 + $0x100] sm:$0xff]  ;;  %v3675_v25 = vor.u32 %v4968_v20, %v3672_v21 }
  0x25   :  { %v5186_v31 = vld [vmem:[%s7336_s1 + $0x140] sm:$0xff] }
  0x26   :  { %2615 = vmatpush.bf16.msrb.mxu0 %v5184_v32  ;;  %v5201_v32 = vld [vmem:[%s7336_s1 + $0x1b8] sm:$0xff] }
  0x27   :  { %2679 = vmatpush.bf16.msrb.mxu1 %v5192_v33  ;;  %v5209_v33 = vld [vmem:[%s7336_s1 + $0x1f8] sm:$0xff] }
  0x28   :  { %2487 = vmatpush.bf16.msrb.mxu2 %v5168_v34  ;;  %2551 = vmatpush.bf16.msrb.mxu3 %v5176_v35  ;;  %v3870_v34 = vld [vmem:[%s7338_s0 + $0x240] sm:$0xf]  ;;  %v5029_v35 = vld [vmem:[%s7338_s0 + $0x284] sm:$0xf0] }
  0x2a   :  { %2616 = vmatpush.bf16.msrb.mxu0 %v5183_v36  ;;  %v4302_v36 = vld [vmem:[%s7338_s0 + $0x5a0] sm:$0xf] }
  0x2b   :  { %2680 = vmatpush.bf16.msrb.mxu1 %v5191_v37  ;;  %v5137_v37 = vld [vmem:[%s7338_s0 + $0x5e4] sm:$0xf0] }
  0x2c   :  { %2488 = vmatpush.bf16.msrb.mxu2 %v5167_v38  ;;  %2552 = vmatpush.bf16.msrb.mxu3 %v5175_v39  ;;  %v5020_v38 = vld [vmem:[%s7338_s0 + $0x244] sm:$0xf]  ;;  %v3872_v39 = vld [vmem:[%s7338_s0 + $0x288] sm:$0xf0]  ;;  %v4303_v43 = vor.u32 %v5137_v37, %v4302_v36  ;;  %v4986_v37 = vld [vmem:[%s7338_s0 + $0x134] sm:$0xf] }
  0x2d   :  { %v3875_v44 = vor.u32 %v5020_v38, %v3872_v39  ;;  %v3808_v36 = vld [vmem:[%s7338_s0 + $0x200] sm:$0xf0]  ;;  %v3744_v38 = vld [vmem:[%s7338_s0 + $0x178] sm:$0xf0] }
  0x2e   :  { %2617 = vmatpush.bf16.msrb.mxu0 %v5182_v41  ;;  %v4304_v41 = vld [vmem:[%s7338_s0 + $0x5e8] sm:$0xf0] }
  0x2f   :  { %2681 = vmatpush.bf16.msrb.mxu1 %v5190_v42  ;;  %v3871_v42 = vor.u32 %v5029_v35, %v3870_v34  ;;  %v4307_v45 = vor.u32 %v5128_v40, %v4304_v41  ;;  %v3742_v34 = vld [vmem:[%s7338_s0 + $0x130] sm:$0xf]  ;;  %v4995_v35 = vld [vmem:[%s7338_s0 + $0x174] sm:$0xf0] }
  0x30   :  { %2489 = vmatpush.bf16.msrb.mxu2 %v5166_v50  ;;  %2553 = vmatpush.bf16.msrb.mxu3 %v5174_v51  ;;  %v3942_v50 = vld [vmem:[%s7338_s0 + $0x2d0] sm:$0xf]  ;;  %v5047_v51 = vld [vmem:[%s7338_s0 + $0x314] sm:$0xf0]  ;;  %v3743_v40 = vor.u32 %v4995_v35, %v3742_v34 }
  0x31   :  { %2371 = vmatmul.bf16.gmra.mxu0 %v3655_v52  ;;  %2401 = vmatmul.bf16.gmra.mxu2 %v4087_v53  ;;  %v5038_v52 = vld [vmem:[%s7338_s0 + $0x2d4] sm:$0xf]  ;;  %v3590_v53 = vld [vmem:[%s7338_s0 + $0x8] sm:$0xf] }
  0x32   :  { %2435 = vmatmul.bf16.gmra.mxu1 %v3659_v54  ;;  %2618 = vmatpush.bf16.msrb.mxu0 %v5181_v58  ;;  %v4958_v54 = vld [vmem:[%s7338_s0 + $0x4c] sm:$0xf0]  ;;  %v3943_v58 = vor.u32 %v5047_v51, %v3942_v50 }
  0x33   :  { %2465 = vmatmul.bf16.gmra.mxu3 %v4091_v55  ;;  %2682 = vmatpush.bf16.msrb.mxu1 %v5189_v59  ;;  %v3944_v55 = vld [vmem:[%s7338_s0 + $0x318] sm:$0xf0]  ;;  %v3591_v59 = vor.u32 %v4958_v54, %v3590_v53 }
  0x34   :  { %2490 = vmatpush.bf16.msrb.mxu2 %v5165_v56  ;;  %2554 = vmatpush.bf16.msrb.mxu3 %v5173_v57  ;;  %v4949_v56 = vld [vmem:[%s7338_s0 + $0xc] sm:$0xf]  ;;  %v3592_v57 = vld [vmem:[%s7338_s0 + $0x50] sm:$0xf0] }
  0x36   :  { %2619 = vmatpush.bf16.msrb.mxu0 %v5180_v62  ;;  %v5216_v62 = vld [vmem:[%s7336_s1 + $0x230] sm:$0xff] }
  0x37   :  { %2683 = vmatpush.bf16.msrb.mxu1 %v5188_v63  ;;  %v5224_v63 = vld [vmem:[%s7336_s1 + $0x270] sm:$0xff] }
  0x38   :  { %2491 = vmatpush.bf16.msrb.mxu2 %v5164_v60  ;;  %2555 = vmatpush.bf16.msrb.mxu3 %v5172_v61  ;;  %v3947_v60 = vor.u32 %v5038_v52, %v3944_v55  ;;  %v3595_v61 = vor.u32 %v4949_v56, %v3592_v57  ;;  %v5222_v55 = vld [vmem:[%s7336_s1 + $0x260] sm:$0xff]  ;;  %v3878_v57 = vld [vmem:[%s7338_s0 + $0x248] sm:$0xf] }
  0x3a   :  { %2620 = vmatpush.bf16.msrb.mxu0 %v5179_v14  ;;  %v3734_v14 = vld [vmem:[%s7338_s0 + $0x128] sm:$0xf] }
  0x3b   :  { %2684 = vmatpush.bf16.msrb.mxu1 %v5187_v15  ;;  %v4994_v15 = vld [vmem:[%s7338_s0 + $0x16c] sm:$0xf0] }
  0x3c   :  { %2492 = vmatpush.bf16.msrb.mxu2 %v5163_v12  ;;  %2556 = vmatpush.bf16.msrb.mxu3 %v5171_v13  ;;  %v5199_v12 = vld [vmem:[%s7336_s1 + $0x1a8] sm:$0xff]  ;;  %v3735_v22 = vor.u32 %v4994_v15, %v3734_v14  ;;  %v5205_v14 = vld [vmem:[%s7336_s1 + $0x1d8] sm:$0xff] }
  0x3d   :  { %v5207_v13 = vld [vmem:[%s7336_s1 + $0x1e8] sm:$0xff] }
  0x3e   :  { %2621 = vmatpush.bf16.msrb.mxu0 %v5178_v30  ;;  %v5012_v30 = vld [vmem:[%s7338_s0 + $0x1fc] sm:$0xf0] }
  0x3f   :  { %2685 = vmatpush.bf16.msrb.mxu1 %v5186_v31  ;;  %v5198_v31 = vld [vmem:[%s7336_s1 + $0x1a0] sm:$0xff] }
  0x40   :  { %2493 = vmatpush.bf16.msrb.mxu2 %v5162_v16  ;;  %2557 = vmatpush.bf16.msrb.mxu3 %v5170_v17  ;;  %v4985_v16 = vld [vmem:[%s7338_s0 + $0x12c] sm:$0xf]  ;;  %v3670_v17 = vld [vmem:[%s7338_s0 + $0xa0] sm:$0xf] }
  0x41   :  { %2376 = vmatmul.bf16.gmra.mxu0 %v3727_v8  ;;  %2406 = vmatmul.bf16.gmra.mxu2 %v4159_v9  ;;  %v3663_v8 = vor.u32 %v4976_v1, %v3662_v0  ;;  %v3599_v9 = vor.u32 %v4959_v4, %v3598_v3  ;;  %v3671_v23 = vor.u32 %v4977_v18, %v3670_v17  ;;  %v3816_v0 = vld [vmem:[%s7338_s0 + $0x208] sm:$0xf0] }
  0x42   :  { %2440 = vmatmul.bf16.gmra.mxu1 %v3731_v10  ;;  %2870 = vmatpush.bf16.msra.mxu0 %v5217_v46  ;;  %v3667_v10 = vor.u32 %v4967_v2, %v3664_v5  ;;  %v3739_v24 = vor.u32 %v4985_v16, %v3736_v19 }
  0x43   :  { %2470 = vmatmul.bf16.gmra.mxu3 %v4163_v11  ;;  %2934 = vmatpush.bf16.msra.mxu1 %v5225_v47  ;;  %v3603_v11 = vor.u32 %v4950_v6, %v3600_v7  ;;  %v5214_v47 = vld [vmem:[%s7336_s1 + $0x220] sm:$0xff] }
  0x44   :  { %2742 = vmatpush.bf16.msra.mxu2 %v5201_v32  ;;  %2806 = vmatpush.bf16.msra.mxu3 %v5209_v33  ;;  %v5206_v32 = vld [vmem:[%s7336_s1 + $0x1e0] sm:$0xff]  ;;  %v5003_v33 = vld [vmem:[%s7338_s0 + $0x1bc] sm:$0xf] }
  0x46   :  { %2871 = vmatpush.bf16.msra.mxu0 %v5216_v62  ;;  %v3880_v62 = vld [vmem:[%s7338_s0 + $0x290] sm:$0xf0] }
  0x47   :  { %2935 = vmatpush.bf16.msra.mxu1 %v5224_v63  ;;  %v5004_v63 = vld [vmem:[%s7338_s0 + $0x1c4] sm:$0xf] }
  0x48   :  { %2743 = vmatpush.bf16.msra.mxu2 %v5200_v48  ;;  %2807 = vmatpush.bf16.msra.mxu3 %v5208_v49 }
  0x4c   :  { %2744 = vmatpush.bf16.msra.mxu2 %v5199_v12  ;;  %2808 = vmatpush.bf16.msra.mxu3 %v5207_v13  ;;  %v5197_v13 = vld [vmem:[%s7336_s1 + $0x198] sm:$0xff] }
  0x50   :  { %2745 = vmatpush.bf16.msra.mxu2 %v5198_v31  ;;  %2809 = vmatpush.bf16.msra.mxu3 %v5206_v32  ;;  %v3952_v31 = vld [vmem:[%s7338_s0 + $0x320] sm:$0xf0]  ;;  %v5022_v32 = vld [vmem:[%s7338_s0 + $0x254] sm:$0xf] }
  0x51   :  { %2381 = vmatmul.bf16.gmra.mxu0 %v3799_v26  ;;  %2411 = vmatmul.bf16.gmra.mxu2 %v4231_v27  ;;  %v5215_v26 = vld [vmem:[%s7336_s1 + $0x228] sm:$0xff] }
  0x52   :  { %2445 = vmatmul.bf16.gmra.mxu1 %v3803_v28  ;;  %v5223_v27 = vld [vmem:[%s7336_s1 + $0x268] sm:$0xff]  ;;  %2872 = vmatpush.bf16.msra.mxu0 %v5215_v26  ;;  %v3806_v28 = vld [vmem:[%s7338_s0 + $0x1b8] sm:$0xf] }
  0x53   :  { %2475 = vmatmul.bf16.gmra.mxu3 %v4235_v29  ;;  %2936 = vmatpush.bf16.msra.mxu1 %v5223_v27  ;;  %v5770_v29 = vld [vmem:[%s7337_s2] ss:$0 sm:$0xff]  ;;  %v3807_v39 = vor.u32 %v5012_v30, %v3806_v28  ;;  %v5221_v26 = vld [vmem:[%s7336_s1 + $0x258] sm:$0xff]  ;;  %v3886_v28 = vld [vmem:[%s7338_s0 + $0x250] sm:$0xf] }
  0x54   :  { %2746 = vmatpush.bf16.msra.mxu2 %v5197_v13  ;;  %2810 = vmatpush.bf16.msra.mxu3 %v5205_v14  ;;  %v5039_v27 = vld [vmem:[%s7338_s0 + $0x2dc] sm:$0xf]  ;;  %v5031_v30 = vld [vmem:[%s7338_s0 + $0x294] sm:$0xf0] }
  0x56   :  { %2873 = vmatpush.bf16.msra.mxu0 %v5214_v47 }
  0x57   :  { %2937 = vmatpush.bf16.msra.mxu1 %v5222_v55  ;;  %v5196_v55 = vld [vmem:[%s7336_s1 + $0x190] sm:$0xff] }
  0x58   :  { %2747 = vmatpush.bf16.msra.mxu2 %v5196_v55  ;;  %v5203_v55 = vld [vmem:[%s7336_s1 + $0x1c8] sm:$0xff] }
  0x5b   :  { %2938 = vmatpush.bf16.msra.mxu1 %v5221_v26 }
  0x61   :  { %2386 = vmatmul.bf16.gmra.mxu0 %v3871_v42  ;;  %2416 = vmatmul.bf16.gmra.mxu2 %v4303_v43  ;;  %v3811_v42 = vor.u32 %v5003_v33, %v3808_v36  ;;  %v3747_v43 = vor.u32 %v4986_v37, %v3744_v38  ;;  %v3888_v33 = vld [vmem:[%s7338_s0 + $0x298] sm:$0xf0]  ;;  %v3887_v38 = vor.u32 %v5031_v30, %v3886_v28  ;;  %v4094_v30 = vld [vmem:[%s7338_s0 + $0x3f8] sm:$0xf] }
  0x62   :  { %2450 = vmatmul.bf16.gmra.mxu1 %v3875_v44 }
  0x63   :  { %2480 = vmatmul.bf16.gmra.mxu3 %v4307_v45 }
  0x71   :  { %2391 = vmatmul.bf16.gmra.mxu0 %v3943_v58  ;;  %2494 = vmatmul.bf16.vlgmr.msrb.gmra.mxu2 %v3591_v59  ;;  %v5030_v58 = vld [vmem:[%s7338_s0 + $0x28c] sm:$0xf0]  ;;  %v5021_v59 = vld [vmem:[%s7338_s0 + $0x24c] sm:$0xf] }
  0x72   :  { %2455 = vmatmul.bf16.gmra.mxu1 %v3947_v60  ;;  %v3814_v60 = vld [vmem:[%s7338_s0 + $0x1c0] sm:$0xf]  ;;  %v3879_v4 = vor.u32 %v5030_v58, %v3878_v57  ;;  %v3883_v7 = vor.u32 %v5021_v59, %v3880_v62  ;;  %v4022_v58 = vld [vmem:[%s7338_s0 + $0x368] sm:$0xf]  ;;  %v5066_v59 = vld [vmem:[%s7338_s0 + $0x3ac] sm:$0xf0] }
  0x73   :  { %2558 = vmatmul.bf16.vlgmr.msrb.gmra.mxu3 %v3595_v61  ;;  %v5013_v61 = vld [vmem:[%s7338_s0 + $0x204] sm:$0xf0]  ;;  %v3958_v62 = vld [vmem:[%s7338_s0 + $0x2e0] sm:$0xf] }
  0x74   :  { %v3815_v5 = vor.u32 %v5013_v61, %v3814_v60  ;;  %v5204_v60 = vld [vmem:[%s7336_s1 + $0x1d0] sm:$0xff]  ;;  %v5057_v61 = vld [vmem:[%s7338_s0 + $0x36c] sm:$0xf] }
  0x75   :  { %2811 = vmatpush.bf16.msra.mxu3 %v5204_v60 }
  0x79   :  { %2812 = vmatpush.bf16.msra.mxu3 %v5203_v55  ;;  %v5094_v55 = vld [vmem:[%s7338_s0 + $0x494] sm:$0xf] }
  0x81   :  { %2499 = vmatmul.bf16.gmra.mxu2 %v3663_v8  ;;  %2622 = vmatmul.bf16.vlgmr.msrb.gmra.mxu0 %v3599_v9  ;;  %v3819_v8 = vor.u32 %v5004_v63, %v3816_v0  ;;  %v5049_v63 = vld [vmem:[%s7338_s0 + $0x324] sm:$0xf0]  ;;  %v4024_v0 = vld [vmem:[%s7338_s0 + $0x3b0] sm:$0xf0] }
  0x82   :  { %2686 = vmatmul.bf16.vlgmr.msrb.gmra.mxu1 %v3603_v11 }
  0x83   :  { %2563 = vmatmul.bf16.gmra.mxu3 %v3667_v10 }
  0x91   :  { %2504 = vmatmul.bf16.gmra.mxu2 %v3735_v22  ;;  %2627 = vmatmul.bf16.gmra.mxu0 %v3671_v23  ;;  %v3950_v22 = vld [vmem:[%s7338_s0 + $0x2d8] sm:$0xf] }
  0x92   :  { %2691 = vmatmul.bf16.gmra.mxu1 %v3675_v25  ;;  %v5213_v25 = vld [vmem:[%s7336_s1 + $0x218] sm:$0xff] }
  0x93   :  { %2568 = vmatmul.bf16.gmra.mxu3 %v3739_v24  ;;  %v5048_v24 = vld [vmem:[%s7338_s0 + $0x31c] sm:$0xf0]  ;;  %2874 = vmatpush.bf16.msra.mxu0 %v5213_v25 }
  0x94   :  { %v3951_v37 = vor.u32 %v5048_v24, %v3950_v22 }
  0x9e   :  { %v2367_v41 = vpop.f32.mrf.mxu0 }
  0x9f   :  { %v2368_v44 = vadd.f32 %v5770_v29, %v2367_v41  ;;  %v2431_v45 = vpop.f32.mrf.mxu1  ;;  %v3891_v41 = vor.u32 %v5022_v32, %v3888_v33  ;;  %v5195_v32 = vld [vmem:[%s7336_s1 + $0x188] sm:$0xff]  ;;  %v5075_v33 = vld [vmem:[%s7338_s0 + $0x3fc] sm:$0xf] }
  0xa0   :  { %2748 = vmatpush.bf16.msra.mxu2 %v5195_v32 }
  0xa1   :  { %v5800_v46 = vadd.f32 %v2431_v45, %v2368_v44  ;;  %2509 = vmatmul.bf16.gmra.mxu2 %v3807_v39  ;;  %2632 = vmatmul.bf16.gmra.mxu0 %v3743_v40  ;;  %v3955_v40 = vor.u32 %v5039_v27, %v3952_v31  ;;  %v5084_v31 = vld [vmem:[%s7338_s0 + $0x43c] sm:$0xf0] }
  0xa2   :  { %2696 = vmatmul.bf16.gmra.mxu1 %v3747_v43 }
  0xa3   :  { %2573 = vmatmul.bf16.gmra.mxu3 %v3811_v42 }
  0xa4   :  { %v2397_v48 = vpop.f32.mrf.mxu2 }
  0xa5   :  { %v2398_v49 = vadd.f32 %v5770_v29, %v2397_v48 }
  0xa6   :  { %v2461_v50 = vpop.f32.mrf.mxu3  ;;  %v2369_v51 = vpop.f32.mrf.mxu0 }
  0xa7   :  { %v5806_v52 = vadd.f32 %v2461_v50, %v2398_v49  ;;  %v2370_v53 = vadd.f32 %v5770_v29, %v2369_v51  ;;  %v2433_v54 = vpop.f32.mrf.mxu1 }
  0xa9   :  { %v5812_v56 = vadd.f32 %v2433_v54, %v2370_v53 }
  0xac   :  { %v2399_v1 = vpop.f32.mrf.mxu2 }
  0xad   :  { %v2400_v2 = vadd.f32 %v5770_v29, %v2399_v1  ;;  %v5040_v1 = vld [vmem:[%s7338_s0 + $0x2e4] sm:$0xf] }
  0xae   :  { %v2463_v3 = vpop.f32.mrf.mxu3  ;;  %v2372_v6 = vpop.f32.mrf.mxu0 }
  0xaf   :  { %v5839_v9 = vadd.f32 %v2463_v3, %v2400_v2  ;;  %v2373_v10 = vadd.f32 %v5770_v29, %v2372_v6  ;;  %v2436_v11 = vpop.f32.mrf.mxu1  ;;  %v3960_v2 = vld [vmem:[%s7338_s0 + $0x328] sm:$0xf0]  ;;  %v4023_v6 = vor.u32 %v5066_v59, %v4022_v58 }
  0xb1   :  { %v5842_v12 = vadd.f32 %v2436_v11, %v2373_v10  ;;  %2514 = vmatmul.bf16.gmra.mxu2 %v3879_v4  ;;  %2637 = vmatmul.bf16.gmra.mxu0 %v3815_v5  ;;  %v4027_v10 = vor.u32 %v5057_v61, %v4024_v0  ;;  %v3963_v11 = vor.u32 %v5040_v1, %v3960_v2  ;;  %v5211_v2 = vld [vmem:[%s7336_s1 + $0x208] sm:$0xff] }
  0xb2   :  { %2701 = vmatmul.bf16.gmra.mxu1 %v3819_v8 }
  0xb3   :  { %2578 = vmatmul.bf16.gmra.mxu3 %v3883_v7  ;;  %v3959_v7 = vor.u32 %v5049_v63, %v3958_v62 }
  0xb4   :  { %v2402_v15 = vpop.f32.mrf.mxu2 }
  0xb5   :  { %v2403_v16 = vadd.f32 %v5770_v29, %v2402_v15 }
  0xb6   :  { %v2466_v17 = vpop.f32.mrf.mxu3  ;;  %v2374_v18 = vpop.f32.mrf.mxu0 }
  0xb7   :  { %v5851_v19 = vadd.f32 %v2466_v17, %v2403_v16  ;;  %v2375_v20 = vadd.f32 %v5770_v29, %v2374_v18  ;;  %v2438_v21 = vpop.f32.mrf.mxu1  ;;  %v5212_v17 = vld [vmem:[%s7336_s1 + $0x210] sm:$0xff] }
  0xb8   :  { %v5220_v18 = vld [vmem:[%s7336_s1 + $0x250] sm:$0xff]  ;;  %2875 = vmatpush.bf16.msra.mxu0 %v5212_v17 }
  0xb9   :  { %v5857_v23 = vadd.f32 %v2438_v21, %v2375_v20  ;;  %2939 = vmatpush.bf16.msra.mxu1 %v5220_v18 }
  0xbc   :  { %v2404_v34 = vpop.f32.mrf.mxu2  ;;  %2876 = vmatpush.bf16.msra.mxu0 %v5211_v2 }
  0xbd   :  { %v2405_v35 = vadd.f32 %v5770_v29, %v2404_v34  ;;  %v4030_v34 = vld [vmem:[%s7338_s0 + $0x370] sm:$0xf] }
  0xbe   :  { %v2468_v36 = vpop.f32.mrf.mxu3  ;;  %v2377_v39 = vpop.f32.mrf.mxu0 }
  0xbf   :  { %v5887_v42 = vadd.f32 %v2468_v36, %v2405_v35  ;;  %v2378_v43 = vadd.f32 %v5770_v29, %v2377_v39  ;;  %v2441_v44 = vpop.f32.mrf.mxu1  ;;  %v5067_v35 = vld [vmem:[%s7338_s0 + $0x3b4] sm:$0xf0]  ;;  %v4096_v36 = vld [vmem:[%s7338_s0 + $0x440] sm:$0xf0] }
  0xc1   :  { %v5890_v45 = vadd.f32 %v2441_v44, %v2378_v43  ;;  %2519 = vmatmul.bf16.gmra.mxu2 %v3951_v37  ;;  %2642 = vmatmul.bf16.gmra.mxu0 %v3887_v38  ;;  %v5058_v37 = vld [vmem:[%s7338_s0 + $0x374] sm:$0xf]  ;;  %v4032_v38 = vld [vmem:[%s7338_s0 + $0x3b8] sm:$0xf0]  ;;  %v4095_v43 = vor.u32 %v5084_v31, %v4094_v30  ;;  %v4031_v44 = vor.u32 %v5067_v35, %v4030_v34  ;;  %v5194_v34 = vld [vmem:[%s7336_s1 + $0x180] sm:$0xff] }
  0xc2   :  { %2706 = vmatmul.bf16.gmra.mxu1 %v3891_v41  ;;  %v5202_v35 = vld [vmem:[%s7336_s1 + $0x1c0] sm:$0xff]  ;;  %2749 = vmatpush.bf16.msra.mxu2 %v5194_v34  ;;  %v5121_v34 = vld [vmem:[%s7338_s0 + $0x564] sm:$0xf0] }
  0xc3   :  { %2583 = vmatmul.bf16.gmra.mxu3 %v3955_v40 }
  0xc4   :  { %v2407_v47 = vpop.f32.mrf.mxu2  ;;  %2813 = vmatpush.bf16.msra.mxu3 %v5202_v35  ;;  %v4312_v35 = vld [vmem:[%s7338_s0 + $0x5f0] sm:$0xf0] }
  0xc5   :  { %v2408_v48 = vadd.f32 %v5770_v29, %v2407_v47 }
  0xc6   :  { %v2471_v49 = vpop.f32.mrf.mxu3  ;;  %v2379_v50 = vpop.f32.mrf.mxu0 }
  0xc7   :  { %v5893_v51 = vadd.f32 %v2471_v49, %v2408_v48  ;;  %v2380_v53 = vadd.f32 %v5770_v29, %v2379_v50  ;;  %v2443_v54 = vpop.f32.mrf.mxu1  ;;  %v4099_v48 = vor.u32 %v5075_v33, %v4096_v36  ;;  %v4035_v49 = vor.u32 %v5058_v37, %v4032_v38 }
  0xc9   :  { %v5899_v57 = vadd.f32 %v2443_v54, %v2380_v53 }
  0xcc   :  { %v2409_v3 = vpop.f32.mrf.mxu2 }
  0xcd   :  { %v2410_v4 = vadd.f32 %v5770_v29, %v2409_v3 }
  0xce   :  { %v2473_v5 = vpop.f32.mrf.mxu3  ;;  %v2382_v8 = vpop.f32.mrf.mxu0 }
  0xcf   :  { %v5929_v13 = vadd.f32 %v2473_v5, %v2410_v4  ;;  %v2383_v14 = vadd.f32 %v5770_v29, %v2382_v8  ;;  %v2446_v15 = vpop.f32.mrf.mxu1  ;;  %v4166_v4 = vld [vmem:[%s7338_s0 + $0x488] sm:$0xf]  ;;  %v5102_v5 = vld [vmem:[%s7338_s0 + $0x4cc] sm:$0xf0]  ;;  %v4102_v8 = vld [vmem:[%s7338_s0 + $0x400] sm:$0xf] }
  0xd1   :  { %v5932_v16 = vadd.f32 %v2446_v15, %v2383_v14  ;;  %2524 = vmatmul.bf16.gmra.mxu2 %v4023_v6  ;;  %2647 = vmatmul.bf16.gmra.mxu0 %v3959_v7  ;;  %v5219_v6 = vld [vmem:[%s7336_s1 + $0x248] sm:$0xff]  ;;  %v5076_v14 = vld [vmem:[%s7338_s0 + $0x404] sm:$0xf] }
  0xd2   :  { %2711 = vmatmul.bf16.gmra.mxu1 %v3963_v11  ;;  %v5093_v7 = vld [vmem:[%s7338_s0 + $0x48c] sm:$0xf]  ;;  %v4168_v11 = vld [vmem:[%s7338_s0 + $0x4d0] sm:$0xf0] }
  0xd3   :  { %2588 = vmatmul.bf16.gmra.mxu3 %v4027_v10  ;;  %v5085_v10 = vld [vmem:[%s7338_s0 + $0x444] sm:$0xf0]  ;;  %v4104_v15 = vld [vmem:[%s7338_s0 + $0x448] sm:$0xf0]  ;;  %2940 = vmatpush.bf16.msra.mxu1 %v5219_v6 }
  0xd4   :  { %v2412_v20 = vpop.f32.mrf.mxu2 }
  0xd5   :  { %v2413_v21 = vadd.f32 %v5770_v29, %v2412_v20 }
  0xd6   :  { %v2476_v22 = vpop.f32.mrf.mxu3  ;;  %v2384_v24 = vpop.f32.mrf.mxu0 }
  0xd7   :  { %v5941_v25 = vadd.f32 %v2476_v22, %v2413_v21  ;;  %v2385_v26 = vadd.f32 %v5770_v29, %v2384_v24  ;;  %v2448_v27 = vpop.f32.mrf.mxu1  ;;  %v4167_v21 = vor.u32 %v5102_v5, %v4166_v4  ;;  %v4103_v22 = vor.u32 %v5085_v10, %v4102_v8  ;;  %v5218_v10 = vld [vmem:[%s7336_s1 + $0x240] sm:$0xff] }
  0xd8   :  { %2941 = vmatpush.bf16.msra.mxu1 %v5218_v10  ;;  %v4320_v10 = vld [vmem:[%s7338_s0 + $0x5f8] sm:$0xf0] }
  0xd9   :  { %v5944_v28 = vadd.f32 %v2448_v27, %v2385_v26  ;;  %v4171_v26 = vor.u32 %v5093_v7, %v4168_v11  ;;  %v4107_v27 = vor.u32 %v5076_v14, %v4104_v15 }
  0xdc   :  { %v2414_v39 = vpop.f32.mrf.mxu2 }
  0xdd   :  { %v2415_v40 = vadd.f32 %v5770_v29, %v2414_v39 }
  0xde   :  { %v2478_v41 = vpop.f32.mrf.mxu3  ;;  %v2387_v47 = vpop.f32.mrf.mxu0 }
  0xdf   :  { %v5974_v50 = vadd.f32 %v2478_v41, %v2415_v40  ;;  %v2388_v53 = vadd.f32 %v5770_v29, %v2387_v47  ;;  %v2451_v54 = vpop.f32.mrf.mxu1  ;;  %v4238_v47 = vld [vmem:[%s7338_s0 + $0x518] sm:$0xf] }
  0xe1   :  { %v5980_v58 = vadd.f32 %v2451_v54, %v2388_v53  ;;  %2529 = vmatmul.bf16.gmra.mxu2 %v4095_v43  ;;  %2652 = vmatmul.bf16.gmra.mxu0 %v4031_v44  ;;  %v5103_v53 = vld [vmem:[%s7338_s0 + $0x4d4] sm:$0xf0]  ;;  %v4240_v54 = vld [vmem:[%s7338_s0 + $0x560] sm:$0xf0] }
  0xe2   :  { %2716 = vmatmul.bf16.gmra.mxu1 %v4035_v49  ;;  %v5111_v49 = vld [vmem:[%s7338_s0 + $0x51c] sm:$0xf] }
  0xe3   :  { %2593 = vmatmul.bf16.gmra.mxu3 %v4099_v48  ;;  %v5120_v48 = vld [vmem:[%s7338_s0 + $0x55c] sm:$0xf0]  ;;  %v4243_v4 = vor.u32 %v5111_v49, %v4240_v54 }
  0xe4   :  { %v2417_v59 = vpop.f32.mrf.mxu2 }
  0xe5   :  { %v2418_v60 = vadd.f32 %v5770_v29, %v2417_v59  ;;  %v4176_v59 = vld [vmem:[%s7338_s0 + $0x4d8] sm:$0xf0] }
  0xe6   :  { %v2481_v61 = vpop.f32.mrf.mxu3  ;;  %v2389_v62 = vpop.f32.mrf.mxu0  ;;  %v4179_v5 = vor.u32 %v5094_v55, %v4176_v59  ;;  %v5249_v55 = vld [vmem:[%s7336_s1 + $0x338] sm:$0xff] }
  0xe7   :  { %v5983_v63 = vadd.f32 %v2481_v61, %v2418_v60  ;;  %v2390_v0 = vadd.f32 %v5770_v29, %v2389_v62  ;;  %v2453_v1 = vpop.f32.mrf.mxu1 }
  0xe9   :  { %v5989_v3 = vadd.f32 %v2453_v1, %v2390_v0  ;;  %v4239_v0 = vor.u32 %v5120_v48, %v4238_v47 }
  0xec   :  { %v2419_v17 = vpop.f32.mrf.mxu2 }
  0xed   :  { %v2420_v18 = vadd.f32 %v5770_v29, %v2419_v17 }
  0xee   :  { %v2483_v20 = vpop.f32.mrf.mxu3  ;;  %v2392_v24 = vpop.f32.mrf.mxu0 }
  0xef   :  { %v6019_v30 = vadd.f32 %v2483_v20, %v2420_v18  ;;  %v2393_v31 = vadd.f32 %v5770_v29, %v2392_v24  ;;  %v2456_v32 = vpop.f32.mrf.mxu1 }
  0xf1   :  { %v6022_v33 = vadd.f32 %v2456_v32, %v2393_v31  ;;  %2534 = vmatmul.bf16.gmra.mxu2 %v4167_v21  ;;  %2657 = vmatmul.bf16.gmra.mxu0 %v4103_v22  ;;  %v4310_v22 = vld [vmem:[%s7338_s0 + $0x5a8] sm:$0xf]  ;;  %v5129_v31 = vld [vmem:[%s7338_s0 + $0x5ac] sm:$0xf]  ;;  %v4246_v32 = vld [vmem:[%s7338_s0 + $0x520] sm:$0xf] }
  0xf2   :  { %2721 = vmatmul.bf16.gmra.mxu1 %v4107_v27  ;;  %v5233_v27 = vld [vmem:[%s7336_s1 + $0x2b8] sm:$0xff]  ;;  %v4315_v48 = vor.u32 %v5129_v31, %v4312_v35 }
  0xf3   :  { %2598 = vmatmul.bf16.gmra.mxu3 %v4171_v26  ;;  %v5138_v26 = vld [vmem:[%s7338_s0 + $0x5ec] sm:$0xf0]  ;;  %2998 = vmatpush.bf16.msrb.mxu2 %v5233_v27 }
  0xf4   :  { %v2495_v36 = vpop.f32.mrf.mxu2 }
  0xf5   :  { %v2496_v37 = vadd.f32 %v2495_v36, %v5800_v46  ;;  %v5210_v46 = vld [vmem:[%s7336_s1 + $0x200] sm:$0xff] }
  0xf6   :  { %v2559_v38 = vpop.f32.mrf.mxu3  ;;  %v2394_v39 = vpop.f32.mrf.mxu0  ;;  %2877 = vmatpush.bf16.msra.mxu0 %v5210_v46  ;;  %v5112_v36 = vld [vmem:[%s7338_s0 + $0x524] sm:$0xf] }
  0xf7   :  { %v2560_v40 = vadd.f32 %v2559_v38, %v2496_v37  ;;  %v2395_v41 = vadd.f32 %v5770_v29, %v2394_v39  ;;  %v2458_v43 = vpop.f32.mrf.mxu1  ;;  %v4174_v29 = vld [vmem:[%s7338_s0 + $0x490] sm:$0xf]  ;;  %v4248_v37 = vld [vmem:[%s7338_s0 + $0x568] sm:$0xf0] }
  0xf8   :  { %v4175_v1 = vor.u32 %v5103_v53, %v4174_v29  ;;  %v4251_v46 = vor.u32 %v5112_v36, %v4248_v37 }
  0xf9   :  { %v6032_v44 = vadd.f32 %v2458_v43, %v2395_v41  ;;  %v4311_v41 = vor.u32 %v5138_v26, %v4310_v22  ;;  %v4247_v43 = vor.u32 %v5121_v34, %v4246_v32  ;;  %v5232_v34 = vld [vmem:[%s7336_s1 + $0x2b0] sm:$0xff] }
  0xfa   :  { %3126 = vmatpush.bf16.msrb.mxu0 %v5249_v55  ;;  %2999 = vmatpush.bf16.msrb.mxu2 %v5232_v34  ;;  %v4961_v55 = vld [vmem:[%s7338_s0 + $0x64] sm:$0xf0]  ;;  %v4979_v34 = vld [vmem:[%s7338_s0 + $0xf4] sm:$0xf0] }
  0xfc   :  { %v2497_v60 = vpop.f32.mrf.mxu2 }
  0xfd   :  { %v2498_v61 = vadd.f32 %v2497_v60, %v5812_v56 }
  0xfe   :  { %v2561_v62 = vpop.f32.mrf.mxu3  ;;  %v2623_v2 = vpop.f32.mrf.mxu0 }
  0xff   :  { %v2562_v6 = vadd.f32 %v2561_v62, %v2498_v61  ;;  %v2624_v7 = vadd.f32 %v2623_v2, %v2560_v40  ;;  %v2687_v8 = vpop.f32.mrf.mxu1 }
 0x101   :  { %v6065_v11 = vadd.f32 %v2687_v8, %v2624_v7  ;;  %2539 = vmatmul.bf16.gmra.mxu2 %v4239_v0  ;;  %2662 = vmatmul.bf16.gmra.mxu0 %v4175_v1  ;;  %v5130_v7 = vld [vmem:[%s7338_s0 + $0x5b4] sm:$0xf]  ;;  %v4960_v8 = vld [vmem:[%s7338_s0 + $0x5c] sm:$0xf0] }
 0x102   :  { %2726 = vmatmul.bf16.gmra.mxu1 %v4179_v5  ;;  %v4318_v5 = vld [vmem:[%s7338_s0 + $0x5b0] sm:$0xf]  ;;  %v4323_v26 = vor.u32 %v5130_v7, %v4320_v10 }
 0x103   :  { %2603 = vmatmul.bf16.gmra.mxu3 %v4243_v4 }
 0x104   :  { %v2500_v56 = vpop.f32.mrf.mxu2 }
 0x105   :  { %v2501_v14 = vadd.f32 %v2500_v56, %v5842_v12  ;;  %v5241_v12 = vld [vmem:[%s7336_s1 + $0x2f8] sm:$0xff] }
 0x106   :  { %v2564_v15 = vpop.f32.mrf.mxu3  ;;  %v2625_v17 = vpop.f32.mrf.mxu0  ;;  %3062 = vmatpush.bf16.msrb.mxu3 %v5241_v12  ;;  %v4951_v56 = vld [vmem:[%s7338_s0 + $0x1c] sm:$0xf] }
 0x107   :  { %v2565_v18 = vadd.f32 %v2564_v15, %v2501_v14  ;;  %v2626_v20 = vadd.f32 %v2625_v17, %v2562_v6  ;;  %v2689_v21 = vpop.f32.mrf.mxu1  ;;  %v5139_v6 = vld [vmem:[%s7338_s0 + $0x5f4] sm:$0xf0]  ;;  %v3608_v14 = vld [vmem:[%s7338_s0 + $0x60] sm:$0xf0] }
 0x108   :  { %v3611_v27 = vor.u32 %v4951_v56, %v3608_v14  ;;  %v5231_v14 = vld [vmem:[%s7336_s1 + $0x2a8] sm:$0xff] }
 0x109   :  { %v6071_v24 = vadd.f32 %v2689_v21, %v2626_v20  ;;  %v4319_v20 = vor.u32 %v5139_v6, %v4318_v5  ;;  %3000 = vmatpush.bf16.msrb.mxu2 %v5231_v14  ;;  %v4997_v14 = vld [vmem:[%s7338_s0 + $0x184] sm:$0xf0] }
 0x10c   :  { %v2502_v38 = vpop.f32.mrf.mxu2 }
 0x10d   :  { %v2503_v39 = vadd.f32 %v2502_v38, %v5857_v23  ;;  %v5257_v23 = vld [vmem:[%s7336_s1 + $0x378] sm:$0xff] }
 0x10e   :  { %v2566_v40 = vpop.f32.mrf.mxu3  ;;  %v2628_v47 = vpop.f32.mrf.mxu0  ;;  %3190 = vmatpush.bf16.msrb.mxu1 %v5257_v23  ;;  %v3680_v23 = vld [vmem:[%s7338_s0 + $0xf0] sm:$0xf0] }
 0x10f   :  { %v2567_v49 = vadd.f32 %v2566_v40, %v2503_v39  ;;  %v2629_v29 = vadd.f32 %v2628_v47, %v2565_v18  ;;  %v2692_v53 = vpop.f32.mrf.mxu1  ;;  %v3678_v47 = vld [vmem:[%s7338_s0 + $0xa8] sm:$0xf] }
 0x111   :  { %v6101_v54 = vadd.f32 %v2692_v53, %v2629_v29  ;;  %2544 = vmatmul.bf16.gmra.mxu2 %v4311_v41  ;;  %2667 = vmatmul.bf16.gmra.mxu0 %v4247_v43  ;;  %v4969_v29 = vld [vmem:[%s7338_s0 + $0xac] sm:$0xf]  ;;  %v3614_v53 = vld [vmem:[%s7338_s0 + $0x20] sm:$0xf] }
 0x112   :  { %2731 = vmatmul.bf16.gmra.mxu1 %v4251_v46  ;;  %v4978_v46 = vld [vmem:[%s7338_s0 + $0xec] sm:$0xf0]  ;;  %v3683_v6 = vor.u32 %v4969_v29, %v3680_v23 }
 0x113   :  { %2608 = vmatmul.bf16.gmra.mxu3 %v4315_v48 }
 0x114   :  { %v2505_v59 = vpop.f32.mrf.mxu2 }
 0x115   :  { %v2506_v60 = vadd.f32 %v2505_v59, %v5890_v45  ;;  %v3606_v45 = vld [vmem:[%s7338_s0 + $0x18] sm:$0xf]  ;;  %v4952_v59 = vld [vmem:[%s7338_s0 + $0x24] sm:$0xf] }
 0x116   :  { %v2569_v61 = vpop.f32.mrf.mxu3  ;;  %v2630_v62 = vpop.f32.mrf.mxu0  ;;  %v3607_v21 = vor.u32 %v4960_v8, %v3606_v45 }
 0x117   :  { %v2570_v0 = vadd.f32 %v2569_v61, %v2506_v60  ;;  %v2631_v1 = vadd.f32 %v2630_v62, %v2567_v49  ;;  %v2694_v2 = vpop.f32.mrf.mxu1  ;;  %v5248_v49 = vld [vmem:[%s7336_s1 + $0x330] sm:$0xff]  ;;  %v3616_v60 = vld [vmem:[%s7338_s0 + $0x68] sm:$0xf0] }
 0x118   :  { %3127 = vmatpush.bf16.msrb.mxu0 %v5248_v49  ;;  %v3619_v7 = vor.u32 %v4952_v59, %v3616_v60 }
 0x119   :  { %v6110_v4 = vadd.f32 %v2694_v2, %v2631_v1  ;;  %v3679_v1 = vor.u32 %v4978_v46, %v3678_v47  ;;  %v3615_v2 = vor.u32 %v4961_v55, %v3614_v53  ;;  %v5247_v55 = vld [vmem:[%s7336_s1 + $0x328] sm:$0xff] }
 0x11c   :  { %v2507_v15 = vpop.f32.mrf.mxu2  ;;  %3128 = vmatpush.bf16.msrb.mxu0 %v5247_v55  ;;  %v5015_v55 = vld [vmem:[%s7338_s0 + $0x214] sm:$0xf0] }
 0x11d   :  { %v2508_v17 = vadd.f32 %v2507_v15, %v5899_v57  ;;  %v5240_v57 = vld [vmem:[%s7336_s1 + $0x2f0] sm:$0xff] }
 0x11e   :  { %v2571_v18 = vpop.f32.mrf.mxu3  ;;  %v2633_v22 = vpop.f32.mrf.mxu0  ;;  %3063 = vmatpush.bf16.msrb.mxu3 %v5240_v57  ;;  %v3752_v57 = vld [vmem:[%s7338_s0 + $0x180] sm:$0xf0] }
 0x11f   :  { %v2572_v12 = vadd.f32 %v2571_v18, %v2508_v17  ;;  %v2634_v31 = vadd.f32 %v2633_v22, %v2570_v0  ;;  %v2697_v32 = vpop.f32.mrf.mxu1 }
 0x121   :  { %v6140_v35 = vadd.f32 %v2697_v32, %v2634_v31  ;;  %2672 = vmatmul.bf16.gmra.mxu0 %v4319_v20  ;;  %2750 = vmatmul.bf16.vlgmr.msra.gmra.mxu2 %v3607_v21  ;;  %v4996_v31 = vld [vmem:[%s7338_s0 + $0x17c] sm:$0xf0]  ;;  %v3686_v32 = vld [vmem:[%s7338_s0 + $0xb0] sm:$0xf] }
 0x122   :  { %2736 = vmatmul.bf16.gmra.mxu1 %v4323_v26  ;;  %v5239_v26 = vld [vmem:[%s7336_s1 + $0x2e8] sm:$0xff] }
 0x123   :  { %2814 = vmatmul.bf16.vlgmr.msra.gmra.mxu3 %v3611_v27 }
 0x124   :  { %v2510_v36 = vpop.f32.mrf.mxu2  ;;  %3064 = vmatpush.bf16.msrb.mxu3 %v5239_v26 }
 0x125   :  { %v2511_v37 = vadd.f32 %v2510_v36, %v5932_v16  ;;  %v5256_v16 = vld [vmem:[%s7336_s1 + $0x370] sm:$0xff] }
 0x126   :  { %v2574_v38 = vpop.f32.mrf.mxu3  ;;  %v2635_v39 = vpop.f32.mrf.mxu0  ;;  %3191 = vmatpush.bf16.msrb.mxu1 %v5256_v16  ;;  %v4970_v36 = vld [vmem:[%s7338_s0 + $0xb4] sm:$0xf] }
 0x127   :  { %v2575_v40 = vadd.f32 %v2574_v38, %v2511_v37  ;;  %v2636_v41 = vadd.f32 %v2635_v39, %v2572_v12  ;;  %v2699_v43 = vpop.f32.mrf.mxu1  ;;  %v3750_v12 = vld [vmem:[%s7338_s0 + $0x138] sm:$0xf]  ;;  %v3688_v37 = vld [vmem:[%s7338_s0 + $0xf8] sm:$0xf0] }
 0x128   :  { %v3691_v49 = vor.u32 %v4970_v36, %v3688_v37  ;;  %v5246_v37 = vld [vmem:[%s7336_s1 + $0x320] sm:$0xff] }
 0x129   :  { %v6149_v48 = vadd.f32 %v2699_v43, %v2636_v41  ;;  %v3751_v41 = vor.u32 %v4996_v31, %v3750_v12  ;;  %v3687_v43 = vor.u32 %v4979_v34, %v3686_v32  ;;  %3129 = vmatpush.bf16.msrb.mxu0 %v5246_v37  ;;  %v5033_v37 = vld [vmem:[%s7338_s0 + $0x2a4] sm:$0xf0] }
 0x12c   :  { %v2512_v61 = vpop.f32.mrf.mxu2 }
 0x12d   :  { %v2513_v62 = vadd.f32 %v2512_v61, %v5944_v28 }
 0x12e   :  { %v2576_v0 = vpop.f32.mrf.mxu3  ;;  %v2638_v5 = vpop.f32.mrf.mxu0 }
 0x12f   :  { %v2577_v45 = vadd.f32 %v2576_v0, %v2513_v62  ;;  %v2639_v8 = vadd.f32 %v2638_v5, %v2575_v40  ;;  %v2702_v10 = vpop.f32.mrf.mxu1  ;;  %v3822_v5 = vld [vmem:[%s7338_s0 + $0x1c8] sm:$0xf] }
 0x131   :  { %v6179_v56 = vadd.f32 %v2702_v10, %v2639_v8  ;;  %2755 = vmatmul.bf16.gmra.mxu2 %v3679_v1  ;;  %2878 = vmatmul.bf16.vlgmr.msra.gmra.mxu0 %v3615_v2  ;;  %v5005_v8 = vld [vmem:[%s7338_s0 + $0x1cc] sm:$0xf]  ;;  %v3758_v10 = vld [vmem:[%s7338_s0 + $0x140] sm:$0xf] }
 0x132   :  { %2942 = vmatmul.bf16.vlgmr.msra.gmra.mxu1 %v3619_v7  ;;  %v5014_v7 = vld [vmem:[%s7338_s0 + $0x20c] sm:$0xf0]  ;;  %v3759_v26 = vor.u32 %v4997_v14, %v3758_v10 }
 0x133   :  { %2819 = vmatmul.bf16.gmra.mxu3 %v3683_v6 }
 0x134   :  { %v2515_v28 = vpop.f32.mrf.mxu2 }
 0x135   :  { %v2516_v15 = vadd.f32 %v2515_v28, %v5980_v58  ;;  %v4987_v58 = vld [vmem:[%s7338_s0 + $0x13c] sm:$0xf]  ;;  %v3824_v28 = vld [vmem:[%s7338_s0 + $0x210] sm:$0xf0] }
 0x136   :  { %v2579_v17 = vpop.f32.mrf.mxu3  ;;  %v2640_v18 = vpop.f32.mrf.mxu0  ;;  %v3755_v46 = vor.u32 %v4987_v58, %v3752_v57  ;;  %v3827_v31 = vor.u32 %v5005_v8, %v3824_v28  ;;  %v5229_v28 = vld [vmem:[%s7336_s1 + $0x298] sm:$0xff] }
 0x137   :  { %v2580_v20 = vadd.f32 %v2579_v17, %v2516_v15  ;;  %v2641_v21 = vadd.f32 %v2640_v18, %v2577_v45  ;;  %v2704_v22 = vpop.f32.mrf.mxu1  ;;  %v5230_v45 = vld [vmem:[%s7336_s1 + $0x2a0] sm:$0xff]  ;;  %v3760_v17 = vld [vmem:[%s7338_s0 + $0x188] sm:$0xf0] }
 0x138   :  { %v4988_v15 = vld [vmem:[%s7338_s0 + $0x144] sm:$0xf]  ;;  %3001 = vmatpush.bf16.msrb.mxu2 %v5230_v45 }
 0x139   :  { %v6188_v27 = vadd.f32 %v2704_v22, %v2641_v21  ;;  %v3823_v22 = vor.u32 %v5014_v7, %v3822_v5  ;;  %v3763_v58 = vor.u32 %v4988_v15, %v3760_v17 }
 0x13c   :  { %v2517_v38 = vpop.f32.mrf.mxu2  ;;  %3002 = vmatpush.bf16.msrb.mxu2 %v5229_v28  ;;  %v5051_v28 = vld [vmem:[%s7338_s0 + $0x334] sm:$0xf0] }
 0x13d   :  { %v2518_v39 = vadd.f32 %v2517_v38, %v5989_v3  ;;  %v5255_v3 = vld [vmem:[%s7336_s1 + $0x368] sm:$0xff] }
 0x13e   :  { %v2581_v40 = vpop.f32.mrf.mxu3  ;;  %v2643_v47 = vpop.f32.mrf.mxu0  ;;  %3192 = vmatpush.bf16.msrb.mxu1 %v5255_v3  ;;  %v3896_v3 = vld [vmem:[%s7338_s0 + $0x2a0] sm:$0xf0] }
 0x13f   :  { %v2582_v16 = vadd.f32 %v2581_v40, %v2518_v39  ;;  %v2644_v29 = vadd.f32 %v2643_v47, %v2580_v20  ;;  %v2707_v53 = vpop.f32.mrf.mxu1 }
 0x141   :  { %v6218_v23 = vadd.f32 %v2707_v53, %v2644_v29  ;;  %2760 = vmatmul.bf16.gmra.mxu2 %v3751_v41  ;;  %2883 = vmatmul.bf16.gmra.mxu0 %v3687_v43  ;;  %v5032_v29 = vld [vmem:[%s7338_s0 + $0x29c] sm:$0xf0]  ;;  %v3830_v53 = vld [vmem:[%s7338_s0 + $0x1d0] sm:$0xf] }
 0x142   :  { %2947 = vmatmul.bf16.gmra.mxu1 %v3691_v49 }
 0x143   :  { %2824 = vmatmul.bf16.gmra.mxu3 %v3755_v46  ;;  %v5254_v46 = vld [vmem:[%s7336_s1 + $0x360] sm:$0xff] }
 0x144   :  { %v2520_v59 = vpop.f32.mrf.mxu2  ;;  %3193 = vmatpush.bf16.msrb.mxu1 %v5254_v46 }
 0x145   :  { %v2521_v60 = vadd.f32 %v2520_v59, %v6022_v33  ;;  %v5238_v33 = vld [vmem:[%s7336_s1 + $0x2e0] sm:$0xff]  ;;  %v5006_v59 = vld [vmem:[%s7338_s0 + $0x1d4] sm:$0xf] }
 0x146   :  { %v2584_v61 = vpop.f32.mrf.mxu3  ;;  %v2645_v62 = vpop.f32.mrf.mxu0  ;;  %3065 = vmatpush.bf16.msrb.mxu3 %v5238_v33 }
 0x147   :  { %v2585_v0 = vadd.f32 %v2584_v61, %v2521_v60  ;;  %v2646_v1 = vadd.f32 %v2645_v62, %v2582_v16  ;;  %v2709_v2 = vpop.f32.mrf.mxu1  ;;  %v3894_v16 = vld [vmem:[%s7338_s0 + $0x258] sm:$0xf]  ;;  %v3832_v60 = vld [vmem:[%s7338_s0 + $0x218] sm:$0xf0] }
 0x148   :  { %v3835_v45 = vor.u32 %v5006_v59, %v3832_v60 }
 0x149   :  { %v6227_v6 = vadd.f32 %v2709_v2, %v2646_v1  ;;  %v3895_v1 = vor.u32 %v5032_v29, %v3894_v16  ;;  %v3831_v2 = vor.u32 %v5015_v55, %v3830_v53 }
 0x14c   :  { %v2522_v18 = vpop.f32.mrf.mxu2 }
 0x14d   :  { %v2523_v20 = vadd.f32 %v2522_v18, %v6032_v44 }
 0x14e   :  { %v2586_v21 = vpop.f32.mrf.mxu3  ;;  %v2648_v12 = vpop.f32.mrf.mxu0 }
 0x14f   :  { %v2587_v32 = vadd.f32 %v2586_v21, %v2523_v20  ;;  %v2649_v34 = vadd.f32 %v2648_v12, %v2585_v0  ;;  %v2712_v57 = vpop.f32.mrf.mxu1  ;;  %v3966_v12 = vld [vmem:[%s7338_s0 + $0x2e8] sm:$0xf] }
 0x151   :  { %v6257_v36 = vadd.f32 %v2712_v57, %v2649_v34  ;;  %2765 = vmatmul.bf16.gmra.mxu2 %v3823_v22  ;;  %2888 = vmatmul.bf16.gmra.mxu0 %v3759_v26  ;;  %v5041_v34 = vld [vmem:[%s7338_s0 + $0x2ec] sm:$0xf]  ;;  %v3902_v57 = vld [vmem:[%s7338_s0 + $0x260] sm:$0xf] }
 0x152   :  { %2952 = vmatmul.bf16.gmra.mxu1 %v3763_v58  ;;  %v5050_v58 = vld [vmem:[%s7338_s0 + $0x32c] sm:$0xf0]  ;;  %v3903_v46 = vor.u32 %v5033_v37, %v3902_v57 }
 0x153   :  { %2829 = vmatmul.bf16.gmra.mxu3 %v3827_v31 }
 0x154   :  { %v2525_v44 = vpop.f32.mrf.mxu2 }
 0x155   :  { %v2526_v38 = vadd.f32 %v2525_v44, %v5806_v52  ;;  %v5023_v52 = vld [vmem:[%s7338_s0 + $0x25c] sm:$0xf]  ;;  %v3968_v44 = vld [vmem:[%s7338_s0 + $0x330] sm:$0xf0] }
 0x156   :  { %v2589_v39 = vpop.f32.mrf.mxu3  ;;  %v2650_v40 = vpop.f32.mrf.mxu0  ;;  %v3899_v7 = vor.u32 %v5023_v52, %v3896_v3  ;;  %v3971_v29 = vor.u32 %v5041_v34, %v3968_v44  ;;  %v5244_v44 = vld [vmem:[%s7336_s1 + $0x310] sm:$0xff] }
 0x157   :  { %v2590_v41 = vadd.f32 %v2589_v39, %v2526_v38  ;;  %v2651_v43 = vadd.f32 %v2650_v40, %v2587_v32  ;;  %v2714_v47 = vpop.f32.mrf.mxu1  ;;  %v5245_v32 = vld [vmem:[%s7336_s1 + $0x318] sm:$0xff]  ;;  %v5024_v38 = vld [vmem:[%s7338_s0 + $0x264] sm:$0xf]  ;;  %v3904_v39 = vld [vmem:[%s7338_s0 + $0x2a8] sm:$0xf0] }
 0x158   :  { %3130 = vmatpush.bf16.msrb.mxu0 %v5245_v32  ;;  %v3907_v52 = vor.u32 %v5024_v38, %v3904_v39 }
 0x159   :  { %v6266_v49 = vadd.f32 %v2714_v47, %v2651_v43  ;;  %v3967_v47 = vor.u32 %v5050_v58, %v3966_v12 }
 0x15c   :  { %v2527_v61 = vpop.f32.mrf.mxu2  ;;  %3131 = vmatpush.bf16.msrb.mxu0 %v5244_v44  ;;  %v5087_v44 = vld [vmem:[%s7338_s0 + $0x454] sm:$0xf0] }
 0x15d   :  { %v2528_v62 = vadd.f32 %v2527_v61, %v5839_v9  ;;  %v5237_v9 = vld [vmem:[%s7336_s1 + $0x2d8] sm:$0xff] }
 0x15e   :  { %v2591_v0 = vpop.f32.mrf.mxu3  ;;  %v2653_v5 = vpop.f32.mrf.mxu0  ;;  %3066 = vmatpush.bf16.msrb.mxu3 %v5237_v9  ;;  %v4040_v9 = vld [vmem:[%s7338_s0 + $0x3c0] sm:$0xf0] }
 0x15f   :  { %v2592_v33 = vadd.f32 %v2591_v0, %v2528_v62  ;;  %v2654_v8 = vadd.f32 %v2653_v5, %v2590_v41  ;;  %v2717_v10 = vpop.f32.mrf.mxu1  ;;  %v5228_v5 = vld [vmem:[%s7336_s1 + $0x290] sm:$0xff] }
 0x160   :  { %3003 = vmatpush.bf16.msrb.mxu2 %v5228_v5 }
 0x161   :  { %v6293_v14 = vadd.f32 %v2717_v10, %v2654_v8  ;;  %2770 = vmatmul.bf16.gmra.mxu2 %v3895_v1  ;;  %2893 = vmatmul.bf16.gmra.mxu0 %v3831_v2  ;;  %v5059_v8 = vld [vmem:[%s7338_s0 + $0x37c] sm:$0xf]  ;;  %v3974_v10 = vld [vmem:[%s7338_s0 + $0x2f0] sm:$0xf] }
 0x162   :  { %2957 = vmatmul.bf16.gmra.mxu1 %v3835_v45  ;;  %v4038_v45 = vld [vmem:[%s7338_s0 + $0x378] sm:$0xf]  ;;  %v4043_v58 = vor.u32 %v5059_v8, %v4040_v9  ;;  %v5235_v9 = vld [vmem:[%s7336_s1 + $0x2c8] sm:$0xff] }
 0x163   :  { %2834 = vmatmul.bf16.gmra.mxu3 %v3899_v7 }
 0x164   :  { %v2530_v15 = vpop.f32.mrf.mxu2 }
 0x165   :  { %v2531_v17 = vadd.f32 %v2530_v15, %v5851_v19  ;;  %v5253_v19 = vld [vmem:[%s7336_s1 + $0x358] sm:$0xff]  ;;  %v5042_v15 = vld [vmem:[%s7338_s0 + $0x2f4] sm:$0xf] }
 0x166   :  { %v2594_v18 = vpop.f32.mrf.mxu3  ;;  %v2655_v20 = vpop.f32.mrf.mxu0  ;;  %3194 = vmatpush.bf16.msrb.mxu1 %v5253_v19 }
 0x167   :  { %v2595_v21 = vadd.f32 %v2594_v18, %v2531_v17  ;;  %v2656_v22 = vadd.f32 %v2655_v20, %v2592_v33  ;;  %v2719_v26 = vpop.f32.mrf.mxu1  ;;  %v5068_v33 = vld [vmem:[%s7338_s0 + $0x3bc] sm:$0xf0]  ;;  %v3976_v17 = vld [vmem:[%s7338_s0 + $0x338] sm:$0xf0] }
 0x168   :  { %v3979_v32 = vor.u32 %v5042_v15, %v3976_v17 }
 0x169   :  { %v6305_v31 = vadd.f32 %v2719_v26, %v2656_v22  ;;  %v4039_v22 = vor.u32 %v5068_v33, %v4038_v45  ;;  %v3975_v26 = vor.u32 %v5051_v28, %v3974_v10 }
 0x16c   :  { %v2532_v40 = vpop.f32.mrf.mxu2 }
 0x16d   :  { %v2533_v41 = vadd.f32 %v2532_v40, %v5887_v42 }
 0x16e   :  { %v2596_v43 = vpop.f32.mrf.mxu3  ;;  %v2658_v16 = vpop.f32.mrf.mxu0 }
 0x16f   :  { %v2597_v53 = vadd.f32 %v2596_v43, %v2533_v41  ;;  %v2659_v55 = vadd.f32 %v2658_v16, %v2595_v21  ;;  %v2722_v3 = vpop.f32.mrf.mxu1 }
 0x171   :  { %v6335_v59 = vadd.f32 %v2722_v3, %v2659_v55  ;;  %2775 = vmatmul.bf16.gmra.mxu2 %v3967_v47  ;;  %2898 = vmatmul.bf16.gmra.mxu0 %v3903_v46  ;;  %v4046_v55 = vld [vmem:[%s7338_s0 + $0x380] sm:$0xf]  ;;  %v5069_v3 = vld [vmem:[%s7338_s0 + $0x3c4] sm:$0xf0] }
 0x172   :  { %2962 = vmatmul.bf16.gmra.mxu1 %v3907_v52  ;;  %v5086_v52 = vld [vmem:[%s7338_s0 + $0x44c] sm:$0xf0]  ;;  %v4047_v5 = vor.u32 %v5069_v3, %v4046_v55 }
 0x173   :  { %2839 = vmatmul.bf16.gmra.mxu3 %v3971_v29  ;;  %v4110_v29 = vld [vmem:[%s7338_s0 + $0x408] sm:$0xf] }
 0x174   :  { %v2535_v60 = vpop.f32.mrf.mxu2 }
 0x175   :  { %v2536_v61 = vadd.f32 %v2535_v60, %v5893_v51  ;;  %v5236_v51 = vld [vmem:[%s7336_s1 + $0x2d0] sm:$0xff] }
 0x176   :  { %v2599_v62 = vpop.f32.mrf.mxu3  ;;  %v2660_v42 = vpop.f32.mrf.mxu0  ;;  %3067 = vmatpush.bf16.msrb.mxu3 %v5236_v51  ;;  %v4112_v60 = vld [vmem:[%s7338_s0 + $0x450] sm:$0xf0] }
 0x177   :  { %v2600_v0 = vadd.f32 %v2599_v62, %v2536_v61  ;;  %v2661_v1 = vadd.f32 %v2660_v42, %v2597_v53  ;;  %v2724_v2 = vpop.f32.mrf.mxu1  ;;  %v5227_v53 = vld [vmem:[%s7336_s1 + $0x288] sm:$0xff]  ;;  %v5060_v61 = vld [vmem:[%s7338_s0 + $0x384] sm:$0xf] }
 0x178   :  { %v4048_v62 = vld [vmem:[%s7338_s0 + $0x3c8] sm:$0xf0]  ;;  %3004 = vmatpush.bf16.msrb.mxu2 %v5227_v53 }
 0x179   :  { %v6341_v7 = vadd.f32 %v2724_v2, %v2661_v1  ;;  %v4111_v2 = vor.u32 %v5086_v52, %v4110_v29  ;;  %v4051_v51 = vor.u32 %v5060_v61, %v4048_v62  ;;  %v5226_v61 = vld [vmem:[%s7336_s1 + $0x280] sm:$0xff] }
 0x17a   :  { %3068 = vmatpush.bf16.msrb.mxu3 %v5235_v9  ;;  %v5105_v9 = vld [vmem:[%s7338_s0 + $0x4e4] sm:$0xf0] }
 0x17c   :  { %v2537_v18 = vpop.f32.mrf.mxu2  ;;  %3005 = vmatpush.bf16.msrb.mxu2 %v5226_v61  ;;  %v5123_v61 = vld [vmem:[%s7338_s0 + $0x574] sm:$0xf0] }
 0x17d   :  { %v2538_v20 = vadd.f32 %v2537_v18, %v5929_v13  ;;  %v5252_v13 = vld [vmem:[%s7336_s1 + $0x350] sm:$0xff] }
 0x17e   :  { %v2601_v21 = vpop.f32.mrf.mxu3  ;;  %v2663_v12 = vpop.f32.mrf.mxu0  ;;  %3195 = vmatpush.bf16.msrb.mxu1 %v5252_v13  ;;  %v4184_v13 = vld [vmem:[%s7338_s0 + $0x4e0] sm:$0xf0] }
 0x17f   :  { %v2602_v19 = vadd.f32 %v2601_v21, %v2538_v20  ;;  %v2664_v34 = vadd.f32 %v2663_v12, %v2600_v0  ;;  %v2727_v57 = vpop.f32.mrf.mxu1  ;;  %v5243_v12 = vld [vmem:[%s7336_s1 + $0x308] sm:$0xff] }
 0x180   :  { %3132 = vmatpush.bf16.msrb.mxu0 %v5243_v12 }
 0x181   :  { %v6371_v37 = vadd.f32 %v2727_v57, %v2664_v34  ;;  %2780 = vmatmul.bf16.gmra.mxu2 %v4039_v22  ;;  %2903 = vmatmul.bf16.gmra.mxu0 %v3975_v26  ;;  %v5095_v34 = vld [vmem:[%s7338_s0 + $0x49c] sm:$0xf]  ;;  %v4118_v57 = vld [vmem:[%s7338_s0 + $0x410] sm:$0xf] }
 0x182   :  { %2967 = vmatmul.bf16.gmra.mxu1 %v3979_v32  ;;  %v4182_v32 = vld [vmem:[%s7338_s0 + $0x498] sm:$0xf]  ;;  %v4187_v52 = vor.u32 %v5095_v34, %v4184_v13  ;;  %v5250_v13 = vld [vmem:[%s7336_s1 + $0x340] sm:$0xff] }
 0x183   :  { %2844 = vmatmul.bf16.gmra.mxu3 %v4043_v58 }
 0x184   :  { %v2540_v38 = vpop.f32.mrf.mxu2 }
 0x185   :  { %v2541_v39 = vadd.f32 %v2540_v38, %v5941_v25  ;;  %v5077_v25 = vld [vmem:[%s7338_s0 + $0x40c] sm:$0xf]  ;;  %v5078_v38 = vld [vmem:[%s7338_s0 + $0x414] sm:$0xf] }
 0x186   :  { %v2604_v40 = vpop.f32.mrf.mxu3  ;;  %v2665_v41 = vpop.f32.mrf.mxu0  ;;  %v4115_v33 = vor.u32 %v5077_v25, %v4112_v60 }
 0x187   :  { %v2605_v43 = vadd.f32 %v2604_v40, %v2541_v39  ;;  %v2666_v47 = vadd.f32 %v2665_v41, %v2602_v19  ;;  %v2729_v46 = vpop.f32.mrf.mxu1  ;;  %v5104_v19 = vld [vmem:[%s7338_s0 + $0x4dc] sm:$0xf0]  ;;  %v4120_v39 = vld [vmem:[%s7338_s0 + $0x458] sm:$0xf0] }
 0x188   :  { %v4123_v53 = vor.u32 %v5078_v38, %v4120_v39 }
 0x189   :  { %v6380_v16 = vadd.f32 %v2729_v46, %v2666_v47  ;;  %v4183_v47 = vor.u32 %v5104_v19, %v4182_v32  ;;  %v4119_v46 = vor.u32 %v5087_v44, %v4118_v57 }
 0x18c   :  { %v2542_v42 = vpop.f32.mrf.mxu2 }
 0x18d   :  { %v2543_v0 = vadd.f32 %v2542_v42, %v5974_v50 }
 0x18e   :  { %v2606_v1 = vpop.f32.mrf.mxu3  ;;  %v2668_v45 = vpop.f32.mrf.mxu0 }
 0x18f   :  { %v2607_v8 = vadd.f32 %v2606_v1, %v2543_v0  ;;  %v2669_v10 = vadd.f32 %v2668_v45, %v2605_v43  ;;  %v2732_v28 = vpop.f32.mrf.mxu1 }
 0x191   :  { %v6413_v15 = vadd.f32 %v2732_v28, %v2669_v10  ;;  %2785 = vmatmul.bf16.gmra.mxu2 %v4111_v2  ;;  %2908 = vmatmul.bf16.gmra.mxu0 %v4047_v5  ;;  %v5242_v10 = vld [vmem:[%s7336_s1 + $0x300] sm:$0xff] }
 0x192   :  { %2972 = vmatmul.bf16.gmra.mxu1 %v4051_v51  ;;  %v4254_v51 = vld [vmem:[%s7338_s0 + $0x528] sm:$0xf]  ;;  %v4190_v28 = vld [vmem:[%s7338_s0 + $0x4a0] sm:$0xf]  ;;  %3133 = vmatpush.bf16.msrb.mxu0 %v5242_v10 }
 0x193   :  { %2849 = vmatmul.bf16.gmra.mxu3 %v4115_v33  ;;  %v4191_v12 = vor.u32 %v5105_v9, %v4190_v28 }
 0x194   :  { %v2545_v50 = vpop.f32.mrf.mxu2 }
 0x195   :  { %v2546_v17 = vadd.f32 %v2545_v50, %v5983_v63  ;;  %v5251_v63 = vld [vmem:[%s7336_s1 + $0x348] sm:$0xff]  ;;  %v4256_v50 = vld [vmem:[%s7338_s0 + $0x570] sm:$0xf0] }
 0x196   :  { %v2609_v18 = vpop.f32.mrf.mxu3  ;;  %v2670_v20 = vpop.f32.mrf.mxu0  ;;  %3196 = vmatpush.bf16.msrb.mxu1 %v5251_v63 }
 0x197   :  { %v2610_v21 = vadd.f32 %v2609_v18, %v2546_v17  ;;  %v2671_v22 = vadd.f32 %v2670_v20, %v2607_v8  ;;  %v2734_v26 = vpop.f32.mrf.mxu1  ;;  %v5122_v8 = vld [vmem:[%s7338_s0 + $0x56c] sm:$0xf0]  ;;  %v5096_v17 = vld [vmem:[%s7338_s0 + $0x4a4] sm:$0xf]  ;;  %v4192_v18 = vld [vmem:[%s7338_s0 + $0x4e8] sm:$0xf0] }
 0x198   :  { %v4195_v63 = vor.u32 %v5096_v17, %v4192_v18  ;;  %v5281_v17 = vld [vmem:[%s7336_s1 + $0x438] sm:$0xff] }
 0x199   :  { %v6419_v58 = vadd.f32 %v2734_v26, %v2671_v22  ;;  %v4255_v26 = vor.u32 %v5122_v8, %v4254_v51  ;;  %3382 = vmatpush.bf16.msra.mxu0 %v5281_v17  ;;  %v4963_v17 = vld [vmem:[%s7338_s0 + $0x74] sm:$0xf0] }
 0x19a   :  { %3197 = vmatpush.bf16.msrb.mxu1 %v5250_v13  ;;  %v4336_v13 = vld [vmem:[%s7338_s0 + $0x608] sm:$0xf0] }
 0x19c   :  { %v2547_v40 = vpop.f32.mrf.mxu2 }
 0x19d   :  { %v2548_v41 = vadd.f32 %v2547_v40, %v6019_v30  ;;  %v5234_v30 = vld [vmem:[%s7336_s1 + $0x2c0] sm:$0xff] }
 0x19e   :  { %v2611_v43 = vpop.f32.mrf.mxu3  ;;  %v2673_v29 = vpop.f32.mrf.mxu0  ;;  %3069 = vmatpush.bf16.msrb.mxu3 %v5234_v30  ;;  %v4328_v30 = vld [vmem:[%s7338_s0 + $0x600] sm:$0xf0] }
 0x19f   :  { %v2612_v25 = vadd.f32 %v2611_v43, %v2548_v41  ;;  %v2674_v55 = vadd.f32 %v2673_v29, %v2610_v21  ;;  %v2737_v3 = vpop.f32.mrf.mxu1  ;;  %v4326_v29 = vld [vmem:[%s7338_s0 + $0x5b8] sm:$0xf] }
 0x1a1   :  { %v6449_v60 = vadd.f32 %v2737_v3, %v2674_v55  ;;  %2790 = vmatmul.bf16.gmra.mxu2 %v4183_v47  ;;  %2913 = vmatmul.bf16.gmra.mxu0 %v4119_v46  ;;  %v5131_v55 = vld [vmem:[%s7338_s0 + $0x5bc] sm:$0xf]  ;;  %v4262_v3 = vld [vmem:[%s7338_s0 + $0x530] sm:$0xf] }
 0x1a2   :  { %2977 = vmatmul.bf16.gmra.mxu1 %v4123_v53  ;;  %v5140_v53 = vld [vmem:[%s7338_s0 + $0x5fc] sm:$0xf0]  ;;  %v4331_v8 = vor.u32 %v5131_v55, %v4328_v30 }
 0x1a3   :  { %2854 = vmatmul.bf16.gmra.mxu3 %v4187_v52 }
 0x1a4   :  { %v2751_v62 = vpop.f32.mrf.mxu2 }
 0x1a5   :  { %v2752_v42 = vadd.f32 %v2751_v62, %v6065_v11  ;;  %v5113_v11 = vld [vmem:[%s7338_s0 + $0x52c] sm:$0xf]  ;;  %v5114_v62 = vld [vmem:[%s7338_s0 + $0x534] sm:$0xf] }
 0x1a6   :  { %v2815_v0 = vpop.f32.mrf.mxu3  ;;  %v2675_v1 = vpop.f32.mrf.mxu0  ;;  %v4259_v19 = vor.u32 %v5113_v11, %v4256_v50 }
 0x1a7   :  { %v2816_v2 = vadd.f32 %v2815_v0, %v2752_v42  ;;  %v2676_v5 = vadd.f32 %v2675_v1, %v2612_v25  ;;  %v2739_v45 = vpop.f32.mrf.mxu1  ;;  %v5265_v25 = vld [vmem:[%s7336_s1 + $0x3b8] sm:$0xff] }
 0x1a8   :  { %v4264_v42 = vld [vmem:[%s7338_s0 + $0x578] sm:$0xf0]  ;;  %3254 = vmatpush.bf16.msra.mxu2 %v5265_v25 }
 0x1a9   :  { %v6458_v33 = vadd.f32 %v2739_v45, %v2676_v5  ;;  %v4327_v5 = vor.u32 %v5140_v53, %v4326_v29  ;;  %v4263_v45 = vor.u32 %v5123_v61, %v4262_v3  ;;  %v4267_v10 = vor.u32 %v5114_v62, %v4264_v42  ;;  %v5264_v61 = vld [vmem:[%s7336_s1 + $0x3b0] sm:$0xff] }
 0x1ac   :  { %v2753_v20 = vpop.f32.mrf.mxu2  ;;  %3255 = vmatpush.bf16.msra.mxu2 %v5264_v61  ;;  %v4981_v61 = vld [vmem:[%s7338_s0 + $0x104] sm:$0xf0] }
 0x1ad   :  { %v2754_v21 = vadd.f32 %v2753_v20, %v6071_v24 }
 0x1ae   :  { %v2817_v22 = vpop.f32.mrf.mxu3  ;;  %v2879_v32 = vpop.f32.mrf.mxu0 }
 0x1af   :  { %v2818_v34 = vadd.f32 %v2817_v22, %v2754_v21  ;;  %v2880_v57 = vadd.f32 %v2879_v32, %v2816_v2  ;;  %v2943_v44 = vpop.f32.mrf.mxu1 }
 0x1b1   :  { %v6491_v38 = vadd.f32 %v2943_v44, %v2880_v57  ;;  %2795 = vmatmul.bf16.gmra.mxu2 %v4255_v26  ;;  %2918 = vmatmul.bf16.gmra.mxu0 %v4191_v12  ;;  %v5132_v57 = vld [vmem:[%s7338_s0 + $0x5c4] sm:$0xf]  ;;  %v4962_v44 = vld [vmem:[%s7338_s0 + $0x6c] sm:$0xf0] }
 0x1b2   :  { %2982 = vmatmul.bf16.gmra.mxu1 %v4195_v63  ;;  %v4334_v63 = vld [vmem:[%s7338_s0 + $0x5c0] sm:$0xf]  ;;  %v4339_v53 = vor.u32 %v5132_v57, %v4336_v13 }
 0x1b3   :  { %2859 = vmatmul.bf16.gmra.mxu3 %v4259_v19 }
 0x1b4   :  { %v2756_v24 = vpop.f32.mrf.mxu2 }
 0x1b5   :  { %v2757_v39 = vadd.f32 %v2756_v24, %v6101_v54  ;;  %v5273_v54 = vld [vmem:[%s7336_s1 + $0x3f8] sm:$0xff]  ;;  %v4953_v24 = vld [vmem:[%s7338_s0 + $0x2c] sm:$0xf] }
 0x1b6   :  { %v2820_v40 = vpop.f32.mrf.mxu3  ;;  %v2881_v41 = vpop.f32.mrf.mxu0  ;;  %3318 = vmatpush.bf16.msra.mxu3 %v5273_v54 }
 0x1b7   :  { %v2821_v43 = vadd.f32 %v2820_v40, %v2757_v39  ;;  %v2882_v47 = vadd.f32 %v2881_v41, %v2818_v34  ;;  %v2945_v46 = vpop.f32.mrf.mxu1  ;;  %v5141_v34 = vld [vmem:[%s7338_s0 + $0x604] sm:$0xf0]  ;;  %v3624_v39 = vld [vmem:[%s7338_s0 + $0x70] sm:$0xf0] }
 0x1b8   :  { %v3627_v25 = vor.u32 %v4953_v24, %v3624_v39  ;;  %v5263_v39 = vld [vmem:[%s7336_s1 + $0x3a8] sm:$0xff] }
 0x1b9   :  { %v6497_v52 = vadd.f32 %v2945_v46, %v2882_v47  ;;  %v4335_v47 = vor.u32 %v5141_v34, %v4334_v63  ;;  %3256 = vmatpush.bf16.msra.mxu2 %v5263_v39  ;;  %v4999_v39 = vld [vmem:[%s7338_s0 + $0x194] sm:$0xf0] }
 0x1bc   :  { %v2758_v0 = vpop.f32.mrf.mxu2 }
 0x1bd   :  { %v2759_v1 = vadd.f32 %v2758_v0, %v6110_v4  ;;  %v5289_v4 = vld [vmem:[%s7336_s1 + $0x478] sm:$0xff] }
 0x1be   :  { %v2822_v2 = vpop.f32.mrf.mxu3  ;;  %v2884_v51 = vpop.f32.mrf.mxu0  ;;  %3446 = vmatpush.bf16.msra.mxu1 %v5289_v4  ;;  %v3696_v4 = vld [vmem:[%s7338_s0 + $0x100] sm:$0xf0] }
 0x1bf   :  { %v2823_v11 = vadd.f32 %v2822_v2, %v2759_v1  ;;  %v2885_v28 = vadd.f32 %v2884_v51, %v2821_v43  ;;  %v2948_v9 = vpop.f32.mrf.mxu1  ;;  %v3694_v51 = vld [vmem:[%s7338_s0 + $0xb8] sm:$0xf] }
 0x1c1   :  { %v6527_v50 = vadd.f32 %v2948_v9, %v2885_v28  ;;  %2800 = vmatmul.bf16.gmra.mxu2 %v4327_v5  ;;  %2923 = vmatmul.bf16.gmra.mxu0 %v4263_v45  ;;  %v4971_v28 = vld [vmem:[%s7338_s0 + $0xbc] sm:$0xf]  ;;  %v3630_v9 = vld [vmem:[%s7338_s0 + $0x30] sm:$0xf] }
 0x1c2   :  { %2987 = vmatmul.bf16.gmra.mxu1 %v4267_v10  ;;  %v4980_v10 = vld [vmem:[%s7338_s0 + $0xfc] sm:$0xf0]  ;;  %v3699_v34 = vor.u32 %v4971_v28, %v3696_v4 }
 0x1c3   :  { %2864 = vmatmul.bf16.gmra.mxu3 %v4331_v8 }
 0x1c4   :  { %v2761_v18 = vpop.f32.mrf.mxu2 }
 0x1c5   :  { %v2762_v20 = vadd.f32 %v2761_v18, %v6140_v35  ;;  %v3622_v35 = vld [vmem:[%s7338_s0 + $0x28] sm:$0xf]  ;;  %v4954_v18 = vld [vmem:[%s7338_s0 + $0x34] sm:$0xf] }
 0x1c6   :  { %v2825_v21 = vpop.f32.mrf.mxu3  ;;  %v2886_v22 = vpop.f32.mrf.mxu0  ;;  %v3623_v46 = vor.u32 %v4962_v44, %v3622_v35 }
 0x1c7   :  { %v2826_v26 = vadd.f32 %v2825_v21, %v2762_v20  ;;  %v2887_v12 = vadd.f32 %v2886_v22, %v2823_v11  ;;  %v2950_v32 = vpop.f32.mrf.mxu1  ;;  %v5280_v11 = vld [vmem:[%s7336_s1 + $0x430] sm:$0xff]  ;;  %v3632_v20 = vld [vmem:[%s7338_s0 + $0x78] sm:$0xf0] }
 0x1c8   :  { %3383 = vmatpush.bf16.msra.mxu0 %v5280_v11  ;;  %v3635_v57 = vor.u32 %v4954_v18, %v3632_v20 }
 0x1c9   :  { %v6536_v19 = vadd.f32 %v2950_v32, %v2887_v12  ;;  %v3695_v12 = vor.u32 %v4980_v10, %v3694_v51  ;;  %v3631_v32 = vor.u32 %v4963_v17, %v3630_v9  ;;  %v5279_v17 = vld [vmem:[%s7336_s1 + $0x428] sm:$0xff] }
 0x1cc   :  { %v2763_v40 = vpop.f32.mrf.mxu2  ;;  %3384 = vmatpush.bf16.msra.mxu0 %v5279_v17  ;;  %v5017_v17 = vld [vmem:[%s7338_s0 + $0x224] sm:$0xf0] }
 0x1cd   :  { %v2764_v41 = vadd.f32 %v2763_v40, %v6149_v48  ;;  %v5272_v48 = vld [vmem:[%s7336_s1 + $0x3f0] sm:$0xff] }
 0x1ce   :  { %v2827_v43 = vpop.f32.mrf.mxu3  ;;  %v2889_v29 = vpop.f32.mrf.mxu0  ;;  %3319 = vmatpush.bf16.msra.mxu3 %v5272_v48  ;;  %v3768_v48 = vld [vmem:[%s7338_s0 + $0x190] sm:$0xf0] }
 0x1cf   :  { %v2828_v54 = vadd.f32 %v2827_v43, %v2764_v41  ;;  %v2890_v55 = vadd.f32 %v2889_v29, %v2826_v26  ;;  %v2953_v3 = vpop.f32.mrf.mxu1 }
 0x1d1   :  { %v6566_v30 = vadd.f32 %v2953_v3, %v2890_v55  ;;  %2928 = vmatmul.bf16.gmra.mxu0 %v4335_v47  ;;  %3006 = vmatmul.bf16.vlgmr.msrb.gmra.mxu2 %v3623_v46  ;;  %v4998_v55 = vld [vmem:[%s7338_s0 + $0x18c] sm:$0xf0]  ;;  %v3702_v3 = vld [vmem:[%s7338_s0 + $0xc0] sm:$0xf] }
 0x1d2   :  { %2992 = vmatmul.bf16.gmra.mxu1 %v4339_v53  ;;  %v5271_v53 = vld [vmem:[%s7336_s1 + $0x3e8] sm:$0xff] }
 0x1d3   :  { %3070 = vmatmul.bf16.vlgmr.msrb.gmra.mxu3 %v3627_v25 }
 0x1d4   :  { %v2766_v62 = vpop.f32.mrf.mxu2  ;;  %3320 = vmatpush.bf16.msra.mxu3 %v5271_v53 }
 0x1d5   :  { %v2767_v42 = vadd.f32 %v2766_v62, %v6179_v56  ;;  %v5288_v56 = vld [vmem:[%s7336_s1 + $0x470] sm:$0xff]  ;;  %v4972_v62 = vld [vmem:[%s7338_s0 + $0xc4] sm:$0xf] }
 0x1d6   :  { %v2830_v0 = vpop.f32.mrf.mxu3  ;;  %v2891_v1 = vpop.f32.mrf.mxu0  ;;  %3447 = vmatpush.bf16.msra.mxu1 %v5288_v56 }
 0x1d7   :  { %v2831_v2 = vadd.f32 %v2830_v0, %v2767_v42  ;;  %v2892_v5 = vadd.f32 %v2891_v1, %v2828_v54  ;;  %v2955_v45 = vpop.f32.mrf.mxu1  ;;  %v3766_v54 = vld [vmem:[%s7338_s0 + $0x148] sm:$0xf]  ;;  %v3704_v42 = vld [vmem:[%s7338_s0 + $0x108] sm:$0xf0] }
 0x1d8   :  { %v3707_v11 = vor.u32 %v4972_v62, %v3704_v42  ;;  %v5278_v42 = vld [vmem:[%s7336_s1 + $0x420] sm:$0xff] }
 0x1d9   :  { %v6575_v8 = vadd.f32 %v2955_v45, %v2892_v5  ;;  %v3767_v5 = vor.u32 %v4998_v55, %v3766_v54  ;;  %v3703_v45 = vor.u32 %v4981_v61, %v3702_v3  ;;  %3385 = vmatpush.bf16.msra.mxu0 %v5278_v42  ;;  %v5035_v42 = vld [vmem:[%s7338_s0 + $0x2b4] sm:$0xf0] }
 0x1dc   :  { %v2768_v21 = vpop.f32.mrf.mxu2 }
 0x1dd   :  { %v2769_v22 = vadd.f32 %v2768_v21, %v6188_v27 }
 0x1de   :  { %v2832_v26 = vpop.f32.mrf.mxu3  ;;  %v2894_v63 = vpop.f32.mrf.mxu0 }
 0x1df   :  { %v2833_v35 = vadd.f32 %v2832_v26, %v2769_v22  ;;  %v2895_v44 = vadd.f32 %v2894_v63, %v2831_v2  ;;  %v2958_v13 = vpop.f32.mrf.mxu1  ;;  %v3838_v63 = vld [vmem:[%s7338_s0 + $0x1d8] sm:$0xf] }
 0x1e1   :  { %v6605_v24 = vadd.f32 %v2958_v13, %v2895_v44  ;;  %3011 = vmatmul.bf16.gmra.mxu2 %v3695_v12  ;;  %3134 = vmatmul.bf16.vlgmr.msrb.gmra.mxu0 %v3631_v32  ;;  %v5007_v44 = vld [vmem:[%s7338_s0 + $0x1dc] sm:$0xf]  ;;  %v3774_v13 = vld [vmem:[%s7338_s0 + $0x150] sm:$0xf] }
 0x1e2   :  { %3198 = vmatmul.bf16.vlgmr.msrb.gmra.mxu1 %v3635_v57  ;;  %v5016_v57 = vld [vmem:[%s7338_s0 + $0x21c] sm:$0xf0]  ;;  %v3775_v53 = vor.u32 %v4999_v39, %v3774_v13 }
 0x1e3   :  { %3075 = vmatmul.bf16.gmra.mxu3 %v3699_v34 }
 0x1e4   :  { %v2771_v27 = vpop.f32.mrf.mxu2 }
 0x1e5   :  { %v2772_v40 = vadd.f32 %v2771_v27, %v6218_v23  ;;  %v4989_v23 = vld [vmem:[%s7338_s0 + $0x14c] sm:$0xf]  ;;  %v3840_v27 = vld [vmem:[%s7338_s0 + $0x220] sm:$0xf0] }
 0x1e6   :  { %v2835_v41 = vpop.f32.mrf.mxu3  ;;  %v2896_v43 = vpop.f32.mrf.mxu0  ;;  %v3771_v10 = vor.u32 %v4989_v23, %v3768_v48  ;;  %v3843_v55 = vor.u32 %v5007_v44, %v3840_v27  ;;  %v5261_v27 = vld [vmem:[%s7336_s1 + $0x398] sm:$0xff] }
 0x1e7   :  { %v2836_v47 = vadd.f32 %v2835_v41, %v2772_v40  ;;  %v2897_v46 = vadd.f32 %v2896_v43, %v2833_v35  ;;  %v2960_v29 = vpop.f32.mrf.mxu1  ;;  %v5262_v35 = vld [vmem:[%s7336_s1 + $0x3a0] sm:$0xff]  ;;  %v4990_v40 = vld [vmem:[%s7338_s0 + $0x154] sm:$0xf]  ;;  %v3776_v41 = vld [vmem:[%s7338_s0 + $0x198] sm:$0xf0] }
 0x1e8   :  { %3257 = vmatpush.bf16.msra.mxu2 %v5262_v35  ;;  %v3779_v23 = vor.u32 %v4990_v40, %v3776_v41 }
 0x1e9   :  { %v6614_v25 = vadd.f32 %v2960_v29, %v2897_v46  ;;  %v3839_v29 = vor.u32 %v5016_v57, %v3838_v63 }
 0x1ec   :  { %v2773_v0 = vpop.f32.mrf.mxu2  ;;  %3258 = vmatpush.bf16.msra.mxu2 %v5261_v27  ;;  %v5053_v27 = vld [vmem:[%s7338_s0 + $0x344] sm:$0xf0] }
 0x1ed   :  { %v2774_v1 = vadd.f32 %v2773_v0, %v6227_v6  ;;  %v5287_v6 = vld [vmem:[%s7336_s1 + $0x468] sm:$0xff] }
 0x1ee   :  { %v2837_v2 = vpop.f32.mrf.mxu3  ;;  %v2899_v51 = vpop.f32.mrf.mxu0  ;;  %3448 = vmatpush.bf16.msra.mxu1 %v5287_v6  ;;  %v3912_v6 = vld [vmem:[%s7338_s0 + $0x2b0] sm:$0xf0] }
 0x1ef   :  { %v2838_v56 = vadd.f32 %v2837_v2, %v2774_v1  ;;  %v2900_v28 = vadd.f32 %v2899_v51, %v2836_v47  ;;  %v2963_v9 = vpop.f32.mrf.mxu1 }
 0x1f1   :  { %v6644_v4 = vadd.f32 %v2963_v9, %v2900_v28  ;;  %3016 = vmatmul.bf16.gmra.mxu2 %v3767_v5  ;;  %3139 = vmatmul.bf16.gmra.mxu0 %v3703_v45  ;;  %v5034_v28 = vld [vmem:[%s7338_s0 + $0x2ac] sm:$0xf0]  ;;  %v3846_v9 = vld [vmem:[%s7338_s0 + $0x1e0] sm:$0xf] }
 0x1f2   :  { %3203 = vmatmul.bf16.gmra.mxu1 %v3707_v11 }
 0x1f3   :  { %3080 = vmatmul.bf16.gmra.mxu3 %v3771_v10  ;;  %v5286_v10 = vld [vmem:[%s7336_s1 + $0x460] sm:$0xff] }
 0x1f4   :  { %v2776_v18 = vpop.f32.mrf.mxu2  ;;  %3449 = vmatpush.bf16.msra.mxu1 %v5286_v10 }
 0x1f5   :  { %v2777_v20 = vadd.f32 %v2776_v18, %v6257_v36  ;;  %v5270_v36 = vld [vmem:[%s7336_s1 + $0x3e0] sm:$0xff] }
 0x1f6   :  { %v2840_v21 = vpop.f32.mrf.mxu3  ;;  %v2901_v22 = vpop.f32.mrf.mxu0  ;;  %3321 = vmatpush.bf16.msra.mxu3 %v5270_v36  ;;  %v5008_v18 = vld [vmem:[%s7338_s0 + $0x1e4] sm:$0xf] }
 0x1f7   :  { %v2841_v26 = vadd.f32 %v2840_v21, %v2777_v20  ;;  %v2902_v12 = vadd.f32 %v2901_v22, %v2838_v56  ;;  %v2965_v32 = vpop.f32.mrf.mxu1  ;;  %v3910_v56 = vld [vmem:[%s7338_s0 + $0x268] sm:$0xf]  ;;  %v3848_v20 = vld [vmem:[%s7338_s0 + $0x228] sm:$0xf0] }
 0x1f8   :  { %v3851_v35 = vor.u32 %v5008_v18, %v3848_v20 }
 0x1f9   :  { %v6653_v34 = vadd.f32 %v2965_v32, %v2902_v12  ;;  %v3911_v12 = vor.u32 %v5034_v28, %v3910_v56  ;;  %v3847_v32 = vor.u32 %v5017_v17, %v3846_v9 }
 0x1fc   :  { %v2778_v43 = vpop.f32.mrf.mxu2 }
 0x1fd   :  { %v2779_v47 = vadd.f32 %v2778_v43, %v6266_v49 }
 0x1fe   :  { %v2842_v46 = vpop.f32.mrf.mxu3  ;;  %v2904_v54 = vpop.f32.mrf.mxu0 }
 0x1ff   :  { %v2843_v3 = vadd.f32 %v2842_v46, %v2779_v47  ;;  %v2905_v61 = vadd.f32 %v2904_v54, %v2841_v26  ;;  %v2968_v48 = vpop.f32.mrf.mxu1  ;;  %v3982_v54 = vld [vmem:[%s7338_s0 + $0x2f8] sm:$0xf] }
 0x201   :  { %v6683_v62 = vadd.f32 %v2968_v48, %v2905_v61  ;;  %3021 = vmatmul.bf16.gmra.mxu2 %v3839_v29  ;;  %3144 = vmatmul.bf16.gmra.mxu0 %v3775_v53  ;;  %v5043_v61 = vld [vmem:[%s7338_s0 + $0x2fc] sm:$0xf]  ;;  %v3918_v48 = vld [vmem:[%s7338_s0 + $0x270] sm:$0xf] }
 0x202   :  { %3208 = vmatmul.bf16.gmra.mxu1 %v3779_v23  ;;  %v5052_v23 = vld [vmem:[%s7338_s0 + $0x33c] sm:$0xf0]  ;;  %v3919_v10 = vor.u32 %v5035_v42, %v3918_v48 }
 0x203   :  { %3085 = vmatmul.bf16.gmra.mxu3 %v3843_v55 }
 0x204   :  { %v2781_v49 = vpop.f32.mrf.mxu2 }
 0x205   :  { %v2782_v0 = vadd.f32 %v2781_v49, %v6293_v14  ;;  %v5025_v14 = vld [vmem:[%s7338_s0 + $0x26c] sm:$0xf]  ;;  %v3984_v49 = vld [vmem:[%s7338_s0 + $0x340] sm:$0xf0] }
 0x206   :  { %v2845_v1 = vpop.f32.mrf.mxu3  ;;  %v2906_v2 = vpop.f32.mrf.mxu0  ;;  %v3915_v57 = vor.u32 %v5025_v14, %v3912_v6  ;;  %v3987_v28 = vor.u32 %v5043_v61, %v3984_v49  ;;  %v5276_v49 = vld [vmem:[%s7336_s1 + $0x410] sm:$0xff] }
 0x207   :  { %v2846_v5 = vadd.f32 %v2845_v1, %v2782_v0  ;;  %v2907_v45 = vadd.f32 %v2906_v2, %v2843_v3  ;;  %v2970_v51 = vpop.f32.mrf.mxu1  ;;  %v5277_v3 = vld [vmem:[%s7336_s1 + $0x418] sm:$0xff]  ;;  %v5026_v0 = vld [vmem:[%s7338_s0 + $0x274] sm:$0xf] }
 0x208   :  { %v3920_v1 = vld [vmem:[%s7338_s0 + $0x2b8] sm:$0xf0]  ;;  %3386 = vmatpush.bf16.msra.mxu0 %v5277_v3 }
 0x209   :  { %v6692_v11 = vadd.f32 %v2970_v51, %v2907_v45  ;;  %v3983_v51 = vor.u32 %v5052_v23, %v3982_v54  ;;  %v3923_v14 = vor.u32 %v5026_v0, %v3920_v1 }
 0x20c   :  { %v2783_v21 = vpop.f32.mrf.mxu2  ;;  %3387 = vmatpush.bf16.msra.mxu0 %v5276_v49  ;;  %v5089_v49 = vld [vmem:[%s7338_s0 + $0x464] sm:$0xf0] }
 0x20d   :  { %v2784_v22 = vadd.f32 %v2783_v21, %v6305_v31  ;;  %v5269_v31 = vld [vmem:[%s7336_s1 + $0x3d8] sm:$0xff] }
 0x20e   :  { %v2847_v26 = vpop.f32.mrf.mxu3  ;;  %v2909_v63 = vpop.f32.mrf.mxu0  ;;  %3322 = vmatpush.bf16.msra.mxu3 %v5269_v31  ;;  %v4056_v31 = vld [vmem:[%s7338_s0 + $0x3d0] sm:$0xf0] }
 0x20f   :  { %v2848_v36 = vadd.f32 %v2847_v26, %v2784_v22  ;;  %v2910_v44 = vadd.f32 %v2909_v63, %v2846_v5  ;;  %v2973_v13 = vpop.f32.mrf.mxu1  ;;  %v5260_v63 = vld [vmem:[%s7336_s1 + $0x390] sm:$0xff] }
 0x210   :  { %3259 = vmatpush.bf16.msra.mxu2 %v5260_v63 }
 0x211   :  { %v6719_v39 = vadd.f32 %v2973_v13, %v2910_v44  ;;  %3026 = vmatmul.bf16.gmra.mxu2 %v3911_v12  ;;  %3149 = vmatmul.bf16.gmra.mxu0 %v3847_v32  ;;  %v5061_v44 = vld [vmem:[%s7338_s0 + $0x38c] sm:$0xf]  ;;  %v3990_v13 = vld [vmem:[%s7338_s0 + $0x300] sm:$0xf] }
 0x212   :  { %3213 = vmatmul.bf16.gmra.mxu1 %v3851_v35  ;;  %v4054_v35 = vld [vmem:[%s7338_s0 + $0x388] sm:$0xf]  ;;  %v4059_v23 = vor.u32 %v5061_v44, %v4056_v31 }
 0x213   :  { %3090 = vmatmul.bf16.gmra.mxu3 %v3915_v57  ;;  %v5267_v31 = vld [vmem:[%s7336_s1 + $0x3c8] sm:$0xff] }
 0x214   :  { %v2786_v40 = vpop.f32.mrf.mxu2 }
 0x215   :  { %v2787_v41 = vadd.f32 %v2786_v40, %v6335_v59  ;;  %v5285_v59 = vld [vmem:[%s7336_s1 + $0x458] sm:$0xff]  ;;  %v5044_v40 = vld [vmem:[%s7338_s0 + $0x304] sm:$0xf] }
 0x216   :  { %v2850_v43 = vpop.f32.mrf.mxu3  ;;  %v2911_v47 = vpop.f32.mrf.mxu0  ;;  %3450 = vmatpush.bf16.msra.mxu1 %v5285_v59 }
 0x217   :  { %v2851_v46 = vadd.f32 %v2850_v43, %v2787_v41  ;;  %v2912_v29 = vadd.f32 %v2911_v47, %v2848_v36  ;;  %v2975_v53 = vpop.f32.mrf.mxu1  ;;  %v5070_v36 = vld [vmem:[%s7338_s0 + $0x3cc] sm:$0xf0]  ;;  %v3992_v41 = vld [vmem:[%s7338_s0 + $0x348] sm:$0xf0] }
 0x218   :  { %v3995_v3 = vor.u32 %v5044_v40, %v3992_v41 }
 0x219   :  { %v6731_v55 = vadd.f32 %v2975_v53, %v2912_v29  ;;  %v4055_v29 = vor.u32 %v5070_v36, %v4054_v35  ;;  %v3991_v53 = vor.u32 %v5053_v27, %v3990_v13 }
 0x21c   :  { %v2788_v2 = vpop.f32.mrf.mxu2 }
 0x21d   :  { %v2789_v5 = vadd.f32 %v2788_v2, %v6341_v7 }
 0x21e   :  { %v2852_v45 = vpop.f32.mrf.mxu3  ;;  %v2914_v56 = vpop.f32.mrf.mxu0 }
 0x21f   :  { %v2853_v9 = vadd.f32 %v2852_v45, %v2789_v5  ;;  %v2915_v17 = vadd.f32 %v2914_v56, %v2851_v46  ;;  %v2978_v6 = vpop.f32.mrf.mxu1 }
 0x221   :  { %v6761_v18 = vadd.f32 %v2978_v6, %v2915_v17  ;;  %3031 = vmatmul.bf16.gmra.mxu2 %v3983_v51  ;;  %3154 = vmatmul.bf16.gmra.mxu0 %v3919_v10  ;;  %v4062_v17 = vld [vmem:[%s7338_s0 + $0x390] sm:$0xf]  ;;  %v5071_v6 = vld [vmem:[%s7338_s0 + $0x3d4] sm:$0xf0] }
 0x222   :  { %3218 = vmatmul.bf16.gmra.mxu1 %v3923_v14  ;;  %v5088_v14 = vld [vmem:[%s7338_s0 + $0x45c] sm:$0xf0]  ;;  %v4063_v63 = vor.u32 %v5071_v6, %v4062_v17 }
 0x223   :  { %3095 = vmatmul.bf16.gmra.mxu3 %v3987_v28  ;;  %v4126_v28 = vld [vmem:[%s7338_s0 + $0x418] sm:$0xf] }
 0x224   :  { %v2791_v20 = vpop.f32.mrf.mxu2 }
 0x225   :  { %v2792_v21 = vadd.f32 %v2791_v20, %v6371_v37  ;;  %v5268_v37 = vld [vmem:[%s7336_s1 + $0x3d0] sm:$0xff]  ;;  %v4128_v20 = vld [vmem:[%s7338_s0 + $0x460] sm:$0xf0] }
 0x226   :  { %v2855_v22 = vpop.f32.mrf.mxu3  ;;  %v2916_v7 = vpop.f32.mrf.mxu0  ;;  %3323 = vmatpush.bf16.msra.mxu3 %v5268_v37 }
 0x227   :  { %v2856_v26 = vadd.f32 %v2855_v22, %v2792_v21  ;;  %v2917_v12 = vadd.f32 %v2916_v7, %v2853_v9  ;;  %v2980_v32 = vpop.f32.mrf.mxu1  ;;  %v5259_v9 = vld [vmem:[%s7336_s1 + $0x388] sm:$0xff]  ;;  %v5062_v21 = vld [vmem:[%s7338_s0 + $0x394] sm:$0xf]  ;;  %v4064_v22 = vld [vmem:[%s7338_s0 + $0x3d8] sm:$0xf0] }
 0x228   :  { %3260 = vmatpush.bf16.msra.mxu2 %v5259_v9  ;;  %v4067_v37 = vor.u32 %v5062_v21, %v4064_v22  ;;  %v5258_v21 = vld [vmem:[%s7336_s1 + $0x380] sm:$0xff] }
 0x229   :  { %v6767_v57 = vadd.f32 %v2980_v32, %v2917_v12  ;;  %v4127_v32 = vor.u32 %v5088_v14, %v4126_v28 }
 0x22a   :  { %3324 = vmatpush.bf16.msra.mxu3 %v5267_v31  ;;  %v5107_v31 = vld [vmem:[%s7338_s0 + $0x4f4] sm:$0xf0] }
 0x22c   :  { %v2793_v43 = vpop.f32.mrf.mxu2  ;;  %3261 = vmatpush.bf16.msra.mxu2 %v5258_v21  ;;  %v5116_v21 = vld [vmem:[%s7338_s0 + $0x544] sm:$0xf] }
 0x22d   :  { %v2794_v47 = vadd.f32 %v2793_v43, %v6380_v16  ;;  %v5284_v16 = vld [vmem:[%s7336_s1 + $0x450] sm:$0xff] }
 0x22e   :  { %v2857_v46 = vpop.f32.mrf.mxu3  ;;  %v2919_v54 = vpop.f32.mrf.mxu0  ;;  %3451 = vmatpush.bf16.msra.mxu1 %v5284_v16  ;;  %v4200_v16 = vld [vmem:[%s7338_s0 + $0x4f0] sm:$0xf0] }
 0x22f   :  { %v2858_v59 = vadd.f32 %v2857_v46, %v2794_v47  ;;  %v2920_v61 = vadd.f32 %v2919_v54, %v2856_v26  ;;  %v2983_v48 = vpop.f32.mrf.mxu1  ;;  %v5275_v54 = vld [vmem:[%s7336_s1 + $0x408] sm:$0xff] }
 0x230   :  { %3388 = vmatpush.bf16.msra.mxu0 %v5275_v54 }
 0x231   :  { %v6797_v42 = vadd.f32 %v2983_v48, %v2920_v61  ;;  %3036 = vmatmul.bf16.gmra.mxu2 %v4055_v29  ;;  %3159 = vmatmul.bf16.gmra.mxu0 %v3991_v53  ;;  %v5097_v61 = vld [vmem:[%s7338_s0 + $0x4ac] sm:$0xf]  ;;  %v4134_v48 = vld [vmem:[%s7338_s0 + $0x420] sm:$0xf] }
 0x232   :  { %3223 = vmatmul.bf16.gmra.mxu1 %v3995_v3  ;;  %v4198_v3 = vld [vmem:[%s7338_s0 + $0x4a8] sm:$0xf]  ;;  %v4203_v14 = vor.u32 %v5097_v61, %v4200_v16  ;;  %v5282_v16 = vld [vmem:[%s7336_s1 + $0x440] sm:$0xff] }
 0x233   :  { %3100 = vmatmul.bf16.gmra.mxu3 %v4059_v23 }
 0x234   :  { %v2796_v0 = vpop.f32.mrf.mxu2 }
 0x235   :  { %v2797_v1 = vadd.f32 %v2796_v0, %v6413_v15  ;;  %v5079_v15 = vld [vmem:[%s7338_s0 + $0x41c] sm:$0xf]  ;;  %v5080_v0 = vld [vmem:[%s7338_s0 + $0x424] sm:$0xf] }
 0x236   :  { %v2860_v2 = vpop.f32.mrf.mxu3  ;;  %v2921_v5 = vpop.f32.mrf.mxu0  ;;  %v4131_v36 = vor.u32 %v5079_v15, %v4128_v20 }
 0x237   :  { %v2861_v45 = vadd.f32 %v2860_v2, %v2797_v1  ;;  %v2922_v51 = vadd.f32 %v2921_v5, %v2858_v59  ;;  %v2985_v10 = vpop.f32.mrf.mxu1  ;;  %v5106_v59 = vld [vmem:[%s7338_s0 + $0x4ec] sm:$0xf0]  ;;  %v4136_v1 = vld [vmem:[%s7338_s0 + $0x468] sm:$0xf0] }
 0x238   :  { %v4139_v9 = vor.u32 %v5080_v0, %v4136_v1 }
 0x239   :  { %v6806_v56 = vadd.f32 %v2985_v10, %v2922_v51  ;;  %v4199_v51 = vor.u32 %v5106_v59, %v4198_v3  ;;  %v4135_v10 = vor.u32 %v5089_v49, %v4134_v48 }
 0x23c   :  { %v2798_v7 = vpop.f32.mrf.mxu2 }
 0x23d   :  { %v2799_v26 = vadd.f32 %v2798_v7, %v6419_v58 }
 0x23e   :  { %v2862_v12 = vpop.f32.mrf.mxu3  ;;  %v2924_v35 = vpop.f32.mrf.mxu0 }
 0x23f   :  { %v2863_v44 = vadd.f32 %v2862_v12, %v2799_v26  ;;  %v2925_v13 = vadd.f32 %v2924_v35, %v2861_v45  ;;  %v2988_v27 = vpop.f32.mrf.mxu1 }
 0x241   :  { %v6839_v40 = vadd.f32 %v2988_v27, %v2925_v13  ;;  %3041 = vmatmul.bf16.gmra.mxu2 %v4127_v32  ;;  %3164 = vmatmul.bf16.gmra.mxu0 %v4063_v63  ;;  %v5274_v13 = vld [vmem:[%s7336_s1 + $0x400] sm:$0xff]  ;;  %v4206_v27 = vld [vmem:[%s7338_s0 + $0x4b0] sm:$0xf] }
 0x242   :  { %3228 = vmatmul.bf16.gmra.mxu1 %v4067_v37  ;;  %v4270_v37 = vld [vmem:[%s7338_s0 + $0x538] sm:$0xf]  ;;  %3389 = vmatpush.bf16.msra.mxu0 %v5274_v13  ;;  %v4207_v54 = vor.u32 %v5107_v31, %v4206_v27 }
 0x243   :  { %3105 = vmatmul.bf16.gmra.mxu3 %v4131_v36 }
 0x244   :  { %v2801_v58 = vpop.f32.mrf.mxu2 }
 0x245   :  { %v2802_v41 = vadd.f32 %v2801_v58, %v6449_v60  ;;  %v5283_v60 = vld [vmem:[%s7336_s1 + $0x448] sm:$0xff]  ;;  %v4272_v58 = vld [vmem:[%s7338_s0 + $0x580] sm:$0xf0] }
 0x246   :  { %v2865_v43 = vpop.f32.mrf.mxu3  ;;  %v2926_v47 = vpop.f32.mrf.mxu0  ;;  %3452 = vmatpush.bf16.msra.mxu1 %v5283_v60 }
 0x247   :  { %v2866_v46 = vadd.f32 %v2865_v43, %v2802_v41  ;;  %v2927_v29 = vadd.f32 %v2926_v47, %v2863_v44  ;;  %v2990_v53 = vpop.f32.mrf.mxu1  ;;  %v5124_v44 = vld [vmem:[%s7338_s0 + $0x57c] sm:$0xf0]  ;;  %v5098_v41 = vld [vmem:[%s7338_s0 + $0x4b4] sm:$0xf]  ;;  %v4208_v43 = vld [vmem:[%s7338_s0 + $0x4f8] sm:$0xf0] }
 0x248   :  { %v4211_v60 = vor.u32 %v5098_v41, %v4208_v43 }
 0x249   :  { %v6845_v23 = vadd.f32 %v2990_v53, %v2927_v29  ;;  %v4271_v53 = vor.u32 %v5124_v44, %v4270_v37 }
 0x24a   :  { %3453 = vmatpush.bf16.msra.mxu1 %v5282_v16 }
 0x24c   :  { %v2803_v2 = vpop.f32.mrf.mxu2 }
 0x24d   :  { %v2804_v5 = vadd.f32 %v2803_v2, %v6458_v33  ;;  %v5266_v33 = vld [vmem:[%s7336_s1 + $0x3c0] sm:$0xff] }
 0x24e   :  { %v2867_v45 = vpop.f32.mrf.mxu3  ;;  %v2929_v28 = vpop.f32.mrf.mxu0  ;;  %3325 = vmatpush.bf16.msra.mxu3 %v5266_v33  ;;  %v4280_v33 = vld [vmem:[%s7338_s0 + $0x588] sm:$0xf0] }
 0x24f   :  { %v2868_v15 = vadd.f32 %v2867_v45, %v2804_v5  ;;  %v2930_v17 = vadd.f32 %v2929_v28, %v2866_v46  ;;  %v2993_v6 = vpop.f32.mrf.mxu1  ;;  %v4283_v37 = vor.u32 %v5116_v21, %v4280_v33 }
 0x251   :  { %v6875_v20 = vadd.f32 %v2993_v6, %v2930_v17  ;;  %3046 = vmatmul.bf16.gmra.mxu2 %v4199_v51  ;;  %3169 = vmatmul.bf16.gmra.mxu0 %v4135_v10  ;;  %v5125_v17 = vld [vmem:[%s7338_s0 + $0x584] sm:$0xf0]  ;;  %v4344_v6 = vld [vmem:[%s7338_s0 + $0x610] sm:$0xf0] }
 0x252   :  { %3233 = vmatmul.bf16.gmra.mxu1 %v4139_v9  ;;  %v5142_v9 = vld [vmem:[%s7338_s0 + $0x60c] sm:$0xf0] }
 0x253   :  { %3110 = vmatmul.bf16.gmra.mxu3 %v4203_v14  ;;  %v4342_v14 = vld [vmem:[%s7338_s0 + $0x5c8] sm:$0xf] }
 0x254   :  { %v3007_v22 = vpop.f32.mrf.mxu2 }
 0x255   :  { %v3008_v7 = vadd.f32 %v3007_v22, %v6491_v38  ;;  %v5115_v38 = vld [vmem:[%s7338_s0 + $0x53c] sm:$0xf] }
 0x256   :  { %v3071_v26 = vpop.f32.mrf.mxu3  ;;  %v2931_v12 = vpop.f32.mrf.mxu0  ;;  %v4275_v59 = vor.u32 %v5115_v38, %v4272_v58 }
 0x257   :  { %v3072_v32 = vadd.f32 %v3071_v26, %v3008_v7  ;;  %v2932_v63 = vadd.f32 %v2931_v12, %v2868_v15  ;;  %v2995_v35 = vpop.f32.mrf.mxu1  ;;  %v5133_v15 = vld [vmem:[%s7338_s0 + $0x5cc] sm:$0xf]  ;;  %v4343_v12 = vor.u32 %v5142_v9, %v4342_v14 }
 0x259   :  { %v6884_v36 = vadd.f32 %v2995_v35, %v2932_v63  ;;  %v4347_v35 = vor.u32 %v5133_v15, %v4344_v6 }
 0x25c   :  { %v3009_v47 = vpop.f32.mrf.mxu2 }
 0x25d   :  { %v3010_v46 = vadd.f32 %v3009_v47, %v6497_v52 }
 0x25e   :  { %v3073_v29 = vpop.f32.mrf.mxu3  ;;  %v3135_v3 = vpop.f32.mrf.mxu0 }
 0x25f   :  { %v3074_v61 = vadd.f32 %v3073_v29, %v3010_v46  ;;  %v3136_v48 = vadd.f32 %v3135_v3, %v3072_v32  ;;  %v3199_v49 = vpop.f32.mrf.mxu1  ;;  %v5134_v3 = vld [vmem:[%s7338_s0 + $0x5d4] sm:$0xf] }
 0x261   :  { %v6917_v0 = vadd.f32 %v3199_v49, %v3136_v48  ;;  %3051 = vmatmul.bf16.gmra.mxu2 %v4271_v53  ;;  %3174 = vmatmul.bf16.gmra.mxu0 %v4207_v54  ;;  %v4350_v53 = vld [vmem:[%s7338_s0 + $0x5d0] sm:$0xf]  ;;  %v5143_v54 = vld [vmem:[%s7338_s0 + $0x614] sm:$0xf0]  ;;  %v3640_v48 = vld [vmem:[%s7338_s0 + $0x80] sm:$0xf0] }
 0x262   :  { %3238 = vmatmul.bf16.gmra.mxu1 %v4211_v60  ;;  %v4352_v60 = vld [vmem:[%s7338_s0 + $0x618] sm:$0xf0] }
 0x263   :  { %3115 = vmatmul.bf16.gmra.mxu3 %v4275_v59  ;;  %v4964_v59 = vld [vmem:[%s7338_s0 + $0x7c] sm:$0xf0] }
 0x264   :  { %v3012_v52 = vpop.f32.mrf.mxu2 }
 0x265   :  { %v3013_v1 = vadd.f32 %v3012_v52, %v6527_v50  ;;  %v4278_v50 = vld [vmem:[%s7338_s0 + $0x540] sm:$0xf] }
 0x266   :  { %v3076_v2 = vpop.f32.mrf.mxu3  ;;  %v3137_v5 = vpop.f32.mrf.mxu0  ;;  %v4279_v32 = vor.u32 %v5125_v17, %v4278_v50 }
 0x267   :  { %v3077_v45 = vadd.f32 %v3076_v2, %v3013_v1  ;;  %v3138_v51 = vadd.f32 %v3137_v5, %v3074_v61  ;;  %v3201_v10 = vpop.f32.mrf.mxu1  ;;  %v4955_v61 = vld [vmem:[%s7338_s0 + $0x3c] sm:$0xf]  ;;  %v4351_v1 = vor.u32 %v5143_v54, %v4350_v53 }
 0x269   :  { %v6920_v28 = vadd.f32 %v3201_v10, %v3138_v51  ;;  %v3643_v51 = vor.u32 %v4955_v61, %v3640_v48 }
 0x26c   :  { %v3014_v22 = vpop.f32.mrf.mxu2 }
 0x26d   :  { %v3015_v7 = vadd.f32 %v3014_v22, %v6536_v19 }
 0x26e   :  { %v3078_v26 = vpop.f32.mrf.mxu3  ;;  %v3140_v63 = vpop.f32.mrf.mxu0 }
 0x26f   :  { %v3079_v44 = vadd.f32 %v3078_v26, %v3015_v7  ;;  %v3141_v13 = vadd.f32 %v3140_v63, %v3077_v45  ;;  %v3204_v38 = vpop.f32.mrf.mxu1  ;;  %v4355_v45 = vor.u32 %v5134_v3, %v4352_v60  ;;  %v3710_v26 = vld [vmem:[%s7338_s0 + $0xc8] sm:$0xf] }
 0x270   :  { %v4965_v63 = vld [vmem:[%s7338_s0 + $0x84] sm:$0xf0] }
 0x271   :  { %v6947_v27 = vadd.f32 %v3204_v38, %v3141_v13  ;;  %3056 = vmatmul.bf16.gmra.mxu2 %v4343_v12  ;;  %3179 = vmatmul.bf16.gmra.mxu0 %v4279_v32  ;;  %v4982_v12 = vld [vmem:[%s7338_s0 + $0x10c] sm:$0xf0]  ;;  %v4973_v32 = vld [vmem:[%s7338_s0 + $0xcc] sm:$0xf] }
 0x272   :  { %3243 = vmatmul.bf16.gmra.mxu1 %v4283_v37  ;;  %v4956_v37 = vld [vmem:[%s7338_s0 + $0x44] sm:$0xf] }
 0x273   :  { %3120 = vmatmul.bf16.gmra.mxu3 %v4347_v35  ;;  %v3712_v35 = vld [vmem:[%s7338_s0 + $0x110] sm:$0xf0] }
 0x274   :  { %v3017_v31 = vpop.f32.mrf.mxu2 }
 0x275   :  { %v3018_v58 = vadd.f32 %v3017_v31, %v6566_v30  ;;  %v3638_v30 = vld [vmem:[%s7338_s0 + $0x38] sm:$0xf] }
 0x276   :  { %v3081_v41 = vpop.f32.mrf.mxu3  ;;  %v3142_v19 = vpop.f32.mrf.mxu0  ;;  %v3639_v2 = vor.u32 %v4964_v59, %v3638_v30 }
 0x277   :  { %v3082_v43 = vadd.f32 %v3081_v41, %v3018_v58  ;;  %v3143_v47 = vadd.f32 %v3142_v19, %v3079_v44  ;;  %v3206_v46 = vpop.f32.mrf.mxu1  ;;  %v3648_v44 = vld [vmem:[%s7338_s0 + $0x88] sm:$0xf0]  ;;  %v3711_v58 = vor.u32 %v4982_v12, %v3710_v26 }
 0x279   :  { %v6950_v29 = vadd.f32 %v3206_v46, %v3143_v47  ;;  %v3651_v47 = vor.u32 %v4956_v37, %v3648_v44 }
 0x27c   :  { %v3019_v49 = vpop.f32.mrf.mxu2 }
 0x27d   :  { %v3020_v16 = vadd.f32 %v3019_v49, %v6575_v8 }
 0x27e   :  { %v3083_v52 = vpop.f32.mrf.mxu3  ;;  %v3145_v5 = vpop.f32.mrf.mxu0 }
 0x27f   :  { %v3084_v10 = vadd.f32 %v3083_v52, %v3020_v16  ;;  %v3146_v14 = vadd.f32 %v3145_v5, %v3082_v43  ;;  %v3209_v9 = vpop.f32.mrf.mxu1  ;;  %v3715_v43 = vor.u32 %v4973_v32, %v3712_v35  ;;  %v3782_v52 = vld [vmem:[%s7338_s0 + $0x158] sm:$0xf] }
 0x280   :  { %v4983_v5 = vld [vmem:[%s7338_s0 + $0x114] sm:$0xf0] }
 0x281   :  { %v6977_v15 = vadd.f32 %v3209_v9, %v3146_v14  ;;  %3184 = vmatmul.bf16.gmra.mxu0 %v4351_v1  ;;  %3262 = vmatmul.bf16.vlgmr.msra.gmra.mxu2 %v3639_v2  ;;  %v5000_v1 = vld [vmem:[%s7338_s0 + $0x19c] sm:$0xf0]  ;;  %v4991_v2 = vld [vmem:[%s7338_s0 + $0x15c] sm:$0xf] }
 0x282   :  { %3248 = vmatmul.bf16.gmra.mxu1 %v4355_v45  ;;  %v3784_v45 = vld [vmem:[%s7338_s0 + $0x1a0] sm:$0xf0] }
 0x283   :  { %3326 = vmatmul.bf16.vlgmr.msra.gmra.mxu3 %v3643_v51  ;;  %v4974_v51 = vld [vmem:[%s7338_s0 + $0xd4] sm:$0xf] }
 0x284   :  { %v3022_v50 = vpop.f32.mrf.mxu2 }
 0x285   :  { %v3023_v17 = vadd.f32 %v3022_v50, %v6605_v24  ;;  %v3646_v24 = vld [vmem:[%s7338_s0 + $0x40] sm:$0xf] }
 0x286   :  { %v3086_v6 = vpop.f32.mrf.mxu3  ;;  %v3147_v8 = vpop.f32.mrf.mxu0  ;;  %v3647_v41 = vor.u32 %v4965_v63, %v3646_v24 }
 0x287   :  { %v3087_v21 = vadd.f32 %v3086_v6, %v3023_v17  ;;  %v3148_v33 = vadd.f32 %v3147_v8, %v3084_v10  ;;  %v3211_v22 = vpop.f32.mrf.mxu1  ;;  %v3720_v10 = vld [vmem:[%s7338_s0 + $0x118] sm:$0xf0]  ;;  %v3783_v17 = vor.u32 %v5000_v1, %v3782_v52 }
 0x289   :  { %v6980_v7 = vadd.f32 %v3211_v22, %v3148_v33  ;;  %v3723_v33 = vor.u32 %v4974_v51, %v3720_v10 }
 0x28c   :  { %v3024_v13 = vpop.f32.mrf.mxu2 }
 0x28d   :  { %v3025_v38 = vadd.f32 %v3024_v13, %v6614_v25 }
 0x28e   :  { %v3088_v31 = vpop.f32.mrf.mxu3  ;;  %v3150_v19 = vpop.f32.mrf.mxu0 }
 0x28f   :  { %v3089_v46 = vadd.f32 %v3088_v31, %v3025_v38  ;;  %v3151_v53 = vadd.f32 %v3150_v19, %v3087_v21  ;;  %v3214_v54 = vpop.f32.mrf.mxu1  ;;  %v3787_v21 = vor.u32 %v4991_v2, %v3784_v45  ;;  %v3854_v31 = vld [vmem:[%s7338_s0 + $0x1e8] sm:$0xf] }
 0x290   :  { %v5001_v19 = vld [vmem:[%s7338_s0 + $0x1a4] sm:$0xf0] }
 0x291   :  { %v7007_v3 = vadd.f32 %v3214_v54, %v3151_v53  ;;  %3267 = vmatmul.bf16.gmra.mxu2 %v3711_v58  ;;  %3390 = vmatmul.bf16.vlgmr.msra.gmra.mxu0 %v3647_v41  ;;  %v5018_v58 = vld [vmem:[%s7338_s0 + $0x22c] sm:$0xf0]  ;;  %v5009_v41 = vld [vmem:[%s7338_s0 + $0x1ec] sm:$0xf] }
 0x292   :  { %3454 = vmatmul.bf16.vlgmr.msra.gmra.mxu1 %v3651_v47  ;;  %v4992_v47 = vld [vmem:[%s7338_s0 + $0x164] sm:$0xf] }
 0x293   :  { %3331 = vmatmul.bf16.gmra.mxu3 %v3715_v43  ;;  %v3856_v43 = vld [vmem:[%s7338_s0 + $0x230] sm:$0xf0] }
 0x294   :  { %v3027_v30 = vpop.f32.mrf.mxu2 }
 0x295   :  { %v3028_v59 = vadd.f32 %v3027_v30, %v6644_v4  ;;  %v3718_v4 = vld [vmem:[%s7338_s0 + $0xd0] sm:$0xf] }
 0x296   :  { %v3091_v60 = vpop.f32.mrf.mxu3  ;;  %v3152_v25 = vpop.f32.mrf.mxu0  ;;  %v3719_v6 = vor.u32 %v4983_v5, %v3718_v4 }
 0x297   :  { %v3092_v61 = vadd.f32 %v3091_v60, %v3028_v59  ;;  %v3153_v48 = vadd.f32 %v3152_v25, %v3089_v46  ;;  %v3216_v49 = vpop.f32.mrf.mxu1  ;;  %v3792_v46 = vld [vmem:[%s7338_s0 + $0x1a8] sm:$0xf0]  ;;  %v3855_v59 = vor.u32 %v5018_v58, %v3854_v31 }
 0x299   :  { %v7010_v16 = vadd.f32 %v3216_v49, %v3153_v48  ;;  %v3795_v48 = vor.u32 %v4992_v47, %v3792_v46 }
 0x29c   :  { %v3029_v14 = vpop.f32.mrf.mxu2 }
 0x29d   :  { %v3030_v9 = vadd.f32 %v3029_v14, %v6653_v34 }
 0x29e   :  { %v3093_v50 = vpop.f32.mrf.mxu3  ;;  %v3155_v8 = vpop.f32.mrf.mxu0 }
 0x29f   :  { %v3094_v22 = vadd.f32 %v3093_v50, %v3030_v9  ;;  %v3156_v26 = vadd.f32 %v3155_v8, %v3092_v61  ;;  %v3219_v12 = vpop.f32.mrf.mxu1  ;;  %v3859_v61 = vor.u32 %v5009_v41, %v3856_v43  ;;  %v3926_v50 = vld [vmem:[%s7338_s0 + $0x278] sm:$0xf] }
 0x2a0   :  { %v5019_v8 = vld [vmem:[%s7338_s0 + $0x234] sm:$0xf0] }
 0x2a1   :  { %v7037_v32 = vadd.f32 %v3219_v12, %v3156_v26  ;;  %3272 = vmatmul.bf16.gmra.mxu2 %v3783_v17  ;;  %3395 = vmatmul.bf16.gmra.mxu0 %v3719_v6  ;;  %v5036_v17 = vld [vmem:[%s7338_s0 + $0x2bc] sm:$0xf0]  ;;  %v5027_v6 = vld [vmem:[%s7338_s0 + $0x27c] sm:$0xf] }
 0x2a2   :  { %3459 = vmatmul.bf16.gmra.mxu1 %v3723_v33  ;;  %v5010_v33 = vld [vmem:[%s7338_s0 + $0x1f4] sm:$0xf] }
 0x2a3   :  { %3336 = vmatmul.bf16.gmra.mxu3 %v3787_v21  ;;  %v3928_v21 = vld [vmem:[%s7338_s0 + $0x2c0] sm:$0xf0] }
 0x2a4   :  { %v3032_v24 = vpop.f32.mrf.mxu2 }
 0x2a5   :  { %v3033_v63 = vadd.f32 %v3032_v24, %v6683_v62  ;;  %v3790_v62 = vld [vmem:[%s7338_s0 + $0x160] sm:$0xf] }
 0x2a6   :  { %v3096_v35 = vpop.f32.mrf.mxu3  ;;  %v3157_v34 = vpop.f32.mrf.mxu0  ;;  %v3791_v60 = vor.u32 %v5001_v19, %v3790_v62 }
 0x2a7   :  { %v3097_v37 = vadd.f32 %v3096_v35, %v3033_v63  ;;  %v3158_v44 = vadd.f32 %v3157_v34, %v3094_v22  ;;  %v3221_v13 = vpop.f32.mrf.mxu1  ;;  %v3864_v22 = vld [vmem:[%s7338_s0 + $0x238] sm:$0xf0]  ;;  %v3927_v63 = vor.u32 %v5036_v17, %v3926_v50 }
 0x2a9   :  { %v7040_v38 = vadd.f32 %v3221_v13, %v3158_v44  ;;  %v3867_v44 = vor.u32 %v5010_v33, %v3864_v22 }
 0x2ac   :  { %v3034_v53 = vpop.f32.mrf.mxu2 }
 0x2ad   :  { %v3035_v54 = vadd.f32 %v3034_v53, %v6692_v11 }
 0x2ae   :  { %v3098_v30 = vpop.f32.mrf.mxu3  ;;  %v3160_v25 = vpop.f32.mrf.mxu0 }
 0x2af   :  { %v3099_v49 = vadd.f32 %v3098_v30, %v3035_v54  ;;  %v3161_v52 = vadd.f32 %v3160_v25, %v3097_v37  ;;  %v3224_v1 = vpop.f32.mrf.mxu1  ;;  %v3931_v37 = vor.u32 %v5027_v6, %v3928_v21  ;;  %v3998_v30 = vld [vmem:[%s7338_s0 + $0x308] sm:$0xf] }
 0x2b0   :  { %v5037_v25 = vld [vmem:[%s7338_s0 + $0x2c4] sm:$0xf0] }
 0x2b1   :  { %v7067_v2 = vadd.f32 %v3224_v1, %v3161_v52  ;;  %3277 = vmatmul.bf16.gmra.mxu2 %v3855_v59  ;;  %3400 = vmatmul.bf16.gmra.mxu0 %v3791_v60  ;;  %v5054_v59 = vld [vmem:[%s7338_s0 + $0x34c] sm:$0xf0]  ;;  %v5045_v60 = vld [vmem:[%s7338_s0 + $0x30c] sm:$0xf] }
 0x2b2   :  { %3464 = vmatmul.bf16.gmra.mxu1 %v3795_v48  ;;  %v5028_v48 = vld [vmem:[%s7338_s0 + $0x284] sm:$0xf] }
 0x2b3   :  { %3341 = vmatmul.bf16.gmra.mxu3 %v3859_v61  ;;  %v4000_v61 = vld [vmem:[%s7338_s0 + $0x350] sm:$0xf0] }
 0x2b4   :  { %v3037_v4 = vpop.f32.mrf.mxu2 }
 0x2b5   :  { %v3038_v5 = vadd.f32 %v3037_v4, %v6719_v39  ;;  %v3862_v39 = vld [vmem:[%s7338_s0 + $0x1f0] sm:$0xf] }
 0x2b6   :  { %v3101_v45 = vpop.f32.mrf.mxu3  ;;  %v3162_v11 = vpop.f32.mrf.mxu0  ;;  %v3863_v35 = vor.u32 %v5019_v8, %v3862_v39 }
 0x2b7   :  { %v3102_v51 = vadd.f32 %v3101_v45, %v3038_v5  ;;  %v3163_v10 = vadd.f32 %v3162_v11, %v3099_v49  ;;  %v3226_v14 = vpop.f32.mrf.mxu1  ;;  %v3936_v49 = vld [vmem:[%s7338_s0 + $0x2c8] sm:$0xf0]  ;;  %v3999_v5 = vor.u32 %v5054_v59, %v3998_v30 }
 0x2b9   :  { %v7070_v9 = vadd.f32 %v3226_v14, %v3163_v10  ;;  %v3939_v10 = vor.u32 %v5028_v48, %v3936_v49 }
 0x2bc   :  { %v3039_v26 = vpop.f32.mrf.mxu2 }
 0x2bd   :  { %v3040_v12 = vadd.f32 %v3039_v26, %v6731_v55 }
 0x2be   :  { %v3103_v24 = vpop.f32.mrf.mxu3  ;;  %v3165_v34 = vpop.f32.mrf.mxu0 }
 0x2bf   :  { %v3104_v13 = vadd.f32 %v3103_v24, %v3040_v12  ;;  %v3166_v31 = vadd.f32 %v3165_v34, %v3102_v51  ;;  %v3229_v58 = vpop.f32.mrf.mxu1  ;;  %v4003_v51 = vor.u32 %v5045_v60, %v4000_v61  ;;  %v4070_v24 = vld [vmem:[%s7338_s0 + $0x398] sm:$0xf] }
 0x2c0   :  { %v5055_v34 = vld [vmem:[%s7338_s0 + $0x354] sm:$0xf0] }
 0x2c1   :  { %v7097_v41 = vadd.f32 %v3229_v58, %v3166_v31  ;;  %3282 = vmatmul.bf16.gmra.mxu2 %v3927_v63  ;;  %3405 = vmatmul.bf16.gmra.mxu0 %v3863_v35  ;;  %v5072_v63 = vld [vmem:[%s7338_s0 + $0x3dc] sm:$0xf0]  ;;  %v5063_v35 = vld [vmem:[%s7338_s0 + $0x39c] sm:$0xf] }
 0x2c2   :  { %3469 = vmatmul.bf16.gmra.mxu1 %v3867_v44  ;;  %v5046_v44 = vld [vmem:[%s7338_s0 + $0x314] sm:$0xf] }
 0x2c3   :  { %3346 = vmatmul.bf16.gmra.mxu3 %v3931_v37  ;;  %v4072_v37 = vld [vmem:[%s7338_s0 + $0x3e0] sm:$0xf0] }
 0x2c4   :  { %v3042_v62 = vpop.f32.mrf.mxu2 }
 0x2c5   :  { %v3043_v19 = vadd.f32 %v3042_v62, %v6761_v18  ;;  %v3934_v18 = vld [vmem:[%s7338_s0 + $0x280] sm:$0xf] }
 0x2c6   :  { %v3106_v43 = vpop.f32.mrf.mxu3  ;;  %v3167_v55 = vpop.f32.mrf.mxu0  ;;  %v3935_v45 = vor.u32 %v5037_v25, %v3934_v18 }
 0x2c7   :  { %v3107_v47 = vadd.f32 %v3106_v43, %v3043_v19  ;;  %v3168_v46 = vadd.f32 %v3167_v55, %v3104_v13  ;;  %v3231_v53 = vpop.f32.mrf.mxu1  ;;  %v4008_v13 = vld [vmem:[%s7338_s0 + $0x358] sm:$0xf0]  ;;  %v4071_v19 = vor.u32 %v5072_v63, %v4070_v24 }
 0x2c9   :  { %v7100_v54 = vadd.f32 %v3231_v53, %v3168_v46  ;;  %v4011_v46 = vor.u32 %v5046_v44, %v4008_v13 }
 0x2cc   :  { %v3044_v52 = vpop.f32.mrf.mxu2 }
 0x2cd   :  { %v3045_v1 = vadd.f32 %v3044_v52, %v6767_v57 }
 0x2ce   :  { %v3108_v4 = vpop.f32.mrf.mxu3  ;;  %v3170_v11 = vpop.f32.mrf.mxu0 }
 0x2cf   :  { %v3109_v14 = vadd.f32 %v3108_v4, %v3045_v1  ;;  %v3171_v50 = vadd.f32 %v3170_v11, %v3107_v47  ;;  %v3234_v17 = vpop.f32.mrf.mxu1  ;;  %v4075_v47 = vor.u32 %v5063_v35, %v4072_v37  ;;  %v4142_v4 = vld [vmem:[%s7338_s0 + $0x428] sm:$0xf] }
 0x2d0   :  { %v5073_v11 = vld [vmem:[%s7338_s0 + $0x3e4] sm:$0xf0] }
 0x2d1   :  { %v7127_v6 = vadd.f32 %v3234_v17, %v3171_v50  ;;  %3287 = vmatmul.bf16.gmra.mxu2 %v3999_v5  ;;  %3410 = vmatmul.bf16.gmra.mxu0 %v3935_v45  ;;  %v5090_v5 = vld [vmem:[%s7338_s0 + $0x46c] sm:$0xf0]  ;;  %v5081_v45 = vld [vmem:[%s7338_s0 + $0x42c] sm:$0xf] }
 0x2d2   :  { %3474 = vmatmul.bf16.gmra.mxu1 %v3939_v10  ;;  %v5064_v10 = vld [vmem:[%s7338_s0 + $0x3a4] sm:$0xf] }
 0x2d3   :  { %3351 = vmatmul.bf16.gmra.mxu3 %v4003_v51  ;;  %v4144_v51 = vld [vmem:[%s7338_s0 + $0x470] sm:$0xf0] }
 0x2d4   :  { %v3047_v39 = vpop.f32.mrf.mxu2 }
 0x2d5   :  { %v3048_v8 = vadd.f32 %v3047_v39, %v6797_v42  ;;  %v4006_v42 = vld [vmem:[%s7338_s0 + $0x310] sm:$0xf] }
 0x2d6   :  { %v3111_v21 = vpop.f32.mrf.mxu3  ;;  %v3172_v57 = vpop.f32.mrf.mxu0  ;;  %v4007_v43 = vor.u32 %v5055_v34, %v4006_v42 }
 0x2d7   :  { %v3112_v33 = vadd.f32 %v3111_v21, %v3048_v8  ;;  %v3173_v22 = vadd.f32 %v3172_v57, %v3109_v14  ;;  %v3236_v26 = vpop.f32.mrf.mxu1  ;;  %v4080_v14 = vld [vmem:[%s7338_s0 + $0x3e8] sm:$0xf0]  ;;  %v4143_v8 = vor.u32 %v5090_v5, %v4142_v4 }
 0x2d9   :  { %v7130_v12 = vadd.f32 %v3236_v26, %v3173_v22  ;;  %v4083_v22 = vor.u32 %v5064_v10, %v4080_v14 }
 0x2dc   :  { %v3049_v31 = vpop.f32.mrf.mxu2 }
 0x2dd   :  { %v3050_v58 = vadd.f32 %v3049_v31, %v6806_v56 }
 0x2de   :  { %v3113_v62 = vpop.f32.mrf.mxu3  ;;  %v3175_v55 = vpop.f32.mrf.mxu0 }
 0x2df   :  { %v3114_v53 = vadd.f32 %v3113_v62, %v3050_v58  ;;  %v3176_v30 = vadd.f32 %v3175_v55, %v3112_v33  ;;  %v3239_v59 = vpop.f32.mrf.mxu1  ;;  %v4147_v33 = vor.u32 %v5081_v45, %v4144_v51  ;;  %v4214_v62 = vld [vmem:[%s7338_s0 + $0x4b8] sm:$0xf] }
 0x2e0   :  { %v5091_v55 = vld [vmem:[%s7338_s0 + $0x474] sm:$0xf0] }
 0x2e1   :  { %v7157_v60 = vadd.f32 %v3239_v59, %v3176_v30  ;;  %3292 = vmatmul.bf16.gmra.mxu2 %v4071_v19  ;;  %3415 = vmatmul.bf16.gmra.mxu0 %v4007_v43  ;;  %v5108_v19 = vld [vmem:[%s7338_s0 + $0x4fc] sm:$0xf0]  ;;  %v5099_v43 = vld [vmem:[%s7338_s0 + $0x4bc] sm:$0xf] }
 0x2e2   :  { %3479 = vmatmul.bf16.gmra.mxu1 %v4011_v46  ;;  %v5082_v46 = vld [vmem:[%s7338_s0 + $0x434] sm:$0xf] }
 0x2e3   :  { %3356 = vmatmul.bf16.gmra.mxu3 %v4075_v47  ;;  %v4216_v47 = vld [vmem:[%s7338_s0 + $0x500] sm:$0xf0] }
 0x2e4   :  { %v3052_v18 = vpop.f32.mrf.mxu2 }
 0x2e5   :  { %v3053_v25 = vadd.f32 %v3052_v18, %v6839_v40  ;;  %v4078_v40 = vld [vmem:[%s7338_s0 + $0x3a0] sm:$0xf] }
 0x2e6   :  { %v3116_v61 = vpop.f32.mrf.mxu3  ;;  %v3177_v56 = vpop.f32.mrf.mxu0  ;;  %v4079_v21 = vor.u32 %v5073_v11, %v4078_v40 }
 0x2e7   :  { %v3117_v48 = vadd.f32 %v3116_v61, %v3053_v25  ;;  %v3178_v49 = vadd.f32 %v3177_v56, %v3114_v53  ;;  %v3241_v52 = vpop.f32.mrf.mxu1  ;;  %v4152_v53 = vld [vmem:[%s7338_s0 + $0x478] sm:$0xf0]  ;;  %v4215_v25 = vor.u32 %v5108_v19, %v4214_v62 }
 0x2e9   :  { %v7160_v1 = vadd.f32 %v3241_v52, %v3178_v49  ;;  %v4155_v49 = vor.u32 %v5082_v46, %v4152_v53 }
 0x2ec   :  { %v3054_v50 = vpop.f32.mrf.mxu2 }
 0x2ed   :  { %v3055_v17 = vadd.f32 %v3054_v50, %v6845_v23  ;;  %v4286_v50 = vld [vmem:[%s7338_s0 + $0x548] sm:$0xf] }
 0x2ee   :  { %v3118_v39 = vpop.f32.mrf.mxu3  ;;  %v3180_v57 = vpop.f32.mrf.mxu0 }
 0x2ef   :  { %v3119_v26 = vadd.f32 %v3118_v39, %v3055_v17  ;;  %v3181_v24 = vadd.f32 %v3180_v57, %v3117_v48  ;;  %v3244_v63 = vpop.f32.mrf.mxu1  ;;  %v4219_v48 = vor.u32 %v5099_v43, %v4216_v47  ;;  %v5126_v17 = vld [vmem:[%s7338_s0 + $0x58c] sm:$0xf0]  ;;  %v5117_v39 = vld [vmem:[%s7338_s0 + $0x54c] sm:$0xf]  ;;  %v4288_v57 = vld [vmem:[%s7338_s0 + $0x590] sm:$0xf0] }
 0x2f1   :  { %v7187_v35 = vadd.f32 %v3244_v63, %v3181_v24  ;;  %3297 = vmatmul.bf16.gmra.mxu2 %v4143_v8  ;;  %3420 = vmatmul.bf16.gmra.mxu0 %v4079_v21  ;;  %v4222_v8 = vld [vmem:[%s7338_s0 + $0x4c0] sm:$0xf]  ;;  %v5109_v21 = vld [vmem:[%s7338_s0 + $0x504] sm:$0xf0] }
 0x2f2   :  { %3484 = vmatmul.bf16.gmra.mxu1 %v4083_v22  ;;  %v4224_v22 = vld [vmem:[%s7338_s0 + $0x508] sm:$0xf0] }
 0x2f3   :  { %3361 = vmatmul.bf16.gmra.mxu3 %v4147_v33  ;;  %v5100_v33 = vld [vmem:[%s7338_s0 + $0x4c4] sm:$0xf] }
 0x2f4   :  { %v3057_v42 = vpop.f32.mrf.mxu2 }
 0x2f5   :  { %v3058_v34 = vadd.f32 %v3057_v42, %v6875_v20  ;;  %v4150_v20 = vld [vmem:[%s7338_s0 + $0x430] sm:$0xf]  ;;  %v4287_v42 = vor.u32 %v5126_v17, %v4286_v50 }
 0x2f6   :  { %v3121_v37 = vpop.f32.mrf.mxu3  ;;  %v3182_v23 = vpop.f32.mrf.mxu0  ;;  %v4151_v61 = vor.u32 %v5091_v55, %v4150_v20 }
 0x2f7   :  { %v3122_v44 = vadd.f32 %v3121_v37, %v3058_v34  ;;  %v3183_v13 = vadd.f32 %v3182_v23, %v3119_v26  ;;  %v3246_v31 = vpop.f32.mrf.mxu1  ;;  %v4223_v34 = vor.u32 %v5109_v21, %v4222_v8  ;;  %v4291_v23 = vor.u32 %v5117_v39, %v4288_v57 }
 0x2f9   :  { %v7190_v58 = vadd.f32 %v3246_v31, %v3183_v13 }
 0x2fc   :  { %v3059_v30 = vpop.f32.mrf.mxu2 }
 0x2fd   :  { %v3060_v59 = vadd.f32 %v3059_v30, %v6884_v36 }
 0x2fe   :  { %v3123_v18 = vpop.f32.mrf.mxu3  ;;  %v3185_v56 = vpop.f32.mrf.mxu0 }
 0x2ff   :  { %v3124_v52 = vadd.f32 %v3123_v18, %v3060_v59  ;;  %v3186_v4 = vadd.f32 %v3185_v56, %v3122_v44  ;;  %v3249_v5 = vpop.f32.mrf.mxu1  ;;  %v4227_v44 = vor.u32 %v5100_v33, %v4224_v22  ;;  %v4358_v59 = vld [vmem:[%s7338_s0 + $0x5d8] sm:$0xf]  ;;  %v5135_v18 = vld [vmem:[%s7338_s0 + $0x5dc] sm:$0xf] }
 0x300   :  { %v5127_v56 = vld [vmem:[%s7338_s0 + $0x594] sm:$0xf0] }
 0x301   :  { %v7217_v45 = vadd.f32 %v3249_v5, %v3186_v4  ;;  %3302 = vmatmul.bf16.gmra.mxu2 %v4215_v25  ;;  %3425 = vmatmul.bf16.gmra.mxu0 %v4151_v61  ;;  %v4360_v25 = vld [vmem:[%s7338_s0 + $0x620] sm:$0xf0]  ;;  %v4294_v61 = vld [vmem:[%s7338_s0 + $0x550] sm:$0xf]  ;;  %v4296_v4 = vld [vmem:[%s7338_s0 + $0x598] sm:$0xf0] }
 0x302   :  { %3489 = vmatmul.bf16.gmra.mxu1 %v4155_v49  ;;  %v4363_v17 = vor.u32 %v5135_v18, %v4360_v25 }
 0x303   :  { %3366 = vmatmul.bf16.gmra.mxu3 %v4219_v48 }
 0x304   :  { %v3263_v40 = vpop.f32.mrf.mxu2 }
 0x305   :  { %v3264_v24 = vadd.f32 %v3263_v40, %v6917_v0 }
 0x306   :  { %v3327_v11 = vpop.f32.mrf.mxu3  ;;  %v3187_v51 = vpop.f32.mrf.mxu0 }
 0x307   :  { %v3188_v10 = vadd.f32 %v3187_v51, %v3124_v52  ;;  %v3251_v36 = vpop.f32.mrf.mxu1  ;;  %v3328_v31 = vadd.f32 %v3327_v11, %v3264_v24  ;;  %v5118_v52 = vld [vmem:[%s7338_s0 + $0x554] sm:$0xf] }
 0x308   :  { %v4299_v39 = vor.u32 %v5118_v52, %v4296_v4 }
 0x309   :  { %v7219_v14 = vadd.f32 %v3251_v36, %v3188_v10  ;;  %v4295_v36 = vor.u32 %v5127_v56, %v4294_v61 }
 0x30c   :  { %v3265_v26 = vpop.f32.mrf.mxu2 }
 0x30d   :  { %v3266_v62 = vadd.f32 %v3265_v26, %v6920_v28  ;;  %v5144_v28 = vld [vmem:[%s7338_s0 + $0x61c] sm:$0xf0] }
 0x30e   :  { %v3329_v63 = vpop.f32.mrf.mxu3  ;;  %v3391_v37 = vpop.f32.mrf.mxu0  ;;  %v4359_v10 = vor.u32 %v5144_v28, %v4358_v59 }
 0x30f   :  { %v3455_v13 = vpop.f32.mrf.mxu1  ;;  %v3392_v19 = vadd.f32 %v3391_v37, %v3328_v31  ;;  %v3330_v20 = vadd.f32 %v3329_v63, %v3266_v62  ;;  %v5136_v31 = vld [vmem:[%s7338_s0 + $0x5e4] sm:$0xf]  ;;  %v4368_v62 = vld [vmem:[%s7338_s0 + $0x628] sm:$0xf0] }
 0x311   :  { %3307 = vmatmul.bf16.gmra.mxu2 %v4287_v42  ;;  %3430 = vmatmul.bf16.gmra.mxu0 %v4223_v34  ;;  %v3456_v0 = vadd.f32 %v3455_v13, %v3392_v19 }
 0x312   :  { %3494 = vmatmul.bf16.gmra.mxu1 %v4227_v44 }
 0x313   :  { %3371 = vmatmul.bf16.gmra.mxu3 %v4291_v23  ;;  %v3510_v48 = vmax.f32 %v3456_v0, 0.0  ;;  %v4366_v23 = vld [vmem:[%s7338_s0 + $0x5e0] sm:$0xf] }
 0x314   :  { %v3268_v43 = vpop.f32.mrf.mxu2 }
 0x315   :  { %v3269_v40 = vadd.f32 %v3268_v43, %v6947_v27 }
 0x316   :  { %v3332_v55 = vpop.f32.mrf.mxu3  ;;  %v3393_v47 = vpop.f32.mrf.mxu0 }
 0x317   :  { %v3394_v46 = vadd.f32 %v3393_v47, %v3330_v20  ;;  %v3457_v53 = vpop.f32.mrf.mxu1  ;;  %v3333_v21 = vadd.f32 %v3332_v55, %v3269_v40 }
 0x319   :  { %v3458_v30 = vadd.f32 %v3457_v53, %v3394_v46  ;;  %v4371_v46 = vor.u32 %v5136_v31, %v4368_v62 }
 0x31b   :  { %v3511_v49 = vmax.f32 %v3458_v30, 0.0 }
 0x31c   :  { %v3270_v5 = vpop.f32.mrf.mxu2 }
 0x31d   :  { %v5293_v11 = vpack.c.bf16 %v3511_v49, %v3510_v48  ;;  %v3271_v57 = vadd.f32 %v3270_v5, %v6950_v29  ;;  %v5145_v29 = vld [vmem:[%s7338_s0 + $0x624] sm:$0xf0] }
 0x31e   :  { %v3334_v51 = vpop.f32.mrf.mxu3  ;;  %v3396_v50 = vpop.f32.mrf.mxu0  ;;  %v4367_v47 = vor.u32 %v5145_v29, %v4366_v23 }
 0x31f   :  { %5294 = vst [vmem:[%s7339_s3] sm:$0xff] %v5293_v11   ;;  %v3460_v8 = vpop.f32.mrf.mxu1  ;;  %v3397_v27 = vadd.f32 %v3396_v50, %v3333_v21  ;;  %v3335_v22 = vadd.f32 %v3334_v51, %v3271_v57 }
 0x321   :  { %3312 = vmatmul.bf16.gmra.mxu2 %v4359_v10  ;;  %3435 = vmatmul.bf16.gmra.mxu0 %v4295_v36  ;;  %v3461_v63 = vadd.f32 %v3460_v8, %v3397_v27 }
 0x322   :  { %3499 = vmatmul.bf16.gmra.mxu1 %v4299_v39 }
 0x323   :  { %3376 = vmatmul.bf16.gmra.mxu3 %v4363_v17  ;;  %v3512_v44 = vmax.f32 %v3461_v63, 0.0 }
 0x324   :  { %v3273_v33 = vpop.f32.mrf.mxu2 }
 0x325   :  { %v3274_v43 = vadd.f32 %v3273_v33, %v6977_v15 }
 0x326   :  { %v3337_v26 = vpop.f32.mrf.mxu3  ;;  %v3398_v24 = vpop.f32.mrf.mxu0 }
 0x327   :  { %v3399_v42 = vadd.f32 %v3398_v24, %v3335_v22  ;;  %v3462_v34 = vpop.f32.mrf.mxu1  ;;  %v3338_v30 = vadd.f32 %v3337_v26, %v3274_v43 }
 0x329   :  { %v3463_v37 = vadd.f32 %v3462_v34, %v3399_v42 }
 0x32b   :  { %v3513_v13 = vmax.f32 %v3463_v37, 0.0 }
 0x32c   :  { %v3275_v19 = vpop.f32.mrf.mxu2 }
 0x32d   :  { %v5298_v20 = vpack.c.bf16 %v3513_v13, %v3512_v44  ;;  %v3276_v59 = vadd.f32 %v3275_v19, %v6980_v7 }
 0x32e   :  { %v3339_v55 = vpop.f32.mrf.mxu3  ;;  %v3401_v0 = vpop.f32.mrf.mxu0 }
 0x32f   :  { %5345 = vst [vmem:[%s7339_s3 + $0x8] sm:$0xff] %v5298_v20   ;;  %v3465_v53 = vpop.f32.mrf.mxu1  ;;  %v3402_v28 = vadd.f32 %v3401_v0, %v3338_v30  ;;  %v3340_v25 = vadd.f32 %v3339_v55, %v3276_v59 }
 0x331   :  { %3440 = vmatmul.bf16.gmra.mxu0 %v4367_v47  ;;  %v3466_v56 = vadd.f32 %v3465_v53, %v3402_v28 }
 0x332   :  { %3504 = vmatmul.bf16.gmra.mxu1 %v4371_v46 }
 0x333   :  { %v3514_v4 = vmax.f32 %v3466_v56, 0.0 }
 0x334   :  { %v3278_v18 = vpop.f32.mrf.mxu2 }
 0x335   :  { %v3279_v11 = vadd.f32 %v3278_v18, %v7007_v3 }
 0x336   :  { %v3342_v61 = vpop.f32.mrf.mxu3  ;;  %v3403_v15 = vpop.f32.mrf.mxu0 }
 0x337   :  { %v3404_v48 = vadd.f32 %v3403_v15, %v3340_v25  ;;  %v3467_v49 = vpop.f32.mrf.mxu1  ;;  %v3343_v50 = vadd.f32 %v3342_v61, %v3279_v11 }
 0x339   :  { %v3468_v52 = vadd.f32 %v3467_v49, %v3404_v48 }
 0x33b   :  { %v3515_v5 = vmax.f32 %v3468_v52, 0.0 }
 0x33c   :  { %v3280_v40 = vpop.f32.mrf.mxu2 }
 0x33d   :  { %v5303_v51 = vpack.c.bf16 %v3515_v5, %v3514_v4  ;;  %v3281_v17 = vadd.f32 %v3280_v40, %v7010_v16 }
 0x33e   :  { %v3344_v10 = vpop.f32.mrf.mxu3  ;;  %v3406_v36 = vpop.f32.mrf.mxu0 }
 0x33f   :  { %5346 = vst [vmem:[%s7339_s3 + $0x10] sm:$0xff] %v5303_v51   ;;  %v3470_v7 = vpop.f32.mrf.mxu1  ;;  %v3407_v39 = vadd.f32 %v3406_v36, %v3343_v50  ;;  %v3345_v21 = vadd.f32 %v3344_v10, %v3281_v17 }
 0x341   :  { %v3471_v33 = vadd.f32 %v3470_v7, %v3407_v39 }
 0x343   :  { %v3516_v24 = vmax.f32 %v3471_v33, 0.0 }
 0x344   :  { %v3283_v8 = vpop.f32.mrf.mxu2 }
 0x345   :  { %v3284_v34 = vadd.f32 %v3283_v8, %v7037_v32 }
 0x346   :  { %v3347_v57 = vpop.f32.mrf.mxu3  ;;  %v3408_v27 = vpop.f32.mrf.mxu0 }
 0x347   :  { %v3409_v22 = vadd.f32 %v3408_v27, %v3345_v21  ;;  %v3472_v26 = vpop.f32.mrf.mxu1  ;;  %v3348_v44 = vadd.f32 %v3347_v57, %v3284_v34 }
 0x349   :  { %v3473_v3 = vadd.f32 %v3472_v26, %v3409_v22 }
 0x34b   :  { %v3517_v63 = vmax.f32 %v3473_v3, 0.0 }
 0x34c   :  { %v3285_v42 = vpop.f32.mrf.mxu2 }
 0x34d   :  { %v5308_v37 = vpack.c.bf16 %v3517_v63, %v3516_v24  ;;  %v3286_v13 = vadd.f32 %v3285_v42, %v7040_v38 }
 0x34e   :  { %v3349_v23 = vpop.f32.mrf.mxu3  ;;  %v3411_v29 = vpop.f32.mrf.mxu0 }
 0x34f   :  { %5347 = vst [vmem:[%s7339_s3 + $0x18] sm:$0xff] %v5308_v37   ;;  %v3475_v16 = vpop.f32.mrf.mxu1  ;;  %v3412_v31 = vadd.f32 %v3411_v29, %v3348_v44  ;;  %v3350_v19 = vadd.f32 %v3349_v23, %v3286_v13 }
 0x351   :  { %v3476_v55 = vadd.f32 %v3475_v16, %v3412_v31 }
 0x353   :  { %v3518_v46 = vmax.f32 %v3476_v55, 0.0 }
 0x354   :  { %v3288_v62 = vpop.f32.mrf.mxu2 }
 0x355   :  { %v3289_v59 = vadd.f32 %v3288_v62, %v7067_v2 }
 0x356   :  { %v3352_v43 = vpop.f32.mrf.mxu3  ;;  %v3413_v20 = vpop.f32.mrf.mxu0 }
 0x357   :  { %v3414_v47 = vadd.f32 %v3413_v20, %v3350_v19  ;;  %v3477_v0 = vpop.f32.mrf.mxu1  ;;  %v3353_v61 = vadd.f32 %v3352_v43, %v3289_v59 }
 0x359   :  { %v3478_v32 = vadd.f32 %v3477_v0, %v3414_v47 }
 0x35b   :  { %v3519_v53 = vmax.f32 %v3478_v32, 0.0 }
 0x35c   :  { %v3290_v30 = vpop.f32.mrf.mxu2 }
 0x35d   :  { %v5313_v28 = vpack.c.bf16 %v3519_v53, %v3518_v46  ;;  %v3291_v15 = vadd.f32 %v3290_v30, %v7070_v9 }
 0x35e   :  { %v3354_v18 = vpop.f32.mrf.mxu3  ;;  %v3416_v25 = vpop.f32.mrf.mxu0 }
 0x35f   :  { %5348 = vst [vmem:[%s7339_s3 + $0x20] sm:$0xff] %v5313_v28   ;;  %v3480_v38 = vpop.f32.mrf.mxu1  ;;  %v3417_v56 = vadd.f32 %v3416_v25, %v3353_v61  ;;  %v3355_v49 = vadd.f32 %v3354_v18, %v3291_v15 }
 0x361   :  { %v3481_v5 = vadd.f32 %v3480_v38, %v3417_v56 }
 0x363   :  { %v3520_v51 = vmax.f32 %v3481_v5, 0.0 }
 0x364   :  { %v3293_v48 = vpop.f32.mrf.mxu2 }
 0x365   :  { %v3294_v7 = vadd.f32 %v3293_v48, %v7097_v41 }
 0x366   :  { %v3357_v52 = vpop.f32.mrf.mxu3  ;;  %v3418_v4 = vpop.f32.mrf.mxu0 }
 0x367   :  { %v3419_v40 = vadd.f32 %v3418_v4, %v3355_v49  ;;  %v3482_v11 = vpop.f32.mrf.mxu1  ;;  %v3358_v8 = vadd.f32 %v3357_v52, %v3294_v7 }
 0x369   :  { %v3483_v2 = vadd.f32 %v3482_v11, %v3419_v40 }
 0x36b   :  { %v3521_v10 = vmax.f32 %v3483_v2, 0.0 }
 0x36c   :  { %v3295_v36 = vpop.f32.mrf.mxu2 }
 0x36d   :  { %v5318_v50 = vpack.c.bf16 %v3521_v10, %v3520_v51  ;;  %v3296_v21 = vadd.f32 %v3295_v36, %v7100_v54 }
 0x36e   :  { %v3359_v17 = vpop.f32.mrf.mxu3  ;;  %v3421_v39 = vpop.f32.mrf.mxu0 }
 0x36f   :  { %5349 = vst [vmem:[%s7339_s3 + $0x28] sm:$0xff] %v5318_v50   ;;  %v3485_v9 = vpop.f32.mrf.mxu1  ;;  %v3422_v57 = vadd.f32 %v3421_v39, %v3358_v8  ;;  %v3360_v33 = vadd.f32 %v3359_v17, %v3296_v21 }
 0x371   :  { %v3486_v3 = vadd.f32 %v3485_v9, %v3422_v57 }
 0x373   :  { %v3522_v42 = vmax.f32 %v3486_v3, 0.0 }
 0x374   :  { %v3298_v27 = vpop.f32.mrf.mxu2 }
 0x375   :  { %v3299_v23 = vadd.f32 %v3298_v27, %v7127_v6 }
 0x376   :  { %v3362_v22 = vpop.f32.mrf.mxu3  ;;  %v3423_v26 = vpop.f32.mrf.mxu0 }
 0x377   :  { %v3424_v24 = vadd.f32 %v3423_v26, %v3360_v33  ;;  %v3487_v63 = vpop.f32.mrf.mxu1  ;;  %v3363_v13 = vadd.f32 %v3362_v22, %v3299_v23 }
 0x379   :  { %v3488_v41 = vadd.f32 %v3487_v63, %v3424_v24 }
 0x37b   :  { %v3523_v34 = vmax.f32 %v3488_v41, 0.0 }
 0x37c   :  { %v3300_v37 = vpop.f32.mrf.mxu2 }
 0x37d   :  { %v5323_v29 = vpack.c.bf16 %v3523_v34, %v3522_v42  ;;  %v3301_v31 = vadd.f32 %v3300_v37, %v7130_v12 }
 0x37e   :  { %v3364_v16 = vpop.f32.mrf.mxu3  ;;  %v3426_v44 = vpop.f32.mrf.mxu0 }
 0x37f   :  { %5350 = vst [vmem:[%s7339_s3 + $0x30] sm:$0xff] %v5323_v29   ;;  %v3490_v54 = vpop.f32.mrf.mxu1  ;;  %v3427_v62 = vadd.f32 %v3426_v44, %v3363_v13  ;;  %v3365_v43 = vadd.f32 %v3364_v16, %v3301_v31 }
 0x381   :  { %v3491_v47 = vadd.f32 %v3490_v54, %v3427_v62 }
 0x383   :  { %v3524_v46 = vmax.f32 %v3491_v47, 0.0 }
 0x384   :  { %v3303_v19 = vpop.f32.mrf.mxu2 }
 0x385   :  { %v3304_v59 = vadd.f32 %v3303_v19, %v7157_v60 }
 0x386   :  { %v3367_v20 = vpop.f32.mrf.mxu3  ;;  %v3428_v55 = vpop.f32.mrf.mxu0 }
 0x387   :  { %v3429_v0 = vadd.f32 %v3428_v55, %v3365_v43  ;;  %v3492_v32 = vpop.f32.mrf.mxu1  ;;  %v3368_v38 = vadd.f32 %v3367_v20, %v3304_v59 }
 0x389   :  { %v3493_v6 = vadd.f32 %v3492_v32, %v3429_v0 }
 0x38b   :  { %v3525_v53 = vmax.f32 %v3493_v6, 0.0 }
 0x38c   :  { %v3305_v30 = vpop.f32.mrf.mxu2 }
 0x38d   :  { %v5328_v28 = vpack.c.bf16 %v3525_v53, %v3524_v46  ;;  %v3306_v61 = vadd.f32 %v3305_v30, %v7160_v1 }
 0x38e   :  { %v3369_v18 = vpop.f32.mrf.mxu3  ;;  %v3431_v25 = vpop.f32.mrf.mxu0 }
 0x38f   :  { %5351 = vst [vmem:[%s7339_s3 + $0x38] sm:$0xff] %v5328_v28   ;;  %v3495_v12 = vpop.f32.mrf.mxu1  ;;  %v3432_v15 = vadd.f32 %v3431_v25, %v3368_v38  ;;  %v3370_v48 = vadd.f32 %v3369_v18, %v3306_v61 }
 0x391   :  { %v3496_v4 = vadd.f32 %v3495_v12, %v3432_v15 }
 0x393   :  { %v3526_v11 = vmax.f32 %v3496_v4, 0.0 }
 0x394   :  { %v3308_v56 = vpop.f32.mrf.mxu2 }
 0x395   :  { %v3309_v10 = vadd.f32 %v3308_v56, %v7187_v35 }
 0x396   :  { %v3372_v49 = vpop.f32.mrf.mxu3  ;;  %v3433_v52 = vpop.f32.mrf.mxu0 }
 0x397   :  { %v3434_v5 = vadd.f32 %v3433_v52, %v3370_v48  ;;  %v3497_v40 = vpop.f32.mrf.mxu1  ;;  %v3373_v17 = vadd.f32 %v3372_v49, %v3309_v10 }
 0x399   :  { %v3498_v60 = vadd.f32 %v3497_v40, %v3434_v5 }
 0x39b   :  { %v3527_v2 = vmax.f32 %v3498_v60, 0.0 }
 0x39c   :  { %v3310_v51 = vpop.f32.mrf.mxu2 }
 0x39d   :  { %v5333_v36 = vpack.c.bf16 %v3527_v2, %v3526_v11  ;;  %v3311_v39 = vadd.f32 %v3310_v51, %v7190_v58 }
 0x39e   :  { %v3436_v7 = vpop.f32.mrf.mxu0  ;;  %v3374_v50 = vpop.f32.mrf.mxu3 }
 0x39f   :  { %5352 = vst [vmem:[%s7339_s3 + $0x40] sm:$0xff] %v5333_v36   ;;  %v3500_v1 = vpop.f32.mrf.mxu1  ;;  %v3437_v9 = vadd.f32 %v3436_v7, %v3373_v17  ;;  %v3375_v21 = vadd.f32 %v3374_v50, %v3311_v39 }
 0x3a1   :  { %v3501_v27 = vadd.f32 %v3500_v1, %v3437_v9 }
 0x3a3   :  { %v3528_v3 = vmax.f32 %v3501_v27, 0.0 }
 0x3a4   :  { %v3313_v8 = vpop.f32.mrf.mxu2 }
 0x3a5   :  { %v3314_v63 = vadd.f32 %v3313_v8, %v7217_v45 }
 0x3a6   :  { %v3438_v57 = vpop.f32.mrf.mxu0  ;;  %v3377_v35 = vpop.f32.mrf.mxu3 }
 0x3a7   :  { %v3439_v33 = vadd.f32 %v3438_v57, %v3375_v21  ;;  %v3502_v22 = vpop.f32.mrf.mxu1  ;;  %v3378_v37 = vadd.f32 %v3377_v35, %v3314_v63 }
 0x3a9   :  { %v3503_v26 = vadd.f32 %v3502_v22, %v3439_v33 }
 0x3ab   :  { %v3529_v24 = vmax.f32 %v3503_v26, 0.0 }
 0x3ac   :  { %v3315_v42 = vpop.f32.mrf.mxu2 }
 0x3ad   :  { %v5338_v41 = vpack.c.bf16 %v3529_v24, %v3528_v3  ;;  %v3316_v23 = vadd.f32 %v3315_v42, %v7219_v14 }
 0x3ae   :  { %v3441_v34 = vpop.f32.mrf.mxu0  ;;  %v3379_v16 = vpop.f32.mrf.mxu3 }
 0x3af   :  { %5353 = vst [vmem:[%s7339_s3 + $0x48] sm:$0xff] %v5338_v41   ;;  %v3505_v58 = vpop.f32.mrf.mxu1  ;;  %v3442_v29 = vadd.f32 %v3441_v34, %v3378_v37  ;;  %v3380_v44 = vadd.f32 %v3379_v16, %v3316_v23 }
 0x3b1   :  { %v3506_v13 = vadd.f32 %v3505_v58, %v3442_v29 }
 0x3b3   :  { %v3530_v45 = vmax.f32 %v3506_v13, 0.0 }
 0x3b6   :  { %v3443_v54 = vpop.f32.mrf.mxu0 }
 0x3b7   :  { %v3444_v31 = vadd.f32 %v3443_v54, %v3380_v44  ;;  %v3507_v62 = vpop.f32.mrf.mxu1 }
 0x3b9   :  { %v3508_v19 = vadd.f32 %v3507_v62, %v3444_v31 }
 0x3bb   :  { %v3531_v43 = vmax.f32 %v3508_v19, 0.0 }
 0x3bd   :  { %v5343_v20 = vpack.c.bf16 %v3531_v43, %v3530_v45 }
 0x3bf   :  { %5354 = vst [vmem:[%s7339_s3 + $0x50] sm:$0xff] %v5343_v20  }

// kernel: conv_decoder_anai_forward.10
= control target key start
LH: loop header
LB: loop body
LE: loop exit
PB: predicated region body
PF: predicated region fallthrough
CT: control target
= control target key end

     0   :  { %s3759_s1 = inlined_call_operand.vmem [shape: bf16[256,128], index: 1, kind: input, shape index: {}]   ;;  %s3760_s2 = inlined_call_operand.vmem [shape: f32[1,128], index: 2, kind: input, shape index: {}]   ;;  %s3761_s0 = inlined_call_operand.vmem [shape: bf16[896,256], index: 0, kind: input, shape index: {}]   ;;  %s3762_s3 = inlined_call_operand.vmem [shape: bf16[896,128], index: 3, kind: output, shape index: {}]  }
   0x1   :  { %v2367_v0 = vld [vmem:[%s3759_s1 + $0x38] sm:$0xff]  ;;  %v2366_v2 = vld [vmem:[%s3759_s1 + $0x30] sm:$0xff]  ;;  %v2365_v4 = vld [vmem:[%s3759_s1 + $0x28] sm:$0xff] }
   0x2   :  { %v2375_v1 = vld [vmem:[%s3759_s1 + $0x78] sm:$0xff]  ;;  %818 = vmatpush.bf16.msra.mxu0 %v2367_v0  ;;  %2711 = vmatpush.bf16.msra.mxu2 %v2367_v0  ;;  %v2374_v3 = vld [vmem:[%s3759_s1 + $0x70] sm:$0xff]  ;;  %v2373_v5 = vld [vmem:[%s3759_s1 + $0x68] sm:$0xff] }
   0x3   :  { %1107 = vmatpush.bf16.msra.mxu1 %v2375_v1  ;;  %2719 = vmatpush.bf16.msra.mxu3 %v2375_v1  ;;  %v2364_v6 = vld [vmem:[%s3759_s1 + $0x20] sm:$0xff]  ;;  %v2363_v8 = vld [vmem:[%s3759_s1 + $0x18] sm:$0xff]  ;;  %v2362_v10 = vld [vmem:[%s3759_s1 + $0x10] sm:$0xff] }
   0x4   :  { %v2372_v7 = vld [vmem:[%s3759_s1 + $0x60] sm:$0xff]  ;;  %v2371_v9 = vld [vmem:[%s3759_s1 + $0x58] sm:$0xff]  ;;  %v2370_v11 = vld [vmem:[%s3759_s1 + $0x50] sm:$0xff] }
   0x5   :  { %v2361_v12 = vld [vmem:[%s3759_s1 + $0x8] sm:$0xff]  ;;  %v2360_v14 = vld [vmem:[%s3759_s1] sm:$0xff]  ;;  %v1746_v28 = vld [vmem:[%s3761_s0 + $0x10] sm:$0xf] }
   0x6   :  { %819 = vmatpush.bf16.msra.mxu0 %v2366_v2  ;;  %2712 = vmatpush.bf16.msra.mxu2 %v2366_v2  ;;  %v2369_v13 = vld [vmem:[%s3759_s1 + $0x48] sm:$0xff]  ;;  %v2368_v15 = vld [vmem:[%s3759_s1 + $0x40] sm:$0xff]  ;;  %v2251_v29 = vld [vmem:[%s3761_s0 + $0x14] sm:$0xf0] }
   0x7   :  { %1108 = vmatpush.bf16.msra.mxu1 %v2374_v3  ;;  %2720 = vmatpush.bf16.msra.mxu3 %v2374_v3  ;;  %v1738_v16 = vld [vmem:[%s3761_s0] sm:$0xf]  ;;  %v2249_v17 = vld [vmem:[%s3761_s0 + $0x4] sm:$0xf0]  ;;  %v2248_v20 = vld [vmem:[%s3761_s0 + $0x4] sm:$0xf]  ;;  %v1747_v36 = vor.u32 %v2251_v29, %v1746_v28 }
   0x8   :  { %v1962_v18 = vld [vmem:[%s3761_s0 + $0x1c0] sm:$0xf]  ;;  %v2305_v19 = vld [vmem:[%s3761_s0 + $0x1c4] sm:$0xf0]  ;;  %v1740_v21 = vld [vmem:[%s3761_s0 + $0x8] sm:$0xf0]  ;;  %v1739_v24 = vor.u32 %v2249_v17, %v1738_v16 }
   0x9   :  { %v2304_v22 = vld [vmem:[%s3761_s0 + $0x1c4] sm:$0xf]  ;;  %v1964_v23 = vld [vmem:[%s3761_s0 + $0x1c8] sm:$0xf0]  ;;  %v1963_v25 = vor.u32 %v2305_v19, %v1962_v18  ;;  %v1743_v26 = vor.u32 %v2248_v20, %v1740_v21  ;;  %v1970_v30 = vld [vmem:[%s3761_s0 + $0x1d0] sm:$0xf] }
   0xa   :  { %820 = vmatpush.bf16.msra.mxu0 %v2365_v4  ;;  %2713 = vmatpush.bf16.msra.mxu2 %v2365_v4  ;;  %v1967_v27 = vor.u32 %v2304_v22, %v1964_v23  ;;  %v2307_v31 = vld [vmem:[%s3761_s0 + $0x1d4] sm:$0xf0]  ;;  %v2250_v32 = vld [vmem:[%s3761_s0 + $0x14] sm:$0xf]  ;;  %v1748_v33 = vld [vmem:[%s3761_s0 + $0x18] sm:$0xf0] }
   0xb   :  { %1109 = vmatpush.bf16.msra.mxu1 %v2373_v5  ;;  %2721 = vmatpush.bf16.msra.mxu3 %v2373_v5  ;;  %v2306_v34 = vld [vmem:[%s3761_s0 + $0x1d4] sm:$0xf]  ;;  %v1972_v35 = vld [vmem:[%s3761_s0 + $0x1d8] sm:$0xf0]  ;;  %v1971_v37 = vor.u32 %v2307_v31, %v1970_v30  ;;  %v1751_v38 = vor.u32 %v2250_v32, %v1748_v33  ;;  %v1754_v40 = vld [vmem:[%s3761_s0 + $0x20] sm:$0xf] }
   0xc   :  { %v1975_v39 = vor.u32 %v2306_v34, %v1972_v35  ;;  %v2253_v41 = vld [vmem:[%s3761_s0 + $0x24] sm:$0xf0]  ;;  %v1978_v42 = vld [vmem:[%s3761_s0 + $0x1e0] sm:$0xf]  ;;  %v2252_v44 = vld [vmem:[%s3761_s0 + $0x24] sm:$0xf] }
   0xd   :  { %v2309_v43 = vld [vmem:[%s3761_s0 + $0x1e4] sm:$0xf0]  ;;  %v1756_v45 = vld [vmem:[%s3761_s0 + $0x28] sm:$0xf0]  ;;  %v2308_v46 = vld [vmem:[%s3761_s0 + $0x1e4] sm:$0xf]  ;;  %v1755_v48 = vor.u32 %v2253_v41, %v1754_v40 }
   0xe   :  { %821 = vmatpush.bf16.msra.mxu0 %v2364_v6  ;;  %2714 = vmatpush.bf16.msra.mxu2 %v2364_v6  ;;  %v1980_v47 = vld [vmem:[%s3761_s0 + $0x1e8] sm:$0xf0]  ;;  %v1979_v49 = vor.u32 %v2309_v43, %v1978_v42  ;;  %v1759_v50 = vor.u32 %v2252_v44, %v1756_v45  ;;  %v1762_v52 = vld [vmem:[%s3761_s0 + $0x30] sm:$0xf]  ;;  %v2255_v53 = vld [vmem:[%s3761_s0 + $0x34] sm:$0xf0] }
   0xf   :  { %1110 = vmatpush.bf16.msra.mxu1 %v2372_v7  ;;  %2722 = vmatpush.bf16.msra.mxu3 %v2372_v7  ;;  %v1983_v51 = vor.u32 %v2308_v46, %v1980_v47  ;;  %v1986_v54 = vld [vmem:[%s3761_s0 + $0x1f0] sm:$0xf]  ;;  %v2311_v55 = vld [vmem:[%s3761_s0 + $0x1f4] sm:$0xf0]  ;;  %v2254_v56 = vld [vmem:[%s3761_s0 + $0x34] sm:$0xf]  ;;  %v1763_v60 = vor.u32 %v2255_v53, %v1762_v52 }
  0x10   :  { %v1764_v57 = vld [vmem:[%s3761_s0 + $0x38] sm:$0xf0]  ;;  %v2310_v58 = vld [vmem:[%s3761_s0 + $0x1f4] sm:$0xf]  ;;  %v1987_v61 = vor.u32 %v2311_v55, %v1986_v54  ;;  %v1770_v0 = vld [vmem:[%s3761_s0 + $0x40] sm:$0xf] }
  0x11   :  { %v1988_v59 = vld [vmem:[%s3761_s0 + $0x1f8] sm:$0xf0]  ;;  %v1767_v62 = vor.u32 %v2254_v56, %v1764_v57  ;;  %v2257_v1 = vld [vmem:[%s3761_s0 + $0x44] sm:$0xf0]  ;;  %v1994_v2 = vld [vmem:[%s3761_s0 + $0x200] sm:$0xf] }
  0x12   :  { %822 = vmatpush.bf16.msra.mxu0 %v2363_v8  ;;  %2715 = vmatpush.bf16.msra.mxu2 %v2363_v8  ;;  %v1991_v63 = vor.u32 %v2310_v58, %v1988_v59  ;;  %v2313_v3 = vld [vmem:[%s3761_s0 + $0x204] sm:$0xf0]  ;;  %v2256_v4 = vld [vmem:[%s3761_s0 + $0x44] sm:$0xf]  ;;  %v1772_v5 = vld [vmem:[%s3761_s0 + $0x48] sm:$0xf0]  ;;  %v1771_v8 = vor.u32 %v2257_v1, %v1770_v0 }
  0x13   :  { %1111 = vmatpush.bf16.msra.mxu1 %v2371_v9  ;;  %2723 = vmatpush.bf16.msra.mxu3 %v2371_v9  ;;  %v2312_v6 = vld [vmem:[%s3761_s0 + $0x204] sm:$0xf]  ;;  %v1996_v7 = vld [vmem:[%s3761_s0 + $0x208] sm:$0xf0]  ;;  %v1995_v9 = vor.u32 %v2313_v3, %v1994_v2  ;;  %v2258_v16 = vld [vmem:[%s3761_s0 + $0x54] sm:$0xf] }
  0x14   :  { %v1780_v17 = vld [vmem:[%s3761_s0 + $0x58] sm:$0xf0]  ;;  %v2314_v18 = vld [vmem:[%s3761_s0 + $0x214] sm:$0xf]  ;;  %v2260_v28 = vld [vmem:[%s3761_s0 + $0x64] sm:$0xf] }
  0x15   :  { %v2004_v19 = vld [vmem:[%s3761_s0 + $0x218] sm:$0xf0]  ;;  %v1783_v22 = vor.u32 %v2258_v16, %v1780_v17  ;;  %v1788_v29 = vld [vmem:[%s3761_s0 + $0x68] sm:$0xf0]  ;;  %v2316_v30 = vld [vmem:[%s3761_s0 + $0x224] sm:$0xf] }
  0x16   :  { %823 = vmatpush.bf16.msra.mxu0 %v2362_v10  ;;  %2716 = vmatpush.bf16.msra.mxu2 %v2362_v10  ;;  %v1775_v10 = vor.u32 %v2256_v4, %v1772_v5  ;;  %v2007_v23 = vor.u32 %v2314_v18, %v2004_v19  ;;  %v2012_v31 = vld [vmem:[%s3761_s0 + $0x228] sm:$0xf0]  ;;  %v1791_v34 = vor.u32 %v2260_v28, %v1788_v29  ;;  %v2262_v40 = vld [vmem:[%s3761_s0 + $0x74] sm:$0xf]  ;;  %v1796_v41 = vld [vmem:[%s3761_s0 + $0x78] sm:$0xf0] }
  0x17   :  { %1112 = vmatpush.bf16.msra.mxu1 %v2370_v11  ;;  %2724 = vmatpush.bf16.msra.mxu3 %v2370_v11  ;;  %v1999_v11 = vor.u32 %v2312_v6, %v1996_v7  ;;  %v2015_v35 = vor.u32 %v2316_v30, %v2012_v31  ;;  %v2318_v42 = vld [vmem:[%s3761_s0 + $0x234] sm:$0xf]  ;;  %v2020_v43 = vld [vmem:[%s3761_s0 + $0x238] sm:$0xf0]  ;;  %v1799_v46 = vor.u32 %v2262_v40, %v1796_v41  ;;  %v2264_v52 = vld [vmem:[%s3761_s0 + $0x84] sm:$0xf] }
  0x18   :  { %v2023_v47 = vor.u32 %v2318_v42, %v2020_v43  ;;  %v1804_v53 = vld [vmem:[%s3761_s0 + $0x88] sm:$0xf0]  ;;  %v2320_v54 = vld [vmem:[%s3761_s0 + $0x244] sm:$0xf]  ;;  %v2322_v16 = vld [vmem:[%s3761_s0 + $0x254] sm:$0xf] }
  0x19   :  { %v2028_v55 = vld [vmem:[%s3761_s0 + $0x248] sm:$0xf0]  ;;  %v1807_v59 = vor.u32 %v2264_v52, %v1804_v53  ;;  %v2036_v17 = vld [vmem:[%s3761_s0 + $0x258] sm:$0xf0]  ;;  %v1818_v42 = vld [vmem:[%s3761_s0 + $0xa0] sm:$0xf] }
  0x1a   :  { %824 = vmatpush.bf16.msra.mxu0 %v2361_v12  ;;  %2717 = vmatpush.bf16.msra.mxu2 %v2361_v12  ;;  %v1778_v12 = vld [vmem:[%s3761_s0 + $0x50] sm:$0xf]  ;;  %v2269_v43 = vld [vmem:[%s3761_s0 + $0xa4] sm:$0xf0] }
  0x1b   :  { %1113 = vmatpush.bf16.msra.mxu1 %v2369_v13  ;;  %2725 = vmatpush.bf16.msra.mxu3 %v2369_v13  ;;  %v2259_v13 = vld [vmem:[%s3761_s0 + $0x54] sm:$0xf0]  ;;  %v1819_v53 = vor.u32 %v2269_v43, %v1818_v42 }
  0x1c   :  { %v1779_v20 = vor.u32 %v2259_v13, %v1778_v12  ;;  %v2266_v12 = vld [vmem:[%s3761_s0 + $0x94] sm:$0xf]  ;;  %v1812_v13 = vld [vmem:[%s3761_s0 + $0x98] sm:$0xf0] }
  0x1e   :  { %825 = vmatpush.bf16.msra.mxu0 %v2360_v14  ;;  %2718 = vmatpush.bf16.msra.mxu2 %v2360_v14  ;;  %v2002_v14 = vld [vmem:[%s3761_s0 + $0x210] sm:$0xf] }
  0x1f   :  { %1114 = vmatpush.bf16.msra.mxu1 %v2368_v15  ;;  %2726 = vmatpush.bf16.msra.mxu3 %v2368_v15  ;;  %v2315_v15 = vld [vmem:[%s3761_s0 + $0x214] sm:$0xf0] }
  0x20   :  { %v2003_v21 = vor.u32 %v2315_v15, %v2002_v14 }
  0x21   :  { %826 = vmatmul.bf16.vlgmr.msra.gmra.mxu0 %v1739_v24  ;;  %966 = vmatmul.bf16.vlgmr.msra.gmra.mxu2 %v1963_v25  ;;  %v1786_v24 = vld [vmem:[%s3761_s0 + $0x60] sm:$0xf]  ;;  %v2261_v25 = vld [vmem:[%s3761_s0 + $0x64] sm:$0xf0] }
  0x22   :  { %1115 = vmatmul.bf16.vlgmr.msra.gmra.mxu1 %v1743_v26  ;;  %1255 = vmatmul.bf16.vlgmr.msra.gmra.mxu3 %v1967_v27  ;;  %v2010_v26 = vld [vmem:[%s3761_s0 + $0x220] sm:$0xf]  ;;  %v2317_v27 = vld [vmem:[%s3761_s0 + $0x224] sm:$0xf0]  ;;  %v1787_v32 = vor.u32 %v2261_v25, %v1786_v24 }
  0x23   :  { %v2011_v33 = vor.u32 %v2317_v27, %v2010_v26  ;;  %v1815_v26 = vor.u32 %v2266_v12, %v1812_v13  ;;  %v2039_v27 = vor.u32 %v2322_v16, %v2036_v17  ;;  %v1826_v13 = vld [vmem:[%s3761_s0 + $0xb0] sm:$0xf]  ;;  %v2327_v16 = vld [vmem:[%s3761_s0 + $0x274] sm:$0xf0]  ;;  %v2270_v17 = vld [vmem:[%s3761_s0 + $0xb4] sm:$0xf] }
  0x31   :  { %831 = vmatmul.bf16.gmra.mxu0 %v1747_v36  ;;  %971 = vmatmul.bf16.gmra.mxu2 %v1971_v37  ;;  %v1794_v36 = vld [vmem:[%s3761_s0 + $0x70] sm:$0xf]  ;;  %v2263_v37 = vld [vmem:[%s3761_s0 + $0x74] sm:$0xf0] }
  0x32   :  { %1120 = vmatmul.bf16.gmra.mxu1 %v1751_v38  ;;  %1260 = vmatmul.bf16.gmra.mxu3 %v1975_v39  ;;  %v2018_v38 = vld [vmem:[%s3761_s0 + $0x230] sm:$0xf]  ;;  %v2319_v39 = vld [vmem:[%s3761_s0 + $0x234] sm:$0xf0]  ;;  %v1795_v44 = vor.u32 %v2263_v37, %v1794_v36 }
  0x33   :  { %v2019_v45 = vor.u32 %v2319_v39, %v2018_v38 }
  0x41   :  { %836 = vmatmul.bf16.gmra.mxu0 %v1755_v48  ;;  %976 = vmatmul.bf16.gmra.mxu2 %v1979_v49  ;;  %v1802_v48 = vld [vmem:[%s3761_s0 + $0x80] sm:$0xf]  ;;  %v2265_v49 = vld [vmem:[%s3761_s0 + $0x84] sm:$0xf0] }
  0x42   :  { %1125 = vmatmul.bf16.gmra.mxu1 %v1759_v50  ;;  %1265 = vmatmul.bf16.gmra.mxu3 %v1983_v51  ;;  %v2026_v50 = vld [vmem:[%s3761_s0 + $0x240] sm:$0xf]  ;;  %v2321_v51 = vld [vmem:[%s3761_s0 + $0x244] sm:$0xf0]  ;;  %v1803_v56 = vor.u32 %v2265_v49, %v1802_v48 }
  0x43   :  { %v2027_v57 = vor.u32 %v2321_v51, %v2026_v50  ;;  %v2324_v50 = vld [vmem:[%s3761_s0 + $0x264] sm:$0xf]  ;;  %v2044_v51 = vld [vmem:[%s3761_s0 + $0x268] sm:$0xf0] }
  0x51   :  { %841 = vmatmul.bf16.gmra.mxu0 %v1763_v60  ;;  %981 = vmatmul.bf16.gmra.mxu2 %v1987_v61  ;;  %v2031_v60 = vor.u32 %v2320_v54, %v2028_v55  ;;  %v3016_v61 = vld [vmem:[%s3760_s2] ss:$0 sm:$0xff] }
  0x52   :  { %1130 = vmatmul.bf16.gmra.mxu1 %v1767_v62  ;;  %1270 = vmatmul.bf16.gmra.mxu3 %v1991_v63 }
  0x61   :  { %846 = vmatmul.bf16.gmra.mxu0 %v1771_v8  ;;  %986 = vmatmul.bf16.gmra.mxu2 %v1995_v9  ;;  %v1810_v8 = vld [vmem:[%s3761_s0 + $0x90] sm:$0xf]  ;;  %v2267_v9 = vld [vmem:[%s3761_s0 + $0x94] sm:$0xf0] }
  0x62   :  { %1135 = vmatmul.bf16.gmra.mxu1 %v1775_v10  ;;  %1275 = vmatmul.bf16.gmra.mxu3 %v1999_v11  ;;  %v2034_v10 = vld [vmem:[%s3761_s0 + $0x250] sm:$0xf]  ;;  %v2323_v11 = vld [vmem:[%s3761_s0 + $0x254] sm:$0xf0]  ;;  %v1811_v19 = vor.u32 %v2267_v9, %v1810_v8 }
  0x63   :  { %v2035_v24 = vor.u32 %v2323_v11, %v2034_v10 }
  0x71   :  { %851 = vmatmul.bf16.gmra.mxu0 %v1779_v20  ;;  %991 = vmatmul.bf16.gmra.mxu2 %v2003_v21 }
  0x72   :  { %1140 = vmatmul.bf16.gmra.mxu1 %v1783_v22  ;;  %1280 = vmatmul.bf16.gmra.mxu3 %v2007_v23 }
  0x81   :  { %856 = vmatmul.bf16.gmra.mxu0 %v1787_v32  ;;  %996 = vmatmul.bf16.gmra.mxu2 %v2011_v33 }
  0x82   :  { %1145 = vmatmul.bf16.gmra.mxu1 %v1791_v34  ;;  %1285 = vmatmul.bf16.gmra.mxu3 %v2015_v35 }
  0x91   :  { %861 = vmatmul.bf16.gmra.mxu0 %v1795_v44  ;;  %1001 = vmatmul.bf16.gmra.mxu2 %v2019_v45  ;;  %v2042_v44 = vld [vmem:[%s3761_s0 + $0x260] sm:$0xf]  ;;  %v2325_v45 = vld [vmem:[%s3761_s0 + $0x264] sm:$0xf0] }
  0x92   :  { %1150 = vmatmul.bf16.gmra.mxu1 %v1799_v46  ;;  %1290 = vmatmul.bf16.gmra.mxu3 %v2023_v47  ;;  %v2268_v46 = vld [vmem:[%s3761_s0 + $0xa4] sm:$0xf]  ;;  %v1820_v47 = vld [vmem:[%s3761_s0 + $0xa8] sm:$0xf0] }
  0x9e   :  { %v827_v58 = vpop.f32.mrf.mxu0 }
  0x9f   :  { %v1116_v62 = vpop.f32.mrf.mxu1  ;;  %v828_v63 = vadd.f32 %v3016_v61, %v827_v58  ;;  %v2043_v58 = vor.u32 %v2325_v45, %v2042_v44 }
  0xa1   :  { %866 = vmatmul.bf16.gmra.mxu0 %v1803_v56  ;;  %1006 = vmatmul.bf16.gmra.mxu2 %v2027_v57  ;;  %v1117_v3 = vadd.f32 %v1116_v62, %v828_v63  ;;  %v2047_v62 = vor.u32 %v2324_v50, %v2044_v51  ;;  %v2329_v50 = vld [vmem:[%s3761_s0 + $0x284] sm:$0xf0]  ;;  %v2272_v51 = vld [vmem:[%s3761_s0 + $0xc4] sm:$0xf] }
  0xa2   :  { %1155 = vmatmul.bf16.gmra.mxu1 %v1807_v59  ;;  %1295 = vmatmul.bf16.gmra.mxu3 %v2031_v60  ;;  %v1823_v60 = vor.u32 %v2268_v46, %v1820_v47  ;;  %v1834_v47 = vld [vmem:[%s3761_s0 + $0xc0] sm:$0xf] }
  0xa3   :  { %v1396_v14 = vmax.f32 %v1117_v3, 0.0 }
  0xa4   :  { %v967_v0 = vpop.f32.mrf.mxu2 }
  0xa5   :  { %v1256_v1 = vpop.f32.mrf.mxu3  ;;  %v968_v6 = vadd.f32 %v3016_v61, %v967_v0 }
  0xa6   :  { %v829_v2 = vpop.f32.mrf.mxu0 }
  0xa7   :  { %v830_v4 = vadd.f32 %v3016_v61, %v829_v2  ;;  %v1118_v5 = vpop.f32.mrf.mxu1  ;;  %v1257_v20 = vadd.f32 %v1256_v1, %v968_v6 }
  0xa9   :  { %v1119_v7 = vadd.f32 %v1118_v5, %v830_v4  ;;  %v1452_v30 = vmax.f32 %v1257_v20, 0.0 }
  0xab   :  { %v1397_v15 = vmax.f32 %v1119_v7, 0.0 }
  0xac   :  { %v969_v18 = vpop.f32.mrf.mxu2 }
  0xad   :  { %v2379_v21 = vpack.c.bf16 %v1397_v15, %v1396_v14  ;;  %v970_v22 = vadd.f32 %v3016_v61, %v969_v18  ;;  %v1258_v23 = vpop.f32.mrf.mxu3  ;;  %v2271_v14 = vld [vmem:[%s3761_s0 + $0xb4] sm:$0xf0]  ;;  %v2050_v15 = vld [vmem:[%s3761_s0 + $0x270] sm:$0xf]  ;;  %v1828_v18 = vld [vmem:[%s3761_s0 + $0xb8] sm:$0xf0] }
  0xae   :  { %v832_v25 = vpop.f32.mrf.mxu0 }
  0xaf   :  { %2380 = vst [vmem:[%s3762_s3] sm:$0xff] %v2379_v21   ;;  %v1259_v28 = vadd.f32 %v1258_v23, %v970_v22  ;;  %v1121_v29 = vpop.f32.mrf.mxu1  ;;  %v833_v33 = vadd.f32 %v3016_v61, %v832_v25  ;;  %v2326_v21 = vld [vmem:[%s3761_s0 + $0x274] sm:$0xf]  ;;  %v2052_v22 = vld [vmem:[%s3761_s0 + $0x278] sm:$0xf0] }
  0xb1   :  { %v1453_v31 = vmax.f32 %v1259_v28, 0.0  ;;  %871 = vmatmul.bf16.gmra.mxu0 %v1811_v19  ;;  %1011 = vmatmul.bf16.gmra.mxu2 %v2035_v24  ;;  %v1122_v37 = vadd.f32 %v1121_v29, %v833_v33  ;;  %v1827_v24 = vor.u32 %v2271_v14, %v1826_v13  ;;  %v2051_v29 = vor.u32 %v2327_v16, %v2050_v15 }
  0xb2   :  { %1160 = vmatmul.bf16.gmra.mxu1 %v1815_v26  ;;  %1300 = vmatmul.bf16.gmra.mxu3 %v2039_v27 }
  0xb3   :  { %v2519_v32 = vpack.c.bf16 %v1453_v31, %v1452_v30  ;;  %v1398_v48 = vmax.f32 %v1122_v37, 0.0  ;;  %v1831_v31 = vor.u32 %v2270_v17, %v1828_v18  ;;  %v1842_v18 = vld [vmem:[%s3761_s0 + $0xd0] sm:$0xf] }
  0xb4   :  { %v972_v34 = vpop.f32.mrf.mxu2 }
  0xb5   :  { %2683 = vst [vmem:[%s3762_s3 + $0xe0] sm:$0xff] %v2519_v32   ;;  %v1261_v35 = vpop.f32.mrf.mxu3  ;;  %v973_v40 = vadd.f32 %v3016_v61, %v972_v34  ;;  %v2055_v32 = vor.u32 %v2326_v21, %v2052_v22  ;;  %v2331_v21 = vld [vmem:[%s3761_s0 + $0x294] sm:$0xf0]  ;;  %v2274_v22 = vld [vmem:[%s3761_s0 + $0xd4] sm:$0xf] }
  0xb6   :  { %v834_v36 = vpop.f32.mrf.mxu0 }
  0xb7   :  { %v835_v38 = vadd.f32 %v3016_v61, %v834_v36  ;;  %v1123_v39 = vpop.f32.mrf.mxu1  ;;  %v1262_v54 = vadd.f32 %v1261_v35, %v973_v40 }
  0xb9   :  { %v1124_v41 = vadd.f32 %v1123_v39, %v835_v38  ;;  %v1454_v1 = vmax.f32 %v1262_v54, 0.0 }
  0xbb   :  { %v1399_v49 = vmax.f32 %v1124_v41, 0.0 }
  0xbc   :  { %v974_v52 = vpop.f32.mrf.mxu2 }
  0xbd   :  { %v2384_v55 = vpack.c.bf16 %v1399_v49, %v1398_v48  ;;  %v975_v56 = vadd.f32 %v3016_v61, %v974_v52  ;;  %v1263_v57 = vpop.f32.mrf.mxu3  ;;  %v2273_v48 = vld [vmem:[%s3761_s0 + $0xc4] sm:$0xf0]  ;;  %v2058_v49 = vld [vmem:[%s3761_s0 + $0x280] sm:$0xf]  ;;  %v1836_v52 = vld [vmem:[%s3761_s0 + $0xc8] sm:$0xf0] }
  0xbe   :  { %v837_v59 = vpop.f32.mrf.mxu0 }
  0xbf   :  { %2656 = vst [vmem:[%s3762_s3 + $0x8] sm:$0xff] %v2384_v55   ;;  %v1264_v63 = vadd.f32 %v1263_v57, %v975_v56  ;;  %v1126_v0 = vpop.f32.mrf.mxu1  ;;  %v838_v4 = vadd.f32 %v3016_v61, %v837_v59  ;;  %v2328_v55 = vld [vmem:[%s3761_s0 + $0x284] sm:$0xf]  ;;  %v2060_v56 = vld [vmem:[%s3761_s0 + $0x288] sm:$0xf0] }
  0xc1   :  { %v1455_v2 = vmax.f32 %v1264_v63, 0.0  ;;  %876 = vmatmul.bf16.gmra.mxu0 %v1819_v53  ;;  %1016 = vmatmul.bf16.gmra.mxu2 %v2043_v58  ;;  %v1127_v8 = vadd.f32 %v1126_v0, %v838_v4  ;;  %v1835_v58 = vor.u32 %v2273_v48, %v1834_v47  ;;  %v2059_v0 = vor.u32 %v2329_v50, %v2058_v49 }
  0xc2   :  { %1165 = vmatmul.bf16.gmra.mxu1 %v1823_v60  ;;  %1305 = vmatmul.bf16.gmra.mxu3 %v2047_v62 }
  0xc3   :  { %v2524_v3 = vpack.c.bf16 %v1455_v2, %v1454_v1  ;;  %v1400_v19 = vmax.f32 %v1127_v8, 0.0  ;;  %v1839_v2 = vor.u32 %v2272_v51, %v1836_v52  ;;  %v1850_v52 = vld [vmem:[%s3761_s0 + $0xe0] sm:$0xf] }
  0xc4   :  { %v977_v5 = vpop.f32.mrf.mxu2 }
  0xc5   :  { %2684 = vst [vmem:[%s3762_s3 + $0xe8] sm:$0xff] %v2524_v3   ;;  %v1266_v6 = vpop.f32.mrf.mxu3  ;;  %v978_v11 = vadd.f32 %v3016_v61, %v977_v5  ;;  %v2063_v3 = vor.u32 %v2328_v55, %v2060_v56  ;;  %v2333_v55 = vld [vmem:[%s3761_s0 + $0x2a4] sm:$0xf0]  ;;  %v2276_v56 = vld [vmem:[%s3761_s0 + $0xe4] sm:$0xf] }
  0xc6   :  { %v839_v7 = vpop.f32.mrf.mxu0 }
  0xc7   :  { %v840_v9 = vadd.f32 %v3016_v61, %v839_v7  ;;  %v1128_v10 = vpop.f32.mrf.mxu1  ;;  %v1267_v25 = vadd.f32 %v1266_v6, %v978_v11 }
  0xc9   :  { %v1129_v12 = vadd.f32 %v1128_v10, %v840_v9  ;;  %v1456_v35 = vmax.f32 %v1267_v25, 0.0 }
  0xcb   :  { %v1401_v20 = vmax.f32 %v1129_v12, 0.0 }
  0xcc   :  { %v979_v23 = vpop.f32.mrf.mxu2 }
  0xcd   :  { %v2389_v26 = vpack.c.bf16 %v1401_v20, %v1400_v19  ;;  %v980_v27 = vadd.f32 %v3016_v61, %v979_v23  ;;  %v1268_v28 = vpop.f32.mrf.mxu3  ;;  %v2275_v19 = vld [vmem:[%s3761_s0 + $0xd4] sm:$0xf0]  ;;  %v2066_v20 = vld [vmem:[%s3761_s0 + $0x290] sm:$0xf]  ;;  %v1844_v23 = vld [vmem:[%s3761_s0 + $0xd8] sm:$0xf0] }
  0xce   :  { %v842_v30 = vpop.f32.mrf.mxu0 }
  0xcf   :  { %2657 = vst [vmem:[%s3762_s3 + $0x10] sm:$0xff] %v2389_v26   ;;  %v1269_v33 = vadd.f32 %v1268_v28, %v980_v27  ;;  %v1131_v34 = vpop.f32.mrf.mxu1  ;;  %v843_v38 = vadd.f32 %v3016_v61, %v842_v30  ;;  %v2330_v26 = vld [vmem:[%s3761_s0 + $0x294] sm:$0xf]  ;;  %v2068_v27 = vld [vmem:[%s3761_s0 + $0x298] sm:$0xf0] }
  0xd1   :  { %v1457_v36 = vmax.f32 %v1269_v33, 0.0  ;;  %881 = vmatmul.bf16.gmra.mxu0 %v1827_v24  ;;  %1021 = vmatmul.bf16.gmra.mxu2 %v2051_v29  ;;  %v1132_v42 = vadd.f32 %v1131_v34, %v843_v38  ;;  %v1843_v29 = vor.u32 %v2275_v19, %v1842_v18  ;;  %v2067_v34 = vor.u32 %v2331_v21, %v2066_v20 }
  0xd2   :  { %1170 = vmatmul.bf16.gmra.mxu1 %v1831_v31  ;;  %1310 = vmatmul.bf16.gmra.mxu3 %v2055_v32 }
  0xd3   :  { %v2529_v37 = vpack.c.bf16 %v1457_v36, %v1456_v35  ;;  %v1402_v53 = vmax.f32 %v1132_v42, 0.0  ;;  %v1847_v36 = vor.u32 %v2274_v22, %v1844_v23  ;;  %v1858_v23 = vld [vmem:[%s3761_s0 + $0xf0] sm:$0xf] }
  0xd4   :  { %v982_v39 = vpop.f32.mrf.mxu2 }
  0xd5   :  { %2685 = vst [vmem:[%s3762_s3 + $0xf0] sm:$0xff] %v2529_v37   ;;  %v1271_v40 = vpop.f32.mrf.mxu3  ;;  %v983_v45 = vadd.f32 %v3016_v61, %v982_v39  ;;  %v2071_v37 = vor.u32 %v2330_v26, %v2068_v27  ;;  %v2335_v26 = vld [vmem:[%s3761_s0 + $0x2b4] sm:$0xf0]  ;;  %v2278_v27 = vld [vmem:[%s3761_s0 + $0xf4] sm:$0xf] }
  0xd6   :  { %v844_v41 = vpop.f32.mrf.mxu0 }
  0xd7   :  { %v845_v43 = vadd.f32 %v3016_v61, %v844_v41  ;;  %v1133_v44 = vpop.f32.mrf.mxu1  ;;  %v1272_v59 = vadd.f32 %v1271_v40, %v983_v45 }
  0xd9   :  { %v1134_v46 = vadd.f32 %v1133_v44, %v845_v43  ;;  %v1458_v6 = vmax.f32 %v1272_v59, 0.0 }
  0xdb   :  { %v1403_v54 = vmax.f32 %v1134_v46, 0.0 }
  0xdc   :  { %v984_v57 = vpop.f32.mrf.mxu2 }
  0xdd   :  { %v2394_v60 = vpack.c.bf16 %v1403_v54, %v1402_v53  ;;  %v985_v62 = vadd.f32 %v3016_v61, %v984_v57  ;;  %v1273_v63 = vpop.f32.mrf.mxu3  ;;  %v2277_v53 = vld [vmem:[%s3761_s0 + $0xe4] sm:$0xf0]  ;;  %v2074_v54 = vld [vmem:[%s3761_s0 + $0x2a0] sm:$0xf]  ;;  %v1852_v57 = vld [vmem:[%s3761_s0 + $0xe8] sm:$0xf0] }
  0xde   :  { %v847_v1 = vpop.f32.mrf.mxu0 }
  0xdf   :  { %2658 = vst [vmem:[%s3762_s3 + $0x18] sm:$0xff] %v2394_v60   ;;  %v1274_v4 = vadd.f32 %v1273_v63, %v985_v62  ;;  %v1136_v5 = vpop.f32.mrf.mxu1  ;;  %v848_v9 = vadd.f32 %v3016_v61, %v847_v1  ;;  %v2332_v60 = vld [vmem:[%s3761_s0 + $0x2a4] sm:$0xf]  ;;  %v2076_v62 = vld [vmem:[%s3761_s0 + $0x2a8] sm:$0xf0] }
  0xe1   :  { %v1459_v7 = vmax.f32 %v1274_v4, 0.0  ;;  %886 = vmatmul.bf16.gmra.mxu0 %v1835_v58  ;;  %1026 = vmatmul.bf16.gmra.mxu2 %v2059_v0  ;;  %v1137_v13 = vadd.f32 %v1136_v5, %v848_v9  ;;  %v1851_v0 = vor.u32 %v2277_v53, %v1850_v52  ;;  %v2075_v5 = vor.u32 %v2333_v55, %v2074_v54 }
  0xe2   :  { %1175 = vmatmul.bf16.gmra.mxu1 %v1839_v2  ;;  %1315 = vmatmul.bf16.gmra.mxu3 %v2063_v3 }
  0xe3   :  { %v2534_v8 = vpack.c.bf16 %v1459_v7, %v1458_v6  ;;  %v1404_v24 = vmax.f32 %v1137_v13, 0.0  ;;  %v1855_v7 = vor.u32 %v2276_v56, %v1852_v57  ;;  %v1866_v57 = vld [vmem:[%s3761_s0 + $0x100] sm:$0xf] }
  0xe4   :  { %v987_v10 = vpop.f32.mrf.mxu2 }
  0xe5   :  { %2686 = vst [vmem:[%s3762_s3 + $0xf8] sm:$0xff] %v2534_v8   ;;  %v1276_v11 = vpop.f32.mrf.mxu3  ;;  %v988_v16 = vadd.f32 %v3016_v61, %v987_v10  ;;  %v2079_v8 = vor.u32 %v2332_v60, %v2076_v62  ;;  %v2337_v60 = vld [vmem:[%s3761_s0 + $0x2c4] sm:$0xf0]  ;;  %v2280_v62 = vld [vmem:[%s3761_s0 + $0x104] sm:$0xf] }
  0xe6   :  { %v849_v12 = vpop.f32.mrf.mxu0 }
  0xe7   :  { %v850_v14 = vadd.f32 %v3016_v61, %v849_v12  ;;  %v1138_v15 = vpop.f32.mrf.mxu1  ;;  %v1277_v30 = vadd.f32 %v1276_v11, %v988_v16 }
  0xe9   :  { %v1139_v17 = vadd.f32 %v1138_v15, %v850_v14  ;;  %v1460_v40 = vmax.f32 %v1277_v30, 0.0 }
  0xeb   :  { %v1405_v25 = vmax.f32 %v1139_v17, 0.0 }
  0xec   :  { %v989_v28 = vpop.f32.mrf.mxu2 }
  0xed   :  { %v2399_v31 = vpack.c.bf16 %v1405_v25, %v1404_v24  ;;  %v990_v32 = vadd.f32 %v3016_v61, %v989_v28  ;;  %v1278_v33 = vpop.f32.mrf.mxu3  ;;  %v2279_v24 = vld [vmem:[%s3761_s0 + $0xf4] sm:$0xf0]  ;;  %v2082_v25 = vld [vmem:[%s3761_s0 + $0x2b0] sm:$0xf]  ;;  %v1860_v28 = vld [vmem:[%s3761_s0 + $0xf8] sm:$0xf0] }
  0xee   :  { %v852_v35 = vpop.f32.mrf.mxu0 }
  0xef   :  { %2659 = vst [vmem:[%s3762_s3 + $0x20] sm:$0xff] %v2399_v31   ;;  %v1279_v38 = vadd.f32 %v1278_v33, %v990_v32  ;;  %v1141_v39 = vpop.f32.mrf.mxu1  ;;  %v853_v43 = vadd.f32 %v3016_v61, %v852_v35  ;;  %v2334_v31 = vld [vmem:[%s3761_s0 + $0x2b4] sm:$0xf]  ;;  %v2084_v32 = vld [vmem:[%s3761_s0 + $0x2b8] sm:$0xf0] }
  0xf1   :  { %v1461_v41 = vmax.f32 %v1279_v38, 0.0  ;;  %891 = vmatmul.bf16.gmra.mxu0 %v1843_v29  ;;  %1031 = vmatmul.bf16.gmra.mxu2 %v2067_v34  ;;  %v1142_v47 = vadd.f32 %v1141_v39, %v853_v43  ;;  %v1859_v34 = vor.u32 %v2279_v24, %v1858_v23  ;;  %v2083_v39 = vor.u32 %v2335_v26, %v2082_v25 }
  0xf2   :  { %1180 = vmatmul.bf16.gmra.mxu1 %v1847_v36  ;;  %1320 = vmatmul.bf16.gmra.mxu3 %v2071_v37 }
  0xf3   :  { %v2539_v42 = vpack.c.bf16 %v1461_v41, %v1460_v40  ;;  %v1406_v58 = vmax.f32 %v1142_v47, 0.0  ;;  %v1863_v41 = vor.u32 %v2278_v27, %v1860_v28  ;;  %v1874_v28 = vld [vmem:[%s3761_s0 + $0x110] sm:$0xf] }
  0xf4   :  { %v992_v44 = vpop.f32.mrf.mxu2 }
  0xf5   :  { %2687 = vst [vmem:[%s3762_s3 + $0x100] sm:$0xff] %v2539_v42   ;;  %v1281_v45 = vpop.f32.mrf.mxu3  ;;  %v993_v50 = vadd.f32 %v3016_v61, %v992_v44  ;;  %v2087_v42 = vor.u32 %v2334_v31, %v2084_v32  ;;  %v2339_v31 = vld [vmem:[%s3761_s0 + $0x2d4] sm:$0xf0]  ;;  %v2282_v32 = vld [vmem:[%s3761_s0 + $0x114] sm:$0xf] }
  0xf6   :  { %v854_v46 = vpop.f32.mrf.mxu0 }
  0xf7   :  { %v855_v48 = vadd.f32 %v3016_v61, %v854_v46  ;;  %v1143_v49 = vpop.f32.mrf.mxu1  ;;  %v1282_v1 = vadd.f32 %v1281_v45, %v993_v50 }
  0xf9   :  { %v1144_v51 = vadd.f32 %v1143_v49, %v855_v48  ;;  %v1462_v11 = vmax.f32 %v1282_v1, 0.0 }
  0xfb   :  { %v1407_v59 = vmax.f32 %v1144_v51, 0.0 }
  0xfc   :  { %v994_v63 = vpop.f32.mrf.mxu2 }
  0xfd   :  { %v2404_v2 = vpack.c.bf16 %v1407_v59, %v1406_v58  ;;  %v995_v3 = vadd.f32 %v3016_v61, %v994_v63  ;;  %v1283_v4 = vpop.f32.mrf.mxu3  ;;  %v2281_v58 = vld [vmem:[%s3761_s0 + $0x104] sm:$0xf0]  ;;  %v2090_v59 = vld [vmem:[%s3761_s0 + $0x2c0] sm:$0xf]  ;;  %v1868_v63 = vld [vmem:[%s3761_s0 + $0x108] sm:$0xf0] }
  0xfe   :  { %v857_v6 = vpop.f32.mrf.mxu0 }
  0xff   :  { %2660 = vst [vmem:[%s3762_s3 + $0x28] sm:$0xff] %v2404_v2   ;;  %v1284_v9 = vadd.f32 %v1283_v4, %v995_v3  ;;  %v1146_v10 = vpop.f32.mrf.mxu1  ;;  %v858_v14 = vadd.f32 %v3016_v61, %v857_v6  ;;  %v2336_v2 = vld [vmem:[%s3761_s0 + $0x2c4] sm:$0xf]  ;;  %v2092_v3 = vld [vmem:[%s3761_s0 + $0x2c8] sm:$0xf0] }
 0x101   :  { %v1463_v12 = vmax.f32 %v1284_v9, 0.0  ;;  %896 = vmatmul.bf16.gmra.mxu0 %v1851_v0  ;;  %1036 = vmatmul.bf16.gmra.mxu2 %v2075_v5  ;;  %v1147_v18 = vadd.f32 %v1146_v10, %v858_v14  ;;  %v1867_v5 = vor.u32 %v2281_v58, %v1866_v57  ;;  %v2091_v10 = vor.u32 %v2337_v60, %v2090_v59 }
 0x102   :  { %1185 = vmatmul.bf16.gmra.mxu1 %v1855_v7  ;;  %1325 = vmatmul.bf16.gmra.mxu3 %v2079_v8 }
 0x103   :  { %v2544_v13 = vpack.c.bf16 %v1463_v12, %v1462_v11  ;;  %v1408_v29 = vmax.f32 %v1147_v18, 0.0  ;;  %v1871_v12 = vor.u32 %v2280_v62, %v1868_v63  ;;  %v1882_v63 = vld [vmem:[%s3761_s0 + $0x120] sm:$0xf] }
 0x104   :  { %v997_v15 = vpop.f32.mrf.mxu2 }
 0x105   :  { %2688 = vst [vmem:[%s3762_s3 + $0x108] sm:$0xff] %v2544_v13   ;;  %v1286_v16 = vpop.f32.mrf.mxu3  ;;  %v998_v21 = vadd.f32 %v3016_v61, %v997_v15  ;;  %v2095_v13 = vor.u32 %v2336_v2, %v2092_v3  ;;  %v2341_v2 = vld [vmem:[%s3761_s0 + $0x2e4] sm:$0xf0]  ;;  %v2284_v3 = vld [vmem:[%s3761_s0 + $0x124] sm:$0xf] }
 0x106   :  { %v859_v17 = vpop.f32.mrf.mxu0 }
 0x107   :  { %v860_v19 = vadd.f32 %v3016_v61, %v859_v17  ;;  %v1148_v20 = vpop.f32.mrf.mxu1  ;;  %v1287_v35 = vadd.f32 %v1286_v16, %v998_v21 }
 0x109   :  { %v1149_v22 = vadd.f32 %v1148_v20, %v860_v19  ;;  %v1464_v45 = vmax.f32 %v1287_v35, 0.0 }
 0x10b   :  { %v1409_v30 = vmax.f32 %v1149_v22, 0.0 }
 0x10c   :  { %v999_v33 = vpop.f32.mrf.mxu2 }
 0x10d   :  { %v2409_v36 = vpack.c.bf16 %v1409_v30, %v1408_v29  ;;  %v1000_v37 = vadd.f32 %v3016_v61, %v999_v33  ;;  %v1288_v38 = vpop.f32.mrf.mxu3  ;;  %v2283_v29 = vld [vmem:[%s3761_s0 + $0x114] sm:$0xf0]  ;;  %v2098_v30 = vld [vmem:[%s3761_s0 + $0x2d0] sm:$0xf]  ;;  %v1876_v33 = vld [vmem:[%s3761_s0 + $0x118] sm:$0xf0] }
 0x10e   :  { %v862_v40 = vpop.f32.mrf.mxu0 }
 0x10f   :  { %2661 = vst [vmem:[%s3762_s3 + $0x30] sm:$0xff] %v2409_v36   ;;  %v1289_v43 = vadd.f32 %v1288_v38, %v1000_v37  ;;  %v1151_v44 = vpop.f32.mrf.mxu1  ;;  %v863_v48 = vadd.f32 %v3016_v61, %v862_v40  ;;  %v2338_v36 = vld [vmem:[%s3761_s0 + $0x2d4] sm:$0xf]  ;;  %v2100_v37 = vld [vmem:[%s3761_s0 + $0x2d8] sm:$0xf0] }
 0x111   :  { %v1465_v46 = vmax.f32 %v1289_v43, 0.0  ;;  %901 = vmatmul.bf16.gmra.mxu0 %v1859_v34  ;;  %1041 = vmatmul.bf16.gmra.mxu2 %v2083_v39  ;;  %v1152_v52 = vadd.f32 %v1151_v44, %v863_v48  ;;  %v1875_v39 = vor.u32 %v2283_v29, %v1874_v28  ;;  %v2099_v44 = vor.u32 %v2339_v31, %v2098_v30 }
 0x112   :  { %1190 = vmatmul.bf16.gmra.mxu1 %v1863_v41  ;;  %1330 = vmatmul.bf16.gmra.mxu3 %v2087_v42 }
 0x113   :  { %v2549_v47 = vpack.c.bf16 %v1465_v46, %v1464_v45  ;;  %v1410_v0 = vmax.f32 %v1152_v52, 0.0  ;;  %v1879_v46 = vor.u32 %v2282_v32, %v1876_v33  ;;  %v1890_v33 = vld [vmem:[%s3761_s0 + $0x130] sm:$0xf] }
 0x114   :  { %v1002_v49 = vpop.f32.mrf.mxu2 }
 0x115   :  { %2689 = vst [vmem:[%s3762_s3 + $0x110] sm:$0xff] %v2549_v47   ;;  %v1291_v50 = vpop.f32.mrf.mxu3  ;;  %v1003_v55 = vadd.f32 %v3016_v61, %v1002_v49  ;;  %v2103_v47 = vor.u32 %v2338_v36, %v2100_v37  ;;  %v2343_v36 = vld [vmem:[%s3761_s0 + $0x2f4] sm:$0xf0]  ;;  %v2286_v37 = vld [vmem:[%s3761_s0 + $0x134] sm:$0xf] }
 0x116   :  { %v864_v51 = vpop.f32.mrf.mxu0 }
 0x117   :  { %v865_v53 = vadd.f32 %v3016_v61, %v864_v51  ;;  %v1153_v54 = vpop.f32.mrf.mxu1  ;;  %v1292_v6 = vadd.f32 %v1291_v50, %v1003_v55 }
 0x119   :  { %v1154_v56 = vadd.f32 %v1153_v54, %v865_v53  ;;  %v1466_v16 = vmax.f32 %v1292_v6, 0.0 }
 0x11b   :  { %v1411_v1 = vmax.f32 %v1154_v56, 0.0 }
 0x11c   :  { %v1004_v4 = vpop.f32.mrf.mxu2 }
 0x11d   :  { %v2414_v7 = vpack.c.bf16 %v1411_v1, %v1410_v0  ;;  %v1005_v8 = vadd.f32 %v3016_v61, %v1004_v4  ;;  %v1293_v9 = vpop.f32.mrf.mxu3  ;;  %v2285_v0 = vld [vmem:[%s3761_s0 + $0x124] sm:$0xf0]  ;;  %v2106_v1 = vld [vmem:[%s3761_s0 + $0x2e0] sm:$0xf]  ;;  %v1884_v4 = vld [vmem:[%s3761_s0 + $0x128] sm:$0xf0] }
 0x11e   :  { %v867_v11 = vpop.f32.mrf.mxu0 }
 0x11f   :  { %2662 = vst [vmem:[%s3762_s3 + $0x38] sm:$0xff] %v2414_v7   ;;  %v1294_v14 = vadd.f32 %v1293_v9, %v1005_v8  ;;  %v1156_v15 = vpop.f32.mrf.mxu1  ;;  %v868_v19 = vadd.f32 %v3016_v61, %v867_v11  ;;  %v2340_v7 = vld [vmem:[%s3761_s0 + $0x2e4] sm:$0xf]  ;;  %v2108_v8 = vld [vmem:[%s3761_s0 + $0x2e8] sm:$0xf0] }
 0x121   :  { %v1467_v17 = vmax.f32 %v1294_v14, 0.0  ;;  %906 = vmatmul.bf16.gmra.mxu0 %v1867_v5  ;;  %1046 = vmatmul.bf16.gmra.mxu2 %v2091_v10  ;;  %v1157_v23 = vadd.f32 %v1156_v15, %v868_v19  ;;  %v1883_v10 = vor.u32 %v2285_v0, %v1882_v63  ;;  %v2107_v15 = vor.u32 %v2341_v2, %v2106_v1 }
 0x122   :  { %1195 = vmatmul.bf16.gmra.mxu1 %v1871_v12  ;;  %1335 = vmatmul.bf16.gmra.mxu3 %v2095_v13 }
 0x123   :  { %v2554_v18 = vpack.c.bf16 %v1467_v17, %v1466_v16  ;;  %v1412_v34 = vmax.f32 %v1157_v23, 0.0  ;;  %v1887_v17 = vor.u32 %v2284_v3, %v1884_v4  ;;  %v1898_v4 = vld [vmem:[%s3761_s0 + $0x140] sm:$0xf] }
 0x124   :  { %v1007_v20 = vpop.f32.mrf.mxu2 }
 0x125   :  { %2690 = vst [vmem:[%s3762_s3 + $0x118] sm:$0xff] %v2554_v18   ;;  %v1296_v21 = vpop.f32.mrf.mxu3  ;;  %v1008_v26 = vadd.f32 %v3016_v61, %v1007_v20  ;;  %v2111_v18 = vor.u32 %v2340_v7, %v2108_v8  ;;  %v2345_v7 = vld [vmem:[%s3761_s0 + $0x304] sm:$0xf0]  ;;  %v2288_v8 = vld [vmem:[%s3761_s0 + $0x144] sm:$0xf] }
 0x126   :  { %v869_v22 = vpop.f32.mrf.mxu0 }
 0x127   :  { %v870_v24 = vadd.f32 %v3016_v61, %v869_v22  ;;  %v1158_v25 = vpop.f32.mrf.mxu1  ;;  %v1297_v40 = vadd.f32 %v1296_v21, %v1008_v26 }
 0x129   :  { %v1159_v27 = vadd.f32 %v1158_v25, %v870_v24  ;;  %v1468_v50 = vmax.f32 %v1297_v40, 0.0 }
 0x12b   :  { %v1413_v35 = vmax.f32 %v1159_v27, 0.0 }
 0x12c   :  { %v1009_v38 = vpop.f32.mrf.mxu2 }
 0x12d   :  { %v2419_v41 = vpack.c.bf16 %v1413_v35, %v1412_v34  ;;  %v1010_v42 = vadd.f32 %v3016_v61, %v1009_v38  ;;  %v1298_v43 = vpop.f32.mrf.mxu3  ;;  %v2287_v34 = vld [vmem:[%s3761_s0 + $0x134] sm:$0xf0]  ;;  %v2114_v35 = vld [vmem:[%s3761_s0 + $0x2f0] sm:$0xf]  ;;  %v1892_v38 = vld [vmem:[%s3761_s0 + $0x138] sm:$0xf0] }
 0x12e   :  { %v872_v45 = vpop.f32.mrf.mxu0 }
 0x12f   :  { %2663 = vst [vmem:[%s3762_s3 + $0x40] sm:$0xff] %v2419_v41   ;;  %v1299_v48 = vadd.f32 %v1298_v43, %v1010_v42  ;;  %v1161_v49 = vpop.f32.mrf.mxu1  ;;  %v873_v53 = vadd.f32 %v3016_v61, %v872_v45  ;;  %v2342_v41 = vld [vmem:[%s3761_s0 + $0x2f4] sm:$0xf]  ;;  %v2116_v42 = vld [vmem:[%s3761_s0 + $0x2f8] sm:$0xf0] }
 0x131   :  { %v1469_v51 = vmax.f32 %v1299_v48, 0.0  ;;  %911 = vmatmul.bf16.gmra.mxu0 %v1875_v39  ;;  %1051 = vmatmul.bf16.gmra.mxu2 %v2099_v44  ;;  %v1162_v57 = vadd.f32 %v1161_v49, %v873_v53  ;;  %v1891_v44 = vor.u32 %v2287_v34, %v1890_v33  ;;  %v2115_v49 = vor.u32 %v2343_v36, %v2114_v35 }
 0x132   :  { %1200 = vmatmul.bf16.gmra.mxu1 %v1879_v46  ;;  %1340 = vmatmul.bf16.gmra.mxu3 %v2103_v47 }
 0x133   :  { %v2559_v52 = vpack.c.bf16 %v1469_v51, %v1468_v50  ;;  %v1414_v5 = vmax.f32 %v1162_v57, 0.0  ;;  %v1895_v51 = vor.u32 %v2286_v37, %v1892_v38  ;;  %v1906_v38 = vld [vmem:[%s3761_s0 + $0x150] sm:$0xf] }
 0x134   :  { %v1012_v54 = vpop.f32.mrf.mxu2 }
 0x135   :  { %2691 = vst [vmem:[%s3762_s3 + $0x120] sm:$0xff] %v2559_v52   ;;  %v1301_v55 = vpop.f32.mrf.mxu3  ;;  %v1013_v60 = vadd.f32 %v3016_v61, %v1012_v54  ;;  %v2119_v52 = vor.u32 %v2342_v41, %v2116_v42  ;;  %v2347_v41 = vld [vmem:[%s3761_s0 + $0x314] sm:$0xf0]  ;;  %v2290_v42 = vld [vmem:[%s3761_s0 + $0x154] sm:$0xf] }
 0x136   :  { %v874_v56 = vpop.f32.mrf.mxu0 }
 0x137   :  { %v875_v58 = vadd.f32 %v3016_v61, %v874_v56  ;;  %v1163_v59 = vpop.f32.mrf.mxu1  ;;  %v1302_v11 = vadd.f32 %v1301_v55, %v1013_v60 }
 0x139   :  { %v1164_v62 = vadd.f32 %v1163_v59, %v875_v58  ;;  %v1470_v21 = vmax.f32 %v1302_v11, 0.0 }
 0x13b   :  { %v1415_v6 = vmax.f32 %v1164_v62, 0.0 }
 0x13c   :  { %v1014_v9 = vpop.f32.mrf.mxu2 }
 0x13d   :  { %v2424_v12 = vpack.c.bf16 %v1415_v6, %v1414_v5  ;;  %v1015_v13 = vadd.f32 %v3016_v61, %v1014_v9  ;;  %v1303_v14 = vpop.f32.mrf.mxu3  ;;  %v2289_v5 = vld [vmem:[%s3761_s0 + $0x144] sm:$0xf0]  ;;  %v2122_v6 = vld [vmem:[%s3761_s0 + $0x300] sm:$0xf]  ;;  %v1900_v9 = vld [vmem:[%s3761_s0 + $0x148] sm:$0xf0] }
 0x13e   :  { %v877_v16 = vpop.f32.mrf.mxu0 }
 0x13f   :  { %2664 = vst [vmem:[%s3762_s3 + $0x48] sm:$0xff] %v2424_v12   ;;  %v1304_v19 = vadd.f32 %v1303_v14, %v1015_v13  ;;  %v1166_v20 = vpop.f32.mrf.mxu1  ;;  %v878_v24 = vadd.f32 %v3016_v61, %v877_v16  ;;  %v2344_v12 = vld [vmem:[%s3761_s0 + $0x304] sm:$0xf]  ;;  %v2124_v13 = vld [vmem:[%s3761_s0 + $0x308] sm:$0xf0] }
 0x141   :  { %v1471_v22 = vmax.f32 %v1304_v19, 0.0  ;;  %916 = vmatmul.bf16.gmra.mxu0 %v1883_v10  ;;  %1056 = vmatmul.bf16.gmra.mxu2 %v2107_v15  ;;  %v1167_v28 = vadd.f32 %v1166_v20, %v878_v24  ;;  %v1899_v15 = vor.u32 %v2289_v5, %v1898_v4  ;;  %v2123_v20 = vor.u32 %v2345_v7, %v2122_v6 }
 0x142   :  { %1205 = vmatmul.bf16.gmra.mxu1 %v1887_v17  ;;  %1345 = vmatmul.bf16.gmra.mxu3 %v2111_v18 }
 0x143   :  { %v2564_v23 = vpack.c.bf16 %v1471_v22, %v1470_v21  ;;  %v1416_v39 = vmax.f32 %v1167_v28, 0.0  ;;  %v1903_v22 = vor.u32 %v2288_v8, %v1900_v9  ;;  %v1914_v9 = vld [vmem:[%s3761_s0 + $0x160] sm:$0xf] }
 0x144   :  { %v1017_v25 = vpop.f32.mrf.mxu2 }
 0x145   :  { %2692 = vst [vmem:[%s3762_s3 + $0x128] sm:$0xff] %v2564_v23   ;;  %v1306_v26 = vpop.f32.mrf.mxu3  ;;  %v1018_v31 = vadd.f32 %v3016_v61, %v1017_v25  ;;  %v2127_v23 = vor.u32 %v2344_v12, %v2124_v13  ;;  %v2349_v12 = vld [vmem:[%s3761_s0 + $0x324] sm:$0xf0]  ;;  %v2292_v13 = vld [vmem:[%s3761_s0 + $0x164] sm:$0xf] }
 0x146   :  { %v879_v27 = vpop.f32.mrf.mxu0 }
 0x147   :  { %v880_v29 = vadd.f32 %v3016_v61, %v879_v27  ;;  %v1168_v30 = vpop.f32.mrf.mxu1  ;;  %v1307_v45 = vadd.f32 %v1306_v26, %v1018_v31 }
 0x149   :  { %v1169_v32 = vadd.f32 %v1168_v30, %v880_v29  ;;  %v1472_v55 = vmax.f32 %v1307_v45, 0.0 }
 0x14b   :  { %v1417_v40 = vmax.f32 %v1169_v32, 0.0 }
 0x14c   :  { %v1019_v43 = vpop.f32.mrf.mxu2 }
 0x14d   :  { %v2429_v46 = vpack.c.bf16 %v1417_v40, %v1416_v39  ;;  %v1020_v47 = vadd.f32 %v3016_v61, %v1019_v43  ;;  %v1308_v48 = vpop.f32.mrf.mxu3  ;;  %v2291_v39 = vld [vmem:[%s3761_s0 + $0x154] sm:$0xf0]  ;;  %v2130_v40 = vld [vmem:[%s3761_s0 + $0x310] sm:$0xf]  ;;  %v1908_v43 = vld [vmem:[%s3761_s0 + $0x158] sm:$0xf0] }
 0x14e   :  { %v882_v50 = vpop.f32.mrf.mxu0 }
 0x14f   :  { %2665 = vst [vmem:[%s3762_s3 + $0x50] sm:$0xff] %v2429_v46   ;;  %v1309_v53 = vadd.f32 %v1308_v48, %v1020_v47  ;;  %v1171_v54 = vpop.f32.mrf.mxu1  ;;  %v883_v58 = vadd.f32 %v3016_v61, %v882_v50  ;;  %v2346_v46 = vld [vmem:[%s3761_s0 + $0x314] sm:$0xf]  ;;  %v2132_v47 = vld [vmem:[%s3761_s0 + $0x318] sm:$0xf0] }
 0x151   :  { %v1473_v56 = vmax.f32 %v1309_v53, 0.0  ;;  %921 = vmatmul.bf16.gmra.mxu0 %v1891_v44  ;;  %1061 = vmatmul.bf16.gmra.mxu2 %v2115_v49  ;;  %v1172_v63 = vadd.f32 %v1171_v54, %v883_v58  ;;  %v1907_v49 = vor.u32 %v2291_v39, %v1906_v38  ;;  %v2131_v54 = vor.u32 %v2347_v41, %v2130_v40 }
 0x152   :  { %1210 = vmatmul.bf16.gmra.mxu1 %v1895_v51  ;;  %1350 = vmatmul.bf16.gmra.mxu3 %v2119_v52 }
 0x153   :  { %v2569_v57 = vpack.c.bf16 %v1473_v56, %v1472_v55  ;;  %v1418_v10 = vmax.f32 %v1172_v63, 0.0  ;;  %v1911_v56 = vor.u32 %v2290_v42, %v1908_v43  ;;  %v1922_v43 = vld [vmem:[%s3761_s0 + $0x170] sm:$0xf] }
 0x154   :  { %v1022_v59 = vpop.f32.mrf.mxu2 }
 0x155   :  { %2693 = vst [vmem:[%s3762_s3 + $0x130] sm:$0xff] %v2569_v57   ;;  %v1311_v60 = vpop.f32.mrf.mxu3  ;;  %v1023_v2 = vadd.f32 %v3016_v61, %v1022_v59  ;;  %v2135_v57 = vor.u32 %v2346_v46, %v2132_v47  ;;  %v2351_v46 = vld [vmem:[%s3761_s0 + $0x334] sm:$0xf0]  ;;  %v2294_v47 = vld [vmem:[%s3761_s0 + $0x174] sm:$0xf] }
 0x156   :  { %v884_v62 = vpop.f32.mrf.mxu0 }
 0x157   :  { %v885_v0 = vadd.f32 %v3016_v61, %v884_v62  ;;  %v1173_v1 = vpop.f32.mrf.mxu1  ;;  %v1312_v16 = vadd.f32 %v1311_v60, %v1023_v2 }
 0x159   :  { %v1174_v3 = vadd.f32 %v1173_v1, %v885_v0  ;;  %v1474_v26 = vmax.f32 %v1312_v16, 0.0 }
 0x15b   :  { %v1419_v11 = vmax.f32 %v1174_v3, 0.0 }
 0x15c   :  { %v1024_v14 = vpop.f32.mrf.mxu2 }
 0x15d   :  { %v2434_v17 = vpack.c.bf16 %v1419_v11, %v1418_v10  ;;  %v1025_v18 = vadd.f32 %v3016_v61, %v1024_v14  ;;  %v1313_v19 = vpop.f32.mrf.mxu3  ;;  %v2293_v10 = vld [vmem:[%s3761_s0 + $0x164] sm:$0xf0]  ;;  %v2138_v11 = vld [vmem:[%s3761_s0 + $0x320] sm:$0xf]  ;;  %v1916_v14 = vld [vmem:[%s3761_s0 + $0x168] sm:$0xf0] }
 0x15e   :  { %v887_v21 = vpop.f32.mrf.mxu0 }
 0x15f   :  { %2666 = vst [vmem:[%s3762_s3 + $0x58] sm:$0xff] %v2434_v17   ;;  %v1314_v24 = vadd.f32 %v1313_v19, %v1025_v18  ;;  %v1176_v25 = vpop.f32.mrf.mxu1  ;;  %v888_v29 = vadd.f32 %v3016_v61, %v887_v21  ;;  %v2348_v17 = vld [vmem:[%s3761_s0 + $0x324] sm:$0xf]  ;;  %v2140_v18 = vld [vmem:[%s3761_s0 + $0x328] sm:$0xf0] }
 0x161   :  { %v1475_v27 = vmax.f32 %v1314_v24, 0.0  ;;  %926 = vmatmul.bf16.gmra.mxu0 %v1899_v15  ;;  %1066 = vmatmul.bf16.gmra.mxu2 %v2123_v20  ;;  %v1177_v33 = vadd.f32 %v1176_v25, %v888_v29  ;;  %v1915_v20 = vor.u32 %v2293_v10, %v1914_v9  ;;  %v2139_v25 = vor.u32 %v2349_v12, %v2138_v11 }
 0x162   :  { %1215 = vmatmul.bf16.gmra.mxu1 %v1903_v22  ;;  %1355 = vmatmul.bf16.gmra.mxu3 %v2127_v23 }
 0x163   :  { %v2574_v28 = vpack.c.bf16 %v1475_v27, %v1474_v26  ;;  %v1420_v44 = vmax.f32 %v1177_v33, 0.0  ;;  %v1919_v27 = vor.u32 %v2292_v13, %v1916_v14  ;;  %v1930_v14 = vld [vmem:[%s3761_s0 + $0x180] sm:$0xf] }
 0x164   :  { %v1027_v30 = vpop.f32.mrf.mxu2 }
 0x165   :  { %2694 = vst [vmem:[%s3762_s3 + $0x138] sm:$0xff] %v2574_v28   ;;  %v1316_v31 = vpop.f32.mrf.mxu3  ;;  %v1028_v36 = vadd.f32 %v3016_v61, %v1027_v30  ;;  %v2143_v28 = vor.u32 %v2348_v17, %v2140_v18  ;;  %v2353_v17 = vld [vmem:[%s3761_s0 + $0x344] sm:$0xf0]  ;;  %v2296_v18 = vld [vmem:[%s3761_s0 + $0x184] sm:$0xf] }
 0x166   :  { %v889_v32 = vpop.f32.mrf.mxu0 }
 0x167   :  { %v890_v34 = vadd.f32 %v3016_v61, %v889_v32  ;;  %v1178_v35 = vpop.f32.mrf.mxu1  ;;  %v1317_v50 = vadd.f32 %v1316_v31, %v1028_v36 }
 0x169   :  { %v1179_v37 = vadd.f32 %v1178_v35, %v890_v34  ;;  %v1476_v60 = vmax.f32 %v1317_v50, 0.0 }
 0x16b   :  { %v1421_v45 = vmax.f32 %v1179_v37, 0.0 }
 0x16c   :  { %v1029_v48 = vpop.f32.mrf.mxu2 }
 0x16d   :  { %v2439_v51 = vpack.c.bf16 %v1421_v45, %v1420_v44  ;;  %v1030_v52 = vadd.f32 %v3016_v61, %v1029_v48  ;;  %v1318_v53 = vpop.f32.mrf.mxu3  ;;  %v3460_v61 = vld [vmem:[%s3760_s2] ss:$0 sm:$0xff]  ;;  %v2295_v44 = vld [vmem:[%s3761_s0 + $0x174] sm:$0xf0]  ;;  %v2146_v45 = vld [vmem:[%s3761_s0 + $0x330] sm:$0xf] }
 0x16e   :  { %v892_v55 = vpop.f32.mrf.mxu0  ;;  %v1924_v48 = vld [vmem:[%s3761_s0 + $0x178] sm:$0xf0] }
 0x16f   :  { %2667 = vst [vmem:[%s3762_s3 + $0x60] sm:$0xff] %v2439_v51   ;;  %v1319_v58 = vadd.f32 %v1318_v53, %v1030_v52  ;;  %v1181_v59 = vpop.f32.mrf.mxu1  ;;  %v893_v0 = vadd.f32 %v3460_v61, %v892_v55  ;;  %v2350_v51 = vld [vmem:[%s3761_s0 + $0x334] sm:$0xf]  ;;  %v2148_v52 = vld [vmem:[%s3761_s0 + $0x338] sm:$0xf0] }
 0x171   :  { %v1477_v62 = vmax.f32 %v1319_v58, 0.0  ;;  %931 = vmatmul.bf16.gmra.mxu0 %v1907_v49  ;;  %1071 = vmatmul.bf16.gmra.mxu2 %v2131_v54  ;;  %v1182_v4 = vadd.f32 %v1181_v59, %v893_v0  ;;  %v1923_v54 = vor.u32 %v2295_v44, %v1922_v43  ;;  %v2147_v59 = vor.u32 %v2351_v46, %v2146_v45 }
 0x172   :  { %1220 = vmatmul.bf16.gmra.mxu1 %v1911_v56  ;;  %1360 = vmatmul.bf16.gmra.mxu3 %v2135_v57 }
 0x173   :  { %v2579_v63 = vpack.c.bf16 %v1477_v62, %v1476_v60  ;;  %v1422_v15 = vmax.f32 %v1182_v4, 0.0  ;;  %v1927_v62 = vor.u32 %v2294_v47, %v1924_v48  ;;  %v1938_v48 = vld [vmem:[%s3761_s0 + $0x190] sm:$0xf] }
 0x174   :  { %v1032_v1 = vpop.f32.mrf.mxu2 }
 0x175   :  { %2695 = vst [vmem:[%s3762_s3 + $0x140] sm:$0xff] %v2579_v63   ;;  %v1321_v2 = vpop.f32.mrf.mxu3  ;;  %v1033_v7 = vadd.f32 %v3460_v61, %v1032_v1  ;;  %v2151_v63 = vor.u32 %v2350_v51, %v2148_v52  ;;  %v2355_v51 = vld [vmem:[%s3761_s0 + $0x354] sm:$0xf0]  ;;  %v2298_v52 = vld [vmem:[%s3761_s0 + $0x194] sm:$0xf] }
 0x176   :  { %v894_v3 = vpop.f32.mrf.mxu0 }
 0x177   :  { %v895_v5 = vadd.f32 %v3460_v61, %v894_v3  ;;  %v1183_v6 = vpop.f32.mrf.mxu1  ;;  %v1322_v21 = vadd.f32 %v1321_v2, %v1033_v7 }
 0x179   :  { %v1184_v8 = vadd.f32 %v1183_v6, %v895_v5  ;;  %v1478_v31 = vmax.f32 %v1322_v21, 0.0 }
 0x17b   :  { %v1423_v16 = vmax.f32 %v1184_v8, 0.0 }
 0x17c   :  { %v1034_v19 = vpop.f32.mrf.mxu2 }
 0x17d   :  { %v2444_v22 = vpack.c.bf16 %v1423_v16, %v1422_v15  ;;  %v1035_v23 = vadd.f32 %v3460_v61, %v1034_v19  ;;  %v1323_v24 = vpop.f32.mrf.mxu3  ;;  %v2297_v15 = vld [vmem:[%s3761_s0 + $0x184] sm:$0xf0]  ;;  %v2154_v16 = vld [vmem:[%s3761_s0 + $0x340] sm:$0xf]  ;;  %v1932_v19 = vld [vmem:[%s3761_s0 + $0x188] sm:$0xf0] }
 0x17e   :  { %v897_v26 = vpop.f32.mrf.mxu0 }
 0x17f   :  { %2668 = vst [vmem:[%s3762_s3 + $0x68] sm:$0xff] %v2444_v22   ;;  %v1324_v29 = vadd.f32 %v1323_v24, %v1035_v23  ;;  %v1186_v30 = vpop.f32.mrf.mxu1  ;;  %v898_v34 = vadd.f32 %v3460_v61, %v897_v26  ;;  %v2352_v22 = vld [vmem:[%s3761_s0 + $0x344] sm:$0xf]  ;;  %v2156_v23 = vld [vmem:[%s3761_s0 + $0x348] sm:$0xf0] }
 0x181   :  { %v1479_v32 = vmax.f32 %v1324_v29, 0.0  ;;  %936 = vmatmul.bf16.gmra.mxu0 %v1915_v20  ;;  %1076 = vmatmul.bf16.gmra.mxu2 %v2139_v25  ;;  %v1187_v38 = vadd.f32 %v1186_v30, %v898_v34  ;;  %v1931_v25 = vor.u32 %v2297_v15, %v1930_v14  ;;  %v2155_v30 = vor.u32 %v2353_v17, %v2154_v16 }
 0x182   :  { %1225 = vmatmul.bf16.gmra.mxu1 %v1919_v27  ;;  %1365 = vmatmul.bf16.gmra.mxu3 %v2143_v28 }
 0x183   :  { %v2584_v33 = vpack.c.bf16 %v1479_v32, %v1478_v31  ;;  %v1424_v49 = vmax.f32 %v1187_v38, 0.0  ;;  %v1935_v32 = vor.u32 %v2296_v18, %v1932_v19  ;;  %v1946_v19 = vld [vmem:[%s3761_s0 + $0x1a0] sm:$0xf] }
 0x184   :  { %v1037_v35 = vpop.f32.mrf.mxu2 }
 0x185   :  { %2696 = vst [vmem:[%s3762_s3 + $0x148] sm:$0xff] %v2584_v33   ;;  %v1326_v36 = vpop.f32.mrf.mxu3  ;;  %v1038_v41 = vadd.f32 %v3460_v61, %v1037_v35  ;;  %v2159_v33 = vor.u32 %v2352_v22, %v2156_v23  ;;  %v2357_v22 = vld [vmem:[%s3761_s0 + $0x364] sm:$0xf0]  ;;  %v2300_v23 = vld [vmem:[%s3761_s0 + $0x1a4] sm:$0xf] }
 0x186   :  { %v899_v37 = vpop.f32.mrf.mxu0 }
 0x187   :  { %v900_v39 = vadd.f32 %v3460_v61, %v899_v37  ;;  %v1188_v40 = vpop.f32.mrf.mxu1  ;;  %v1327_v55 = vadd.f32 %v1326_v36, %v1038_v41 }
 0x189   :  { %v1189_v42 = vadd.f32 %v1188_v40, %v900_v39  ;;  %v1480_v2 = vmax.f32 %v1327_v55, 0.0 }
 0x18b   :  { %v1425_v50 = vmax.f32 %v1189_v42, 0.0 }
 0x18c   :  { %v1039_v53 = vpop.f32.mrf.mxu2 }
 0x18d   :  { %v2449_v56 = vpack.c.bf16 %v1425_v50, %v1424_v49  ;;  %v1040_v57 = vadd.f32 %v3460_v61, %v1039_v53  ;;  %v1328_v58 = vpop.f32.mrf.mxu3  ;;  %v2299_v49 = vld [vmem:[%s3761_s0 + $0x194] sm:$0xf0]  ;;  %v2162_v50 = vld [vmem:[%s3761_s0 + $0x350] sm:$0xf]  ;;  %v1940_v53 = vld [vmem:[%s3761_s0 + $0x198] sm:$0xf0] }
 0x18e   :  { %v902_v60 = vpop.f32.mrf.mxu0 }
 0x18f   :  { %2669 = vst [vmem:[%s3762_s3 + $0x70] sm:$0xff] %v2449_v56   ;;  %v1329_v0 = vadd.f32 %v1328_v58, %v1040_v57  ;;  %v1191_v1 = vpop.f32.mrf.mxu1  ;;  %v903_v5 = vadd.f32 %v3460_v61, %v902_v60  ;;  %v2354_v56 = vld [vmem:[%s3761_s0 + $0x354] sm:$0xf]  ;;  %v2164_v57 = vld [vmem:[%s3761_s0 + $0x358] sm:$0xf0] }
 0x191   :  { %v1481_v3 = vmax.f32 %v1329_v0, 0.0  ;;  %941 = vmatmul.bf16.gmra.mxu0 %v1923_v54  ;;  %1081 = vmatmul.bf16.gmra.mxu2 %v2147_v59  ;;  %v1192_v9 = vadd.f32 %v1191_v1, %v903_v5  ;;  %v1939_v59 = vor.u32 %v2299_v49, %v1938_v48  ;;  %v2163_v1 = vor.u32 %v2355_v51, %v2162_v50 }
 0x192   :  { %1230 = vmatmul.bf16.gmra.mxu1 %v1927_v62  ;;  %1370 = vmatmul.bf16.gmra.mxu3 %v2151_v63 }
 0x193   :  { %v2589_v4 = vpack.c.bf16 %v1481_v3, %v1480_v2  ;;  %v1426_v20 = vmax.f32 %v1192_v9, 0.0  ;;  %v1943_v3 = vor.u32 %v2298_v52, %v1940_v53  ;;  %v1954_v53 = vld [vmem:[%s3761_s0 + $0x1b0] sm:$0xf] }
 0x194   :  { %v1042_v6 = vpop.f32.mrf.mxu2 }
 0x195   :  { %2697 = vst [vmem:[%s3762_s3 + $0x150] sm:$0xff] %v2589_v4   ;;  %v1331_v7 = vpop.f32.mrf.mxu3  ;;  %v1043_v12 = vadd.f32 %v3460_v61, %v1042_v6  ;;  %v2167_v4 = vor.u32 %v2354_v56, %v2164_v57  ;;  %v2359_v56 = vld [vmem:[%s3761_s0 + $0x374] sm:$0xf0]  ;;  %v2302_v57 = vld [vmem:[%s3761_s0 + $0x1b4] sm:$0xf] }
 0x196   :  { %v904_v8 = vpop.f32.mrf.mxu0 }
 0x197   :  { %v905_v10 = vadd.f32 %v3460_v61, %v904_v8  ;;  %v1193_v11 = vpop.f32.mrf.mxu1  ;;  %v1332_v26 = vadd.f32 %v1331_v7, %v1043_v12 }
 0x199   :  { %v1194_v13 = vadd.f32 %v1193_v11, %v905_v10  ;;  %v1482_v36 = vmax.f32 %v1332_v26, 0.0 }
 0x19b   :  { %v1427_v21 = vmax.f32 %v1194_v13, 0.0 }
 0x19c   :  { %v1044_v24 = vpop.f32.mrf.mxu2 }
 0x19d   :  { %v2454_v27 = vpack.c.bf16 %v1427_v21, %v1426_v20  ;;  %v1045_v28 = vadd.f32 %v3460_v61, %v1044_v24  ;;  %v1333_v29 = vpop.f32.mrf.mxu3  ;;  %v2301_v20 = vld [vmem:[%s3761_s0 + $0x1a4] sm:$0xf0]  ;;  %v2170_v21 = vld [vmem:[%s3761_s0 + $0x360] sm:$0xf]  ;;  %v1948_v24 = vld [vmem:[%s3761_s0 + $0x1a8] sm:$0xf0] }
 0x19e   :  { %v907_v31 = vpop.f32.mrf.mxu0 }
 0x19f   :  { %2670 = vst [vmem:[%s3762_s3 + $0x78] sm:$0xff] %v2454_v27   ;;  %v1334_v34 = vadd.f32 %v1333_v29, %v1045_v28  ;;  %v1196_v35 = vpop.f32.mrf.mxu1  ;;  %v908_v39 = vadd.f32 %v3460_v61, %v907_v31  ;;  %v2356_v27 = vld [vmem:[%s3761_s0 + $0x364] sm:$0xf]  ;;  %v2172_v28 = vld [vmem:[%s3761_s0 + $0x368] sm:$0xf0] }
 0x1a1   :  { %v1483_v37 = vmax.f32 %v1334_v34, 0.0  ;;  %946 = vmatmul.bf16.gmra.mxu0 %v1931_v25  ;;  %1086 = vmatmul.bf16.gmra.mxu2 %v2155_v30  ;;  %v1197_v43 = vadd.f32 %v1196_v35, %v908_v39  ;;  %v1947_v30 = vor.u32 %v2301_v20, %v1946_v19  ;;  %v2171_v35 = vor.u32 %v2357_v22, %v2170_v21 }
 0x1a2   :  { %1235 = vmatmul.bf16.gmra.mxu1 %v1935_v32  ;;  %1375 = vmatmul.bf16.gmra.mxu3 %v2159_v33 }
 0x1a3   :  { %v2594_v38 = vpack.c.bf16 %v1483_v37, %v1482_v36  ;;  %v1428_v54 = vmax.f32 %v1197_v43, 0.0  ;;  %v1951_v37 = vor.u32 %v2300_v23, %v1948_v24 }
 0x1a4   :  { %v1047_v40 = vpop.f32.mrf.mxu2 }
 0x1a5   :  { %2698 = vst [vmem:[%s3762_s3 + $0x158] sm:$0xff] %v2594_v38   ;;  %v1336_v41 = vpop.f32.mrf.mxu3  ;;  %v1048_v46 = vadd.f32 %v3460_v61, %v1047_v40  ;;  %v2175_v38 = vor.u32 %v2356_v27, %v2172_v28 }
 0x1a6   :  { %v909_v42 = vpop.f32.mrf.mxu0 }
 0x1a7   :  { %v910_v44 = vadd.f32 %v3460_v61, %v909_v42  ;;  %v1198_v45 = vpop.f32.mrf.mxu1  ;;  %v1337_v60 = vadd.f32 %v1336_v41, %v1048_v46 }
 0x1a9   :  { %v1199_v47 = vadd.f32 %v1198_v45, %v910_v44  ;;  %v1484_v7 = vmax.f32 %v1337_v60, 0.0 }
 0x1ab   :  { %v1429_v55 = vmax.f32 %v1199_v47, 0.0 }
 0x1ac   :  { %v1049_v58 = vpop.f32.mrf.mxu2 }
 0x1ad   :  { %v2459_v62 = vpack.c.bf16 %v1429_v55, %v1428_v54  ;;  %v1050_v63 = vadd.f32 %v3460_v61, %v1049_v58  ;;  %v1338_v0 = vpop.f32.mrf.mxu3  ;;  %v2303_v54 = vld [vmem:[%s3761_s0 + $0x1b4] sm:$0xf0]  ;;  %v2178_v55 = vld [vmem:[%s3761_s0 + $0x370] sm:$0xf]  ;;  %v1956_v58 = vld [vmem:[%s3761_s0 + $0x1b8] sm:$0xf0] }
 0x1ae   :  { %v912_v2 = vpop.f32.mrf.mxu0 }
 0x1af   :  { %2671 = vst [vmem:[%s3762_s3 + $0x80] sm:$0xff] %v2459_v62   ;;  %v1339_v5 = vadd.f32 %v1338_v0, %v1050_v63  ;;  %v1201_v6 = vpop.f32.mrf.mxu1  ;;  %v913_v10 = vadd.f32 %v3460_v61, %v912_v2  ;;  %v2358_v62 = vld [vmem:[%s3761_s0 + $0x374] sm:$0xf]  ;;  %v2180_v63 = vld [vmem:[%s3761_s0 + $0x378] sm:$0xf0] }
 0x1b1   :  { %v1485_v8 = vmax.f32 %v1339_v5, 0.0  ;;  %951 = vmatmul.bf16.gmra.mxu0 %v1939_v59  ;;  %1091 = vmatmul.bf16.gmra.mxu2 %v2163_v1  ;;  %v1202_v14 = vadd.f32 %v1201_v6, %v913_v10  ;;  %v1955_v1 = vor.u32 %v2303_v54, %v1954_v53  ;;  %v2179_v6 = vor.u32 %v2359_v56, %v2178_v55 }
 0x1b2   :  { %1240 = vmatmul.bf16.gmra.mxu1 %v1943_v3  ;;  %1380 = vmatmul.bf16.gmra.mxu3 %v2167_v4 }
 0x1b3   :  { %v2599_v9 = vpack.c.bf16 %v1485_v8, %v1484_v7  ;;  %v1430_v25 = vmax.f32 %v1202_v14, 0.0  ;;  %v1959_v8 = vor.u32 %v2302_v57, %v1956_v58 }
 0x1b4   :  { %v1052_v11 = vpop.f32.mrf.mxu2 }
 0x1b5   :  { %2699 = vst [vmem:[%s3762_s3 + $0x160] sm:$0xff] %v2599_v9   ;;  %v1341_v12 = vpop.f32.mrf.mxu3  ;;  %v1053_v17 = vadd.f32 %v3460_v61, %v1052_v11  ;;  %v2183_v9 = vor.u32 %v2358_v62, %v2180_v63 }
 0x1b6   :  { %v914_v13 = vpop.f32.mrf.mxu0 }
 0x1b7   :  { %v915_v15 = vadd.f32 %v3460_v61, %v914_v13  ;;  %v1203_v16 = vpop.f32.mrf.mxu1  ;;  %v1342_v31 = vadd.f32 %v1341_v12, %v1053_v17 }
 0x1b9   :  { %v1204_v18 = vadd.f32 %v1203_v16, %v915_v15  ;;  %v1486_v41 = vmax.f32 %v1342_v31, 0.0 }
 0x1bb   :  { %v1431_v26 = vmax.f32 %v1204_v18, 0.0 }
 0x1bc   :  { %v1054_v29 = vpop.f32.mrf.mxu2 }
 0x1bd   :  { %v2464_v32 = vpack.c.bf16 %v1431_v26, %v1430_v25  ;;  %v1055_v33 = vadd.f32 %v3460_v61, %v1054_v29  ;;  %v1343_v34 = vpop.f32.mrf.mxu3 }
 0x1be   :  { %v917_v36 = vpop.f32.mrf.mxu0 }
 0x1bf   :  { %2672 = vst [vmem:[%s3762_s3 + $0x88] sm:$0xff] %v2464_v32   ;;  %v1344_v39 = vadd.f32 %v1343_v34, %v1055_v33  ;;  %v1206_v40 = vpop.f32.mrf.mxu1  ;;  %v918_v44 = vadd.f32 %v3460_v61, %v917_v36 }
 0x1c1   :  { %v1487_v42 = vmax.f32 %v1344_v39, 0.0  ;;  %956 = vmatmul.bf16.gmra.mxu0 %v1947_v30  ;;  %1096 = vmatmul.bf16.gmra.mxu2 %v2171_v35  ;;  %v1207_v48 = vadd.f32 %v1206_v40, %v918_v44 }
 0x1c2   :  { %1245 = vmatmul.bf16.gmra.mxu1 %v1951_v37  ;;  %1385 = vmatmul.bf16.gmra.mxu3 %v2175_v38 }
 0x1c3   :  { %v2604_v43 = vpack.c.bf16 %v1487_v42, %v1486_v41  ;;  %v1432_v59 = vmax.f32 %v1207_v48, 0.0 }
 0x1c4   :  { %v1057_v45 = vpop.f32.mrf.mxu2 }
 0x1c5   :  { %2700 = vst [vmem:[%s3762_s3 + $0x168] sm:$0xff] %v2604_v43   ;;  %v1346_v46 = vpop.f32.mrf.mxu3  ;;  %v1058_v51 = vadd.f32 %v3460_v61, %v1057_v45 }
 0x1c6   :  { %v919_v47 = vpop.f32.mrf.mxu0 }
 0x1c7   :  { %v920_v49 = vadd.f32 %v3460_v61, %v919_v47  ;;  %v1208_v50 = vpop.f32.mrf.mxu1  ;;  %v1347_v2 = vadd.f32 %v1346_v46, %v1058_v51 }
 0x1c9   :  { %v1209_v52 = vadd.f32 %v1208_v50, %v920_v49  ;;  %v1488_v12 = vmax.f32 %v1347_v2, 0.0 }
 0x1cb   :  { %v1433_v60 = vmax.f32 %v1209_v52, 0.0 }
 0x1cc   :  { %v1059_v0 = vpop.f32.mrf.mxu2 }
 0x1cd   :  { %v2469_v3 = vpack.c.bf16 %v1433_v60, %v1432_v59  ;;  %v1060_v4 = vadd.f32 %v3460_v61, %v1059_v0  ;;  %v1348_v5 = vpop.f32.mrf.mxu3 }
 0x1ce   :  { %v922_v7 = vpop.f32.mrf.mxu0 }
 0x1cf   :  { %2673 = vst [vmem:[%s3762_s3 + $0x90] sm:$0xff] %v2469_v3   ;;  %v1349_v10 = vadd.f32 %v1348_v5, %v1060_v4  ;;  %v1211_v11 = vpop.f32.mrf.mxu1  ;;  %v923_v15 = vadd.f32 %v3460_v61, %v922_v7 }
 0x1d1   :  { %v1489_v13 = vmax.f32 %v1349_v10, 0.0  ;;  %961 = vmatmul.bf16.gmra.mxu0 %v1955_v1  ;;  %1101 = vmatmul.bf16.gmra.mxu2 %v2179_v6  ;;  %v1212_v19 = vadd.f32 %v1211_v11, %v923_v15 }
 0x1d2   :  { %1250 = vmatmul.bf16.gmra.mxu1 %v1959_v8  ;;  %1390 = vmatmul.bf16.gmra.mxu3 %v2183_v9 }
 0x1d3   :  { %v2609_v14 = vpack.c.bf16 %v1489_v13, %v1488_v12  ;;  %v1434_v24 = vmax.f32 %v1212_v19, 0.0 }
 0x1d4   :  { %v1062_v16 = vpop.f32.mrf.mxu2 }
 0x1d5   :  { %2701 = vst [vmem:[%s3762_s3 + $0x170] sm:$0xff] %v2609_v14   ;;  %v1351_v17 = vpop.f32.mrf.mxu3  ;;  %v1063_v22 = vadd.f32 %v3460_v61, %v1062_v16 }
 0x1d6   :  { %v924_v18 = vpop.f32.mrf.mxu0 }
 0x1d7   :  { %v925_v20 = vadd.f32 %v3460_v61, %v924_v18  ;;  %v1213_v21 = vpop.f32.mrf.mxu1  ;;  %v1352_v27 = vadd.f32 %v1351_v17, %v1063_v22 }
 0x1d9   :  { %v1214_v23 = vadd.f32 %v1213_v21, %v925_v20  ;;  %v1490_v34 = vmax.f32 %v1352_v27, 0.0 }
 0x1db   :  { %v1435_v25 = vmax.f32 %v1214_v23, 0.0 }
 0x1dc   :  { %v1064_v26 = vpop.f32.mrf.mxu2 }
 0x1dd   :  { %v2474_v28 = vpack.c.bf16 %v1435_v25, %v1434_v24  ;;  %v1065_v29 = vadd.f32 %v3460_v61, %v1064_v26  ;;  %v1353_v30 = vpop.f32.mrf.mxu3 }
 0x1de   :  { %v927_v31 = vpop.f32.mrf.mxu0 }
 0x1df   :  { %2674 = vst [vmem:[%s3762_s3 + $0x98] sm:$0xff] %v2474_v28   ;;  %v1354_v32 = vadd.f32 %v1353_v30, %v1065_v29  ;;  %v1216_v33 = vpop.f32.mrf.mxu1  ;;  %v928_v37 = vadd.f32 %v3460_v61, %v927_v31 }
 0x1e1   :  { %v1491_v35 = vmax.f32 %v1354_v32, 0.0  ;;  %v1217_v41 = vadd.f32 %v1216_v33, %v928_v37 }
 0x1e3   :  { %v2614_v36 = vpack.c.bf16 %v1491_v35, %v1490_v34  ;;  %v1436_v46 = vmax.f32 %v1217_v41, 0.0 }
 0x1e4   :  { %v1067_v38 = vpop.f32.mrf.mxu2 }
 0x1e5   :  { %2702 = vst [vmem:[%s3762_s3 + $0x178] sm:$0xff] %v2614_v36   ;;  %v1356_v39 = vpop.f32.mrf.mxu3  ;;  %v1068_v44 = vadd.f32 %v3460_v61, %v1067_v38 }
 0x1e6   :  { %v929_v40 = vpop.f32.mrf.mxu0 }
 0x1e7   :  { %v930_v42 = vadd.f32 %v3460_v61, %v929_v40  ;;  %v1218_v43 = vpop.f32.mrf.mxu1  ;;  %v1357_v49 = vadd.f32 %v1356_v39, %v1068_v44 }
 0x1e9   :  { %v1219_v45 = vadd.f32 %v1218_v43, %v930_v42  ;;  %v1492_v56 = vmax.f32 %v1357_v49, 0.0 }
 0x1eb   :  { %v1437_v47 = vmax.f32 %v1219_v45, 0.0 }
 0x1ec   :  { %v1069_v48 = vpop.f32.mrf.mxu2 }
 0x1ed   :  { %v2479_v50 = vpack.c.bf16 %v1437_v47, %v1436_v46  ;;  %v1070_v51 = vadd.f32 %v3460_v61, %v1069_v48  ;;  %v1358_v52 = vpop.f32.mrf.mxu3 }
 0x1ee   :  { %v932_v53 = vpop.f32.mrf.mxu0 }
 0x1ef   :  { %2675 = vst [vmem:[%s3762_s3 + $0xa0] sm:$0xff] %v2479_v50   ;;  %v1359_v54 = vadd.f32 %v1358_v52, %v1070_v51  ;;  %v1221_v55 = vpop.f32.mrf.mxu1  ;;  %v933_v59 = vadd.f32 %v3460_v61, %v932_v53 }
 0x1f1   :  { %v1493_v57 = vmax.f32 %v1359_v54, 0.0  ;;  %v1222_v0 = vadd.f32 %v1221_v55, %v933_v59 }
 0x1f3   :  { %v2619_v58 = vpack.c.bf16 %v1493_v57, %v1492_v56  ;;  %v1438_v5 = vmax.f32 %v1222_v0, 0.0 }
 0x1f4   :  { %v1072_v60 = vpop.f32.mrf.mxu2 }
 0x1f5   :  { %2703 = vst [vmem:[%s3762_s3 + $0x180] sm:$0xff] %v2619_v58   ;;  %v1361_v62 = vpop.f32.mrf.mxu3  ;;  %v1073_v3 = vadd.f32 %v3460_v61, %v1072_v60 }
 0x1f6   :  { %v934_v63 = vpop.f32.mrf.mxu0 }
 0x1f7   :  { %v935_v1 = vadd.f32 %v3460_v61, %v934_v63  ;;  %v1223_v2 = vpop.f32.mrf.mxu1  ;;  %v1362_v8 = vadd.f32 %v1361_v62, %v1073_v3 }
 0x1f9   :  { %v1224_v4 = vadd.f32 %v1223_v2, %v935_v1  ;;  %v1494_v15 = vmax.f32 %v1362_v8, 0.0 }
 0x1fb   :  { %v1439_v6 = vmax.f32 %v1224_v4, 0.0 }
 0x1fc   :  { %v1074_v7 = vpop.f32.mrf.mxu2 }
 0x1fd   :  { %v2484_v9 = vpack.c.bf16 %v1439_v6, %v1438_v5  ;;  %v1075_v10 = vadd.f32 %v3460_v61, %v1074_v7  ;;  %v1363_v11 = vpop.f32.mrf.mxu3 }
 0x1fe   :  { %v937_v12 = vpop.f32.mrf.mxu0 }
 0x1ff   :  { %2676 = vst [vmem:[%s3762_s3 + $0xa8] sm:$0xff] %v2484_v9   ;;  %v1364_v13 = vadd.f32 %v1363_v11, %v1075_v10  ;;  %v1226_v14 = vpop.f32.mrf.mxu1  ;;  %v938_v18 = vadd.f32 %v3460_v61, %v937_v12 }
 0x201   :  { %v1495_v16 = vmax.f32 %v1364_v13, 0.0  ;;  %v1227_v22 = vadd.f32 %v1226_v14, %v938_v18 }
 0x203   :  { %v2624_v17 = vpack.c.bf16 %v1495_v16, %v1494_v15  ;;  %v1440_v27 = vmax.f32 %v1227_v22, 0.0 }
 0x204   :  { %v1077_v19 = vpop.f32.mrf.mxu2 }
 0x205   :  { %2704 = vst [vmem:[%s3762_s3 + $0x188] sm:$0xff] %v2624_v17   ;;  %v1366_v20 = vpop.f32.mrf.mxu3  ;;  %v1078_v25 = vadd.f32 %v3460_v61, %v1077_v19 }
 0x206   :  { %v939_v21 = vpop.f32.mrf.mxu0 }
 0x207   :  { %v940_v23 = vadd.f32 %v3460_v61, %v939_v21  ;;  %v1228_v24 = vpop.f32.mrf.mxu1  ;;  %v1367_v30 = vadd.f32 %v1366_v20, %v1078_v25 }
 0x209   :  { %v1229_v26 = vadd.f32 %v1228_v24, %v940_v23  ;;  %v1496_v37 = vmax.f32 %v1367_v30, 0.0 }
 0x20b   :  { %v1441_v28 = vmax.f32 %v1229_v26, 0.0 }
 0x20c   :  { %v1079_v29 = vpop.f32.mrf.mxu2 }
 0x20d   :  { %v2489_v31 = vpack.c.bf16 %v1441_v28, %v1440_v27  ;;  %v1080_v32 = vadd.f32 %v3460_v61, %v1079_v29  ;;  %v1368_v33 = vpop.f32.mrf.mxu3 }
 0x20e   :  { %v942_v34 = vpop.f32.mrf.mxu0 }
 0x20f   :  { %2677 = vst [vmem:[%s3762_s3 + $0xb0] sm:$0xff] %v2489_v31   ;;  %v1369_v35 = vadd.f32 %v1368_v33, %v1080_v32  ;;  %v1231_v36 = vpop.f32.mrf.mxu1  ;;  %v943_v40 = vadd.f32 %v3460_v61, %v942_v34 }
 0x211   :  { %v1497_v38 = vmax.f32 %v1369_v35, 0.0  ;;  %v1232_v44 = vadd.f32 %v1231_v36, %v943_v40 }
 0x213   :  { %v2629_v39 = vpack.c.bf16 %v1497_v38, %v1496_v37  ;;  %v1442_v49 = vmax.f32 %v1232_v44, 0.0 }
 0x214   :  { %v1082_v41 = vpop.f32.mrf.mxu2 }
 0x215   :  { %2705 = vst [vmem:[%s3762_s3 + $0x190] sm:$0xff] %v2629_v39   ;;  %v1371_v42 = vpop.f32.mrf.mxu3  ;;  %v1083_v47 = vadd.f32 %v3460_v61, %v1082_v41 }
 0x216   :  { %v944_v43 = vpop.f32.mrf.mxu0 }
 0x217   :  { %v945_v45 = vadd.f32 %v3460_v61, %v944_v43  ;;  %v1233_v46 = vpop.f32.mrf.mxu1  ;;  %v1372_v52 = vadd.f32 %v1371_v42, %v1083_v47 }
 0x219   :  { %v1234_v48 = vadd.f32 %v1233_v46, %v945_v45  ;;  %v1498_v59 = vmax.f32 %v1372_v52, 0.0 }
 0x21b   :  { %v1443_v50 = vmax.f32 %v1234_v48, 0.0 }
 0x21c   :  { %v1084_v51 = vpop.f32.mrf.mxu2 }
 0x21d   :  { %v2494_v53 = vpack.c.bf16 %v1443_v50, %v1442_v49  ;;  %v1085_v54 = vadd.f32 %v3460_v61, %v1084_v51  ;;  %v1373_v55 = vpop.f32.mrf.mxu3 }
 0x21e   :  { %v947_v56 = vpop.f32.mrf.mxu0 }
 0x21f   :  { %2678 = vst [vmem:[%s3762_s3 + $0xb8] sm:$0xff] %v2494_v53   ;;  %v1374_v57 = vadd.f32 %v1373_v55, %v1085_v54  ;;  %v1236_v58 = vpop.f32.mrf.mxu1  ;;  %v948_v63 = vadd.f32 %v3460_v61, %v947_v56 }
 0x221   :  { %v1499_v60 = vmax.f32 %v1374_v57, 0.0  ;;  %v1237_v3 = vadd.f32 %v1236_v58, %v948_v63 }
 0x223   :  { %v2634_v62 = vpack.c.bf16 %v1499_v60, %v1498_v59  ;;  %v1444_v8 = vmax.f32 %v1237_v3, 0.0 }
 0x224   :  { %v1087_v0 = vpop.f32.mrf.mxu2 }
 0x225   :  { %2706 = vst [vmem:[%s3762_s3 + $0x198] sm:$0xff] %v2634_v62   ;;  %v1376_v1 = vpop.f32.mrf.mxu3  ;;  %v1088_v6 = vadd.f32 %v3460_v61, %v1087_v0 }
 0x226   :  { %v949_v2 = vpop.f32.mrf.mxu0 }
 0x227   :  { %v950_v4 = vadd.f32 %v3460_v61, %v949_v2  ;;  %v1238_v5 = vpop.f32.mrf.mxu1  ;;  %v1377_v11 = vadd.f32 %v1376_v1, %v1088_v6 }
 0x229   :  { %v1239_v7 = vadd.f32 %v1238_v5, %v950_v4  ;;  %v1500_v18 = vmax.f32 %v1377_v11, 0.0 }
 0x22b   :  { %v1445_v9 = vmax.f32 %v1239_v7, 0.0 }
 0x22c   :  { %v1089_v10 = vpop.f32.mrf.mxu2 }
 0x22d   :  { %v2499_v12 = vpack.c.bf16 %v1445_v9, %v1444_v8  ;;  %v1090_v13 = vadd.f32 %v3460_v61, %v1089_v10  ;;  %v1378_v14 = vpop.f32.mrf.mxu3 }
 0x22e   :  { %v952_v15 = vpop.f32.mrf.mxu0 }
 0x22f   :  { %2679 = vst [vmem:[%s3762_s3 + $0xc0] sm:$0xff] %v2499_v12   ;;  %v1379_v16 = vadd.f32 %v1378_v14, %v1090_v13  ;;  %v1241_v17 = vpop.f32.mrf.mxu1  ;;  %v953_v21 = vadd.f32 %v3460_v61, %v952_v15 }
 0x231   :  { %v1501_v19 = vmax.f32 %v1379_v16, 0.0  ;;  %v1242_v25 = vadd.f32 %v1241_v17, %v953_v21 }
 0x233   :  { %v2639_v20 = vpack.c.bf16 %v1501_v19, %v1500_v18  ;;  %v1446_v30 = vmax.f32 %v1242_v25, 0.0 }
 0x234   :  { %v1092_v22 = vpop.f32.mrf.mxu2 }
 0x235   :  { %2707 = vst [vmem:[%s3762_s3 + $0x1a0] sm:$0xff] %v2639_v20   ;;  %v1381_v23 = vpop.f32.mrf.mxu3  ;;  %v1093_v28 = vadd.f32 %v3460_v61, %v1092_v22 }
 0x236   :  { %v954_v24 = vpop.f32.mrf.mxu0 }
 0x237   :  { %v955_v26 = vadd.f32 %v3460_v61, %v954_v24  ;;  %v1243_v27 = vpop.f32.mrf.mxu1  ;;  %v1382_v33 = vadd.f32 %v1381_v23, %v1093_v28 }
 0x239   :  { %v1244_v29 = vadd.f32 %v1243_v27, %v955_v26  ;;  %v1502_v40 = vmax.f32 %v1382_v33, 0.0 }
 0x23b   :  { %v1447_v31 = vmax.f32 %v1244_v29, 0.0 }
 0x23c   :  { %v1094_v32 = vpop.f32.mrf.mxu2 }
 0x23d   :  { %v2504_v34 = vpack.c.bf16 %v1447_v31, %v1446_v30  ;;  %v1095_v35 = vadd.f32 %v3460_v61, %v1094_v32  ;;  %v1383_v36 = vpop.f32.mrf.mxu3 }
 0x23e   :  { %v957_v37 = vpop.f32.mrf.mxu0 }
 0x23f   :  { %2680 = vst [vmem:[%s3762_s3 + $0xc8] sm:$0xff] %v2504_v34   ;;  %v1384_v38 = vadd.f32 %v1383_v36, %v1095_v35  ;;  %v1246_v39 = vpop.f32.mrf.mxu1  ;;  %v958_v43 = vadd.f32 %v3460_v61, %v957_v37 }
 0x241   :  { %v1503_v41 = vmax.f32 %v1384_v38, 0.0  ;;  %v1247_v47 = vadd.f32 %v1246_v39, %v958_v43 }
 0x243   :  { %v2644_v42 = vpack.c.bf16 %v1503_v41, %v1502_v40  ;;  %v1448_v52 = vmax.f32 %v1247_v47, 0.0 }
 0x244   :  { %v1097_v44 = vpop.f32.mrf.mxu2 }
 0x245   :  { %2708 = vst [vmem:[%s3762_s3 + $0x1a8] sm:$0xff] %v2644_v42   ;;  %v1386_v45 = vpop.f32.mrf.mxu3  ;;  %v1098_v50 = vadd.f32 %v3460_v61, %v1097_v44 }
 0x246   :  { %v959_v46 = vpop.f32.mrf.mxu0 }
 0x247   :  { %v960_v48 = vadd.f32 %v3460_v61, %v959_v46  ;;  %v1248_v49 = vpop.f32.mrf.mxu1  ;;  %v1387_v55 = vadd.f32 %v1386_v45, %v1098_v50 }
 0x249   :  { %v1249_v51 = vadd.f32 %v1248_v49, %v960_v48  ;;  %v1504_v63 = vmax.f32 %v1387_v55, 0.0 }
 0x24b   :  { %v1449_v53 = vmax.f32 %v1249_v51, 0.0 }
 0x24c   :  { %v1099_v54 = vpop.f32.mrf.mxu2 }
 0x24d   :  { %v2509_v56 = vpack.c.bf16 %v1449_v53, %v1448_v52  ;;  %v1100_v57 = vadd.f32 %v3460_v61, %v1099_v54  ;;  %v1388_v58 = vpop.f32.mrf.mxu3 }
 0x24e   :  { %v962_v59 = vpop.f32.mrf.mxu0 }
 0x24f   :  { %2681 = vst [vmem:[%s3762_s3 + $0xd0] sm:$0xff] %v2509_v56   ;;  %v1389_v60 = vadd.f32 %v1388_v58, %v1100_v57  ;;  %v1251_v62 = vpop.f32.mrf.mxu1  ;;  %v963_v2 = vadd.f32 %v3460_v61, %v962_v59 }
 0x251   :  { %v1505_v0 = vmax.f32 %v1389_v60, 0.0  ;;  %v1252_v6 = vadd.f32 %v1251_v62, %v963_v2 }
 0x253   :  { %v2649_v1 = vpack.c.bf16 %v1505_v0, %v1504_v63  ;;  %v1450_v11 = vmax.f32 %v1252_v6, 0.0 }
 0x254   :  { %v1102_v3 = vpop.f32.mrf.mxu2 }
 0x255   :  { %2709 = vst [vmem:[%s3762_s3 + $0x1b0] sm:$0xff] %v2649_v1   ;;  %v1391_v4 = vpop.f32.mrf.mxu3  ;;  %v1103_v9 = vadd.f32 %v3460_v61, %v1102_v3 }
 0x256   :  { %v964_v5 = vpop.f32.mrf.mxu0 }
 0x257   :  { %v965_v7 = vadd.f32 %v3460_v61, %v964_v5  ;;  %v1253_v8 = vpop.f32.mrf.mxu1  ;;  %v1392_v14 = vadd.f32 %v1391_v4, %v1103_v9 }
 0x259   :  { %v1254_v10 = vadd.f32 %v1253_v8, %v965_v7  ;;  %v1506_v19 = vmax.f32 %v1392_v14, 0.0 }
 0x25b   :  { %v1451_v12 = vmax.f32 %v1254_v10, 0.0 }
 0x25c   :  { %v1104_v13 = vpop.f32.mrf.mxu2 }
 0x25d   :  { %v2514_v15 = vpack.c.bf16 %v1451_v12, %v1450_v11  ;;  %v1105_v16 = vadd.f32 %v3460_v61, %v1104_v13  ;;  %v1393_v17 = vpop.f32.mrf.mxu3 }
 0x25f   :  { %2682 = vst [vmem:[%s3762_s3 + $0xd8] sm:$0xff] %v2514_v15   ;;  %v1394_v18 = vadd.f32 %v1393_v17, %v1105_v16 }
 0x261   :  { %v1507_v20 = vmax.f32 %v1394_v18, 0.0 }
 0x263   :  { %v2654_v21 = vpack.c.bf16 %v1507_v20, %v1506_v19 }
 0x265   :  { %2710 = vst [vmem:[%s3762_s3 + $0x1b8] sm:$0xff] %v2654_v21  }

// kernel: conv_decoder_anai_forward.11
= control target key start
LH: loop header
LB: loop body
LE: loop exit
PB: predicated region body
PF: predicated region fallthrough
CT: control target
= control target key end

     0   :  { %s2754_s12 = smov 0   ;;  %s2756_s13 = smov 0   ;;  %s3127_s0 = inlined_call_operand.vmem [shape: bf16[3712,128], index: 0, kind: input, shape index: {}]   ;;  %s3128_s1 = inlined_call_operand.vmem [shape: bf16[128,128], index: 1, kind: input, shape index: {}]   ;;  %s3129_s2 = inlined_call_operand.vmem [shape: f32[1,128], index: 2, kind: input, shape index: {}]   ;;  %s3130_s3 = inlined_call_operand.vmem [shape: f32[3712,128], index: 3, kind: output, shape index: {}]  }
   0x1   :  { %s2758_s14 = smov 0  }
   0x2 LB: > { %s25_s15 = sadd.s32 1, %s2728_s13  ;;  %p1860_p0 = scmp.ge.s32.totalorder %s2732_s14, 1  ;;  %s2732_s14 = sphi %s2758_s14, %s13_s14   ;;  %s2728_s13 = sphi %s2756_s13, %s3132_s13   ;;  %s2724_s12 = sphi %s2754_s12, %s3131_s12  }
   0x3   : > { %p27_p1 = scmp.ge.s32.totalorder %s25_s15, 4  ;;  %p169_p2 = scmp.lt.s32.totalorder %s2732_s14, 5 }
   0x5   : > { %s3134_s15 = smov (%p27_p1, %s25_s15), 0  ;;  %p170_p3 = pnand %p1860_p0, %p169_p2 }
   0x6   : > { %s203_s24 = smul.u32 (!%p170_p3), 116, %s2724_s12 }
   0x7   : > { %173 = sbr.rel (%p170_p3) target bundleno = 432 (0x1b0), region = 32 }
   0x8   : > { %p204_p4 = scmp.lt.s32.totalorder (!%p170_p3), %s203_s24, 463 }
   0xc   : > { %v2194_v0 = vld [vmem:[%s3128_s1 + $0x38] sm:$0xff]  ;;  %v2193_v1 = vld [vmem:[%s3128_s1 + $0x30] sm:$0xff]  ;;  %v2192_v2 = vld [vmem:[%s3128_s1 + $0x28] sm:$0xff]  ;;  %s3136_s24 = smov (!%p204_p4, %s203_s24), 463 }
   0xd   : > { %2196 = vmatpush.bf16.msra.mxu2 %v2194_v0  ;;  %2197 = vmatpush.bf16.msra.mxu3 %v2194_v0  ;;  %v2191_v3 = vld [vmem:[%s3128_s1 + $0x20] sm:$0xff]  ;;  %v2190_v4 = vld [vmem:[%s3128_s1 + $0x18] sm:$0xff]  ;;  %v2189_v5 = vld [vmem:[%s3128_s1 + $0x10] sm:$0xff]  ;;  %s1861_s4 = sshll.u32 %s3136_s24, 2  ;;  %s1862_s12 = sshll.u32 %s3136_s24, 3 }
   0xe   : > { %757 = vmatpush.bf16.msra.mxu0 %v2194_v0  ;;  %2195 = vmatpush.bf16.msra.mxu1 %v2194_v0  ;;  %v2188_v6 = vld [vmem:[%s3128_s1 + $0x8] sm:$0xff]  ;;  %v2187_v7 = vld [vmem:[%s3128_s1] sm:$0xff]  ;;  %s2805_s9 = scalar_lea.vmem %s3127_s0, %s1861_s4  ;;  %s2866_s18 = scalar_lea.vmem %s3130_s3, %s1862_s12 }
   0xf   : > { %v2157_v8 = vld [vmem:[%s2805_s9 + $0xe0] sm:$0xff]  ;;  %v2172_v9 = vld [vmem:[%s2805_s9 + $0x158] sm:$0xff]  ;;  %v2143_v11 = vld [vmem:[%s2805_s9 + $0x70] sm:$0xff] }
  0x10   : > { %v2129_v10 = vld [vmem:[%s2805_s9] sm:$0xff]  ;;  %v2158_v12 = vld [vmem:[%s2805_s9 + $0xe8] sm:$0xff]  ;;  %v2144_v15 = vld [vmem:[%s2805_s9 + $0x78] sm:$0xff] }
  0x11   : > { %2199 = vmatpush.bf16.msra.mxu2 %v2193_v1  ;;  %2200 = vmatpush.bf16.msra.mxu3 %v2193_v1  ;;  %v2173_v13 = vld [vmem:[%s2805_s9 + $0x160] sm:$0xff]  ;;  %v2130_v14 = vld [vmem:[%s2805_s9 + $0x8] sm:$0xff]  ;;  %v2159_v16 = vld [vmem:[%s2805_s9 + $0xf0] sm:$0xff] }
  0x12   : > { %758 = vmatpush.bf16.msra.mxu0 %v2193_v1  ;;  %2198 = vmatpush.bf16.msra.mxu1 %v2193_v1  ;;  %v2174_v17 = vld [vmem:[%s2805_s9 + $0x168] sm:$0xff]  ;;  %v2131_v18 = vld [vmem:[%s2805_s9 + $0x10] sm:$0xff]  ;;  %v2145_v19 = vld [vmem:[%s2805_s9 + $0x80] sm:$0xff] }
  0x13   : > { %v2160_v20 = vld [vmem:[%s2805_s9 + $0xf8] sm:$0xff]  ;;  %v2175_v21 = vld [vmem:[%s2805_s9 + $0x170] sm:$0xff]  ;;  %v2146_v23 = vld [vmem:[%s2805_s9 + $0x88] sm:$0xff] }
  0x14   : > { %v2132_v22 = vld [vmem:[%s2805_s9 + $0x18] sm:$0xff]  ;;  %v2161_v24 = vld [vmem:[%s2805_s9 + $0x100] sm:$0xff]  ;;  %v2147_v27 = vld [vmem:[%s2805_s9 + $0x90] sm:$0xff] }
  0x15   : > { %2202 = vmatpush.bf16.msra.mxu2 %v2192_v2  ;;  %2203 = vmatpush.bf16.msra.mxu3 %v2192_v2  ;;  %v2176_v25 = vld [vmem:[%s2805_s9 + $0x178] sm:$0xff]  ;;  %v2133_v26 = vld [vmem:[%s2805_s9 + $0x20] sm:$0xff]  ;;  %v2162_v28 = vld [vmem:[%s2805_s9 + $0x108] sm:$0xff] }
  0x16   : > { %759 = vmatpush.bf16.msra.mxu0 %v2192_v2  ;;  %2201 = vmatpush.bf16.msra.mxu1 %v2192_v2  ;;  %v2177_v29 = vld [vmem:[%s2805_s9 + $0x180] sm:$0xff]  ;;  %v2134_v30 = vld [vmem:[%s2805_s9 + $0x28] sm:$0xff]  ;;  %v2148_v31 = vld [vmem:[%s2805_s9 + $0x98] sm:$0xff] }
  0x17   : > { %v2163_v32 = vld [vmem:[%s2805_s9 + $0x110] sm:$0xff]  ;;  %v2178_v33 = vld [vmem:[%s2805_s9 + $0x188] sm:$0xff]  ;;  %v2149_v35 = vld [vmem:[%s2805_s9 + $0xa0] sm:$0xff] }
  0x18   : > { %v2135_v34 = vld [vmem:[%s2805_s9 + $0x30] sm:$0xff]  ;;  %v2164_v36 = vld [vmem:[%s2805_s9 + $0x118] sm:$0xff]  ;;  %v2150_v39 = vld [vmem:[%s2805_s9 + $0xa8] sm:$0xff] }
  0x19   : > { %2205 = vmatpush.bf16.msra.mxu2 %v2191_v3  ;;  %2206 = vmatpush.bf16.msra.mxu3 %v2191_v3  ;;  %v2179_v37 = vld [vmem:[%s2805_s9 + $0x190] sm:$0xff]  ;;  %v2136_v38 = vld [vmem:[%s2805_s9 + $0x38] sm:$0xff]  ;;  %v2165_v40 = vld [vmem:[%s2805_s9 + $0x120] sm:$0xff] }
  0x1a   : > { %760 = vmatpush.bf16.msra.mxu0 %v2191_v3  ;;  %2204 = vmatpush.bf16.msra.mxu1 %v2191_v3  ;;  %v2180_v41 = vld [vmem:[%s2805_s9 + $0x198] sm:$0xff]  ;;  %v2844_v42 = vld [vmem:[%s3129_s2] ss:$0 sm:$0xff]  ;;  %v2151_v44 = vld [vmem:[%s2805_s9 + $0xb0] sm:$0xff] }
  0x1b   : > { %v2137_v43 = vld [vmem:[%s2805_s9 + $0x40] sm:$0xff] }
  0x1d   : > { %2208 = vmatpush.bf16.msra.mxu2 %v2190_v4  ;;  %2209 = vmatpush.bf16.msra.mxu3 %v2190_v4 }
  0x1e   : > { %761 = vmatpush.bf16.msra.mxu0 %v2190_v4  ;;  %2207 = vmatpush.bf16.msra.mxu1 %v2190_v4 }
  0x21   : > { %2211 = vmatpush.bf16.msra.mxu2 %v2189_v5  ;;  %2212 = vmatpush.bf16.msra.mxu3 %v2189_v5 }
  0x22   : > { %762 = vmatpush.bf16.msra.mxu0 %v2189_v5  ;;  %2210 = vmatpush.bf16.msra.mxu1 %v2189_v5 }
  0x25   : > { %2214 = vmatpush.bf16.msra.mxu2 %v2188_v6  ;;  %2215 = vmatpush.bf16.msra.mxu3 %v2188_v6 }
  0x26   : > { %763 = vmatpush.bf16.msra.mxu0 %v2188_v6  ;;  %2213 = vmatpush.bf16.msra.mxu1 %v2188_v6 }
  0x29   : > { %2217 = vmatpush.bf16.msra.mxu2 %v2187_v7  ;;  %2218 = vmatpush.bf16.msra.mxu3 %v2187_v7 }
  0x2a   : > { %764 = vmatpush.bf16.msra.mxu0 %v2187_v7  ;;  %2216 = vmatpush.bf16.msra.mxu1 %v2187_v7 }
  0x2c   : > { %905 = vmatmul.bf16.vlgmr.msra.gmra.mxu2 %v2157_v8  ;;  %980 = vmatmul.bf16.vlgmr.msra.gmra.mxu3 %v2172_v9 }
  0x2d   : > { %765 = vmatmul.bf16.vlgmr.msra.gmra.mxu0 %v2129_v10  ;;  %835 = vmatmul.bf16.vlgmr.msra.gmra.mxu1 %v2143_v11  ;;  %v2166_v11 = vld [vmem:[%s2805_s9 + $0x128] sm:$0xff] }
  0x3c   : > { %910 = vmatmul.bf16.gmra.mxu2 %v2158_v12  ;;  %985 = vmatmul.bf16.gmra.mxu3 %v2173_v13  ;;  %v2181_v12 = vld [vmem:[%s2805_s9 + $0x1a0] sm:$0xff] }
  0x3d   : > { %770 = vmatmul.bf16.gmra.mxu0 %v2130_v14  ;;  %840 = vmatmul.bf16.gmra.mxu1 %v2144_v15  ;;  %v2138_v15 = vld [vmem:[%s2805_s9 + $0x48] sm:$0xff] }
  0x4c   : > { %915 = vmatmul.bf16.gmra.mxu2 %v2159_v16  ;;  %990 = vmatmul.bf16.gmra.mxu3 %v2174_v17  ;;  %v2152_v16 = vld [vmem:[%s2805_s9 + $0xb8] sm:$0xff] }
  0x4d   : > { %775 = vmatmul.bf16.gmra.mxu0 %v2131_v18  ;;  %845 = vmatmul.bf16.gmra.mxu1 %v2145_v19 }
  0x5c   : > { %920 = vmatmul.bf16.gmra.mxu2 %v2160_v20  ;;  %995 = vmatmul.bf16.gmra.mxu3 %v2175_v21 }
  0x5d   : > { %780 = vmatmul.bf16.gmra.mxu0 %v2132_v22  ;;  %850 = vmatmul.bf16.gmra.mxu1 %v2146_v23 }
  0x6c   : > { %925 = vmatmul.bf16.gmra.mxu2 %v2161_v24  ;;  %1000 = vmatmul.bf16.gmra.mxu3 %v2176_v25 }
  0x6d   : > { %785 = vmatmul.bf16.gmra.mxu0 %v2133_v26  ;;  %855 = vmatmul.bf16.gmra.mxu1 %v2147_v27 }
  0x7c   : > { %930 = vmatmul.bf16.gmra.mxu2 %v2162_v28  ;;  %1005 = vmatmul.bf16.gmra.mxu3 %v2177_v29 }
  0x7d   : > { %790 = vmatmul.bf16.gmra.mxu0 %v2134_v30  ;;  %860 = vmatmul.bf16.gmra.mxu1 %v2148_v31 }
  0x8c   : > { %935 = vmatmul.bf16.gmra.mxu2 %v2163_v32  ;;  %1010 = vmatmul.bf16.gmra.mxu3 %v2178_v33 }
  0x8d   : > { %795 = vmatmul.bf16.gmra.mxu0 %v2135_v34  ;;  %865 = vmatmul.bf16.gmra.mxu1 %v2149_v35 }
  0x9c   : > { %940 = vmatmul.bf16.gmra.mxu2 %v2164_v36  ;;  %1015 = vmatmul.bf16.gmra.mxu3 %v2179_v37 }
  0x9d   : > { %800 = vmatmul.bf16.gmra.mxu0 %v2136_v38  ;;  %870 = vmatmul.bf16.gmra.mxu1 %v2150_v39 }
  0xaa   : > { %v766_v45 = vpop.f32.mrf.mxu0  ;;  %v836_v46 = vpop.f32.mrf.mxu1 }
  0xab   : > { %v767_v47 = vadd.f32 %v2844_v42, %v766_v45  ;;  %v837_v48 = vadd.f32 %v2844_v42, %v836_v46 }
  0xac   : > { %945 = vmatmul.bf16.gmra.mxu2 %v2165_v40  ;;  %1020 = vmatmul.bf16.gmra.mxu3 %v2180_v41 }
  0xad   : > { %v1056_v49 = vsub.f32 0.0, %v767_v47  ;;  %v1084_v50 = vsub.f32 0.0, %v837_v48  ;;  %805 = vmatmul.bf16.gmra.mxu0 %v2137_v43  ;;  %875 = vmatmul.bf16.gmra.mxu1 %v2151_v44 }
  0xaf   : > { %v906_v51 = vpop.f32.mrf.mxu2  ;;  %v981_v52 = vpop.f32.mrf.mxu3  ;;  %v1172_v53 = vmul.f32 1.442695, %v1056_v49  ;;  %v1228_v54 = vmul.f32 1.442695, %v1084_v50 }
  0xb0   : > { %v907_v55 = vadd.f32 %v2844_v42, %v906_v51  ;;  %v982_v56 = vadd.f32 %v2844_v42, %v981_v52 }
  0xb1   : > { %2244 = vpow2.f32 %v1172_v53 }
  0xb2   : > { %v1112_v57 = vsub.f32 0.0, %v907_v55  ;;  %v1142_v58 = vsub.f32 0.0, %v982_v56  ;;  %2246 = vpow2.f32 %v1228_v54  ;;  %v768_v59 = vpop.f32.mrf.mxu0  ;;  %v838_v60 = vpop.f32.mrf.mxu1 }
  0xb3   : > { %v769_v61 = vadd.f32 %v2844_v42, %v768_v59  ;;  %v839_v62 = vadd.f32 %v2844_v42, %v838_v60 }
  0xb4   : > { %v1284_v63 = vmul.f32 1.442695, %v1112_v57  ;;  %v1344_v0 = vmul.f32 1.442695, %v1142_v58 }
  0xb5   : > { %v1057_v1 = vsub.f32 0.0, %v769_v61  ;;  %v1085_v2 = vsub.f32 0.0, %v839_v62 }
  0xb6   : > { %2248 = vpow2.f32 %v1284_v63 }
  0xb7   : > { %v2245_v3 = vpop.eup %2244  ;;  %2250 = vpow2.f32 %v1344_v0  ;;  %v908_v4 = vpop.f32.mrf.mxu2  ;;  %v1174_v6 = vmul.f32 1.442695, %v1057_v1  ;;  %v1230_v13 = vmul.f32 1.442695, %v1085_v2 }
  0xb8   : > { %v983_v5 = vpop.f32.mrf.mxu3  ;;  %v2247_v7 = vpop.eup %2246  ;;  %v1404_v8 = vadd.f32 1.0, %v2245_v3  ;;  %v909_v9 = vadd.f32 %v2844_v42, %v908_v4  ;;  %v2167_v3 = vld [vmem:[%s2805_s9 + $0x130] sm:$0xff]  ;;  %v2182_v4 = vld [vmem:[%s2805_s9 + $0x1a8] sm:$0xff] }
  0xb9   : > { %v984_v10 = vadd.f32 %v2844_v42, %v983_v5  ;;  %v1432_v14 = vadd.f32 1.0, %v2247_v7  ;;  %2252 = vpow2.f32 %v1174_v6  ;;  %v2139_v6 = vld [vmem:[%s2805_s9 + $0x50] sm:$0xff]  ;;  %v2153_v7 = vld [vmem:[%s2805_s9 + $0xc0] sm:$0xff] }
  0xba   : > { %2254 = vrcp.f32 %v1404_v8  ;;  %v1113_v17 = vsub.f32 0.0, %v909_v9  ;;  %v771_v19 = vpop.f32.mrf.mxu0  ;;  %v841_v20 = vpop.f32.mrf.mxu1 }
  0xbb   : > { %v1143_v18 = vsub.f32 0.0, %v984_v10  ;;  %2256 = vrcp.f32 %v1432_v14  ;;  %v772_v21 = vadd.f32 %v2844_v42, %v771_v19  ;;  %v842_v22 = vadd.f32 %v2844_v42, %v841_v20 }
  0xbc   : > { %v2249_v23 = vpop.eup %2248  ;;  %v1286_v24 = vmul.f32 1.442695, %v1113_v17  ;;  %950 = vmatmul.bf16.gmra.mxu2 %v2166_v11  ;;  %1025 = vmatmul.bf16.gmra.mxu3 %v2181_v12  ;;  %2258 = vpow2.f32 %v1230_v13 }
  0xbd   : > { %v2251_v25 = vpop.eup %2250  ;;  %v1460_v26 = vadd.f32 1.0, %v2249_v23  ;;  %v1346_v27 = vmul.f32 1.442695, %v1143_v18  ;;  %v1058_v28 = vsub.f32 0.0, %v772_v21  ;;  %v1086_v29 = vsub.f32 0.0, %v842_v22  ;;  %810 = vmatmul.bf16.gmra.mxu0 %v2138_v15  ;;  %880 = vmatmul.bf16.gmra.mxu1 %v2152_v16 }
  0xbe   : > { %v1490_v30 = vadd.f32 1.0, %v2251_v25  ;;  %2260 = vpow2.f32 %v1286_v24 }
  0xbf   : > { %v2253_v31 = vpop.eup %2252  ;;  %2262 = vrcp.f32 %v1460_v26  ;;  %v911_v32 = vpop.f32.mrf.mxu2  ;;  %v1176_v34 = vmul.f32 1.442695, %v1058_v28  ;;  %v1232_v35 = vmul.f32 1.442695, %v1086_v29 }
  0xc0   : > { %v986_v33 = vpop.f32.mrf.mxu3  ;;  %v2255_v36 = vpop.eup %2254  ;;  %2264 = vrcp.f32 %v1490_v30  ;;  %v1405_v37 = vadd.f32 1.0, %v2253_v31  ;;  %v912_v38 = vadd.f32 %v2844_v42, %v911_v32 }
  0xc1   : > { %v987_v39 = vadd.f32 %v2844_v42, %v986_v33  ;;  %v2257_v40 = vpop.eup %2256  ;;  %1636 = vst [vmem:[%s2866_s18] sm:$0xff] %v2255_v36  ;;  %2266 = vpow2.f32 %v1346_v27 }
  0xc2   : > { %v2259_v41 = vpop.eup %2258  ;;  %1664 = vst [vmem:[%s2866_s18 + $0xe0] sm:$0xff] %v2257_v40  ;;  %2268 = vrcp.f32 %v1405_v37  ;;  %v1114_v43 = vsub.f32 0.0, %v912_v38  ;;  %v773_v45 = vpop.f32.mrf.mxu0 }
  0xc3   : > { %v1144_v44 = vsub.f32 0.0, %v987_v39  ;;  %v843_v46 = vpop.f32.mrf.mxu1  ;;  %v1433_v47 = vadd.f32 1.0, %v2259_v41  ;;  %2270 = vpow2.f32 %v1176_v34  ;;  %v774_v48 = vadd.f32 %v2844_v42, %v773_v45 }
  0xc4   : > { %v844_v49 = vadd.f32 %v2844_v42, %v843_v46  ;;  %v2261_v50 = vpop.eup %2260  ;;  %v1288_v51 = vmul.f32 1.442695, %v1114_v43  ;;  %2272 = vpow2.f32 %v1232_v35 }
  0xc5   : > { %v1348_v52 = vmul.f32 1.442695, %v1144_v44  ;;  %v2263_v53 = vpop.eup %2262  ;;  %v1461_v54 = vadd.f32 1.0, %v2261_v50  ;;  %2274 = vrcp.f32 %v1433_v47  ;;  %v1059_v55 = vsub.f32 0.0, %v774_v48 }
  0xc6   : > { %v1087_v56 = vsub.f32 0.0, %v844_v49  ;;  %v2265_v57 = vpop.eup %2264  ;;  %1692 = vst [vmem:[%s2866_s18 + $0x1c0] sm:$0xff] %v2263_v53  ;;  %2276 = vpow2.f32 %v1288_v51 }
  0xc7   : > { %v2267_v58 = vpop.eup %2266  ;;  %1722 = vst [vmem:[%s2866_s18 + $0x2b0] sm:$0xff] %v2265_v57  ;;  %2278 = vrcp.f32 %v1461_v54  ;;  %v913_v59 = vpop.f32.mrf.mxu2  ;;  %v1178_v61 = vmul.f32 1.442695, %v1059_v55 }
  0xc8   : > { %v988_v60 = vpop.f32.mrf.mxu3  ;;  %v1234_v62 = vmul.f32 1.442695, %v1087_v56  ;;  %v2269_v63 = vpop.eup %2268  ;;  %v1491_v0 = vadd.f32 1.0, %v2267_v58  ;;  %2280 = vpow2.f32 %v1348_v52  ;;  %v914_v1 = vadd.f32 %v2844_v42, %v913_v59 }
  0xc9   : > { %v989_v2 = vadd.f32 %v2844_v42, %v988_v60  ;;  %v2271_v5 = vpop.eup %2270  ;;  %1637 = vst [vmem:[%s2866_s18 + $0x8] sm:$0xff] %v2269_v63  ;;  %2282 = vpow2.f32 %v1178_v61 }
  0xca   : > { %v2273_v8 = vpop.eup %2272  ;;  %2284 = vrcp.f32 %v1491_v0  ;;  %v1406_v9 = vadd.f32 1.0, %v2271_v5  ;;  %v1115_v10 = vsub.f32 0.0, %v914_v1  ;;  %v776_v12 = vpop.f32.mrf.mxu0  ;;  %v2168_v0 = vld [vmem:[%s2805_s9 + $0x138] sm:$0xff]  ;;  %v2183_v1 = vld [vmem:[%s2805_s9 + $0x1b0] sm:$0xff] }
  0xcb   : > { %v1145_v11 = vsub.f32 0.0, %v989_v2  ;;  %v846_v13 = vpop.f32.mrf.mxu1  ;;  %v2275_v14 = vpop.eup %2274  ;;  %v1434_v15 = vadd.f32 1.0, %v2273_v8  ;;  %2286 = vpow2.f32 %v1234_v62  ;;  %v777_v16 = vadd.f32 %v2844_v42, %v776_v12 }
  0xcc   : > { %v847_v17 = vadd.f32 %v2844_v42, %v846_v13  ;;  %v2277_v18 = vpop.eup %2276  ;;  %1665 = vst [vmem:[%s2866_s18 + $0xe8] sm:$0xff] %v2275_v14  ;;  %2288 = vrcp.f32 %v1406_v9  ;;  %v1290_v19 = vmul.f32 1.442695, %v1115_v10  ;;  %955 = vmatmul.bf16.gmra.mxu2 %v2167_v3  ;;  %1030 = vmatmul.bf16.gmra.mxu3 %v2182_v4  ;;  %v2140_v3 = vld [vmem:[%s2805_s9 + $0x58] sm:$0xff]  ;;  %v2154_v4 = vld [vmem:[%s2805_s9 + $0xc8] sm:$0xff] }
  0xcd   : > { %v1350_v20 = vmul.f32 1.442695, %v1145_v11  ;;  %v2279_v21 = vpop.eup %2278  ;;  %v1462_v22 = vadd.f32 1.0, %v2277_v18  ;;  %2290 = vrcp.f32 %v1434_v15  ;;  %v1060_v23 = vsub.f32 0.0, %v777_v16  ;;  %815 = vmatmul.bf16.gmra.mxu0 %v2139_v6  ;;  %885 = vmatmul.bf16.gmra.mxu1 %v2153_v7 }
  0xce   : > { %v1088_v24 = vsub.f32 0.0, %v847_v17  ;;  %v2281_v25 = vpop.eup %2280  ;;  %1693 = vst [vmem:[%s2866_s18 + $0x1c8] sm:$0xff] %v2279_v21  ;;  %2292 = vpow2.f32 %v1290_v19 }
  0xcf   : > { %v2283_v26 = vpop.eup %2282  ;;  %2294 = vrcp.f32 %v1462_v22  ;;  %v1492_v27 = vadd.f32 1.0, %v2281_v25  ;;  %v916_v28 = vpop.f32.mrf.mxu2  ;;  %v1180_v30 = vmul.f32 1.442695, %v1060_v23 }
  0xd0   : > { %v991_v29 = vpop.f32.mrf.mxu3  ;;  %v2285_v31 = vpop.eup %2284  ;;  %2296 = vpow2.f32 %v1350_v20  ;;  %v1407_v32 = vadd.f32 1.0, %v2283_v26  ;;  %v917_v33 = vadd.f32 %v2844_v42, %v916_v28  ;;  %v1236_v36 = vmul.f32 1.442695, %v1088_v24 }
  0xd1   : > { %v992_v34 = vadd.f32 %v2844_v42, %v991_v29  ;;  %v2287_v35 = vpop.eup %2286  ;;  %1723 = vst [vmem:[%s2866_s18 + $0x2b8] sm:$0xff] %v2285_v31  ;;  %2298 = vrcp.f32 %v1492_v27 }
  0xd2   : > { %v2289_v37 = vpop.eup %2288  ;;  %2300 = vrcp.f32 %v1407_v32  ;;  %v1435_v38 = vadd.f32 1.0, %v2287_v35  ;;  %v1116_v39 = vsub.f32 0.0, %v917_v33  ;;  %v778_v41 = vpop.f32.mrf.mxu0 }
  0xd3   : > { %v1146_v40 = vsub.f32 0.0, %v992_v34  ;;  %v848_v43 = vpop.f32.mrf.mxu1  ;;  %v2291_v44 = vpop.eup %2290  ;;  %1638 = vst [vmem:[%s2866_s18 + $0x10] sm:$0xff] %v2289_v37  ;;  %2302 = vpow2.f32 %v1180_v30  ;;  %v779_v45 = vadd.f32 %v2844_v42, %v778_v41 }
  0xd4   : > { %v849_v46 = vadd.f32 %v2844_v42, %v848_v43  ;;  %v2293_v47 = vpop.eup %2292  ;;  %1666 = vst [vmem:[%s2866_s18 + $0xf0] sm:$0xff] %v2291_v44  ;;  %2304 = vrcp.f32 %v1435_v38  ;;  %v1292_v48 = vmul.f32 1.442695, %v1116_v39 }
  0xd5   : > { %v1352_v49 = vmul.f32 1.442695, %v1146_v40  ;;  %v2295_v50 = vpop.eup %2294  ;;  %v1463_v51 = vadd.f32 1.0, %v2293_v47  ;;  %2306 = vpow2.f32 %v1236_v36  ;;  %v1061_v52 = vsub.f32 0.0, %v779_v45 }
  0xd6   : > { %v1089_v53 = vsub.f32 0.0, %v849_v46  ;;  %v2297_v54 = vpop.eup %2296  ;;  %1694 = vst [vmem:[%s2866_s18 + $0x1d0] sm:$0xff] %v2295_v50  ;;  %2308 = vpow2.f32 %v1292_v48 }
  0xd7   : > { %v2299_v55 = vpop.eup %2298  ;;  %2310 = vrcp.f32 %v1463_v51  ;;  %v1493_v56 = vadd.f32 1.0, %v2297_v54  ;;  %v918_v57 = vpop.f32.mrf.mxu2  ;;  %v1182_v59 = vmul.f32 1.442695, %v1061_v52 }
  0xd8   : > { %v993_v58 = vpop.f32.mrf.mxu3  ;;  %v1238_v60 = vmul.f32 1.442695, %v1089_v53  ;;  %v2301_v61 = vpop.eup %2300  ;;  %1724 = vst [vmem:[%s2866_s18 + $0x2c0] sm:$0xff] %v2299_v55  ;;  %2312 = vpow2.f32 %v1352_v49  ;;  %v919_v62 = vadd.f32 %v2844_v42, %v918_v57 }
  0xd9   : > { %v994_v63 = vadd.f32 %v2844_v42, %v993_v58  ;;  %v2303_v2 = vpop.eup %2302  ;;  %2314 = vrcp.f32 %v1493_v56  ;;  %1639 = vst [vmem:[%s2866_s18 + $0x18] sm:$0xff] %v2301_v61  ;;  %v2169_v58 = vld [vmem:[%s2805_s9 + $0x140] sm:$0xff] }
  0xda   : > { %v2305_v5 = vpop.eup %2304  ;;  %v1408_v6 = vadd.f32 1.0, %v2303_v2  ;;  %v1117_v7 = vsub.f32 0.0, %v919_v62  ;;  %2316 = vpow2.f32 %v1182_v59  ;;  %v781_v9 = vpop.f32.mrf.mxu0  ;;  %v2184_v59 = vld [vmem:[%s2805_s9 + $0x1b8] sm:$0xff] }
  0xdb   : > { %v1147_v8 = vsub.f32 0.0, %v994_v63  ;;  %v851_v10 = vpop.f32.mrf.mxu1  ;;  %v2307_v11 = vpop.eup %2306  ;;  %1667 = vst [vmem:[%s2866_s18 + $0xf8] sm:$0xff] %v2305_v5  ;;  %2318 = vpow2.f32 %v1238_v60  ;;  %v782_v12 = vadd.f32 %v2844_v42, %v781_v9  ;;  %v2141_v63 = vld [vmem:[%s2805_s9 + $0x60] sm:$0xff] }
  0xdc   : > { %v2309_v13 = vpop.eup %2308  ;;  %2320 = vrcp.f32 %v1408_v6  ;;  %v1436_v14 = vadd.f32 1.0, %v2307_v11  ;;  %v1294_v15 = vmul.f32 1.442695, %v1117_v7  ;;  %960 = vmatmul.bf16.gmra.mxu2 %v2168_v0  ;;  %1035 = vmatmul.bf16.gmra.mxu3 %v2183_v1  ;;  %v852_v16 = vadd.f32 %v2844_v42, %v851_v10  ;;  %v2155_v0 = vld [vmem:[%s2805_s9 + $0xd0] sm:$0xff] }
  0xdd   : > { %v2311_v17 = vpop.eup %2310  ;;  %v1464_v18 = vadd.f32 1.0, %v2309_v13  ;;  %v1062_v19 = vsub.f32 0.0, %v782_v12  ;;  %820 = vmatmul.bf16.gmra.mxu0 %v2140_v3  ;;  %890 = vmatmul.bf16.gmra.mxu1 %v2154_v4  ;;  %v1354_v21 = vmul.f32 1.442695, %v1147_v8 }
  0xde   : > { %v2313_v20 = vpop.eup %2312  ;;  %1695 = vst [vmem:[%s2866_s18 + $0x1d8] sm:$0xff] %v2311_v17  ;;  %2322 = vrcp.f32 %v1436_v14  ;;  %v1090_v29 = vsub.f32 0.0, %v852_v16 }
  0xdf   : > { %v2315_v22 = vpop.eup %2314  ;;  %2324 = vrcp.f32 %v1464_v18  ;;  %v1494_v23 = vadd.f32 1.0, %v2313_v20  ;;  %v921_v24 = vpop.f32.mrf.mxu2  ;;  %v1184_v32 = vmul.f32 1.442695, %v1062_v19 }
  0xe0   : > { %v996_v25 = vpop.f32.mrf.mxu3  ;;  %v2317_v26 = vpop.eup %2316  ;;  %1725 = vst [vmem:[%s2866_s18 + $0x2c8] sm:$0xff] %v2315_v22  ;;  %2326 = vpow2.f32 %v1294_v15  ;;  %v922_v27 = vadd.f32 %v2844_v42, %v921_v24  ;;  %v1240_v45 = vmul.f32 1.442695, %v1090_v29 }
  0xe1   : > { %v997_v28 = vadd.f32 %v2844_v42, %v996_v25  ;;  %v2319_v30 = vpop.eup %2318  ;;  %2328 = vrcp.f32 %v1494_v23  ;;  %v1409_v31 = vadd.f32 1.0, %v2317_v26 }
  0xe2   : > { %v2321_v33 = vpop.eup %2320  ;;  %2330 = vpow2.f32 %v1354_v21  ;;  %v1437_v34 = vadd.f32 1.0, %v2319_v30  ;;  %v1118_v35 = vsub.f32 0.0, %v922_v27  ;;  %v783_v37 = vpop.f32.mrf.mxu0 }
  0xe3   : > { %v1148_v36 = vsub.f32 0.0, %v997_v28  ;;  %v853_v38 = vpop.f32.mrf.mxu1  ;;  %1640 = vst [vmem:[%s2866_s18 + $0x20] sm:$0xff] %v2321_v33  ;;  %2332 = vrcp.f32 %v1409_v31  ;;  %v784_v39 = vadd.f32 %v2844_v42, %v783_v37 }
  0xe4   : > { %v854_v40 = vadd.f32 %v2844_v42, %v853_v38  ;;  %v2323_v41 = vpop.eup %2322  ;;  %2334 = vrcp.f32 %v1437_v34  ;;  %v1296_v43 = vmul.f32 1.442695, %v1118_v35 }
  0xe5   : > { %v1356_v44 = vmul.f32 1.442695, %v1148_v36  ;;  %v2325_v46 = vpop.eup %2324  ;;  %1668 = vst [vmem:[%s2866_s18 + $0x100] sm:$0xff] %v2323_v41  ;;  %2336 = vpow2.f32 %v1184_v32  ;;  %v1063_v47 = vsub.f32 0.0, %v784_v39 }
  0xe6   : > { %v1091_v48 = vsub.f32 0.0, %v854_v40  ;;  %v2327_v49 = vpop.eup %2326  ;;  %1696 = vst [vmem:[%s2866_s18 + $0x1e0] sm:$0xff] %v2325_v46  ;;  %2338 = vpow2.f32 %v1296_v43 }
  0xe7   : > { %v2329_v50 = vpop.eup %2328  ;;  %v1465_v51 = vadd.f32 1.0, %v2327_v49  ;;  %2340 = vpow2.f32 %v1356_v44  ;;  %v923_v52 = vpop.f32.mrf.mxu2  ;;  %v1186_v54 = vmul.f32 1.442695, %v1063_v47 }
  0xe8   : > { %v998_v53 = vpop.f32.mrf.mxu3  ;;  %v2331_v55 = vpop.eup %2330  ;;  %1726 = vst [vmem:[%s2866_s18 + $0x2d0] sm:$0xff] %v2329_v50  ;;  %2342 = vpow2.f32 %v1240_v45  ;;  %v924_v56 = vadd.f32 %v2844_v42, %v923_v52  ;;  %v1242_v60 = vmul.f32 1.442695, %v1091_v48 }
  0xe9   : > { %v999_v57 = vadd.f32 %v2844_v42, %v998_v53  ;;  %v2333_v61 = vpop.eup %2332  ;;  %2344 = vrcp.f32 %v1465_v51  ;;  %v1495_v62 = vadd.f32 1.0, %v2331_v55  ;;  %v2170_v53 = vld [vmem:[%s2805_s9 + $0x148] sm:$0xff] }
  0xea   : > { %v2335_v1 = vpop.eup %2334  ;;  %1641 = vst [vmem:[%s2866_s18 + $0x28] sm:$0xff] %v2333_v61  ;;  %v1119_v2 = vsub.f32 0.0, %v924_v56  ;;  %2346 = vpow2.f32 %v1186_v54  ;;  %v786_v3 = vpop.f32.mrf.mxu0  ;;  %v2185_v54 = vld [vmem:[%s2805_s9 + $0x1c0] sm:$0xff] }
  0xeb   : > { %v856_v4 = vpop.f32.mrf.mxu1  ;;  %v2337_v5 = vpop.eup %2336  ;;  %2348 = vrcp.f32 %v1495_v62  ;;  %1669 = vst [vmem:[%s2866_s18 + $0x108] sm:$0xff] %v2335_v1  ;;  %v1149_v6 = vsub.f32 0.0, %v999_v57  ;;  %v787_v9 = vadd.f32 %v2844_v42, %v786_v3 }
  0xec   : > { %v2339_v7 = vpop.eup %2338  ;;  %v1410_v8 = vadd.f32 1.0, %v2337_v5  ;;  %965 = vmatmul.bf16.gmra.mxu2 %v2169_v58  ;;  %1040 = vmatmul.bf16.gmra.mxu3 %v2184_v59  ;;  %2350 = vpow2.f32 %v1242_v60  ;;  %v857_v12 = vadd.f32 %v2844_v42, %v856_v4  ;;  %v1298_v15 = vmul.f32 1.442695, %v1119_v2  ;;  %v2142_v58 = vld [vmem:[%s2805_s9 + $0x68] sm:$0xff]  ;;  %v2156_v59 = vld [vmem:[%s2805_s9 + $0xd8] sm:$0xff] }
  0xed   : > { %v2341_v10 = vpop.eup %2340  ;;  %v1466_v11 = vadd.f32 1.0, %v2339_v7  ;;  %825 = vmatmul.bf16.gmra.mxu0 %v2141_v63  ;;  %895 = vmatmul.bf16.gmra.mxu1 %v2155_v0  ;;  %v1358_v18 = vmul.f32 1.442695, %v1149_v6  ;;  %v1064_v24 = vsub.f32 0.0, %v787_v9 }
  0xee   : > { %v2343_v13 = vpop.eup %2342  ;;  %v1496_v14 = vadd.f32 1.0, %v2341_v10  ;;  %2352 = vrcp.f32 %v1410_v8  ;;  %v1092_v27 = vsub.f32 0.0, %v857_v12 }
  0xef   : > { %v2345_v16 = vpop.eup %2344  ;;  %2354 = vrcp.f32 %v1466_v11  ;;  %v1438_v17 = vadd.f32 1.0, %v2343_v13  ;;  %v926_v19 = vpop.f32.mrf.mxu2  ;;  %v1188_v39 = vmul.f32 1.442695, %v1064_v24 }
  0xf0   : > { %v1001_v20 = vpop.f32.mrf.mxu3  ;;  %v2347_v21 = vpop.eup %2346  ;;  %1697 = vst [vmem:[%s2866_s18 + $0x1e8] sm:$0xff] %v2345_v16  ;;  %2356 = vrcp.f32 %v1496_v14  ;;  %v927_v22 = vadd.f32 %v2844_v42, %v926_v19  ;;  %v1244_v41 = vmul.f32 1.442695, %v1092_v27 }
  0xf1   : > { %v1002_v23 = vadd.f32 %v2844_v42, %v1001_v20  ;;  %v2349_v25 = vpop.eup %2348  ;;  %2358 = vrcp.f32 %v1438_v17  ;;  %v1411_v26 = vadd.f32 1.0, %v2347_v21 }
  0xf2   : > { %v2351_v28 = vpop.eup %2350  ;;  %1727 = vst [vmem:[%s2866_s18 + $0x2d8] sm:$0xff] %v2349_v25  ;;  %2360 = vpow2.f32 %v1298_v15  ;;  %v1120_v29 = vsub.f32 0.0, %v927_v22  ;;  %v788_v31 = vpop.f32.mrf.mxu0 }
  0xf3   : > { %v1150_v30 = vsub.f32 0.0, %v1002_v23  ;;  %v858_v32 = vpop.f32.mrf.mxu1  ;;  %2362 = vpow2.f32 %v1358_v18  ;;  %v1439_v33 = vadd.f32 1.0, %v2351_v28  ;;  %v789_v34 = vadd.f32 %v2844_v42, %v788_v31 }
  0xf4   : > { %v859_v35 = vadd.f32 %v2844_v42, %v858_v32  ;;  %v2353_v36 = vpop.eup %2352  ;;  %2364 = vrcp.f32 %v1411_v26  ;;  %v1300_v37 = vmul.f32 1.442695, %v1120_v29 }
  0xf5   : > { %v1360_v38 = vmul.f32 1.442695, %v1150_v30  ;;  %v2355_v40 = vpop.eup %2354  ;;  %1642 = vst [vmem:[%s2866_s18 + $0x30] sm:$0xff] %v2353_v36  ;;  %2366 = vrcp.f32 %v1439_v33  ;;  %v1065_v43 = vsub.f32 0.0, %v789_v34 }
  0xf6   : > { %v1093_v44 = vsub.f32 0.0, %v859_v35  ;;  %v2357_v45 = vpop.eup %2356  ;;  %1698 = vst [vmem:[%s2866_s18 + $0x1f0] sm:$0xff] %v2355_v40  ;;  %2368 = vpow2.f32 %v1300_v37 }
  0xf7   : > { %v2359_v46 = vpop.eup %2358  ;;  %1728 = vst [vmem:[%s2866_s18 + $0x2e0] sm:$0xff] %v2357_v45  ;;  %2370 = vpow2.f32 %v1360_v38  ;;  %v928_v47 = vpop.f32.mrf.mxu2  ;;  %v1190_v49 = vmul.f32 1.442695, %v1065_v43 }
  0xf8   : > { %v1003_v48 = vpop.f32.mrf.mxu3  ;;  %v2361_v50 = vpop.eup %2360  ;;  %1670 = vst [vmem:[%s2866_s18 + $0x110] sm:$0xff] %v2359_v46  ;;  %2372 = vpow2.f32 %v1188_v39  ;;  %v929_v51 = vadd.f32 %v2844_v42, %v928_v47  ;;  %v1246_v57 = vmul.f32 1.442695, %v1093_v44 }
  0xf9   : > { %v1004_v52 = vadd.f32 %v2844_v42, %v1003_v48  ;;  %v2363_v55 = vpop.eup %2362  ;;  %v1467_v56 = vadd.f32 1.0, %v2361_v50  ;;  %2374 = vpow2.f32 %v1244_v41 }
  0xfa   : > { %v2365_v60 = vpop.eup %2364  ;;  %v1497_v61 = vadd.f32 1.0, %v2363_v55  ;;  %v1121_v62 = vsub.f32 0.0, %v929_v51  ;;  %2376 = vpow2.f32 %v1190_v49  ;;  %v791_v63 = vpop.f32.mrf.mxu0  ;;  %v2171_v51 = vld [vmem:[%s2805_s9 + $0x150] sm:$0xff] }
  0xfb   : > { %v861_v0 = vpop.f32.mrf.mxu1  ;;  %v2367_v1 = vpop.eup %2366  ;;  %2378 = vrcp.f32 %v1467_v56  ;;  %1643 = vst [vmem:[%s2866_s18 + $0x38] sm:$0xff] %v2365_v60  ;;  %v1151_v2 = vsub.f32 0.0, %v1004_v52  ;;  %v792_v3 = vadd.f32 %v2844_v42, %v791_v63  ;;  %v2186_v52 = vld [vmem:[%s2805_s9 + $0x1c8] sm:$0xff] }
  0xfc   : > { %v2369_v4 = vpop.eup %2368  ;;  %2380 = vrcp.f32 %v1497_v61  ;;  %1671 = vst [vmem:[%s2866_s18 + $0x118] sm:$0xff] %v2367_v1  ;;  %v1302_v5 = vmul.f32 1.442695, %v1121_v62  ;;  %970 = vmatmul.bf16.gmra.mxu2 %v2170_v53  ;;  %1045 = vmatmul.bf16.gmra.mxu3 %v2185_v54  ;;  %v862_v11 = vadd.f32 %v2844_v42, %v861_v0 }
  0xfd   : > { %v2371_v6 = vpop.eup %2370  ;;  %v1468_v7 = vadd.f32 1.0, %v2369_v4  ;;  %2382 = vpow2.f32 %v1246_v57  ;;  %v1066_v8 = vsub.f32 0.0, %v792_v3  ;;  %830 = vmatmul.bf16.gmra.mxu0 %v2142_v58  ;;  %900 = vmatmul.bf16.gmra.mxu1 %v2156_v59  ;;  %v1362_v14 = vmul.f32 1.442695, %v1151_v2 }
  0xfe   : > { %v2373_v9 = vpop.eup %2372  ;;  %v1498_v10 = vadd.f32 1.0, %v2371_v6  ;;  %2384 = vpow2.f32 %v1302_v5  ;;  %v1094_v27 = vsub.f32 0.0, %v862_v11 }
  0xff   : > { %v2375_v12 = vpop.eup %2374  ;;  %2386 = vrcp.f32 %v1468_v7  ;;  %v1412_v13 = vadd.f32 1.0, %v2373_v9  ;;  %v931_v15 = vpop.f32.mrf.mxu2  ;;  %v1192_v23 = vmul.f32 1.442695, %v1066_v8 }
 0x100   : > { %v1006_v16 = vpop.f32.mrf.mxu3  ;;  %v2377_v17 = vpop.eup %2376  ;;  %2388 = vrcp.f32 %v1498_v10  ;;  %v1440_v18 = vadd.f32 1.0, %v2375_v12  ;;  %v932_v19 = vadd.f32 %v2844_v42, %v931_v15  ;;  %v1248_v43 = vmul.f32 1.442695, %v1094_v27 }
 0x101   : > { %v1007_v20 = vadd.f32 %v2844_v42, %v1006_v16  ;;  %v2379_v21 = vpop.eup %2378  ;;  %2390 = vrcp.f32 %v1412_v13  ;;  %v1413_v22 = vadd.f32 1.0, %v2377_v17 }
 0x102   : > { %v2381_v24 = vpop.eup %2380  ;;  %1699 = vst [vmem:[%s2866_s18 + $0x1f8] sm:$0xff] %v2379_v21  ;;  %2392 = vrcp.f32 %v1440_v18  ;;  %v1122_v25 = vsub.f32 0.0, %v932_v19  ;;  %v793_v28 = vpop.f32.mrf.mxu0 }
 0x103   : > { %v1152_v26 = vsub.f32 0.0, %v1007_v20  ;;  %v863_v29 = vpop.f32.mrf.mxu1  ;;  %v2383_v30 = vpop.eup %2382  ;;  %1729 = vst [vmem:[%s2866_s18 + $0x2e8] sm:$0xff] %v2381_v24  ;;  %2394 = vpow2.f32 %v1362_v14  ;;  %v794_v31 = vadd.f32 %v2844_v42, %v793_v28 }
 0x104   : > { %v864_v32 = vadd.f32 %v2844_v42, %v863_v29  ;;  %v2385_v33 = vpop.eup %2384  ;;  %2396 = vrcp.f32 %v1413_v22  ;;  %v1441_v34 = vadd.f32 1.0, %v2383_v30  ;;  %v1304_v35 = vmul.f32 1.442695, %v1122_v25 }
 0x105   : > { %v1364_v36 = vmul.f32 1.442695, %v1152_v26  ;;  %v2387_v37 = vpop.eup %2386  ;;  %v1469_v38 = vadd.f32 1.0, %v2385_v33  ;;  %2398 = vpow2.f32 %v1192_v23  ;;  %v1067_v39 = vsub.f32 0.0, %v794_v31 }
 0x106   : > { %v1095_v40 = vsub.f32 0.0, %v864_v32  ;;  %v2389_v41 = vpop.eup %2388  ;;  %1700 = vst [vmem:[%s2866_s18 + $0x200] sm:$0xff] %v2387_v37  ;;  %2400 = vrcp.f32 %v1441_v34 }
 0x107   : > { %v2391_v44 = vpop.eup %2390  ;;  %1730 = vst [vmem:[%s2866_s18 + $0x2f0] sm:$0xff] %v2389_v41  ;;  %2402 = vrcp.f32 %v1469_v38  ;;  %v933_v45 = vpop.f32.mrf.mxu2  ;;  %v1194_v47 = vmul.f32 1.442695, %v1067_v39 }
 0x108   : > { %v1008_v46 = vpop.f32.mrf.mxu3  ;;  %v2393_v48 = vpop.eup %2392  ;;  %1644 = vst [vmem:[%s2866_s18 + $0x40] sm:$0xff] %v2391_v44  ;;  %2404 = vpow2.f32 %v1304_v35  ;;  %v934_v49 = vadd.f32 %v2844_v42, %v933_v45  ;;  %v1250_v54 = vmul.f32 1.442695, %v1095_v40 }
 0x109   : > { %v1009_v50 = vadd.f32 %v2844_v42, %v1008_v46  ;;  %v2395_v53 = vpop.eup %2394  ;;  %1672 = vst [vmem:[%s2866_s18 + $0x120] sm:$0xff] %v2393_v48  ;;  %2406 = vpow2.f32 %v1364_v36 }
 0x10a   : > { %v2397_v55 = vpop.eup %2396  ;;  %v1499_v56 = vadd.f32 1.0, %v2395_v53  ;;  %2408 = vpow2.f32 %v1248_v43  ;;  %v1123_v57 = vsub.f32 0.0, %v934_v49  ;;  %v796_v59 = vpop.f32.mrf.mxu0 }
 0x10b   : > { %v1153_v58 = vsub.f32 0.0, %v1009_v50  ;;  %v866_v60 = vpop.f32.mrf.mxu1  ;;  %v2399_v61 = vpop.eup %2398  ;;  %1645 = vst [vmem:[%s2866_s18 + $0x48] sm:$0xff] %v2397_v55  ;;  %2410 = vpow2.f32 %v1194_v47  ;;  %v797_v62 = vadd.f32 %v2844_v42, %v796_v59 }
 0x10c   : > { %v2401_v63 = vpop.eup %2400  ;;  %2412 = vrcp.f32 %v1499_v56  ;;  %v1414_v0 = vadd.f32 1.0, %v2399_v61  ;;  %v1306_v1 = vmul.f32 1.442695, %v1123_v57  ;;  %975 = vmatmul.bf16.gmra.mxu2 %v2171_v51  ;;  %1050 = vmatmul.bf16.gmra.mxu3 %v2186_v52  ;;  %v867_v10 = vadd.f32 %v2844_v42, %v866_v60 }
 0x10d   : > { %v1366_v2 = vmul.f32 1.442695, %v1153_v58  ;;  %v2403_v3 = vpop.eup %2402  ;;  %1673 = vst [vmem:[%s2866_s18 + $0x128] sm:$0xff] %v2401_v63  ;;  %2414 = vpow2.f32 %v1250_v54  ;;  %v1068_v4 = vsub.f32 0.0, %v797_v62 }
 0x10e   : > { %v2405_v5 = vpop.eup %2404  ;;  %1701 = vst [vmem:[%s2866_s18 + $0x208] sm:$0xff] %v2403_v3  ;;  %2416 = vrcp.f32 %v1414_v0  ;;  %v1096_v25 = vsub.f32 0.0, %v867_v10 }
 0x10f   : > { %v2407_v6 = vpop.eup %2406  ;;  %v1470_v7 = vadd.f32 1.0, %v2405_v5  ;;  %2418 = vpow2.f32 %v1306_v1  ;;  %v936_v8 = vpop.f32.mrf.mxu2  ;;  %v1196_v17 = vmul.f32 1.442695, %v1068_v4 }
 0x110   : > { %v1011_v9 = vpop.f32.mrf.mxu3  ;;  %v2409_v11 = vpop.eup %2408  ;;  %v1500_v12 = vadd.f32 1.0, %v2407_v6  ;;  %2420 = vpow2.f32 %v1366_v2  ;;  %v937_v13 = vadd.f32 %v2844_v42, %v936_v8  ;;  %v1252_v39 = vmul.f32 1.442695, %v1096_v25 }
 0x111   : > { %v1012_v14 = vadd.f32 %v2844_v42, %v1011_v9  ;;  %v2411_v15 = vpop.eup %2410  ;;  %2422 = vrcp.f32 %v1470_v7  ;;  %v1442_v16 = vadd.f32 1.0, %v2409_v11  ;;  %v2971_v42 = vld [vmem:[%s3129_s2] ss:$0 sm:$0xff] }
 0x112   : > { %v2413_v18 = vpop.eup %2412  ;;  %2424 = vrcp.f32 %v1500_v12  ;;  %v1415_v19 = vadd.f32 1.0, %v2411_v15  ;;  %v1124_v20 = vsub.f32 0.0, %v937_v13  ;;  %v798_v22 = vpop.f32.mrf.mxu0 }
 0x113   : > { %v1154_v21 = vsub.f32 0.0, %v1012_v14  ;;  %v868_v23 = vpop.f32.mrf.mxu1  ;;  %v2415_v24 = vpop.eup %2414  ;;  %1731 = vst [vmem:[%s2866_s18 + $0x2f8] sm:$0xff] %v2413_v18  ;;  %2426 = vrcp.f32 %v1442_v16  ;;  %v799_v26 = vadd.f32 %v2971_v42, %v798_v22 }
 0x114   : > { %v869_v27 = vadd.f32 %v2971_v42, %v868_v23  ;;  %v2417_v28 = vpop.eup %2416  ;;  %2428 = vrcp.f32 %v1415_v19  ;;  %v1443_v29 = vadd.f32 1.0, %v2415_v24  ;;  %v1308_v30 = vmul.f32 1.442695, %v1124_v20 }
 0x115   : > { %v2419_v31 = vpop.eup %2418  ;;  %1646 = vst [vmem:[%s2866_s18 + $0x50] sm:$0xff] %v2417_v28  ;;  %2430 = vpow2.f32 %v1196_v17  ;;  %v1069_v32 = vsub.f32 0.0, %v799_v26  ;;  %v1368_v36 = vmul.f32 1.442695, %v1154_v21 }
 0x116   : > { %v1097_v33 = vsub.f32 0.0, %v869_v27  ;;  %v2421_v34 = vpop.eup %2420  ;;  %v1471_v35 = vadd.f32 1.0, %v2419_v31  ;;  %2432 = vrcp.f32 %v1443_v29 }
 0x117   : > { %v2423_v37 = vpop.eup %2422  ;;  %v1501_v38 = vadd.f32 1.0, %v2421_v34  ;;  %2434 = vpow2.f32 %v1308_v30  ;;  %v938_v40 = vpop.f32.mrf.mxu2  ;;  %v1198_v46 = vmul.f32 1.442695, %v1069_v32 }
 0x118   : > { %v1013_v41 = vpop.f32.mrf.mxu3  ;;  %v2425_v43 = vpop.eup %2424  ;;  %1702 = vst [vmem:[%s2866_s18 + $0x210] sm:$0xff] %v2423_v37  ;;  %2436 = vrcp.f32 %v1471_v35  ;;  %v939_v44 = vadd.f32 %v2971_v42, %v938_v40  ;;  %v1254_v48 = vmul.f32 1.442695, %v1097_v33 }
 0x119   : > { %v1014_v45 = vadd.f32 %v2971_v42, %v1013_v41  ;;  %v2427_v47 = vpop.eup %2426  ;;  %1732 = vst [vmem:[%s2866_s18 + $0x300] sm:$0xff] %v2425_v43  ;;  %2438 = vrcp.f32 %v1501_v38 }
 0x11a   : > { %v2429_v49 = vpop.eup %2428  ;;  %1674 = vst [vmem:[%s2866_s18 + $0x130] sm:$0xff] %v2427_v47  ;;  %2440 = vpow2.f32 %v1368_v36  ;;  %v1125_v50 = vsub.f32 0.0, %v939_v44  ;;  %v801_v52 = vpop.f32.mrf.mxu0 }
 0x11b   : > { %v1155_v51 = vsub.f32 0.0, %v1014_v45  ;;  %v871_v53 = vpop.f32.mrf.mxu1  ;;  %v2431_v54 = vpop.eup %2430  ;;  %1647 = vst [vmem:[%s2866_s18 + $0x58] sm:$0xff] %v2429_v49  ;;  %2442 = vpow2.f32 %v1252_v39  ;;  %v802_v55 = vadd.f32 %v2971_v42, %v801_v52 }
 0x11c   : > { %v2433_v56 = vpop.eup %2432  ;;  %v1416_v57 = vadd.f32 1.0, %v2431_v54  ;;  %v1310_v58 = vmul.f32 1.442695, %v1125_v50  ;;  %2444 = vpow2.f32 %v1198_v46  ;;  %v872_v4 = vadd.f32 %v2971_v42, %v871_v53 }
 0x11d   : > { %v2435_v59 = vpop.eup %2434  ;;  %1675 = vst [vmem:[%s2866_s18 + $0x138] sm:$0xff] %v2433_v56  ;;  %v1370_v60 = vmul.f32 1.442695, %v1155_v51  ;;  %2446 = vpow2.f32 %v1254_v48  ;;  %v1070_v61 = vsub.f32 0.0, %v802_v55 }
 0x11e   : > { %v2437_v62 = vpop.eup %2436  ;;  %v1472_v63 = vadd.f32 1.0, %v2435_v59  ;;  %2448 = vrcp.f32 %v1416_v57  ;;  %v1098_v18 = vsub.f32 0.0, %v872_v4 }
 0x11f   : > { %v2439_v0 = vpop.eup %2438  ;;  %1703 = vst [vmem:[%s2866_s18 + $0x218] sm:$0xff] %v2437_v62  ;;  %2450 = vpow2.f32 %v1310_v58  ;;  %v941_v1 = vpop.f32.mrf.mxu2  ;;  %v1200_v3 = vmul.f32 1.442695, %v1070_v61 }
 0x120   : > { %v1016_v2 = vpop.f32.mrf.mxu3  ;;  %v2441_v5 = vpop.eup %2440  ;;  %1733 = vst [vmem:[%s2866_s18 + $0x308] sm:$0xff] %v2439_v0  ;;  %2452 = vrcp.f32 %v1472_v63  ;;  %v942_v6 = vadd.f32 %v2971_v42, %v941_v1  ;;  %v1256_v30 = vmul.f32 1.442695, %v1098_v18 }
 0x121   : > { %v1017_v7 = vadd.f32 %v2971_v42, %v1016_v2  ;;  %v2443_v8 = vpop.eup %2442  ;;  %v1502_v9 = vadd.f32 1.0, %v2441_v5  ;;  %2454 = vpow2.f32 %v1370_v60 }
 0x122   : > { %v2445_v10 = vpop.eup %2444  ;;  %v1444_v11 = vadd.f32 1.0, %v2443_v8  ;;  %v1126_v12 = vsub.f32 0.0, %v942_v6  ;;  %2456 = vpow2.f32 %v1200_v3  ;;  %v803_v14 = vpop.f32.mrf.mxu0 }
 0x123   : > { %v1156_v13 = vsub.f32 0.0, %v1017_v7  ;;  %v873_v15 = vpop.f32.mrf.mxu1  ;;  %v2447_v16 = vpop.eup %2446  ;;  %2458 = vrcp.f32 %v1502_v9  ;;  %v1417_v17 = vadd.f32 1.0, %v2445_v10  ;;  %v804_v19 = vadd.f32 %v2971_v42, %v803_v14 }
 0x124   : > { %v2449_v20 = vpop.eup %2448  ;;  %2460 = vrcp.f32 %v1444_v11  ;;  %v1445_v21 = vadd.f32 1.0, %v2447_v16  ;;  %v1312_v22 = vmul.f32 1.442695, %v1126_v12  ;;  %v874_v26 = vadd.f32 %v2971_v42, %v873_v15 }
 0x125   : > { %v2451_v23 = vpop.eup %2450  ;;  %1648 = vst [vmem:[%s2866_s18 + $0x60] sm:$0xff] %v2449_v20  ;;  %2462 = vrcp.f32 %v1417_v17  ;;  %v1372_v24 = vmul.f32 1.442695, %v1156_v13  ;;  %v1071_v25 = vsub.f32 0.0, %v804_v19 }
 0x126   : > { %v2453_v27 = vpop.eup %2452  ;;  %v1473_v28 = vadd.f32 1.0, %v2451_v23  ;;  %2464 = vrcp.f32 %v1445_v21  ;;  %v1099_v40 = vsub.f32 0.0, %v874_v26 }
 0x127   : > { %v2455_v29 = vpop.eup %2454  ;;  %1704 = vst [vmem:[%s2866_s18 + $0x220] sm:$0xff] %v2453_v27  ;;  %2466 = vpow2.f32 %v1312_v22  ;;  %v943_v31 = vpop.f32.mrf.mxu2  ;;  %v1202_v39 = vmul.f32 1.442695, %v1071_v25 }
 0x128   : > { %v1018_v32 = vpop.f32.mrf.mxu3  ;;  %v2457_v33 = vpop.eup %2456  ;;  %2468 = vrcp.f32 %v1473_v28  ;;  %v1503_v34 = vadd.f32 1.0, %v2455_v29  ;;  %v944_v35 = vadd.f32 %v2971_v42, %v943_v31  ;;  %v1258_v54 = vmul.f32 1.442695, %v1099_v40 }
 0x129   : > { %v1019_v36 = vadd.f32 %v2971_v42, %v1018_v32  ;;  %v2459_v37 = vpop.eup %2458  ;;  %2470 = vpow2.f32 %v1372_v24  ;;  %v1418_v38 = vadd.f32 1.0, %v2457_v33 }
 0x12a   : > { %v2461_v41 = vpop.eup %2460  ;;  %1734 = vst [vmem:[%s2866_s18 + $0x310] sm:$0xff] %v2459_v37  ;;  %2472 = vrcp.f32 %v1503_v34  ;;  %v1127_v43 = vsub.f32 0.0, %v944_v35  ;;  %v806_v45 = vpop.f32.mrf.mxu0 }
 0x12b   : > { %v1157_v44 = vsub.f32 0.0, %v1019_v36  ;;  %v876_v46 = vpop.f32.mrf.mxu1  ;;  %v2463_v47 = vpop.eup %2462  ;;  %1676 = vst [vmem:[%s2866_s18 + $0x140] sm:$0xff] %v2461_v41  ;;  %2474 = vrcp.f32 %v1418_v38  ;;  %v807_v48 = vadd.f32 %v2971_v42, %v806_v45 }
 0x12c   : > { %v877_v49 = vadd.f32 %v2971_v42, %v876_v46  ;;  %v2465_v50 = vpop.eup %2464  ;;  %1649 = vst [vmem:[%s2866_s18 + $0x68] sm:$0xff] %v2463_v47  ;;  %2476 = vpow2.f32 %v1256_v30  ;;  %v1314_v51 = vmul.f32 1.442695, %v1127_v43 }
 0x12d   : > { %v1374_v52 = vmul.f32 1.442695, %v1157_v44  ;;  %v2467_v53 = vpop.eup %2466  ;;  %1677 = vst [vmem:[%s2866_s18 + $0x148] sm:$0xff] %v2465_v50  ;;  %2478 = vpow2.f32 %v1202_v39  ;;  %v1072_v55 = vsub.f32 0.0, %v807_v48 }
 0x12e   : > { %v1100_v56 = vsub.f32 0.0, %v877_v49  ;;  %v2469_v57 = vpop.eup %2468  ;;  %v1474_v58 = vadd.f32 1.0, %v2467_v53  ;;  %2480 = vpow2.f32 %v1314_v51 }
 0x12f   : > { %v2471_v59 = vpop.eup %2470  ;;  %1705 = vst [vmem:[%s2866_s18 + $0x228] sm:$0xff] %v2469_v57  ;;  %2482 = vpow2.f32 %v1374_v52  ;;  %v946_v60 = vpop.f32.mrf.mxu2  ;;  %v1204_v62 = vmul.f32 1.442695, %v1072_v55 }
 0x130   : > { %v1021_v61 = vpop.f32.mrf.mxu3  ;;  %v1260_v63 = vmul.f32 1.442695, %v1100_v56  ;;  %v2473_v0 = vpop.eup %2472  ;;  %2484 = vrcp.f32 %v1474_v58  ;;  %v1504_v1 = vadd.f32 1.0, %v2471_v59  ;;  %v947_v2 = vadd.f32 %v2971_v42, %v946_v60 }
 0x131   : > { %v1022_v3 = vadd.f32 %v2971_v42, %v1021_v61  ;;  %v2475_v4 = vpop.eup %2474  ;;  %1735 = vst [vmem:[%s2866_s18 + $0x318] sm:$0xff] %v2473_v0  ;;  %2486 = vpow2.f32 %v1258_v54 }
 0x132   : > { %v2477_v5 = vpop.eup %2476  ;;  %2488 = vrcp.f32 %v1504_v1  ;;  %1650 = vst [vmem:[%s2866_s18 + $0x70] sm:$0xff] %v2475_v4  ;;  %v1128_v6 = vsub.f32 0.0, %v947_v2  ;;  %v808_v7 = vpop.f32.mrf.mxu0 }
 0x133   : > { %v878_v8 = vpop.f32.mrf.mxu1  ;;  %v2479_v9 = vpop.eup %2478  ;;  %v1446_v10 = vadd.f32 1.0, %v2477_v5  ;;  %v1158_v11 = vsub.f32 0.0, %v1022_v3  ;;  %2490 = vpow2.f32 %v1204_v62  ;;  %v809_v12 = vadd.f32 %v2971_v42, %v808_v7 }
 0x134   : > { %v2481_v13 = vpop.eup %2480  ;;  %v1419_v14 = vadd.f32 1.0, %v2479_v9  ;;  %2492 = vpow2.f32 %v1260_v63  ;;  %v879_v15 = vadd.f32 %v2971_v42, %v878_v8  ;;  %v1316_v18 = vmul.f32 1.442695, %v1128_v6 }
 0x135   : > { %v2483_v16 = vpop.eup %2482  ;;  %2494 = vrcp.f32 %v1446_v10  ;;  %v1475_v17 = vadd.f32 1.0, %v2481_v13  ;;  %v1073_v19 = vsub.f32 0.0, %v809_v12  ;;  %v1376_v23 = vmul.f32 1.442695, %v1158_v11 }
 0x136   : > { %v2485_v20 = vpop.eup %2484  ;;  %v1505_v21 = vadd.f32 1.0, %v2483_v16  ;;  %2496 = vrcp.f32 %v1419_v14  ;;  %v1101_v32 = vsub.f32 0.0, %v879_v15 }
 0x137   : > { %v2487_v22 = vpop.eup %2486  ;;  %1706 = vst [vmem:[%s2866_s18 + $0x230] sm:$0xff] %v2485_v20  ;;  %2498 = vrcp.f32 %v1475_v17  ;;  %v948_v24 = vpop.f32.mrf.mxu2  ;;  %v1206_v31 = vmul.f32 1.442695, %v1073_v19 }
 0x138   : > { %v1023_v25 = vpop.f32.mrf.mxu3  ;;  %v2489_v26 = vpop.eup %2488  ;;  %2500 = vrcp.f32 %v1505_v21  ;;  %v1447_v27 = vadd.f32 1.0, %v2487_v22  ;;  %v949_v28 = vadd.f32 %v2971_v42, %v948_v24  ;;  %v1262_v48 = vmul.f32 1.442695, %v1101_v32 }
 0x139   : > { %v1024_v29 = vadd.f32 %v2971_v42, %v1023_v25  ;;  %v2491_v30 = vpop.eup %2490  ;;  %1736 = vst [vmem:[%s2866_s18 + $0x320] sm:$0xff] %v2489_v26  ;;  %2502 = vpow2.f32 %v1316_v18 }
 0x13a   : > { %v2493_v33 = vpop.eup %2492  ;;  %2504 = vrcp.f32 %v1447_v27  ;;  %v1420_v34 = vadd.f32 1.0, %v2491_v30  ;;  %v1129_v35 = vsub.f32 0.0, %v949_v28  ;;  %v811_v37 = vpop.f32.mrf.mxu0 }
 0x13b   : > { %v1159_v36 = vsub.f32 0.0, %v1024_v29  ;;  %v881_v38 = vpop.f32.mrf.mxu1  ;;  %v2495_v39 = vpop.eup %2494  ;;  %2506 = vpow2.f32 %v1376_v23  ;;  %v1448_v40 = vadd.f32 1.0, %v2493_v33  ;;  %v812_v41 = vadd.f32 %v2971_v42, %v811_v37 }
 0x13c   : > { %v882_v43 = vadd.f32 %v2971_v42, %v881_v38  ;;  %v2497_v44 = vpop.eup %2496  ;;  %1678 = vst [vmem:[%s2866_s18 + $0x150] sm:$0xff] %v2495_v39  ;;  %2508 = vrcp.f32 %v1420_v34  ;;  %v1318_v45 = vmul.f32 1.442695, %v1129_v35 }
 0x13d   : > { %v1378_v46 = vmul.f32 1.442695, %v1159_v36  ;;  %v2499_v47 = vpop.eup %2498  ;;  %1651 = vst [vmem:[%s2866_s18 + $0x78] sm:$0xff] %v2497_v44  ;;  %2510 = vrcp.f32 %v1448_v40  ;;  %v1074_v49 = vsub.f32 0.0, %v812_v41 }
 0x13e   : > { %v1102_v50 = vsub.f32 0.0, %v882_v43  ;;  %v2501_v51 = vpop.eup %2500  ;;  %1707 = vst [vmem:[%s2866_s18 + $0x238] sm:$0xff] %v2499_v47  ;;  %2512 = vpow2.f32 %v1318_v45 }
 0x13f   : > { %v2503_v52 = vpop.eup %2502  ;;  %1737 = vst [vmem:[%s2866_s18 + $0x328] sm:$0xff] %v2501_v51  ;;  %2514 = vpow2.f32 %v1378_v46  ;;  %v951_v53 = vpop.f32.mrf.mxu2  ;;  %v1208_v55 = vmul.f32 1.442695, %v1074_v49 }
 0x140   : > { %v1026_v54 = vpop.f32.mrf.mxu3  ;;  %v2505_v56 = vpop.eup %2504  ;;  %v1476_v57 = vadd.f32 1.0, %v2503_v52  ;;  %2516 = vpow2.f32 %v1206_v31  ;;  %v952_v58 = vadd.f32 %v2971_v42, %v951_v53  ;;  %v1264_v61 = vmul.f32 1.442695, %v1102_v50 }
 0x141   : > { %v1027_v59 = vadd.f32 %v2971_v42, %v1026_v54  ;;  %v2507_v60 = vpop.eup %2506  ;;  %1679 = vst [vmem:[%s2866_s18 + $0x158] sm:$0xff] %v2505_v56  ;;  %2518 = vpow2.f32 %v1262_v48 }
 0x142   : > { %v2509_v62 = vpop.eup %2508  ;;  %2520 = vrcp.f32 %v1476_v57  ;;  %v1506_v63 = vadd.f32 1.0, %v2507_v60  ;;  %v1130_v0 = vsub.f32 0.0, %v952_v58  ;;  %v813_v1 = vpop.f32.mrf.mxu0 }
 0x143   : > { %v883_v2 = vpop.f32.mrf.mxu1  ;;  %v2511_v3 = vpop.eup %2510  ;;  %1652 = vst [vmem:[%s2866_s18 + $0x80] sm:$0xff] %v2509_v62  ;;  %v1160_v4 = vsub.f32 0.0, %v1027_v59  ;;  %2522 = vpow2.f32 %v1208_v55  ;;  %v814_v5 = vadd.f32 %v2971_v42, %v813_v1 }
 0x144   : > { %v2513_v6 = vpop.eup %2512  ;;  %2524 = vrcp.f32 %v1506_v63  ;;  %1680 = vst [vmem:[%s2866_s18 + $0x160] sm:$0xff] %v2511_v3  ;;  %v1320_v7 = vmul.f32 1.442695, %v1130_v0  ;;  %v884_v11 = vadd.f32 %v2971_v42, %v883_v2 }
 0x145   : > { %v2515_v8 = vpop.eup %2514  ;;  %v1477_v9 = vadd.f32 1.0, %v2513_v6  ;;  %2526 = vpow2.f32 %v1264_v61  ;;  %v1075_v10 = vsub.f32 0.0, %v814_v5  ;;  %v1380_v16 = vmul.f32 1.442695, %v1160_v4 }
 0x146   : > { %v2517_v12 = vpop.eup %2516  ;;  %v1507_v13 = vadd.f32 1.0, %v2515_v8  ;;  %2528 = vpow2.f32 %v1320_v7  ;;  %v1103_v25 = vsub.f32 0.0, %v884_v11 }
 0x147   : > { %v2519_v14 = vpop.eup %2518  ;;  %2530 = vrcp.f32 %v1477_v9  ;;  %v1421_v15 = vadd.f32 1.0, %v2517_v12  ;;  %v953_v17 = vpop.f32.mrf.mxu2  ;;  %v1210_v24 = vmul.f32 1.442695, %v1075_v10 }
 0x148   : > { %v1028_v18 = vpop.f32.mrf.mxu3  ;;  %v2521_v19 = vpop.eup %2520  ;;  %2532 = vrcp.f32 %v1507_v13  ;;  %v1449_v20 = vadd.f32 1.0, %v2519_v14  ;;  %v954_v21 = vadd.f32 %v2971_v42, %v953_v17  ;;  %v1266_v45 = vmul.f32 1.442695, %v1103_v25 }
 0x149   : > { %v1029_v22 = vadd.f32 %v2971_v42, %v1028_v18  ;;  %v2523_v23 = vpop.eup %2522  ;;  %1708 = vst [vmem:[%s2866_s18 + $0x240] sm:$0xff] %v2521_v19  ;;  %2534 = vrcp.f32 %v1421_v15 }
 0x14a   : > { %v2525_v26 = vpop.eup %2524  ;;  %2536 = vrcp.f32 %v1449_v20  ;;  %v1422_v27 = vadd.f32 1.0, %v2523_v23  ;;  %v1131_v28 = vsub.f32 0.0, %v954_v21  ;;  %v816_v30 = vpop.f32.mrf.mxu0 }
 0x14b   : > { %v1161_v29 = vsub.f32 0.0, %v1029_v22  ;;  %v886_v31 = vpop.f32.mrf.mxu1  ;;  %v2527_v32 = vpop.eup %2526  ;;  %1738 = vst [vmem:[%s2866_s18 + $0x330] sm:$0xff] %v2525_v26  ;;  %2538 = vpow2.f32 %v1380_v16  ;;  %v817_v33 = vadd.f32 %v2971_v42, %v816_v30 }
 0x14c   : > { %v887_v34 = vadd.f32 %v2971_v42, %v886_v31  ;;  %v2529_v35 = vpop.eup %2528  ;;  %2540 = vrcp.f32 %v1422_v27  ;;  %v1450_v36 = vadd.f32 1.0, %v2527_v32  ;;  %v1322_v37 = vmul.f32 1.442695, %v1131_v28 }
 0x14d   : > { %v1382_v38 = vmul.f32 1.442695, %v1161_v29  ;;  %v2531_v39 = vpop.eup %2530  ;;  %v1478_v40 = vadd.f32 1.0, %v2529_v35  ;;  %2542 = vpow2.f32 %v1210_v24  ;;  %v1076_v41 = vsub.f32 0.0, %v817_v33 }
 0x14e   : > { %v1104_v43 = vsub.f32 0.0, %v887_v34  ;;  %v2533_v44 = vpop.eup %2532  ;;  %1709 = vst [vmem:[%s2866_s18 + $0x248] sm:$0xff] %v2531_v39  ;;  %2544 = vrcp.f32 %v1450_v36 }
 0x14f   : > { %v2535_v46 = vpop.eup %2534  ;;  %1739 = vst [vmem:[%s2866_s18 + $0x338] sm:$0xff] %v2533_v44  ;;  %2546 = vrcp.f32 %v1478_v40  ;;  %v956_v47 = vpop.f32.mrf.mxu2  ;;  %v1212_v49 = vmul.f32 1.442695, %v1076_v41 }
 0x150   : > { %v1031_v48 = vpop.f32.mrf.mxu3  ;;  %v2537_v50 = vpop.eup %2536  ;;  %1653 = vst [vmem:[%s2866_s18 + $0x88] sm:$0xff] %v2535_v46  ;;  %2548 = vpow2.f32 %v1322_v37  ;;  %v957_v51 = vadd.f32 %v2971_v42, %v956_v47  ;;  %v1268_v54 = vmul.f32 1.442695, %v1104_v43 }
 0x151   : > { %v1032_v52 = vadd.f32 %v2971_v42, %v1031_v48  ;;  %v2539_v53 = vpop.eup %2538  ;;  %1681 = vst [vmem:[%s2866_s18 + $0x168] sm:$0xff] %v2537_v50  ;;  %2550 = vpow2.f32 %v1382_v38 }
 0x152   : > { %v2541_v55 = vpop.eup %2540  ;;  %v1508_v56 = vadd.f32 1.0, %v2539_v53  ;;  %2552 = vpow2.f32 %v1266_v45  ;;  %v1132_v57 = vsub.f32 0.0, %v957_v51  ;;  %v818_v59 = vpop.f32.mrf.mxu0 }
 0x153   : > { %v1162_v58 = vsub.f32 0.0, %v1032_v52  ;;  %v888_v60 = vpop.f32.mrf.mxu1  ;;  %v2543_v61 = vpop.eup %2542  ;;  %1654 = vst [vmem:[%s2866_s18 + $0x90] sm:$0xff] %v2541_v55  ;;  %2554 = vpow2.f32 %v1212_v49  ;;  %v819_v62 = vadd.f32 %v2971_v42, %v818_v59 }
 0x154   : > { %v2545_v63 = vpop.eup %2544  ;;  %2556 = vrcp.f32 %v1508_v56  ;;  %v1423_v0 = vadd.f32 1.0, %v2543_v61  ;;  %v1324_v1 = vmul.f32 1.442695, %v1132_v57  ;;  %v889_v10 = vadd.f32 %v2971_v42, %v888_v60 }
 0x155   : > { %v1384_v2 = vmul.f32 1.442695, %v1162_v58  ;;  %v2547_v3 = vpop.eup %2546  ;;  %1682 = vst [vmem:[%s2866_s18 + $0x170] sm:$0xff] %v2545_v63  ;;  %2558 = vpow2.f32 %v1268_v54  ;;  %v1077_v4 = vsub.f32 0.0, %v819_v62 }
 0x156   : > { %v2549_v5 = vpop.eup %2548  ;;  %1710 = vst [vmem:[%s2866_s18 + $0x250] sm:$0xff] %v2547_v3  ;;  %2560 = vrcp.f32 %v1423_v0  ;;  %v1105_v25 = vsub.f32 0.0, %v889_v10 }
 0x157   : > { %v2551_v6 = vpop.eup %2550  ;;  %v1479_v7 = vadd.f32 1.0, %v2549_v5  ;;  %2562 = vpow2.f32 %v1324_v1  ;;  %v958_v8 = vpop.f32.mrf.mxu2  ;;  %v1214_v17 = vmul.f32 1.442695, %v1077_v4 }
 0x158   : > { %v1033_v9 = vpop.f32.mrf.mxu3  ;;  %v2553_v11 = vpop.eup %2552  ;;  %v1509_v12 = vadd.f32 1.0, %v2551_v6  ;;  %2564 = vpow2.f32 %v1384_v2  ;;  %v959_v13 = vadd.f32 %v2971_v42, %v958_v8  ;;  %v1270_v39 = vmul.f32 1.442695, %v1105_v25 }
 0x159   : > { %v1034_v14 = vadd.f32 %v2971_v42, %v1033_v9  ;;  %v2555_v15 = vpop.eup %2554  ;;  %2566 = vrcp.f32 %v1479_v7  ;;  %v1451_v16 = vadd.f32 1.0, %v2553_v11 }
 0x15a   : > { %v2557_v18 = vpop.eup %2556  ;;  %2568 = vrcp.f32 %v1509_v12  ;;  %v1424_v19 = vadd.f32 1.0, %v2555_v15  ;;  %v1133_v20 = vsub.f32 0.0, %v959_v13  ;;  %v821_v22 = vpop.f32.mrf.mxu0 }
 0x15b   : > { %v1163_v21 = vsub.f32 0.0, %v1034_v14  ;;  %v891_v23 = vpop.f32.mrf.mxu1  ;;  %v2559_v24 = vpop.eup %2558  ;;  %1740 = vst [vmem:[%s2866_s18 + $0x340] sm:$0xff] %v2557_v18  ;;  %2570 = vrcp.f32 %v1451_v16  ;;  %v822_v26 = vadd.f32 %v2971_v42, %v821_v22 }
 0x15c   : > { %v892_v27 = vadd.f32 %v2971_v42, %v891_v23  ;;  %v2561_v28 = vpop.eup %2560  ;;  %2572 = vrcp.f32 %v1424_v19  ;;  %v1452_v29 = vadd.f32 1.0, %v2559_v24  ;;  %v1326_v30 = vmul.f32 1.442695, %v1133_v20 }
 0x15d   : > { %v2563_v31 = vpop.eup %2562  ;;  %1655 = vst [vmem:[%s2866_s18 + $0x98] sm:$0xff] %v2561_v28  ;;  %2574 = vpow2.f32 %v1214_v17  ;;  %v1078_v32 = vsub.f32 0.0, %v822_v26  ;;  %v1386_v36 = vmul.f32 1.442695, %v1163_v21 }
 0x15e   : > { %v1106_v33 = vsub.f32 0.0, %v892_v27  ;;  %v2565_v34 = vpop.eup %2564  ;;  %v1480_v35 = vadd.f32 1.0, %v2563_v31  ;;  %2576 = vrcp.f32 %v1452_v29 }
 0x15f   : > { %v2567_v37 = vpop.eup %2566  ;;  %v1510_v38 = vadd.f32 1.0, %v2565_v34  ;;  %2578 = vpow2.f32 %v1326_v30  ;;  %v961_v40 = vpop.f32.mrf.mxu2  ;;  %v1216_v46 = vmul.f32 1.442695, %v1078_v32 }
 0x160   : > { %v1036_v41 = vpop.f32.mrf.mxu3  ;;  %v2569_v43 = vpop.eup %2568  ;;  %1711 = vst [vmem:[%s2866_s18 + $0x258] sm:$0xff] %v2567_v37  ;;  %2580 = vrcp.f32 %v1480_v35  ;;  %v962_v44 = vadd.f32 %v2971_v42, %v961_v40  ;;  %v1272_v48 = vmul.f32 1.442695, %v1106_v33 }
 0x161   : > { %v1037_v45 = vadd.f32 %v2971_v42, %v1036_v41  ;;  %v2571_v47 = vpop.eup %2570  ;;  %1741 = vst [vmem:[%s2866_s18 + $0x348] sm:$0xff] %v2569_v43  ;;  %2582 = vrcp.f32 %v1510_v38 }
 0x162   : > { %v2573_v49 = vpop.eup %2572  ;;  %1683 = vst [vmem:[%s2866_s18 + $0x178] sm:$0xff] %v2571_v47  ;;  %2584 = vpow2.f32 %v1386_v36  ;;  %v1134_v50 = vsub.f32 0.0, %v962_v44  ;;  %v823_v52 = vpop.f32.mrf.mxu0 }
 0x163   : > { %v1164_v51 = vsub.f32 0.0, %v1037_v45  ;;  %v893_v53 = vpop.f32.mrf.mxu1  ;;  %v2575_v54 = vpop.eup %2574  ;;  %1656 = vst [vmem:[%s2866_s18 + $0xa0] sm:$0xff] %v2573_v49  ;;  %2586 = vpow2.f32 %v1270_v39  ;;  %v824_v55 = vadd.f32 %v2971_v42, %v823_v52 }
 0x164   : > { %v2577_v56 = vpop.eup %2576  ;;  %v1425_v57 = vadd.f32 1.0, %v2575_v54  ;;  %v1328_v58 = vmul.f32 1.442695, %v1134_v50  ;;  %2588 = vpow2.f32 %v1216_v46  ;;  %v894_v4 = vadd.f32 %v2971_v42, %v893_v53 }
 0x165   : > { %v2579_v59 = vpop.eup %2578  ;;  %1684 = vst [vmem:[%s2866_s18 + $0x180] sm:$0xff] %v2577_v56  ;;  %v1388_v60 = vmul.f32 1.442695, %v1164_v51  ;;  %2590 = vpow2.f32 %v1272_v48  ;;  %v1079_v61 = vsub.f32 0.0, %v824_v55 }
 0x166   : > { %v2581_v62 = vpop.eup %2580  ;;  %v1481_v63 = vadd.f32 1.0, %v2579_v59  ;;  %2592 = vrcp.f32 %v1425_v57  ;;  %v1107_v18 = vsub.f32 0.0, %v894_v4 }
 0x167   : > { %v2583_v0 = vpop.eup %2582  ;;  %1712 = vst [vmem:[%s2866_s18 + $0x260] sm:$0xff] %v2581_v62  ;;  %2594 = vpow2.f32 %v1328_v58  ;;  %v963_v1 = vpop.f32.mrf.mxu2  ;;  %v1218_v3 = vmul.f32 1.442695, %v1079_v61 }
 0x168   : > { %v1038_v2 = vpop.f32.mrf.mxu3  ;;  %v2585_v5 = vpop.eup %2584  ;;  %1742 = vst [vmem:[%s2866_s18 + $0x350] sm:$0xff] %v2583_v0  ;;  %2596 = vrcp.f32 %v1481_v63  ;;  %v964_v6 = vadd.f32 %v2971_v42, %v963_v1  ;;  %v1274_v30 = vmul.f32 1.442695, %v1107_v18 }
 0x169   : > { %v1039_v7 = vadd.f32 %v2971_v42, %v1038_v2  ;;  %v2587_v8 = vpop.eup %2586  ;;  %v1511_v9 = vadd.f32 1.0, %v2585_v5  ;;  %2598 = vpow2.f32 %v1388_v60 }
 0x16a   : > { %v2589_v10 = vpop.eup %2588  ;;  %v1453_v11 = vadd.f32 1.0, %v2587_v8  ;;  %v1135_v12 = vsub.f32 0.0, %v964_v6  ;;  %2600 = vpow2.f32 %v1218_v3  ;;  %v826_v14 = vpop.f32.mrf.mxu0 }
 0x16b   : > { %v1165_v13 = vsub.f32 0.0, %v1039_v7  ;;  %v896_v15 = vpop.f32.mrf.mxu1  ;;  %v2591_v16 = vpop.eup %2590  ;;  %2602 = vrcp.f32 %v1511_v9  ;;  %v1426_v17 = vadd.f32 1.0, %v2589_v10  ;;  %v827_v19 = vadd.f32 %v2971_v42, %v826_v14 }
 0x16c   : > { %v2593_v20 = vpop.eup %2592  ;;  %2604 = vrcp.f32 %v1453_v11  ;;  %v1454_v21 = vadd.f32 1.0, %v2591_v16  ;;  %v1330_v22 = vmul.f32 1.442695, %v1135_v12  ;;  %v897_v26 = vadd.f32 %v2971_v42, %v896_v15  ;;  %v3081_v12 = vld [vmem:[%s3129_s2] ss:$0 sm:$0xff] }
 0x16d   : > { %v2595_v23 = vpop.eup %2594  ;;  %1657 = vst [vmem:[%s2866_s18 + $0xa8] sm:$0xff] %v2593_v20  ;;  %2606 = vrcp.f32 %v1426_v17  ;;  %v1390_v24 = vmul.f32 1.442695, %v1165_v13  ;;  %v1080_v25 = vsub.f32 0.0, %v827_v19 }
 0x16e   : > { %v2597_v27 = vpop.eup %2596  ;;  %v1482_v28 = vadd.f32 1.0, %v2595_v23  ;;  %2608 = vrcp.f32 %v1454_v21  ;;  %v1108_v40 = vsub.f32 0.0, %v897_v26 }
 0x16f   : > { %v2599_v29 = vpop.eup %2598  ;;  %1713 = vst [vmem:[%s2866_s18 + $0x268] sm:$0xff] %v2597_v27  ;;  %2610 = vpow2.f32 %v1330_v22  ;;  %v966_v31 = vpop.f32.mrf.mxu2  ;;  %v1220_v39 = vmul.f32 1.442695, %v1080_v25 }
 0x170   : > { %v1041_v32 = vpop.f32.mrf.mxu3  ;;  %v2601_v33 = vpop.eup %2600  ;;  %2612 = vrcp.f32 %v1482_v28  ;;  %v1512_v34 = vadd.f32 1.0, %v2599_v29  ;;  %v967_v35 = vadd.f32 %v2971_v42, %v966_v31  ;;  %v1276_v54 = vmul.f32 1.442695, %v1108_v40 }
 0x171   : > { %v1042_v36 = vadd.f32 %v2971_v42, %v1041_v32  ;;  %v2603_v37 = vpop.eup %2602  ;;  %2614 = vpow2.f32 %v1390_v24  ;;  %v1427_v38 = vadd.f32 1.0, %v2601_v33 }
 0x172   : > { %v2605_v41 = vpop.eup %2604  ;;  %1743 = vst [vmem:[%s2866_s18 + $0x358] sm:$0xff] %v2603_v37  ;;  %2616 = vrcp.f32 %v1512_v34  ;;  %v1136_v43 = vsub.f32 0.0, %v967_v35  ;;  %v828_v45 = vpop.f32.mrf.mxu0 }
 0x173   : > { %v1166_v44 = vsub.f32 0.0, %v1042_v36  ;;  %v898_v46 = vpop.f32.mrf.mxu1  ;;  %v2607_v47 = vpop.eup %2606  ;;  %1685 = vst [vmem:[%s2866_s18 + $0x188] sm:$0xff] %v2605_v41  ;;  %2618 = vrcp.f32 %v1427_v38  ;;  %v829_v48 = vadd.f32 %v2971_v42, %v828_v45 }
 0x174   : > { %v899_v49 = vadd.f32 %v2971_v42, %v898_v46  ;;  %v2609_v50 = vpop.eup %2608  ;;  %1658 = vst [vmem:[%s2866_s18 + $0xb0] sm:$0xff] %v2607_v47  ;;  %2620 = vpow2.f32 %v1274_v30  ;;  %v1332_v51 = vmul.f32 1.442695, %v1136_v43 }
 0x175   : > { %v1392_v52 = vmul.f32 1.442695, %v1166_v44  ;;  %v2611_v53 = vpop.eup %2610  ;;  %1686 = vst [vmem:[%s2866_s18 + $0x190] sm:$0xff] %v2609_v50  ;;  %2622 = vpow2.f32 %v1220_v39  ;;  %v1081_v55 = vsub.f32 0.0, %v829_v48 }
 0x176   : > { %v1109_v56 = vsub.f32 0.0, %v899_v49  ;;  %v2613_v57 = vpop.eup %2612  ;;  %v1483_v58 = vadd.f32 1.0, %v2611_v53  ;;  %2624 = vpow2.f32 %v1332_v51 }
 0x177   : > { %v2615_v59 = vpop.eup %2614  ;;  %1714 = vst [vmem:[%s2866_s18 + $0x270] sm:$0xff] %v2613_v57  ;;  %2626 = vpow2.f32 %v1392_v52  ;;  %v968_v60 = vpop.f32.mrf.mxu2  ;;  %v1222_v62 = vmul.f32 1.442695, %v1081_v55 }
 0x178   : > { %v1043_v61 = vpop.f32.mrf.mxu3  ;;  %v1278_v63 = vmul.f32 1.442695, %v1109_v56  ;;  %v2617_v0 = vpop.eup %2616  ;;  %2628 = vrcp.f32 %v1483_v58  ;;  %v1513_v1 = vadd.f32 1.0, %v2615_v59  ;;  %v969_v2 = vadd.f32 %v2971_v42, %v968_v60 }
 0x179   : > { %v1044_v3 = vadd.f32 %v2971_v42, %v1043_v61  ;;  %v2619_v4 = vpop.eup %2618  ;;  %1744 = vst [vmem:[%s2866_s18 + $0x360] sm:$0xff] %v2617_v0  ;;  %2630 = vpow2.f32 %v1276_v54 }
 0x17a   : > { %v2621_v5 = vpop.eup %2620  ;;  %2632 = vrcp.f32 %v1513_v1  ;;  %1659 = vst [vmem:[%s2866_s18 + $0xb8] sm:$0xff] %v2619_v4  ;;  %v1137_v6 = vsub.f32 0.0, %v969_v2  ;;  %v831_v7 = vpop.f32.mrf.mxu0 }
 0x17b   : > { %v901_v8 = vpop.f32.mrf.mxu1  ;;  %v2623_v9 = vpop.eup %2622  ;;  %v1455_v10 = vadd.f32 1.0, %v2621_v5  ;;  %v1167_v11 = vsub.f32 0.0, %v1044_v3  ;;  %2634 = vpow2.f32 %v1222_v62  ;;  %v832_v42 = vadd.f32 %v3081_v12, %v831_v7 }
 0x17c   : > { %v2625_v13 = vpop.eup %2624  ;;  %v1428_v14 = vadd.f32 1.0, %v2623_v9  ;;  %2636 = vpow2.f32 %v1278_v63  ;;  %v902_v15 = vadd.f32 %v3081_v12, %v901_v8  ;;  %v1334_v18 = vmul.f32 1.442695, %v1137_v6 }
 0x17d   : > { %v2627_v16 = vpop.eup %2626  ;;  %2638 = vrcp.f32 %v1455_v10  ;;  %v1484_v17 = vadd.f32 1.0, %v2625_v13  ;;  %v1082_v19 = vsub.f32 0.0, %v832_v42  ;;  %v1394_v23 = vmul.f32 1.442695, %v1167_v11 }
 0x17e   : > { %v2629_v20 = vpop.eup %2628  ;;  %v1514_v21 = vadd.f32 1.0, %v2627_v16  ;;  %2640 = vrcp.f32 %v1428_v14  ;;  %v1110_v32 = vsub.f32 0.0, %v902_v15 }
 0x17f   : > { %v2631_v22 = vpop.eup %2630  ;;  %1715 = vst [vmem:[%s2866_s18 + $0x278] sm:$0xff] %v2629_v20  ;;  %2642 = vrcp.f32 %v1484_v17  ;;  %v971_v24 = vpop.f32.mrf.mxu2  ;;  %v1224_v31 = vmul.f32 1.442695, %v1082_v19 }
 0x180   : > { %v1046_v25 = vpop.f32.mrf.mxu3  ;;  %v2633_v26 = vpop.eup %2632  ;;  %2644 = vrcp.f32 %v1514_v21  ;;  %v1456_v27 = vadd.f32 1.0, %v2631_v22  ;;  %v972_v28 = vadd.f32 %v3081_v12, %v971_v24  ;;  %v1280_v48 = vmul.f32 1.442695, %v1110_v32 }
 0x181   : > { %v1047_v29 = vadd.f32 %v3081_v12, %v1046_v25  ;;  %v2635_v30 = vpop.eup %2634  ;;  %1745 = vst [vmem:[%s2866_s18 + $0x368] sm:$0xff] %v2633_v26  ;;  %2646 = vpow2.f32 %v1334_v18 }
 0x182   : > { %v2637_v33 = vpop.eup %2636  ;;  %2648 = vrcp.f32 %v1456_v27  ;;  %v1429_v34 = vadd.f32 1.0, %v2635_v30  ;;  %v1138_v35 = vsub.f32 0.0, %v972_v28  ;;  %v833_v37 = vpop.f32.mrf.mxu0 }
 0x183   : > { %v1168_v36 = vsub.f32 0.0, %v1047_v29  ;;  %v903_v38 = vpop.f32.mrf.mxu1  ;;  %v2639_v39 = vpop.eup %2638  ;;  %2650 = vpow2.f32 %v1394_v23  ;;  %v1457_v40 = vadd.f32 1.0, %v2637_v33  ;;  %v834_v41 = vadd.f32 %v3081_v12, %v833_v37 }
 0x184   : > { %v904_v43 = vadd.f32 %v3081_v12, %v903_v38  ;;  %v2641_v44 = vpop.eup %2640  ;;  %1687 = vst [vmem:[%s2866_s18 + $0x198] sm:$0xff] %v2639_v39  ;;  %2652 = vrcp.f32 %v1429_v34  ;;  %v1336_v45 = vmul.f32 1.442695, %v1138_v35 }
 0x185   : > { %v1396_v46 = vmul.f32 1.442695, %v1168_v36  ;;  %v2643_v47 = vpop.eup %2642  ;;  %1660 = vst [vmem:[%s2866_s18 + $0xc0] sm:$0xff] %v2641_v44  ;;  %2654 = vrcp.f32 %v1457_v40  ;;  %v1083_v49 = vsub.f32 0.0, %v834_v41 }
 0x186   : > { %v1111_v50 = vsub.f32 0.0, %v904_v43  ;;  %v2645_v51 = vpop.eup %2644  ;;  %1716 = vst [vmem:[%s2866_s18 + $0x280] sm:$0xff] %v2643_v47  ;;  %2656 = vpow2.f32 %v1336_v45 }
 0x187   : > { %v2647_v52 = vpop.eup %2646  ;;  %1746 = vst [vmem:[%s2866_s18 + $0x370] sm:$0xff] %v2645_v51  ;;  %2658 = vpow2.f32 %v1396_v46  ;;  %v973_v53 = vpop.f32.mrf.mxu2  ;;  %v1226_v55 = vmul.f32 1.442695, %v1083_v49 }
 0x188   : > { %v1048_v54 = vpop.f32.mrf.mxu3  ;;  %v2649_v56 = vpop.eup %2648  ;;  %v1485_v57 = vadd.f32 1.0, %v2647_v52  ;;  %2660 = vpow2.f32 %v1224_v31  ;;  %v974_v58 = vadd.f32 %v3081_v12, %v973_v53  ;;  %v1282_v61 = vmul.f32 1.442695, %v1111_v50 }
 0x189   : > { %v1049_v59 = vadd.f32 %v3081_v12, %v1048_v54  ;;  %v2651_v60 = vpop.eup %2650  ;;  %1688 = vst [vmem:[%s2866_s18 + $0x1a0] sm:$0xff] %v2649_v56  ;;  %2662 = vpow2.f32 %v1280_v48 }
 0x18a   : > { %v2653_v62 = vpop.eup %2652  ;;  %2664 = vrcp.f32 %v1485_v57  ;;  %v1515_v63 = vadd.f32 1.0, %v2651_v60  ;;  %v1139_v0 = vsub.f32 0.0, %v974_v58 }
 0x18b   : > { %v2655_v1 = vpop.eup %2654  ;;  %1661 = vst [vmem:[%s2866_s18 + $0xc8] sm:$0xff] %v2653_v62  ;;  %v1169_v2 = vsub.f32 0.0, %v1049_v59  ;;  %2666 = vpow2.f32 %v1226_v55 }
 0x18c   : > { %v2657_v3 = vpop.eup %2656  ;;  %2668 = vrcp.f32 %v1515_v63  ;;  %1689 = vst [vmem:[%s2866_s18 + $0x1a8] sm:$0xff] %v2655_v1  ;;  %v1338_v4 = vmul.f32 1.442695, %v1139_v0 }
 0x18d   : > { %v2659_v5 = vpop.eup %2658  ;;  %v1486_v6 = vadd.f32 1.0, %v2657_v3  ;;  %2670 = vpow2.f32 %v1282_v61  ;;  %v1398_v11 = vmul.f32 1.442695, %v1169_v2 }
 0x18e   : > { %v2661_v7 = vpop.eup %2660  ;;  %v1516_v8 = vadd.f32 1.0, %v2659_v5  ;;  %2672 = vpow2.f32 %v1338_v4 }
 0x18f   : > { %v2663_v9 = vpop.eup %2662  ;;  %2674 = vrcp.f32 %v1486_v6  ;;  %v1430_v10 = vadd.f32 1.0, %v2661_v7  ;;  %v976_v42 = vpop.f32.mrf.mxu2 }
 0x190   : > { %v1051_v13 = vpop.f32.mrf.mxu3  ;;  %v2665_v14 = vpop.eup %2664  ;;  %2676 = vrcp.f32 %v1516_v8  ;;  %v1458_v15 = vadd.f32 1.0, %v2663_v9  ;;  %v977_v16 = vadd.f32 %v3081_v12, %v976_v42 }
 0x191   : > { %v1052_v17 = vadd.f32 %v3081_v12, %v1051_v13  ;;  %v2667_v18 = vpop.eup %2666  ;;  %1717 = vst [vmem:[%s2866_s18 + $0x288] sm:$0xff] %v2665_v14  ;;  %2678 = vrcp.f32 %v1430_v10 }
 0x192   : > { %v2669_v19 = vpop.eup %2668  ;;  %2680 = vrcp.f32 %v1458_v15  ;;  %v1431_v20 = vadd.f32 1.0, %v2667_v18  ;;  %v1140_v21 = vsub.f32 0.0, %v977_v16 }
 0x193   : > { %v1170_v22 = vsub.f32 0.0, %v1052_v17  ;;  %v2671_v23 = vpop.eup %2670  ;;  %1747 = vst [vmem:[%s2866_s18 + $0x378] sm:$0xff] %v2669_v19  ;;  %2682 = vpow2.f32 %v1398_v11 }
 0x194   : > { %v2673_v24 = vpop.eup %2672  ;;  %2684 = vrcp.f32 %v1431_v20  ;;  %v1459_v25 = vadd.f32 1.0, %v2671_v23  ;;  %v1340_v26 = vmul.f32 1.442695, %v1140_v21 }
 0x195   : > { %v2675_v27 = vpop.eup %2674  ;;  %v1487_v28 = vadd.f32 1.0, %v2673_v24  ;;  %v1400_v29 = vmul.f32 1.442695, %v1170_v22 }
 0x196   : > { %v2677_v30 = vpop.eup %2676  ;;  %1718 = vst [vmem:[%s2866_s18 + $0x290] sm:$0xff] %v2675_v27  ;;  %2686 = vrcp.f32 %v1459_v25 }
 0x197   : > { %v2679_v31 = vpop.eup %2678  ;;  %1748 = vst [vmem:[%s2866_s18 + $0x380] sm:$0xff] %v2677_v30  ;;  %2688 = vrcp.f32 %v1487_v28  ;;  %v978_v32 = vpop.f32.mrf.mxu2 }
 0x198   : > { %v1053_v33 = vpop.f32.mrf.mxu3  ;;  %v2681_v34 = vpop.eup %2680  ;;  %1662 = vst [vmem:[%s2866_s18 + $0xd0] sm:$0xff] %v2679_v31  ;;  %2690 = vpow2.f32 %v1340_v26  ;;  %v979_v35 = vadd.f32 %v3081_v12, %v978_v32 }
 0x199   : > { %v1054_v36 = vadd.f32 %v3081_v12, %v1053_v33  ;;  %v2683_v37 = vpop.eup %2682  ;;  %1690 = vst [vmem:[%s2866_s18 + $0x1b0] sm:$0xff] %v2681_v34  ;;  %2692 = vpow2.f32 %v1400_v29 }
 0x19a   : > { %v2685_v38 = vpop.eup %2684  ;;  %v1517_v39 = vadd.f32 1.0, %v2683_v37  ;;  %v1141_v40 = vsub.f32 0.0, %v979_v35 }
 0x19b   : > { %v1171_v41 = vsub.f32 0.0, %v1054_v36  ;;  %1663 = vst [vmem:[%s2866_s18 + $0xd8] sm:$0xff] %v2685_v38 }
 0x19c   : > { %v2687_v43 = vpop.eup %2686  ;;  %2694 = vrcp.f32 %v1517_v39  ;;  %v1342_v44 = vmul.f32 1.442695, %v1141_v40 }
 0x19d   : > { %v1402_v45 = vmul.f32 1.442695, %v1171_v41  ;;  %v2689_v46 = vpop.eup %2688  ;;  %1691 = vst [vmem:[%s2866_s18 + $0x1b8] sm:$0xff] %v2687_v43 }
 0x19e   : > { %v2691_v47 = vpop.eup %2690  ;;  %1719 = vst [vmem:[%s2866_s18 + $0x298] sm:$0xff] %v2689_v46  ;;  %2696 = vpow2.f32 %v1342_v44 }
 0x19f   : > { %v2693_v12 = vpop.eup %2692  ;;  %v1488_v48 = vadd.f32 1.0, %v2691_v47  ;;  %2698 = vpow2.f32 %v1402_v45 }
 0x1a0   : > { %v1518_v49 = vadd.f32 1.0, %v2693_v12 }
 0x1a1   : > { %2700 = vrcp.f32 %v1488_v48 }
 0x1a2   : > { %v2695_v50 = vpop.eup %2694  ;;  %2702 = vrcp.f32 %v1518_v49 }
 0x1a3   : > { %1749 = vst [vmem:[%s2866_s18 + $0x388] sm:$0xff] %v2695_v50 }
 0x1a4   : > { %v2697_v51 = vpop.eup %2696 }
 0x1a5   : > { %v2699_v52 = vpop.eup %2698  ;;  %v1489_v53 = vadd.f32 1.0, %v2697_v51 }
 0x1a6   : > { %v1519_v54 = vadd.f32 1.0, %v2699_v52 }
 0x1a7   : > { %v2701_v55 = vpop.eup %2700  ;;  %2704 = vrcp.f32 %v1489_v53 }
 0x1a8   : > { %v2703_v56 = vpop.eup %2702  ;;  %1720 = vst [vmem:[%s2866_s18 + $0x2a0] sm:$0xff] %v2701_v55  ;;  %2706 = vrcp.f32 %v1519_v54 }
 0x1a9   : > { %1750 = vst [vmem:[%s2866_s18 + $0x390] sm:$0xff] %v2703_v56 }
 0x1ad   : > { %v2705_v57 = vpop.eup %2704 }
 0x1ae   : > { %v2707_v58 = vpop.eup %2706  ;;  %1721 = vst [vmem:[%s2866_s18 + $0x2a8] sm:$0xff] %v2705_v57 }
 0x1af   : > { %1751 = vst [vmem:[%s2866_s18 + $0x398] sm:$0xff] %v2707_v58 }
 0x1b0 PF: > { %s13_s14 = sadd.s32 1, %s2732_s14   ;;  %s3131_s12 = smov %s2728_s13 }
 0x1b1   : > { %p10_p5 = scmp.ge.s32.totalorder %s13_s14, 6   ;;  %s3132_s13 = smov %s3134_s15 }
 0x1b3   :  { %12 = sbr.rel (!%p10_p5) target bundleno = 2 (0x2), region = 68 }

</bundles_post_ra>
